<compile_context>
chip_gen: v7x
topology: tpu7x:2x2x1
jax: 0.10.0
libtpu: 0.0.40
codegen_flags: <defaults>
</compile_context>

<pallas_src>
import functools

import jax
import jax.numpy as jnp
from jax.experimental import pallas as pl
from jax.experimental.pallas import tpu as pltpu

_LANE = 512            # lane-dense last dim (multiple of 128)
_MAX_BLOCK_ROWS = 1024  # 1024x512 f32 = 2 MiB/block; 4x buffers ~ 8 MiB VMEM
_SUBLANE_MULT = 32      # multiple of 8/16/32 -> aligned for f32/bf16/int8
_MIN_ELEMS_FOR_KERNEL = 32768  # below this, XLA's fused elementwise wins


def _sine_kernel(x_ref, o_ref, *, w0):
    # Elementwise: VPU multiply + EUP sin over the whole VMEM tile.
    # Compute in f32 (v5e EUP is f32-only), cast back on the store.
    xf = x_ref[...].astype(jnp.float32)
    o_ref[...] = jnp.sin(w0 * xf).astype(o_ref.dtype)


def sine_pallas(x: jax.Array, w0: float = 1.0,
                *, min_elems_for_kernel: int = _MIN_ELEMS_FOR_KERNEL) -> jax.Array:
    """Sine activation y = sin(w0 * x) via a Pallas TPU kernel."""
    orig_shape = x.shape
    dtype = x.dtype
    n = x.size

    if n == 0:
        return x
    if n < min_elems_for_kernel:
        # Launch/dispatch overhead dominates for tiny tensors.
        return jnp.sin(w0 * x)

    # Flatten to a lane-dense (rows, 512) slab, padding so blocks divide evenly.
    flat = x.reshape(-1)
    rows = (n + _LANE - 1) // _LANE
    tr = min(_MAX_BLOCK_ROWS,
             ((rows + _SUBLANE_MULT - 1) // _SUBLANE_MULT) * _SUBLANE_MULT)
    padded_rows = ((rows + tr - 1) // tr) * tr
    padded_n = padded_rows * _LANE
    if padded_n != n:
        flat = jnp.pad(flat, (0, padded_n - n))
    x2 = flat.reshape(padded_rows, _LANE)

    grid = (padded_rows // tr,)

    # NOTE: input_output_aliases={0: 0} would let XLA reuse the input buffer
    # in place; left off here since the wrapper's padded view may alias the
    # caller's array.
    out = pl.pallas_call(
        functools.partial(_sine_kernel, w0=float(w0)),
        out_shape=jax.ShapeDtypeStruct((padded_rows, _LANE), dtype),
        grid_spec=pltpu.PrefetchScalarGridSpec(
            num_scalar_prefetch=0,
            grid=grid,
            in_specs=[pl.BlockSpec((tr, _LANE), lambda i: (i, 0))],
            out_specs=pl.BlockSpec((tr, _LANE), lambda i: (i, 0)),
        ),
        compiler_params=pltpu.CompilerParams(
            dimension_semantics=("parallel",),
        ),
    )(x2)

    return out.reshape(-1)[:n].reshape(orig_shape)


if __name__ == "__main__":
    key = jax.random.PRNGKey(0)
    k1, k2 = jax.random.split(key)

    # Shape consistent with SIREN usage (batch, n_points, features); large
    # enough to exercise the Pallas path (65536 elements >= threshold).
    w0 = 30.0
    x = jax.random.normal(k1, (2, 256, 128), dtype=jnp.float32)
    y = jax.block_until_ready(sine_pallas(x, w0=w0))
    ref = jnp.sin(w0 * x)
    assert y.shape == x.shape and y.dtype == x.dtype
    assert jnp.allclose(y, ref, atol=1e-4, rtol=1e-4), "mismatch vs reference sin (kernel path)"

    # Tiny tensor takes the fallback path (overhead-dominated for pallas_call).
    x_small = jax.random.normal(k2, (2, 8, 32), dtype=jnp.float32)
    y_small = jax.block_until_ready(sine_pallas(x_small, w0=1.0))
    assert jnp.allclose(y_small, jnp.sin(x_small), atol=1e-5, rtol=1e-5), \
        "mismatch vs reference sin (fallback path)"

    print("KERNEL_OK")
</pallas_src>

<mosaic_0001>
module attributes {stable_mosaic.version = 11 : i64} {
  func.func @_sine_kernel(%arg0: i32, %arg1: memref<128x512xf32, #tpu.memory_space<vmem>>, %arg2: memref<128x512xf32, #tpu.memory_space<vmem>>) attributes {dimension_semantics = [#tpu.dimension_semantics<parallel>], iteration_bounds = array<i64: 1>, scalar_prefetch = 0 : i64, scratch_operands = 0 : i64, tpu.core_type = #tpu.core_type<tc>, window_params = [{transform_indices = @transform_0, window_bounds = array<i64: 128, 512>}, {transform_indices = @transform_1, window_bounds = array<i64: 128, 512>}]} {
    %c0 = arith.constant 0 : index
    %c0_0 = arith.constant 0 : index
    %0 = vector.load %arg1[%c0, %c0_0] : memref<128x512xf32, #tpu.memory_space<vmem>>, vector<128x512xf32>
    %cst = arith.constant 3.000000e+01 : f32
    %1 = vector.broadcast %cst : f32 to vector<128x512xf32>
    %2 = arith.mulf %1, %0 : vector<128x512xf32>
    %3 = math.sin %2 : vector<128x512xf32>
    %c0_1 = arith.constant 0 : index
    %c0_2 = arith.constant 0 : index
    %4 = vector.load %arg2[%c0_1, %c0_2] : memref<128x512xf32, #tpu.memory_space<vmem>>, vector<128x512xf32>
    tpu.vector_store %arg2[%c0_1, %c0_2], %3 {strides = array<i32>} : memref<128x512xf32, #tpu.memory_space<vmem>>, vector<128x512xf32>,
    return
  }
  func.func @transform_0(%arg0: i32) -> (i32, i32) {
    %c0_i32 = arith.constant 0 : i32
    %c0_i32_0 = arith.constant 0 : i32
    return %arg0, %c0_i32 : i32, i32
  }
  func.func @transform_1(%arg0: i32) -> (i32, i32) {
    %c0_i32 = arith.constant 0 : i32
    %c0_i32_0 = arith.constant 0 : i32
    return %arg0, %c0_i32 : i32, i32
  }
}

</mosaic_0001>

<bundles_post_ra>
// kernel: tpu_custom_call.1
= control target key start
LH: loop header
LB: loop body
LE: loop exit
PB: predicated region body
PF: predicated region fallthrough
CT: control target
= control target key end

     0   :  { %6 = vsyncpa [#allocation3], 0  ;;  %s13435_s0 = inlined_call_operand.hbm [shape: f32[128,512], index: 0, kind: input, shape index: {}]   ;;  %s13436_s1 = inlined_call_operand.hbm [shape: f32[128,512], index: 1, kind: output, shape index: {}]  }
   0x1   :  { %7 = vsyncpa [#allocation4], 0  ;;  %s7714_s6 = smov [#allocation2]   ;;  %s7666_s10 = scalar_lea.hbm %s13435_s0, 8192 }
   0x2   :  { %s13_s7 = sshll.u32 %s7714_s6, 4  ;;  %p7667_p0 = scmp.ne.s32.totalorder %s13435_s0, %s7666_s10  ;;  %s14_s7 = int_to_ptr.vmem [resolvable:$true] %s13_s7 }
   0x3   :  { %p7670_p1 = scmp.lt.u32.totalorder %s7666_s10, %s13435_s0 }
   0x5   :  { %p7672_p2 = pnand %p7670_p1, %p7667_p0 }
   0x7   :  { %7675 = shalt.err (!%p7672_p2)
}
   0x8   :  { %s7676_s15 = scalar_lea.vmem %s14_s7, 8192  ;;  %p7681_p4 = scmp.lt.s32.totalorder %s14_s7, %s14_s7 }
   0x9   :  { %p7677_p3 = scmp.ne.s32.totalorder %s14_s7, %s7676_s15  ;;  %p7682_p5 = scmp.lt.s32.totalorder %s7676_s15, %s7676_s15 }
   0xb   :  { %p7683_p6 = por %p7682_p5, %p7681_p4 }
   0xd   :  { %p7684_p7 = pnand %p7683_p6, %p7677_p3 }
   0xf   :  { %7687 = shalt.err (!%p7684_p7)
}
  0x10   :  { %s7715_s16 = smov 512   ;;  %s7716_s17 = smov 32  }
  0x11   :  { %19 = dma.hbm_to_vmem [thread:$0]  %s13435_s0, 8192, %s14_s7, [#allocation3], %s7715_s16, %s7715_s16, %s7716_s17  }
  0x12   :  { %7710 = dma.done.wait [#allocation3], 8192  }
  0x13   :  { %7711 = vsyncadd [#allocation3], 4294959104  ;;  %v23_v0 = vld [vmem:[#allocation2] sm:$0xff]  ;;  %v24_v1 = vld [vmem:[#allocation2 + $0x8] sm:$0xff]  ;;  %v7717_v36 = vmov 683565275  }
  0x14   :  { %v25_v2 = vld [vmem:[#allocation2 + $0x10] sm:$0xff]  ;;  %v7749_v3 = vmul.f32 30.0, %v23_v0  ;;  %v7751_v4 = vmul.f32 30.0, %v24_v1  ;;  %v26_v18 = vld [vmem:[#allocation2 + $0x18] sm:$0xff]  ;;  %v7718_v38 = vmov 2475754826  }
  0x15   :  { %v7753_v5 = vmul.f32 30.0, %v25_v2  ;;  %v7765_v25 = vmul.f32 30.0, %v26_v18  ;;  %v7719_v40 = vmov 2131351028   ;;  %v7720_v42 = vmov 2102212464  }
  0x16   :  { %v151_v6 = vand.u32 2147483647, %v7749_v3  ;;  %v154_v7 = vand.u32 2139095040, %v7749_v3  ;;  %v255_v8 = vand.u32 2147483647, %v7751_v4  ;;  %v258_v9 = vand.u32 2139095040, %v7751_v4 }
  0x17   :  { %v362_v14 = vand.u32 2139095040, %v7753_v5  ;;  %v359_v23 = vand.u32 2147483647, %v7753_v5  ;;  %v7721_v44 = vmov 920167782   ;;  %vm153_vm12 = vcmp.lt.s32.totalorder %v7749_v3, 0 }
  0x18   :  { %v155_v10 = vshrl.u32 %v154_v7, 23  ;;  %v158_v11 = vand.u32 8388607, %v151_v6  ;;  %v259_v12 = vshrl.u32 %v258_v9, 23  ;;  %v262_v13 = vand.u32 8388607, %v255_v8 }
  0x19   :  { %v363_v17 = vshrl.u32 %v362_v14, 23  ;;  %v7773_v33 = vand.u32 8388607, %v359_v23  ;;  %v7722_v52 = vmov 1326507024   ;;  %s7723_s0 = smov [#allocation5]  }
  0x1a   :  { %v6888_v15 = vadd.s32 4294967169, %v155_v10  ;;  %v6892_v16 = vadd.s32 4294967169, %v259_v12  ;;  %v159_v19 = vor.u32 8388608, %v158_v11  ;;  %v263_v21 = vor.u32 8388608, %v262_v13  ;;  %s6876_s20 = sshll.u32 %s7723_s0, 4  ;;  %s6877_s20 = int_to_ptr.vmem [resolvable:$true] %s6876_s20 }
  0x1b   :  { %v6896_v24 = vadd.s32 4294967169, %v363_v17  ;;  %vm7862_vm14 = vcmp.le.f32.partialorder %v151_v6, 0.7853982  ;;  %s7688_s21 = scalar_lea.vmem %s6877_s20, 8192  ;;  %p7693_p9 = scmp.lt.s32.totalorder %s6877_s20, %s6877_s20 }
  0x1c   :  { %v161_v20 = vadd.s32 1, %v6888_v15  ;;  %v265_v22 = vadd.s32 1, %v6892_v16  ;;  %v7767_v29 = vshll.u32 %v159_v19, 8  ;;  %v7769_v32 = vshll.u32 %v263_v21, 8  ;;  %p7689_p8 = scmp.ne.s32.totalorder %s6877_s20, %s7688_s21  ;;  %p7694_p10 = scmp.lt.s32.totalorder %s7688_s21, %s7688_s21 }
  0x1d   :  { %v7775_v34 = vadd.s32 1, %v6896_v24 }
  0x1e   :  { %vm162_vm0 = vcmp.gt.s32.totalorder %v161_v20, 0  ;;  %vm266_vm1 = vcmp.gt.s32.totalorder %v265_v22, 0  ;;  %p7695_p11 = por %p7694_p10, %p7693_p9 }
  0x1f   :  { %v163_v26 = vsel %vm162_vm0, %v161_v20, 0  ;;  %v267_v30 = vsel %vm266_vm1, %v265_v22, 0  ;;  %vm370_vm6 = vcmp.gt.s32.totalorder %v7775_v34, 0 }
  0x20   :  { %v164_v27 = vshrl.u32 %v163_v26, 5  ;;  %v165_v28 = vand.u32 31, %v163_v26  ;;  %v269_v31 = vand.u32 31, %v267_v30  ;;  %v7782_v46 = vshrl.u32 %v267_v30, 5  ;;  %p7696_p12 = pnand %p7695_p11, %p7689_p8 }
  0x22   :  { %v166_v35 = vsub.s32 32, %v165_v28  ;;  %v168_v37 = vshll.u32 %v7717_v36, %v165_v28  ;;  %v171_v39 = vshll.u32 %v7718_v38, %v165_v28  ;;  %v174_v41 = vshll.u32 %v7719_v40, %v165_v28 }
  0x23   :  { %v177_v43 = vshll.u32 %v7720_v42, %v165_v28  ;;  %v180_v45 = vshll.u32 %v7721_v44, %v165_v28  ;;  %vm183_vm2 = vcmp.lt.s32.totalorder %v164_v27, 1  ;;  %vm184_vm3 = vcmp.lt.s32.totalorder %v164_v27, 2 }
  0x24   :  { %v167_v47 = vshrl.u32 %v7717_v36, %v166_v35  ;;  %v169_v48 = vshrl.u32 %v7718_v38, %v166_v35  ;;  %v172_v49 = vshrl.u32 %v7719_v40, %v166_v35  ;;  %v175_v50 = vshrl.u32 %v7720_v42, %v166_v35 }
  0x25   :  { %v178_v51 = vshrl.u32 %v7721_v44, %v166_v35  ;;  %v181_v53 = vshrl.u32 %v7722_v52, %v166_v35  ;;  %vm186_vm4 = vcmp.lt.s32.totalorder %v164_v27, 4  ;;  %v270_v57 = vsub.s32 32, %v269_v31 }
  0x26   :  { %v170_v54 = vor.u32 %v169_v48, %v168_v37  ;;  %v173_v55 = vor.u32 %v172_v49, %v171_v39  ;;  %v176_v56 = vor.u32 %v175_v50, %v174_v41  ;;  %vm185_vm5 = vcmp.lt.s32.totalorder %v164_v27, 3 }
  0x27   :  { %v179_v58 = vor.u32 %v178_v51, %v177_v43  ;;  %v182_v59 = vor.u32 %v181_v53, %v180_v45  ;;  %v272_v60 = vshll.u32 %v7717_v36, %v269_v31  ;;  %v275_v9 = vshll.u32 %v7718_v38, %v269_v31 }
  0x28   :  { %v187_v61 = vsel %vm183_vm2, %v167_v47, %v170_v54  ;;  %v188_v62 = vsel %vm186_vm4, %v176_v56, 2102212464  ;;  %v191_v63 = vsel %vm183_vm2, %v170_v54, %v173_v55  ;;  %v195_v0 = vsel %vm183_vm2, %v173_v55, %v176_v56 }
  0x29   :  { %v189_v1 = vsel %vm185_vm5, %v173_v55, %v188_v62  ;;  %v192_v2 = vsel %vm186_vm4, %v179_v58, 920167782  ;;  %v196_v7 = vsel %vm186_vm4, %v182_v59, 1326507024  ;;  %v271_v12 = vshrl.u32 %v7717_v36, %v270_v57  ;;  %v28_v62 = vld [vmem:[#allocation2 + $0x28] sm:$0xff] }
  0x2a   :  { %v193_v10 = vsel %vm185_vm5, %v176_v56, %v192_v2  ;;  %v197_v11 = vsel %vm185_vm5, %v179_v58, %v196_v7  ;;  %v273_v13 = vshrl.u32 %v7718_v38, %v270_v57  ;;  %v190_v14 = vsel %vm184_vm3, %v187_v61, %v189_v1  ;;  %v27_v61 = vld [vmem:[#allocation2 + $0x20] sm:$0xff] }
  0x2b   :  { %v194_v15 = vsel %vm184_vm3, %v191_v63, %v193_v10  ;;  %v198_v16 = vsel %vm184_vm3, %v195_v0, %v197_v11  ;;  %v276_v17 = vshrl.u32 %v7719_v40, %v270_v57  ;;  %v278_v26 = vshll.u32 %v7719_v40, %v269_v31  ;;  %v29_v63 = vld [vmem:[#allocation2 + $0x30] sm:$0xff] }
  0x2c   :  { %v7803_v18 = vmul.u32.u64.low %v7767_v29, %v198_v16  ;;  %v7804_v19 = vmul.u32.u64.high %v7767_v29, %v198_v16, %v7803_v18  ;;  %v7807_v20 = vmul.u32.u64.low %v7767_v29, %v194_v15  ;;  %v7808_v21 = vmul.u32.u64.high %v7767_v29, %v194_v15, %v7807_v20 }
  0x2d   :  { %v274_v22 = vor.u32 %v273_v13, %v272_v60  ;;  %v277_v24 = vor.u32 %v276_v17, %v275_v9  ;;  %v279_v28 = vshrl.u32 %v7720_v42, %v270_v57  ;;  %v281_v27 = vshll.u32 %v7720_v42, %v269_v31 }
  0x2e   :  { %v282_v30 = vshrl.u32 %v7721_v44, %v270_v57  ;;  %v284_v35 = vshll.u32 %v7721_v44, %v269_v31  ;;  %v285_v37 = vshrl.u32 %v7722_v52, %v270_v57  ;;  %v206_v39 = vmul.u32 %v7767_v29, %v190_v14 }
  0x2f   :  { %v280_v41 = vor.u32 %v279_v28, %v278_v26  ;;  %vm287_vm7 = vcmp.lt.s32.totalorder %v7782_v46, 1  ;;  %vm288_vm8 = vcmp.lt.s32.totalorder %v7782_v46, 2  ;;  %vm208_vm9 = vc.u32 %v7804_v19, %v7807_v20 }
  0x30   :  { %v209_v43 = vadd.s32 1, %v7808_v21  ;;  %v283_v45 = vor.u32 %v282_v30, %v281_v27  ;;  %vm289_vm10 = vcmp.lt.s32.totalorder %v7782_v46, 3  ;;  %v286_v47 = vor.u32 %v285_v37, %v284_v35 }
  0x31   :  { %vm290_vm11 = vcmp.lt.s32.totalorder %v7782_v46, 4  ;;  %v291_v31 = vsel %vm287_vm7, %v271_v12, %v274_v22  ;;  %v295_v48 = vsel %vm287_vm7, %v274_v22, %v277_v24  ;;  %v299_v51 = vsel %vm287_vm7, %v277_v24, %v280_v41 }
  0x32   :  { %v210_v29 = vsel %vm208_vm9, %v209_v43, %v7808_v21  ;;  %v292_v49 = vsel %vm290_vm11, %v280_v41, 2102212464  ;;  %v296_v50 = vsel %vm290_vm11, %v283_v45, 920167782  ;;  %v300_v56 = vsel %vm290_vm11, %v286_v47, 1326507024 }
  0x33   :  { %v211_v53 = vadd.s32 %v210_v29, %v206_v39  ;;  %v293_v54 = vsel %vm289_vm10, %v277_v24, %v292_v49  ;;  %v297_v55 = vsel %vm289_vm10, %v280_v41, %v296_v50  ;;  %v301_v59 = vsel %vm289_vm10, %v283_v45, %v300_v56 }
  0x34   :  { %v294_v57 = vsel %vm288_vm8, %v291_v31, %v293_v54  ;;  %v298_v58 = vsel %vm288_vm8, %v295_v48, %v297_v55  ;;  %v371_v60 = vsel %vm370_vm6, %v7775_v34, 0  ;;  %v302_v1 = vsel %vm288_vm8, %v299_v51, %v301_v59 }
  0x35   :  { %v212_v0 = vadd.s32 536870912, %v211_v53  ;;  %v7836_v2 = vmul.u32.u64.low %v7769_v32, %v298_v58  ;;  %v7837_v7 = vmul.u32.u64.high %v7769_v32, %v298_v58, %v7836_v2  ;;  %v367_v11 = vor.u32 8388608, %v7773_v33 }
  0x36   :  { %v7841_v9 = vmul.u32.u64.low %v7769_v32, %v302_v1  ;;  %v7842_v10 = vmul.u32.u64.high %v7769_v32, %v302_v1, %v7841_v9  ;;  %v466_v34 = vand.u32 2139095040, %v7765_v25  ;;  %v373_v13 = vand.u32 31, %v371_v60 }
  0x37   :  { %v213_v12 = vshrl.u32 %v212_v0, 30  ;;  %v7846_v14 = vmul.f32 30.0, %v27_v61  ;;  %v7848_v15 = vmul.f32 30.0, %v28_v62  ;;  %v7850_v46 = vmul.f32 30.0, %v29_v63 }
  0x38   :  { %v310_v16 = vmul.u32 %v7769_v32, %v294_v57  ;;  %v313_v18 = vadd.s32 1, %v7837_v7  ;;  %v374_v21 = vsub.s32 32, %v373_v13  ;;  %vm312_vm13 = vc.u32 %v7842_v10, %v7836_v2 }
  0x39   :  { %v214_v17 = vshll.u32 %v213_v12, 30  ;;  %v7857_v33 = vshll.u32 %v367_v11, 8  ;;  %v463_v22 = vand.u32 2147483647, %v7765_v25  ;;  %v467_v24 = vshrl.u32 %v466_v34, 23 }
  0x3a   :  { %v237_v28 = vsub.s32 4, %v213_v12  ;;  %v314_v27 = vsel %vm312_vm13, %v313_v18, %v7837_v7  ;;  %v372_v30 = vshrl.u32 %v371_v60, 5  ;;  %v376_v37 = vshll.u32 %v7717_v36, %v373_v13 }
  0x3b   :  { %v7866_v32 = vsub.s32 %v211_v53, %v214_v17  ;;  %v315_v35 = vadd.s32 %v314_v27, %v310_v16  ;;  %v377_v39 = vshrl.u32 %v7718_v38, %v374_v21  ;;  %v379_v41 = vshll.u32 %v7718_v38, %v373_v13 }
  0x3c   :  { %v380_v6 = vshrl.u32 %v7719_v40, %v374_v21  ;;  %v382_v45 = vshll.u32 %v7719_v40, %v373_v13  ;;  %v383_v47 = vshrl.u32 %v7720_v42, %v374_v21  ;;  %v207_v31 = vadd.s32 %v7807_v20, %v7804_v19 }
  0x3d   :  { %v217_v43 = vsub.s32 0, %v7866_v32  ;;  %v316_v48 = vadd.s32 536870912, %v315_v35  ;;  %v385_v29 = vshll.u32 %v7720_v42, %v373_v13  ;;  %v6900_v49 = vadd.s32 4294967169, %v467_v24 }
  0x3e   :  { %v238_v51 = vsel %vm153_vm12, %v237_v28, %v213_v12  ;;  %v386_v53 = vshrl.u32 %v7721_v44, %v374_v21  ;;  %vm394_vm15 = vcmp.lt.s32.totalorder %v372_v30, 4  ;;  %v375_v55 = vshrl.u32 %v7717_v36, %v374_v21 }
  0x3f   :  { %v6889_v50 = vmin.u32 %v217_v43, %v7866_v32  ;;  %v7883_v54 = vshrl.u32 %v316_v48, 30  ;;  %v388_v56 = vshll.u32 %v7721_v44, %v373_v13  ;;  %v389_v19 = vshrl.u32 %v7722_v52, %v374_v21 }
  0x40   :  { %v378_v57 = vor.u32 %v377_v39, %v376_v37  ;;  %v381_v58 = vor.u32 %v380_v6, %v379_v41  ;;  %v384_v59 = vor.u32 %v383_v47, %v382_v45  ;;  %v387_v61 = vor.u32 %v386_v53, %v385_v29 }
  0x41   :  { %v219_v20 = vclz %v6889_v50  ;;  %v318_v60 = vshll.u32 %v7883_v54, 30  ;;  %vm391_vm0 = vcmp.lt.s32.totalorder %v372_v30, 1  ;;  %vm393_vm1 = vcmp.lt.s32.totalorder %v372_v30, 3 }
  0x42   :  { %v390_v63 = vor.u32 %v389_v19, %v388_v56  ;;  %v396_v0 = vsel %vm394_vm15, %v384_v59, 2102212464  ;;  %v473_v1 = vadd.s32 1, %v6900_v49  ;;  %v240_v7 = vsel %vm7862_vm14, 0, %v238_v51 }
  0x43   :  { %v6890_v62 = vadd.s32 4294967294, %v219_v20  ;;  %v7892_v9 = vsub.s32 %v315_v35, %v318_v60  ;;  %vm392_vm2 = vcmp.lt.s32.totalorder %v372_v30, 2  ;;  %v400_v11 = vsel %vm394_vm15, %v387_v61, 920167782 }
  0x44   :  { %v395_v34 = vsel %vm391_vm0, %v375_v55, %v378_v57  ;;  %v399_v12 = vsel %vm391_vm0, %v378_v57, %v381_v58  ;;  %v401_v13 = vsel %vm393_vm1, %v384_v59, %v400_v11  ;;  %v397_v18 = vsel %vm393_vm1, %v381_v58, %v396_v0 }
  0x45   :  { %vm6891_vm3 = vcmp.lt.s32.totalorder %v6890_v62, 0  ;;  %v321_v17 = vsub.s32 0, %v7892_v9  ;;  %v403_v21 = vsel %vm391_vm0, %v381_v58, %v384_v59  ;;  %v404_v35 = vsel %vm394_vm15, %v390_v63, 1326507024 }
  0x46   :  { %v222_v16 = vsel %vm6891_vm3, 0, %v6890_v62  ;;  %vm257_vm4 = vcmp.lt.s32.totalorder %v7751_v4, 0  ;;  %v402_v39 = vsel %vm392_vm2, %v399_v12, %v401_v13  ;;  %v405_v41 = vsel %vm393_vm1, %v387_v61, %v404_v35 }
  0x47   :  { %v223_v24 = vsub.s32 32, %v222_v16  ;;  %v224_v28 = vshll.u32 %v7866_v32, %v222_v16  ;;  %v227_v27 = vsub.s32 4294967266, %v222_v16  ;;  %v6893_v37 = vmin.u32 %v321_v17, %v7892_v9 }
  0x48   :  { %v406_v45 = vsel %vm392_vm2, %v403_v21, %v405_v41  ;;  %vm474_vm5 = vcmp.gt.s32.totalorder %v473_v1, 0  ;;  %v244_v47 = vadd.s32 3, %v240_v7  ;;  %v398_v32 = vsel %vm392_vm2, %v395_v34, %v397_v18 }
  0x49   :  { %v225_v43 = vshrl.u32 %v207_v31, %v223_v24  ;;  %v228_v6 = vadd.s32 127, %v227_v27  ;;  %v323_v48 = vclz %v6893_v37  ;;  %v7911_v29 = vand.u32 8388607, %v463_v22 }
  0x4a   :  { %v7914_v51 = vmul.u32.u64.low %v7857_v33, %v406_v45  ;;  %v7915_v53 = vmul.u32.u64.high %v7857_v33, %v406_v45, %v7914_v51  ;;  %v7918_v31 = vmul.u32.u64.low %v7857_v33, %v402_v39  ;;  %v7919_v56 = vmul.u32.u64.high %v7857_v33, %v402_v39, %v7918_v31 }
  0x4b   :  { %v226_v49 = vor.u32 %v225_v43, %v224_v28  ;;  %v229_v50 = vshll.u32 %v228_v6, 23  ;;  %v6894_v55 = vadd.s32 4294967294, %v323_v48  ;;  %v475_v19 = vsel %vm474_vm5, %v473_v1, 0 }
  0x4c   :  { %v341_v57 = vsub.s32 4, %v7883_v54  ;;  %v477_v58 = vand.u32 31, %v475_v19  ;;  %v7923_v59 = vand.u32 3, %v244_v47  ;;  %v311_v60 = vadd.s32 %v7836_v2, %v7842_v10 }
  0x4d   :  { %v230_v20 = vor.u32 4788187, %v229_v50  ;;  %v233_v30 = vcvt.s32.f32 %v226_v49  ;;  %vm6895_vm6 = vcmp.lt.s32.totalorder %v6894_v55, 0  ;;  %v471_v61 = vor.u32 8388608, %v7911_v29 }
  0x4e   :  { %v326_v63 = vsel %vm6895_vm6, 0, %v6894_v55  ;;  %v414_v0 = vmul.u32 %v7857_v33, %v398_v32  ;;  %vm416_vm7 = vc.u32 %v7915_v53, %v7918_v31  ;;  %vm7933_vm8 = vcmp.le.f32.partialorder %v255_v8, 0.7853982 }
  0x4f   :  { %v231_v62 = vand.u32 2147483647, %v230_v20  ;;  %v327_v7 = vsub.s32 32, %v326_v63  ;;  %v328_v11 = vshll.u32 %v7892_v9, %v326_v63  ;;  %v331_v2 = vsub.s32 4294967266, %v326_v63 }
  0x50   :  { %v417_v10 = vadd.s32 1, %v7919_v56  ;;  %v342_v33 = vsel %vm257_vm4, %v341_v57, %v7883_v54  ;;  %v7942_v12 = vshrl.u32 %v475_v19, 5  ;;  %v478_v13 = vsub.s32 32, %v477_v58 }
  0x51   :  { %v234_v34 = vmul.f32 %v233_v30, %v231_v62  ;;  %v329_v16 = vshrl.u32 %v311_v60, %v327_v7  ;;  %v332_v17 = vadd.s32 127, %v331_v2  ;;  %v480_v18 = vshll.u32 %v7717_v36, %v477_v58 }
  0x52   :  { %v418_v8 = vsel %vm416_vm7, %v417_v10, %v7919_v56  ;;  %v481_v9 = vshrl.u32 %v7718_v38, %v478_v13  ;;  %v483_v28 = vshll.u32 %v7718_v38, %v477_v58  ;;  %v484_v37 = vshrl.u32 %v7719_v40, %v478_v13 }
  0x53   :  { %v235_v21 = vxor.u32 2147483648, %v234_v34  ;;  %v419_v24 = vadd.s32 %v418_v8, %v414_v0  ;;  %v330_v27 = vor.u32 %v329_v16, %v328_v11  ;;  %v333_v35 = vshll.u32 %v332_v17, 23 }
  0x54   :  { %v486_v54 = vshll.u32 %v7719_v40, %v477_v58  ;;  %v487_v43 = vshrl.u32 %v7720_v42, %v478_v13  ;;  %v489_v6 = vshll.u32 %v7720_v42, %v477_v58  ;;  %v482_v32 = vor.u32 %v481_v9, %v480_v18 }
  0x55   :  { %v236_v39 = vsel %vm153_vm12, %v235_v21, %v234_v34  ;;  %v420_v41 = vadd.s32 536870912, %v419_v24  ;;  %v334_v47 = vor.u32 4788187, %v333_v35  ;;  %v337_v48 = vcvt.s32.f32 %v330_v27 }
  0x56   :  { %v239_v45 = vsel %vm7862_vm14, %v7749_v3, %v236_v39  ;;  %v485_v49 = vor.u32 %v484_v37, %v483_v28  ;;  %v490_v50 = vshrl.u32 %v7721_v44, %v478_v13  ;;  %v492_v55 = vshll.u32 %v7721_v44, %v477_v58 }
  0x57   :  { %7410 = vcosq.f32 %v239_v45  ;;  %v7957_v29 = vshrl.u32 %v420_v41, 30  ;;  %v335_v51 = vand.u32 2147483647, %v334_v47  ;;  %v493_v56 = vshrl.u32 %v7722_v52, %v478_v13 }
  0x58   :  { %7412 = vsinq.f32 %v239_v45  ;;  %v344_v19 = vsel %vm7933_vm8, 0, %v342_v33  ;;  %v491_v20 = vor.u32 %v490_v50, %v489_v6  ;;  %vm495_vm9 = vcmp.lt.s32.totalorder %v7942_v12, 1 }
  0x59   :  { %v422_v26 = vshll.u32 %v7957_v29, 30  ;;  %vm247_vm10 = vcmp.eq.s32.totalorder %v7923_v59, 0  ;;  %v338_v30 = vmul.f32 %v337_v48, %v335_v51  ;;  %v479_v57 = vshrl.u32 %v7717_v36, %v478_v13 }
  0x5a   :  { %v488_v60 = vor.u32 %v487_v43, %v486_v54  ;;  %v7968_v62 = vshll.u32 %v471_v61, 8  ;;  %vm246_vm11 = vcmp.lt.s32.totalorder %v7923_v59, 2  ;;  %v494_v63 = vor.u32 %v493_v56, %v492_v55 }
  0x5b   :  { %v7971_v58 = vsub.s32 %v419_v24, %v422_v26  ;;  %vm497_vm12 = vcmp.lt.s32.totalorder %v7942_v12, 3  ;;  %vm498_vm13 = vcmp.lt.s32.totalorder %v7942_v12, 4  ;;  %vm243_vm14 = vweird.f32 %v7749_v3 }
  0x5c   :  { %v339_v0 = vxor.u32 2147483648, %v338_v30  ;;  %vm496_vm15 = vcmp.lt.s32.totalorder %v7942_v12, 2  ;;  %v500_v7 = vsel %vm498_vm13, %v488_v60, 2102212464  ;;  %v503_v61 = vsel %vm495_vm9, %v482_v32, %v485_v49 }
  0x5d   :  { %v348_v11 = vadd.s32 3, %v344_v19  ;;  %vm361_vm0 = vcmp.lt.s32.totalorder %v7753_v5, 0  ;;  %v425_v2 = vsub.s32 0, %v7971_v58  ;;  %v504_v10 = vsel %vm498_vm13, %v491_v20, 920167782 }
  0x5e   :  { %v570_v34 = vand.u32 2139095040, %v7846_v14  ;;  %v340_v33 = vsel %vm257_vm4, %v339_v0, %v338_v30  ;;  %v499_v13 = vsel %vm495_vm9, %v479_v57, %v482_v32  ;;  %v501_v16 = vsel %vm497_vm12, %v485_v49, %v500_v7 }
  0x5f   :  { %v505_v17 = vsel %vm497_vm12, %v488_v60, %v504_v10  ;;  %v343_v8 = vsel %vm7933_vm8, %v7751_v4, %v340_v33  ;;  %v6897_v18 = vmin.u32 %v425_v2, %v7971_v58  ;;  %v507_v24 = vsel %vm495_vm9, %v485_v49, %v488_v60 }
  0x60   :  { %v506_v21 = vsel %vm496_vm15, %v503_v61, %v505_v17  ;;  %7414 = vcosq.f32 %v343_v8  ;;  %v508_v9 = vsel %vm498_vm13, %v494_v63, 1326507024  ;;  %vm250_vm1 = vcmp.eq.s32.totalorder %v7923_v59, 2 }
  0x61   :  { %v8005_v28 = vmul.u32.u64.low %v7968_v62, %v506_v21  ;;  %v8006_v27 = vmul.u32.u64.high %v7968_v62, %v506_v21, %v8005_v28  ;;  %v7411_v35 = vpop.eup %7410  ;;  %7416 = vsinq.f32 %v343_v8  ;;  %v349_v1 = vand.u32 3, %v348_v11 }
  0x62   :  { %v427_v37 = vclz %v6897_v18  ;;  %v7413_v54 = vpop.eup %7412  ;;  %v251_v39 = vxor.u32 2147483648, %v7411_v35  ;;  %v445_v41 = vsub.s32 4, %v7957_v29  ;;  %v502_v43 = vsel %vm496_vm15, %v499_v13, %v501_v16 }
  0x63   :  { %v509_v6 = vsel %vm497_vm12, %v491_v20, %v508_v9  ;;  %v248_v45 = vxor.u32 2147483648, %v7413_v54  ;;  %v571_v32 = vshrl.u32 %v570_v34, 23  ;;  %v415_v50 = vadd.s32 %v7918_v31, %v7915_v53 }
  0x64   :  { %v6898_v47 = vadd.s32 4294967294, %v427_v37  ;;  %v510_v48 = vsel %vm496_vm15, %v507_v24, %v509_v6  ;;  %v252_v49 = vsel %vm250_vm1, %v251_v39, %v7413_v54  ;;  %v521_v19 = vadd.s32 1, %v8006_v27 }
  0x65   :  { %v8020_v51 = vmul.u32.u64.low %v7968_v62, %v510_v48  ;;  %v8021_v55 = vmul.u32.u64.high %v7968_v62, %v510_v48, %v8020_v51  ;;  %v249_v56 = vsel %vm247_vm10, %v7411_v35, %v248_v45  ;;  %v6904_v26 = vadd.s32 4294967169, %v571_v32 }
  0x66   :  { %vm6899_vm2 = vcmp.lt.s32.totalorder %v6898_v47, 0  ;;  %v253_v12 = vsel %vm246_vm11, %v249_v56, %v252_v49  ;;  %v446_v30 = vsel %vm361_vm0, %v445_v41, %v7957_v29  ;;  %v518_v53 = vmul.u32 %v7968_v62, %v502_v43 }
  0x67   :  { %v430_v20 = vsel %vm6899_vm2, 0, %v6898_v47  ;;  %v254_v31 = vsel %vm243_vm14, nan, %v253_v12  ;;  %vm8037_vm3 = vcmp.le.f32.partialorder %v359_v23, 0.7853982  ;;  %vm520_vm4 = vc.u32 %v8021_v55, %v8005_v28 }
  0x68   :  { %v431_v57 = vsub.s32 32, %v430_v20  ;;  %v432_v60 = vshll.u32 %v7971_v58, %v430_v20  ;;  %v435_v63 = vsub.s32 4294967266, %v430_v20  ;;  %v567_v59 = vand.u32 2147483647, %v7846_v14  ;;  %6807 = vst [vmem:[#allocation5] sm:$0xff] %v254_v31 }
  0x69   :  { %v577_v29 = vadd.s32 1, %v6904_v26  ;;  %vm351_vm5 = vcmp.eq.s32.totalorder %v349_v1, 0  ;;  %v522_v7 = vsel %vm520_vm4, %v521_v19, %v8006_v27  ;;  %vm354_vm6 = vcmp.eq.s32.totalorder %v349_v1, 2 }
  0x6a   :  { %v433_v3 = vshrl.u32 %v415_v50, %v431_v57  ;;  %v436_v62 = vadd.s32 127, %v435_v63  ;;  %v7415_v58 = vpop.eup %7414  ;;  %v448_v23 = vsel %vm8037_vm3, 0, %v446_v30  ;;  %v523_v61 = vadd.s32 %v522_v7, %v518_v53 }
  0x6b   :  { %vm578_vm7 = vcmp.gt.s32.totalorder %v577_v29, 0  ;;  %v7417_v11 = vpop.eup %7416  ;;  %v355_v2 = vxor.u32 2147483648, %v7415_v58  ;;  %vm350_vm8 = vcmp.lt.s32.totalorder %v349_v1, 2  ;;  %vm347_vm9 = vweird.f32 %v7751_v4 }
  0x6c   :  { %v434_v10 = vor.u32 %v433_v3, %v432_v60  ;;  %v437_v34 = vshll.u32 %v436_v62, 23  ;;  %v579_v33 = vsel %vm578_vm7, %v577_v29, 0  ;;  %v352_v13 = vxor.u32 2147483648, %v7417_v11 }
  0x6d   :  { %v524_v16 = vadd.s32 536870912, %v523_v61  ;;  %v581_v17 = vand.u32 31, %v579_v33  ;;  %v356_v8 = vsel %vm354_vm6, %v355_v2, %v7417_v11  ;;  %v452_v9 = vadd.s32 3, %v448_v23 }
  0x6e   :  { %v438_v18 = vor.u32 4788187, %v437_v34  ;;  %v441_v21 = vcvt.s32.f32 %v434_v10  ;;  %v353_v24 = vsel %vm351_vm5, %v7415_v58, %v352_v13  ;;  %v574_v39 = vand.u32 8388607, %v567_v59 }
  0x6f   :  { %v8049_v27 = vshrl.u32 %v524_v16, 30  ;;  %v582_v35 = vsub.s32 32, %v581_v17  ;;  %v357_v37 = vsel %vm350_vm8, %v353_v24, %v356_v8  ;;  %v584_v41 = vshll.u32 %v7717_v36, %v581_v17 }
  0x70   :  { %v439_v54 = vand.u32 2147483647, %v438_v18  ;;  %v358_v43 = vsel %vm347_vm9, nan, %v357_v37  ;;  %v587_v4 = vshll.u32 %v7718_v38, %v581_v17  ;;  %v590_v45 = vshll.u32 %v7719_v40, %v581_v17 }
  0x71   :  { %v526_v6 = vshll.u32 %v8049_v27, 30  ;;  %v585_v47 = vshrl.u32 %v7718_v38, %v582_v35  ;;  %v588_v48 = vshrl.u32 %v7719_v40, %v582_v35  ;;  %v591_v32 = vshrl.u32 %v7720_v42, %v582_v35  ;;  %6808 = vst [vmem:[#allocation5 + $0x8] sm:$0xff] %v358_v43 }
  0x72   :  { %v442_v1 = vmul.f32 %v441_v21, %v439_v54  ;;  %v580_v50 = vshrl.u32 %v579_v33, 5  ;;  %v593_v51 = vshll.u32 %v7720_v42, %v581_v17  ;;  %v594_v56 = vshrl.u32 %v7721_v44, %v582_v35 }
  0x73   :  { %v8060_v49 = vsub.s32 %v523_v61, %v526_v6  ;;  %v8064_v26 = vand.u32 3, %v452_v9  ;;  %v519_v12 = vadd.s32 %v8005_v28, %v8021_v55  ;;  %v575_v20 = vor.u32 8388608, %v574_v39 }
  0x74   :  { %v443_v19 = vxor.u32 2147483648, %v442_v1  ;;  %v583_v53 = vshrl.u32 %v7717_v36, %v582_v35  ;;  %v586_v31 = vor.u32 %v585_v47, %v584_v41  ;;  %v589_v57 = vor.u32 %v588_v48, %v587_v4 }
  0x75   :  { %v529_v30 = vsub.s32 0, %v8060_v49  ;;  %v592_v63 = vor.u32 %v591_v32, %v590_v45  ;;  %v596_v29 = vshll.u32 %v7721_v44, %v581_v17  ;;  %v597_v3 = vshrl.u32 %v7722_v52, %v582_v35 }
  0x76   :  { %v444_v60 = vsel %vm361_vm0, %v443_v19, %v442_v1  ;;  %v595_v55 = vor.u32 %v594_v56, %v593_v51  ;;  %vm599_vm10 = vcmp.lt.s32.totalorder %v580_v50, 1  ;;  %vm465_vm11 = vcmp.lt.s32.totalorder %v7765_v25, 0 }
  0x77   :  { %v447_v62 = vsel %vm8037_vm3, %v7753_v5, %v444_v60  ;;  %v6901_v28 = vmin.u32 %v529_v30, %v8060_v49  ;;  %v598_v7 = vor.u32 %v597_v3, %v596_v29  ;;  %vm602_vm12 = vcmp.lt.s32.totalorder %v580_v50, 4  ;;  %v30_v30 = vld [vmem:[#allocation2 + $0x38] sm:$0xff] }
  0x78   :  { %7418 = vcosq.f32 %v447_v62  ;;  %v674_v58 = vand.u32 2139095040, %v7848_v15  ;;  %vm601_vm13 = vcmp.lt.s32.totalorder %v580_v50, 3  ;;  %v615_v61 = vshll.u32 %v575_v20, 8 }
  0x79   :  { %7420 = vsinq.f32 %v447_v62  ;;  %v531_v23 = vclz %v6901_v28  ;;  %vm600_vm14 = vcmp.lt.s32.totalorder %v580_v50, 2  ;;  %v603_v11 = vsel %vm599_vm10, %v583_v53, %v586_v31 }
  0x7a   :  { %v604_v0 = vsel %vm602_vm12, %v592_v63, 2102212464  ;;  %v607_v2 = vsel %vm599_vm10, %v586_v31, %v589_v57  ;;  %vm8085_vm15 = vcmp.le.f32.partialorder %v463_v22, 0.7853982  ;;  %v608_v13 = vsel %vm602_vm12, %v595_v55, 920167782 }
  0x7b   :  { %v6902_v34 = vadd.s32 4294967294, %v531_v23  ;;  %v605_v33 = vsel %vm601_vm13, %v589_v57, %v604_v0  ;;  %v611_v16 = vsel %vm599_vm10, %v589_v57, %v592_v63  ;;  %v549_v17 = vsub.s32 4, %v8049_v27 }
  0x7c   :  { %v609_v8 = vsel %vm601_vm13, %v592_v63, %v608_v13  ;;  %v612_v18 = vsel %vm602_vm12, %v598_v7, 1326507024  ;;  %v675_v21 = vshrl.u32 %v674_v58, 23  ;;  %vm451_vm0 = vweird.f32 %v7753_v5 }
  0x7d   :  { %vm6903_vm1 = vcmp.lt.s32.totalorder %v6902_v34, 0  ;;  %v606_v22 = vsel %vm600_vm14, %v603_v11, %v605_v33  ;;  %v610_v24 = vsel %vm600_vm14, %v607_v2, %v609_v8  ;;  %v613_v9 = vsel %vm601_vm13, %v595_v55, %v612_v18 }
  0x7e   :  { %v534_v35 = vsel %vm6903_vm1, 0, %v6902_v34  ;;  %v614_v37 = vsel %vm600_vm14, %v611_v16, %v613_v9  ;;  %v8100_v54 = vmul.u32.u64.low %v615_v61, %v610_v24  ;;  %v8101_v39 = vmul.u32.u64.high %v615_v61, %v610_v24, %v8100_v54 }
  0x7f   :  { %v535_v41 = vsub.s32 32, %v534_v35  ;;  %v536_v43 = vshll.u32 %v8060_v49, %v534_v35  ;;  %v539_v6 = vsub.s32 4294967266, %v534_v35  ;;  %v6908_v4 = vadd.s32 4294967169, %v675_v21 }
  0x80   :  { %vm454_vm2 = vcmp.lt.s32.totalorder %v8064_v26, 2  ;;  %vm455_vm3 = vcmp.eq.s32.totalorder %v8064_v26, 0  ;;  %v8107_v45 = vmul.u32.u64.low %v615_v61, %v614_v37  ;;  %v8108_v1 = vmul.u32.u64.high %v615_v61, %v614_v37, %v8107_v45 }
  0x81   :  { %v537_v47 = vshrl.u32 %v519_v12, %v535_v41  ;;  %v540_v48 = vadd.s32 127, %v539_v6  ;;  %v550_v32 = vsel %vm465_vm11, %v549_v17, %v8049_v27  ;;  %v681_v50 = vadd.s32 1, %v6908_v4 }
  0x82   :  { %v7419_v51 = vpop.eup %7418  ;;  %vm458_vm4 = vcmp.eq.s32.totalorder %v8064_v26, 2  ;;  %v622_v49 = vmul.u32 %v615_v61, %v606_v22  ;;  %v625_v56 = vadd.s32 1, %v8101_v39  ;;  %v671_v19 = vand.u32 2147483647, %v7848_v15 }
  0x83   :  { %v7421_v20 = vpop.eup %7420  ;;  %v459_v53 = vxor.u32 2147483648, %v7419_v51  ;;  %v538_v31 = vor.u32 %v537_v47, %v536_v43  ;;  %v541_v57 = vshll.u32 %v540_v48, 23  ;;  %vm682_vm5 = vcmp.gt.s32.totalorder %v681_v50, 0 }
  0x84   :  { %v456_v12 = vxor.u32 2147483648, %v7421_v20  ;;  %v552_v60 = vsel %vm8085_vm15, 0, %v550_v32  ;;  %vm624_vm6 = vc.u32 %v8108_v1, %v8100_v54  ;;  %v683_v27 = vsel %vm682_vm5, %v681_v50, 0 }
  0x85   :  { %v460_v63 = vsel %vm458_vm4, %v459_v53, %v7421_v20  ;;  %v542_v29 = vor.u32 4788187, %v541_v57  ;;  %v545_v3 = vcvt.s32.f32 %v538_v31  ;;  %v626_v62 = vsel %vm624_vm6, %v625_v56, %v8101_v39 }
  0x86   :  { %v8121_v28 = vmul.f32 30.0, %v30_v30  ;;  %v457_v55 = vsel %vm455_vm3, %v7419_v51, %v456_v12  ;;  %v627_v7 = vadd.s32 %v626_v62, %v622_v49  ;;  %v685_v58 = vand.u32 31, %v683_v27 }
  0x87   :  { %v461_v23 = vsel %vm454_vm2, %v457_v55, %v460_v63  ;;  %v543_v61 = vand.u32 2147483647, %v542_v29  ;;  %v556_v11 = vadd.s32 3, %v552_v60  ;;  %v678_v0 = vand.u32 8388607, %v671_v19 }
  0x88   :  { %v462_v2 = vsel %vm451_vm0, nan, %v461_v23  ;;  %v628_v34 = vadd.s32 536870912, %v627_v7  ;;  %v686_v33 = vsub.s32 32, %v685_v58  ;;  %v688_v13 = vshll.u32 %v7717_v36, %v685_v58 }
  0x89   :  { %v546_v16 = vmul.f32 %v545_v3, %v543_v61  ;;  %v684_v17 = vshrl.u32 %v683_v27, 5  ;;  %v691_v8 = vshll.u32 %v7718_v38, %v685_v58  ;;  %v694_v18 = vshll.u32 %v7719_v40, %v685_v58  ;;  %6809 = vst [vmem:[#allocation5 + $0x10] sm:$0xff] %v462_v2 }
  0x8a   :  { %v8134_v26 = vshrl.u32 %v628_v34, 30  ;;  %v689_v21 = vshrl.u32 %v7718_v38, %v686_v33  ;;  %v692_v22 = vshrl.u32 %v7719_v40, %v686_v33  ;;  %v697_v5 = vshll.u32 %v7720_v42, %v685_v58 }
  0x8b   :  { %v547_v24 = vxor.u32 2147483648, %v546_v16  ;;  %v695_v9 = vshrl.u32 %v7720_v42, %v686_v33  ;;  %v698_v35 = vshrl.u32 %v7721_v44, %v686_v33  ;;  %v700_v37 = vshll.u32 %v7721_v44, %v685_v58 }
  0x8c   :  { %v630_v39 = vshll.u32 %v8134_v26, 30  ;;  %v679_v41 = vor.u32 8388608, %v678_v0  ;;  %v687_v43 = vshrl.u32 %v7717_v36, %v686_v33  ;;  %v690_v6 = vor.u32 %v689_v21, %v688_v13 }
  0x8d   :  { %v548_v4 = vsel %vm465_vm11, %v547_v24, %v546_v16  ;;  %v693_v45 = vor.u32 %v692_v22, %v691_v8  ;;  %v696_v47 = vor.u32 %v695_v9, %v694_v18  ;;  %v701_v48 = vshrl.u32 %v7722_v52, %v686_v33 }
  0x8e   :  { %v551_v32 = vsel %vm8085_vm15, %v7765_v25, %v548_v4  ;;  %v8150_v50 = vsub.s32 %v627_v7, %v630_v39  ;;  %v699_v51 = vor.u32 %v698_v35, %v697_v5  ;;  %vm703_vm7 = vcmp.lt.s32.totalorder %v684_v17, 1 }
  0x8f   :  { %7422 = vcosq.f32 %v551_v32  ;;  %v8152_v49 = vand.u32 3, %v556_v11  ;;  %v702_v56 = vor.u32 %v701_v48, %v700_v37  ;;  %v778_v20 = vand.u32 2139095040, %v7850_v46 }
  0x90   :  { %7424 = vsinq.f32 %v551_v32  ;;  %v633_v30 = vsub.s32 0, %v8150_v50  ;;  %vm705_vm8 = vcmp.lt.s32.totalorder %v684_v17, 3  ;;  %v719_v53 = vshll.u32 %v679_v41, 8 }
  0x91   :  { %vm704_vm9 = vcmp.lt.s32.totalorder %v684_v17, 2  ;;  %vm706_vm10 = vcmp.lt.s32.totalorder %v684_v17, 4  ;;  %v707_v10 = vsel %vm703_vm7, %v687_v43, %v690_v6  ;;  %v711_v31 = vsel %vm703_vm7, %v690_v6, %v693_v45 }
  0x92   :  { %v6905_v57 = vmin.u32 %v633_v30, %v8150_v50  ;;  %v708_v12 = vsel %vm706_vm10, %v696_v47, 2102212464  ;;  %v712_v60 = vsel %vm706_vm10, %v699_v51, 920167782  ;;  %v715_v27 = vsel %vm703_vm7, %v693_v45, %v696_v47 }
  0x93   :  { %v709_v63 = vsel %vm705_vm8, %v693_v45, %v708_v12  ;;  %v713_v29 = vsel %vm705_vm8, %v696_v47, %v712_v60  ;;  %v716_v3 = vsel %vm706_vm10, %v702_v56, 1326507024  ;;  %v779_v62 = vshrl.u32 %v778_v20, 23 }
  0x94   :  { %vm555_vm11 = vweird.f32 %v7765_v25  ;;  %vm569_vm12 = vcmp.lt.s32.totalorder %v7846_v14, 0  ;;  %v635_v55 = vclz %v6905_v57  ;;  %v653_v7 = vsub.s32 4, %v8134_v26 }
  0x95   :  { %v710_v58 = vsel %vm704_vm9, %v707_v10, %v709_v63  ;;  %v714_v23 = vsel %vm704_vm9, %v711_v31, %v713_v29  ;;  %v717_v61 = vsel %vm705_vm8, %v699_v51, %v716_v3  ;;  %v6912_v11 = vadd.s32 4294967169, %v779_v62  ;;  %v31_v29 = vld [vmem:[#allocation2 + $0x40] sm:$0xff] }
  0x96   :  { %v6906_v0 = vadd.s32 4294967294, %v635_v55  ;;  %v718_v2 = vsel %vm704_vm9, %v715_v27, %v717_v61  ;;  %v8169_v34 = vmul.u32.u64.low %v719_v53, %v714_v23  ;;  %v8170_v33 = vmul.u32.u64.high %v719_v53, %v714_v23, %v8169_v34 }
  0x97   :  { %vm558_vm13 = vcmp.lt.s32.totalorder %v8152_v49, 2  ;;  %v8174_v13 = vmul.u32.u64.low %v719_v53, %v718_v2  ;;  %v8175_v16 = vmul.u32.u64.high %v719_v53, %v718_v2, %v8174_v13  ;;  %v775_v8 = vand.u32 2147483647, %v7850_v46 }
  0x98   :  { %vm559_vm14 = vcmp.eq.s32.totalorder %v8152_v49, 0  ;;  %v623_v18 = vadd.s32 %v8100_v54, %v8108_v1  ;;  %vm6907_vm15 = vcmp.lt.s32.totalorder %v6906_v0, 0  ;;  %v785_v21 = vadd.s32 1, %v6912_v11 }
  0x99   :  { %v7423_v17 = vpop.eup %7422  ;;  %vm562_vm0 = vcmp.eq.s32.totalorder %v8152_v49, 2  ;;  %v638_v22 = vsel %vm6907_vm15, 0, %v6906_v0  ;;  %v654_v5 = vsel %vm569_vm12, %v653_v7, %v8134_v26  ;;  %v726_v24 = vmul.u32 %v719_v53, %v710_v58 }
  0x9a   :  { %v7425_v9 = vpop.eup %7424  ;;  %v563_v35 = vxor.u32 2147483648, %v7423_v17  ;;  %v639_v37 = vsub.s32 32, %v638_v22  ;;  %v640_v39 = vshll.u32 %v8150_v50, %v638_v22  ;;  %v643_v41 = vsub.s32 4294967266, %v638_v22 }
  0x9b   :  { %v560_v43 = vxor.u32 2147483648, %v7425_v9  ;;  %vm728_vm1 = vc.u32 %v8175_v16, %v8169_v34  ;;  %v729_v54 = vadd.s32 1, %v8170_v33  ;;  %v782_v1 = vand.u32 8388607, %v775_v8 }
  0x9c   :  { %v564_v6 = vsel %vm562_vm0, %v563_v35, %v7425_v9  ;;  %v641_v4 = vshrl.u32 %v623_v18, %v639_v37  ;;  %v644_v45 = vadd.s32 127, %v643_v41  ;;  %vm786_vm2 = vcmp.gt.s32.totalorder %v785_v21, 0 }
  0x9d   :  { %v561_v26 = vsel %vm559_vm14, %v7423_v17, %v560_v43  ;;  %vm8195_vm3 = vcmp.le.f32.partialorder %v567_v59, 0.7853982  ;;  %v730_v48 = vsel %vm728_vm1, %v729_v54, %v8170_v33  ;;  %v787_v32 = vsel %vm786_vm2, %v785_v21, 0 }
  0x9e   :  { %v565_v50 = vsel %vm558_vm13, %v561_v26, %v564_v6  ;;  %v642_v51 = vor.u32 %v641_v4, %v640_v39  ;;  %v645_v56 = vshll.u32 %v644_v45, 23  ;;  %v731_v20 = vadd.s32 %v730_v48, %v726_v24 }
  0x9f   :  { %v566_v30 = vsel %vm555_vm11, nan, %v565_v50  ;;  %v656_v53 = vsel %vm8195_vm3, 0, %v654_v5  ;;  %v789_v10 = vand.u32 31, %v787_v32  ;;  %v783_v12 = vor.u32 8388608, %v782_v1 }
  0xa0   :  { %v646_v59 = vor.u32 4788187, %v645_v56  ;;  %v649_v31 = vcvt.s32.f32 %v642_v51  ;;  %v732_v57 = vadd.s32 536870912, %v731_v20  ;;  %6810 = vst [vmem:[#allocation5 + $0x18] sm:$0xff] %v566_v30  ;;  %v788_v60 = vshrl.u32 %v787_v32, 5 }
  0xa1   :  { %v790_v27 = vsub.s32 32, %v789_v10  ;;  %v792_v49 = vshll.u32 %v7717_v36, %v789_v10  ;;  %v882_v63 = vand.u32 2139095040, %v8121_v28  ;;  %v795_v25 = vshll.u32 %v7718_v38, %v789_v10 }
  0xa2   :  { %v647_v3 = vand.u32 2147483647, %v646_v59  ;;  %v8208_v62 = vshrl.u32 %v732_v57, 30  ;;  %v798_v55 = vshll.u32 %v7719_v40, %v789_v10  ;;  %v801_v61 = vshll.u32 %v7720_v42, %v789_v10 }
  0xa3   :  { %v793_v7 = vshrl.u32 %v7718_v38, %v790_v27  ;;  %v796_v58 = vshrl.u32 %v7719_v40, %v790_v27  ;;  %v799_v23 = vshrl.u32 %v7720_v42, %v790_v27  ;;  %v802_v2 = vshrl.u32 %v7721_v44, %v790_v27 }
  0xa4   :  { %v650_v11 = vmul.f32 %v649_v31, %v647_v3  ;;  %v734_v0 = vshll.u32 %v8208_v62, 30  ;;  %v804_v33 = vshll.u32 %v7721_v44, %v789_v10  ;;  %v8219_v13 = vmul.f32 30.0, %v31_v29 }
  0xa5   :  { %v660_v18 = vadd.s32 3, %v656_v53  ;;  %v805_v21 = vshrl.u32 %v7722_v52, %v790_v27  ;;  %v8222_v17 = vshll.u32 %v783_v12, 8  ;;  %v791_v24 = vshrl.u32 %v7717_v36, %v790_v27 }
  0xa6   :  { %v651_v22 = vxor.u32 2147483648, %v650_v11  ;;  %v8224_v5 = vsub.s32 %v731_v20, %v734_v0  ;;  %v883_v9 = vshrl.u32 %v882_v63, 23  ;;  %v794_v35 = vor.u32 %v793_v7, %v792_v49 }
  0xa7   :  { %v797_v37 = vor.u32 %v796_v58, %v795_v25  ;;  %v800_v39 = vor.u32 %v799_v23, %v798_v55  ;;  %v803_v41 = vor.u32 %v802_v2, %v801_v61  ;;  %v806_v1 = vor.u32 %v805_v21, %v804_v33 }
  0xa8   :  { %v652_v43 = vsel %vm569_vm12, %v651_v22, %v650_v11  ;;  %v737_v54 = vsub.s32 0, %v8224_v5  ;;  %vm807_vm4 = vcmp.lt.s32.totalorder %v788_v60, 1  ;;  %vm808_vm5 = vcmp.lt.s32.totalorder %v788_v60, 2 }
  0xa9   :  { %v655_v6 = vsel %vm8195_vm3, %v7846_v14, %v652_v43  ;;  %vm809_vm6 = vcmp.lt.s32.totalorder %v788_v60, 3  ;;  %vm810_vm7 = vcmp.lt.s32.totalorder %v788_v60, 4  ;;  %v811_v45 = vsel %vm807_vm4, %v791_v24, %v794_v35 }
  0xaa   :  { %7426 = vcosq.f32 %v655_v6  ;;  %v6909_v4 = vmin.u32 %v737_v54, %v8224_v5  ;;  %v812_v26 = vsel %vm810_vm7, %v800_v39, 2102212464  ;;  %v815_v32 = vsel %vm807_vm4, %v794_v35, %v797_v37 }
  0xab   :  { %7428 = vsinq.f32 %v655_v6  ;;  %v813_v48 = vsel %vm809_vm6, %v797_v37, %v812_v26  ;;  %v816_v50 = vsel %vm810_vm7, %v803_v41, 920167782  ;;  %v661_v51 = vand.u32 3, %v660_v18 }
  0xac   :  { %vm673_vm8 = vcmp.lt.s32.totalorder %v7848_v15, 0  ;;  %v739_v47 = vclz %v6909_v4  ;;  %v819_v56 = vsel %vm807_vm4, %v797_v37, %v800_v39  ;;  %v727_v20 = vadd.s32 %v8169_v34, %v8175_v16 }
  0xad   :  { %v817_v30 = vsel %vm809_vm6, %v800_v39, %v816_v50  ;;  %v820_v53 = vsel %vm810_vm7, %v806_v1, 1326507024  ;;  %v6916_v10 = vadd.s32 4294967169, %v883_v9  ;;  %vm8244_vm9 = vcmp.le.f32.partialorder %v671_v19, 0.7853982  ;;  %v32_v50 = vld [vmem:[#allocation2 + $0x48] sm:$0xff] }
  0xae   :  { %v6910_v31 = vadd.s32 4294967294, %v739_v47  ;;  %v814_v57 = vsel %vm808_vm5, %v811_v45, %v813_v48  ;;  %v818_v12 = vsel %vm808_vm5, %v815_v32, %v817_v30  ;;  %v821_v27 = vsel %vm809_vm6, %v803_v41, %v820_v53 }
  0xaf   :  { %v757_v49 = vsub.s32 4, %v8208_v62  ;;  %v822_v34 = vsel %vm808_vm5, %v819_v56, %v821_v27  ;;  %v8254_v16 = vmul.u32.u64.low %v8222_v17, %v818_v12  ;;  %v8255_v63 = vmul.u32.u64.high %v8222_v17, %v818_v12, %v8254_v16 }
  0xb0   :  { %vm6911_vm10 = vcmp.lt.s32.totalorder %v6910_v31, 0  ;;  %v8259_v19 = vmul.u32.u64.low %v8222_v17, %v822_v34  ;;  %v8260_v29 = vmul.u32.u64.high %v8222_v17, %v822_v34, %v8259_v19  ;;  %v889_v3 = vadd.s32 1, %v6916_v10 }
  0xb1   :  { %vm662_vm11 = vcmp.lt.s32.totalorder %v661_v51, 2  ;;  %v742_v25 = vsel %vm6911_vm10, 0, %v6910_v31  ;;  %v830_v55 = vmul.u32 %v8222_v17, %v814_v57  ;;  %v879_v7 = vand.u32 2147483647, %v8121_v28 }
  0xb2   :  { %v743_v58 = vsub.s32 32, %v742_v25  ;;  %v744_v60 = vshll.u32 %v8224_v5, %v742_v25  ;;  %v747_v23 = vsub.s32 4294967266, %v742_v25  ;;  %vm890_vm12 = vcmp.gt.s32.totalorder %v889_v3, 0 }
  0xb3   :  { %vm663_vm13 = vcmp.eq.s32.totalorder %v661_v51, 0  ;;  %vm666_vm14 = vcmp.eq.s32.totalorder %v661_v51, 2  ;;  %v833_v61 = vadd.s32 1, %v8255_v63  ;;  %v891_v11 = vsel %vm890_vm12, %v889_v3, 0 }
  0xb4   :  { %v7427_v0 = vpop.eup %7426  ;;  %v745_v2 = vshrl.u32 %v727_v20, %v743_v58  ;;  %v748_v33 = vadd.s32 127, %v747_v23  ;;  %v758_v18 = vsel %vm673_vm8, %v757_v49, %v8208_v62  ;;  %vm832_vm15 = vc.u32 %v8260_v29, %v8254_v16 }
  0xb5   :  { %v7429_v21 = vpop.eup %7428  ;;  %v667_v17 = vxor.u32 2147483648, %v7427_v0  ;;  %v834_v22 = vsel %vm832_vm15, %v833_v61, %v8255_v63  ;;  %v886_v5 = vand.u32 8388607, %v879_v7  ;;  %v893_v24 = vand.u32 31, %v891_v11 }
  0xb6   :  { %v664_v9 = vxor.u32 2147483648, %v7429_v21  ;;  %v746_v35 = vor.u32 %v745_v2, %v744_v60  ;;  %v749_v37 = vshll.u32 %v748_v33, 23  ;;  %v835_v39 = vadd.s32 %v834_v22, %v830_v55 }
  0xb7   :  { %vm659_vm0 = vweird.f32 %v7846_v14  ;;  %v668_v41 = vsel %vm666_vm14, %v667_v17, %v7429_v21  ;;  %v760_v62 = vsel %vm8244_vm9, 0, %v758_v18  ;;  %v894_v43 = vsub.s32 32, %v893_v24 }
  0xb8   :  { %v665_v54 = vsel %vm663_vm13, %v7427_v0, %v664_v9  ;;  %v750_v1 = vor.u32 4788187, %v749_v37  ;;  %v753_v6 = vcvt.s32.f32 %v746_v35  ;;  %v836_v4 = vadd.s32 536870912, %v835_v39 }
  0xb9   :  { %v669_v45 = vsel %vm662_vm11, %v665_v54, %v668_v41  ;;  %v887_v26 = vor.u32 8388608, %v886_v5  ;;  %v896_v48 = vshll.u32 %v7717_v36, %v893_v24  ;;  %v899_v32 = vshll.u32 %v7718_v38, %v893_v24 }
  0xba   :  { %v670_v14 = vsel %vm659_vm0, nan, %v669_v45  ;;  %v751_v47 = vand.u32 2147483647, %v750_v1  ;;  %v837_v56 = vshrl.u32 %v836_v4, 30  ;;  %v897_v20 = vshrl.u32 %v7718_v38, %v894_v43 }
  0xbb   :  { %v900_v30 = vshrl.u32 %v7719_v40, %v894_v43  ;;  %v902_v53 = vshll.u32 %v7719_v40, %v893_v24  ;;  %v903_v10 = vshrl.u32 %v7720_v42, %v894_v43  ;;  %v905_v51 = vshll.u32 %v7720_v42, %v893_v24  ;;  %6811 = vst [vmem:[#allocation5 + $0x20] sm:$0xff] %v670_v14 }
  0xbc   :  { %v754_v31 = vmul.f32 %v753_v6, %v751_v47  ;;  %v838_v57 = vshll.u32 %v837_v56, 30  ;;  %v892_v12 = vshrl.u32 %v891_v11, 5  ;;  %v906_v27 = vshrl.u32 %v7721_v44, %v894_v43 }
  0xbd   :  { %v8288_v49 = vmul.f32 30.0, %v32_v50  ;;  %v764_v34 = vadd.s32 3, %v760_v62  ;;  %v908_v63 = vshll.u32 %v7721_v44, %v893_v24  ;;  %v909_v19 = vshrl.u32 %v7722_v52, %v894_v43 }
  0xbe   :  { %v755_v3 = vxor.u32 2147483648, %v754_v31  ;;  %v8292_v25 = vsub.s32 %v835_v39, %v838_v57  ;;  %v895_v55 = vshrl.u32 %v7717_v36, %v894_v43  ;;  %v8295_v58 = vshll.u32 %v887_v26, 8 }
  0xbf   :  { %v898_v60 = vor.u32 %v897_v20, %v896_v48  ;;  %v901_v23 = vor.u32 %v900_v30, %v899_v32  ;;  %v904_v61 = vor.u32 %v903_v10, %v902_v53  ;;  %v907_v11 = vor.u32 %v906_v27, %v905_v51 }
  0xc0   :  { %v756_v0 = vsel %vm673_vm8, %v755_v3, %v754_v31  ;;  %v841_v2 = vsub.s32 0, %v8292_v25  ;;  %vm911_vm1 = vcmp.lt.s32.totalorder %v892_v12, 1  ;;  %vm914_vm2 = vcmp.lt.s32.totalorder %v892_v12, 4 }
  0xc1   :  { %v759_v33 = vsel %vm8244_vm9, %v7848_v15, %v756_v0  ;;  %v910_v18 = vor.u32 %v909_v19, %v908_v63  ;;  %vm913_vm3 = vcmp.lt.s32.totalorder %v892_v12, 3  ;;  %v916_v21 = vsel %vm914_vm2, %v904_v61, 2102212464 }
  0xc2   :  { %7430 = vcosq.f32 %v759_v33  ;;  %v6913_v17 = vmin.u32 %v841_v2, %v8292_v25  ;;  %v915_v22 = vsel %vm911_vm1, %v895_v55, %v898_v60  ;;  %v917_v5 = vsel %vm913_vm3, %v901_v23, %v916_v21 }
  0xc3   :  { %7432 = vsinq.f32 %v759_v33  ;;  %vm912_vm4 = vcmp.lt.s32.totalorder %v892_v12, 2  ;;  %v919_v24 = vsel %vm911_vm1, %v898_v60, %v901_v23  ;;  %v920_v9 = vsel %vm914_vm2, %v907_v11, 920167782 }
  0xc4   :  { %v765_v35 = vand.u32 3, %v764_v34  ;;  %vm777_vm5 = vcmp.lt.s32.totalorder %v7850_v46, 0  ;;  %v843_v59 = vclz %v6913_v17  ;;  %v923_v37 = vsel %vm911_vm1, %v901_v23, %v904_v61 }
  0xc5   :  { %v861_v39 = vsub.s32 4, %v837_v56  ;;  %v918_v41 = vsel %vm912_vm4, %v915_v22, %v917_v5  ;;  %v921_v62 = vsel %vm913_vm3, %v904_v61, %v920_v9  ;;  %v924_v43 = vsel %vm914_vm2, %v910_v18, 1326507024 }
  0xc6   :  { %v6914_v54 = vadd.s32 4294967294, %v843_v59  ;;  %v922_v1 = vsel %vm912_vm4, %v919_v24, %v921_v62  ;;  %v925_v6 = vsel %vm913_vm3, %v907_v11, %v924_v43  ;;  %v986_v4 = vand.u32 2139095040, %v8219_v13 }
  0xc7   :  { %vm763_vm6 = vweird.f32 %v7848_v15  ;;  %v831_v45 = vadd.s32 %v8254_v16, %v8260_v29  ;;  %v926_v26 = vsel %vm912_vm4, %v923_v37, %v925_v6  ;;  %vm8332_vm8 = vcmp.le.f32.partialorder %v775_v8, 0.7853982 }
  0xc8   :  { %v8322_v48 = vmul.u32.u64.low %v8295_v58, %v922_v1  ;;  %v8323_v32 = vmul.u32.u64.high %v8295_v58, %v922_v1, %v8322_v48  ;;  %vm6915_vm7 = vcmp.lt.s32.totalorder %v6914_v54, 0  ;;  %v987_v47 = vshrl.u32 %v986_v4, 23 }
  0xc9   :  { %v8327_v50 = vmul.u32.u64.low %v8295_v58, %v926_v26  ;;  %v8328_v14 = vmul.u32.u64.high %v8295_v58, %v926_v26, %v8327_v50  ;;  %v846_v16 = vsel %vm6915_vm7, 0, %v6914_v54  ;;  %v862_v29 = vsel %vm777_vm5, %v861_v39, %v837_v56 }
  0xca   :  { %v934_v30 = vmul.u32 %v8295_v58, %v918_v41  ;;  %v847_v53 = vsub.s32 32, %v846_v16  ;;  %v848_v10 = vshll.u32 %v8292_v25, %v846_v16  ;;  %v851_v51 = vsub.s32 4294967266, %v846_v16 }
  0xcb   :  { %v6920_v31 = vadd.s32 4294967169, %v987_v47  ;;  %vm766_vm9 = vcmp.lt.s32.totalorder %v765_v35, 2  ;;  %vm767_vm10 = vcmp.eq.s32.totalorder %v765_v35, 0  ;;  %vm770_vm11 = vcmp.eq.s32.totalorder %v765_v35, 2 }
  0xcc   :  { %v937_v57 = vadd.s32 1, %v8323_v32  ;;  %v7431_v8 = vpop.eup %7430  ;;  %v849_v12 = vshrl.u32 %v831_v45, %v847_v53  ;;  %v852_v27 = vadd.s32 127, %v851_v51  ;;  %v864_v34 = vsel %vm8332_vm8, 0, %v862_v29 }
  0xcd   :  { %vm936_vm12 = vc.u32 %v8328_v14, %v8322_v48  ;;  %v7433_v56 = vpop.eup %7432  ;;  %v771_v63 = vxor.u32 2147483648, %v7431_v8  ;;  %v983_v3 = vand.u32 2147483647, %v8219_v13  ;;  %v993_v25 = vadd.s32 1, %v6920_v31 }
  0xce   :  { %v938_v19 = vsel %vm936_vm12, %v937_v57, %v8323_v32  ;;  %v768_v55 = vxor.u32 2147483648, %v7433_v56  ;;  %v850_v58 = vor.u32 %v849_v12, %v848_v10  ;;  %v853_v60 = vshll.u32 %v852_v27, 23 }
  0xcf   :  { %v939_v23 = vadd.s32 %v938_v19, %v934_v30  ;;  %v772_v61 = vsel %vm770_vm11, %v771_v63, %v7433_v56  ;;  %v868_v11 = vadd.s32 3, %v864_v34  ;;  %vm994_vm13 = vcmp.gt.s32.totalorder %v993_v25, 0 }
  0xd0   :  { %v1090_v0 = vand.u32 2139095040, %v8288_v49  ;;  %v769_v2 = vsel %vm767_vm10, %v7431_v8, %v768_v55  ;;  %v854_v33 = vor.u32 4788187, %v853_v60  ;;  %v857_v18 = vcvt.s32.f32 %v850_v58 }
  0xd1   :  { %v940_v21 = vadd.s32 536870912, %v939_v23  ;;  %v773_v17 = vsel %vm766_vm9, %v769_v2, %v772_v61  ;;  %v990_v22 = vand.u32 8388607, %v983_v3  ;;  %v995_v5 = vsel %vm994_vm13, %v993_v25, 0 }
  0xd2   :  { %v774_v24 = vsel %vm763_vm6, nan, %v773_v17  ;;  %v855_v9 = vand.u32 2147483647, %v854_v33  ;;  %v997_v37 = vand.u32 31, %v995_v5  ;;  %v1091_v39 = vshrl.u32 %v1090_v0, 23 }
  0xd3   :  { %v8355_v59 = vshrl.u32 %v940_v21, 30  ;;  %6812 = vst [vmem:[#allocation5 + $0x28] sm:$0xff] %v774_v24  ;;  %v8357_v62 = vand.u32 3, %v868_v11  ;;  %v996_v35 = vshrl.u32 %v995_v5, 5  ;;  %v991_v54 = vor.u32 8388608, %v990_v22 }
  0xd4   :  { %v858_v41 = vmul.f32 %v857_v18, %v855_v9  ;;  %v998_v1 = vsub.s32 32, %v997_v37  ;;  %v1000_v6 = vshll.u32 %v7717_v36, %v997_v37  ;;  %v1087_v4 = vand.u32 2147483647, %v8288_v49 }
  0xd5   :  { %v942_v43 = vshll.u32 %v8355_v59, 30  ;;  %v1003_v26 = vshll.u32 %v7718_v38, %v997_v37  ;;  %v1006_v32 = vshll.u32 %v7719_v40, %v997_v37  ;;  %v1009_v16 = vshll.u32 %v7720_v42, %v997_v37 }
  0xd6   :  { %v859_v15 = vxor.u32 2147483648, %v858_v41  ;;  %v1001_v50 = vshrl.u32 %v7718_v38, %v998_v1  ;;  %v1004_v47 = vshrl.u32 %v7719_v40, %v998_v1  ;;  %v6924_v29 = vadd.s32 4294967169, %v1091_v39 }
  0xd7   :  { %v8362_v45 = vsub.s32 %v939_v23, %v942_v43  ;;  %v1007_v10 = vshrl.u32 %v7720_v42, %v998_v1  ;;  %vm1015_vm14 = vcmp.lt.s32.totalorder %v996_v35, 1  ;;  %v999_v31 = vshrl.u32 %v7717_v36, %v998_v1 }
  0xd8   :  { %v860_v30 = vsel %vm777_vm5, %v859_v15, %v858_v41  ;;  %v1002_v57 = vor.u32 %v1001_v50, %v1000_v6  ;;  %v1010_v8 = vshrl.u32 %v7721_v44, %v998_v1  ;;  %v1005_v27 = vor.u32 %v1004_v47, %v1003_v26 }
  0xd9   :  { %v945_v53 = vsub.s32 0, %v8362_v45  ;;  %v863_v51 = vsel %vm8332_vm8, %v7850_v46, %v860_v30  ;;  %v1008_v34 = vor.u32 %v1007_v10, %v1006_v32  ;;  %vm881_vm15 = vcmp.lt.s32.totalorder %v8121_v28, 0 }
  0xda   :  { %7434 = vcosq.f32 %v863_v51  ;;  %v1011_v56 = vor.u32 %v1010_v8, %v1009_v16  ;;  %v1012_v63 = vshll.u32 %v7721_v44, %v997_v37  ;;  %v1013_v19 = vshrl.u32 %v7722_v52, %v998_v1 }
  0xdb   :  { %v6917_v12 = vmin.u32 %v945_v53, %v8362_v45  ;;  %7436 = vsinq.f32 %v863_v51  ;;  %vm874_vm0 = vcmp.eq.s32.totalorder %v8357_v62, 2  ;;  %v935_v20 = vadd.s32 %v8322_v48, %v8328_v14 }
  0xdc   :  { %v8385_v55 = vshll.u32 %v991_v54, 8  ;;  %v1097_v58 = vadd.s32 1, %v6924_v29  ;;  %v1014_v60 = vor.u32 %v1013_v19, %v1012_v63  ;;  %vm1016_vm1 = vcmp.lt.s32.totalorder %v996_v35, 2 }
  0xdd   :  { %v947_v25 = vclz %v6917_v12  ;;  %vm1017_vm2 = vcmp.lt.s32.totalorder %v996_v35, 3  ;;  %vm1018_vm3 = vcmp.lt.s32.totalorder %v996_v35, 4  ;;  %vm870_vm4 = vcmp.lt.s32.totalorder %v8357_v62, 2 }
  0xde   :  { %vm8390_vm5 = vcmp.le.f32.partialorder %v879_v7, 0.7853982  ;;  %v1019_v11 = vsel %vm1015_vm14, %v999_v31, %v1002_v57  ;;  %v1020_v48 = vsel %vm1018_vm3, %v1008_v34, 2102212464  ;;  %v1023_v14 = vsel %vm1015_vm14, %v1002_v57, %v1005_v27 }
  0xdf   :  { %v6918_v61 = vadd.s32 4294967294, %v947_v25  ;;  %vm867_vm6 = vweird.f32 %v7850_v46  ;;  %v1021_v0 = vsel %vm1017_vm2, %v1005_v27, %v1020_v48  ;;  %v1024_v2 = vsel %vm1018_vm3, %v1011_v56, 920167782  ;;  %v33_v25 = vld [vmem:[#allocation2 + $0x50] sm:$0xff] }
  0xe0   :  { %v1027_v33 = vsel %vm1015_vm14, %v1005_v27, %v1008_v34  ;;  %v1028_v18 = vsel %vm1018_vm3, %v1014_v60, 1326507024  ;;  %v965_v7 = vsub.s32 4, %v8355_v59  ;;  %v1025_v21 = vsel %vm1017_vm2, %v1008_v34, %v1024_v2 }
  0xe1   :  { %vm6919_vm7 = vcmp.lt.s32.totalorder %v6918_v61, 0  ;;  %v1029_v17 = vsel %vm1017_vm2, %v1011_v56, %v1028_v18  ;;  %v1022_v5 = vsel %vm1016_vm1, %v1019_v11, %v1021_v0  ;;  %v1026_v24 = vsel %vm1016_vm1, %v1023_v14, %v1025_v21 }
  0xe2   :  { %v950_v22 = vsel %vm6919_vm7, 0, %v6918_v61  ;;  %v1030_v9 = vsel %vm1016_vm1, %v1027_v33, %v1029_v17  ;;  %vm1098_vm8 = vcmp.gt.s32.totalorder %v1097_v58, 0  ;;  %v966_v35 = vsel %vm881_vm15, %v965_v7, %v8355_v59 }
  0xe3   :  { %v951_v37 = vsub.s32 32, %v950_v22  ;;  %v952_v39 = vshll.u32 %v8362_v45, %v950_v22  ;;  %v955_v41 = vsub.s32 4294967266, %v950_v22  ;;  %v1099_v50 = vsel %vm1098_vm8, %v1097_v58, 0 }
  0xe4   :  { %v8407_v43 = vmul.u32.u64.low %v8385_v55, %v1030_v9  ;;  %v8408_v54 = vmul.u32.u64.high %v8385_v55, %v1030_v9, %v8407_v43  ;;  %v8411_v1 = vmul.u32.u64.low %v8385_v55, %v1026_v24  ;;  %v8412_v6 = vmul.u32.u64.high %v8385_v55, %v1026_v24, %v8411_v1  ;;  %v7435_v15 = vpop.eup %7434 }
  0xe5   :  { %v953_v26 = vshrl.u32 %v935_v20, %v951_v37  ;;  %v956_v32 = vadd.s32 127, %v955_v41  ;;  %v7437_v45 = vpop.eup %7436  ;;  %vm871_vm9 = vcmp.eq.s32.totalorder %v8357_v62, 0  ;;  %v875_v47 = vxor.u32 2147483648, %v7435_v15 }
  0xe6   :  { %v1094_v16 = vand.u32 8388607, %v1087_v4  ;;  %v1101_v29 = vand.u32 31, %v1099_v50  ;;  %v872_v30 = vxor.u32 2147483648, %v7437_v45  ;;  %v1038_v51 = vmul.u32 %v8385_v55, %v1022_v5 }
  0xe7   :  { %v954_v53 = vor.u32 %v953_v26, %v952_v39  ;;  %v957_v10 = vshll.u32 %v956_v32, 23  ;;  %v876_v31 = vsel %vm874_vm0, %v875_v47, %v7437_v45  ;;  %v968_v59 = vsel %vm8390_vm5, 0, %v966_v35 }
  0xe8   :  { %vm1040_vm10 = vc.u32 %v8408_v54, %v8411_v1  ;;  %v1041_v57 = vadd.s32 1, %v8412_v6  ;;  %v873_v8 = vsel %vm871_vm9, %v7435_v15, %v872_v30  ;;  %v1102_v34 = vsub.s32 32, %v1101_v29 }
  0xe9   :  { %v958_v12 = vor.u32 4788187, %v957_v10  ;;  %v961_v27 = vcvt.s32.f32 %v954_v53  ;;  %v877_v56 = vsel %vm870_vm4, %v873_v8, %v876_v31  ;;  %v8432_v19 = vshrl.u32 %v1099_v50, 5  ;;  %v34_v10 = vld [vmem:[#allocation2 + $0x58] sm:$0xff] }
  0xea   :  { %v1042_v63 = vsel %vm1040_vm10, %v1041_v57, %v8412_v6  ;;  %v1104_v20 = vshll.u32 %v7717_v36, %v1101_v29  ;;  %v878_v55 = vsel %vm867_vm6, nan, %v877_v56  ;;  %v1107_v61 = vshll.u32 %v7718_v38, %v1101_v29 }
  0xeb   :  { %v959_v58 = vand.u32 2147483647, %v958_v12  ;;  %v1043_v60 = vadd.s32 %v1042_v63, %v1038_v51  ;;  %v1105_v11 = vshrl.u32 %v7718_v38, %v1102_v34  ;;  %v1108_v48 = vshrl.u32 %v7719_v40, %v1102_v34  ;;  %6813 = vst [vmem:[#allocation5 + $0x30] sm:$0xff] %v878_v55 }
  0xec   :  { %v1110_v62 = vshll.u32 %v7719_v40, %v1101_v29  ;;  %v1111_v14 = vshrl.u32 %v7720_v42, %v1102_v34  ;;  %v1113_v33 = vshll.u32 %v7720_v42, %v1101_v29  ;;  %v1114_v46 = vshrl.u32 %v7721_v44, %v1102_v34 }
  0xed   :  { %v962_v0 = vmul.f32 %v961_v27, %v959_v58  ;;  %v1044_v2 = vadd.s32 536870912, %v1043_v60  ;;  %v8444_v18 = vmul.f32 30.0, %v33_v25  ;;  %v1106_v7 = vor.u32 %v1105_v11, %v1104_v20 }
  0xee   :  { %v1116_v21 = vshll.u32 %v7721_v44, %v1101_v29  ;;  %v1109_v5 = vor.u32 %v1108_v48, %v1107_v61  ;;  %v1117_v24 = vshrl.u32 %v7722_v52, %v1102_v34  ;;  %v972_v9 = vadd.s32 3, %v968_v59 }
  0xef   :  { %v963_v17 = vxor.u32 2147483648, %v962_v0  ;;  %v1045_v22 = vshrl.u32 %v1044_v2, 30  ;;  %v1095_v37 = vor.u32 8388608, %v1094_v16  ;;  %v1115_v39 = vor.u32 %v1114_v46, %v1113_v33 }
  0xf0   :  { %vm1119_vm11 = vcmp.lt.s32.totalorder %v8432_v19, 1  ;;  %v1112_v6 = vor.u32 %v1111_v14, %v1110_v62  ;;  %vm1122_vm12 = vcmp.lt.s32.totalorder %v8432_v19, 4  ;;  %v1103_v26 = vshrl.u32 %v7717_v36, %v1102_v34 }
  0xf1   :  { %v964_v41 = vsel %vm881_vm15, %v963_v17, %v962_v0  ;;  %v1046_v43 = vshll.u32 %v1045_v22, 30  ;;  %v1118_v32 = vor.u32 %v1117_v24, %v1116_v21  ;;  %vm1121_vm13 = vcmp.lt.s32.totalorder %v8432_v19, 3 }
  0xf2   :  { %v967_v15 = vsel %vm8390_vm5, %v8121_v28, %v964_v41  ;;  %vm1120_vm14 = vcmp.lt.s32.totalorder %v8432_v19, 2  ;;  %v1127_v50 = vsel %vm1119_vm11, %v1106_v7, %v1109_v5  ;;  %v1124_v45 = vsel %vm1122_vm12, %v1112_v6, 2102212464 }
  0xf3   :  { %7438 = vcosq.f32 %v967_v15  ;;  %v8457_v35 = vsub.s32 %v1043_v60, %v1046_v43  ;;  %v1128_v23 = vsel %vm1122_vm12, %v1115_v39, 920167782  ;;  %v1135_v47 = vshll.u32 %v1095_v37, 8 }
  0xf4   :  { %7440 = vsinq.f32 %v967_v15  ;;  %v973_v16 = vand.u32 3, %v972_v9  ;;  %v1129_v30 = vsel %vm1121_vm13, %v1112_v6, %v1128_v23  ;;  %v1131_v53 = vsel %vm1119_vm11, %v1109_v5, %v1112_v6 }
  0xf5   :  { %v1049_v29 = vsub.s32 0, %v8457_v35  ;;  %v1069_v51 = vsub.s32 4, %v1045_v22  ;;  %v1130_v31 = vsel %vm1120_vm14, %v1127_v50, %v1129_v30  ;;  %v1132_v59 = vsel %vm1122_vm12, %v1118_v32, 1326507024 }
  0xf6   :  { %v1194_v57 = vand.u32 2139095040, %v8444_v18  ;;  %v1123_v12 = vsel %vm1119_vm11, %v1103_v26, %v1106_v7  ;;  %v1125_v27 = vsel %vm1121_vm13, %v1109_v5, %v1124_v45  ;;  %v1133_v34 = vsel %vm1121_vm13, %v1115_v39, %v1132_v59 }
  0xf7   :  { %v6921_v8 = vmin.u32 %v1049_v29, %v8457_v35  ;;  %v1134_v56 = vsel %vm1120_vm14, %v1131_v53, %v1133_v34  ;;  %v8485_v63 = vmul.u32.u64.low %v1135_v47, %v1130_v31  ;;  %v8486_v20 = vmul.u32.u64.high %v1135_v47, %v1130_v31, %v8485_v63 }
  0xf8   :  { %v1195_v25 = vshrl.u32 %v1194_v57, 23  ;;  %v8489_v55 = vmul.f32 30.0, %v34_v10  ;;  %vm971_vm15 = vweird.f32 %v8121_v28  ;;  %vm985_vm0 = vcmp.lt.s32.totalorder %v8219_v13, 0 }
  0xf9   :  { %v1051_v58 = vclz %v6921_v8  ;;  %v1126_v60 = vsel %vm1120_vm14, %v1123_v12, %v1125_v27  ;;  %v8495_v61 = vmul.u32.u64.low %v1135_v47, %v1134_v56  ;;  %v8496_v11 = vmul.u32.u64.high %v1135_v47, %v1134_v56, %v8495_v61 }
  0xfa   :  { %v6928_v48 = vadd.s32 4294967169, %v1195_v25  ;;  %vm974_vm1 = vcmp.lt.s32.totalorder %v973_v16, 2  ;;  %vm8500_vm2 = vcmp.le.f32.partialorder %v983_v3, 0.7853982  ;;  %v1070_v0 = vsel %vm985_vm0, %v1069_v51, %v1045_v22 }
  0xfb   :  { %v6922_v14 = vadd.s32 4294967294, %v1051_v58  ;;  %vm975_vm3 = vcmp.eq.s32.totalorder %v973_v16, 0  ;;  %v1145_v2 = vadd.s32 1, %v8486_v20  ;;  %v1191_v19 = vand.u32 2147483647, %v8444_v18 }
  0xfc   :  { %v1201_v33 = vadd.s32 1, %v6928_v48  ;;  %vm978_vm4 = vcmp.eq.s32.totalorder %v973_v16, 2  ;;  %v1039_v7 = vadd.s32 %v8411_v1, %v8408_v54  ;;  %v1142_v3 = vmul.u32 %v1135_v47, %v1126_v60 }
  0xfd   :  { %v7439_v46 = vpop.eup %7438  ;;  %vm6923_vm5 = vcmp.lt.s32.totalorder %v6922_v14, 0  ;;  %v1072_v24 = vsel %vm8500_vm2, 0, %v1070_v0  ;;  %vm1144_vm6 = vc.u32 %v8496_v11, %v8485_v63  ;;  %v1198_v54 = vand.u32 8388607, %v1191_v19 }
  0xfe   :  { %v7441_v21 = vpop.eup %7440  ;;  %v979_v17 = vxor.u32 2147483648, %v7439_v46  ;;  %v1054_v5 = vsel %vm6923_vm5, 0, %v6922_v14  ;;  %v1146_v43 = vsel %vm1144_vm6, %v1145_v2, %v8486_v20  ;;  %vm1202_vm7 = vcmp.gt.s32.totalorder %v1201_v33, 0 }
  0xff   :  { %v976_v22 = vxor.u32 2147483648, %v7441_v21  ;;  %v1055_v9 = vsub.s32 32, %v1054_v5  ;;  %v1056_v37 = vshll.u32 %v8457_v35, %v1054_v5  ;;  %v1059_v39 = vsub.s32 4294967266, %v1054_v5 }
 0x100   :  { %v980_v41 = vsel %vm978_vm4, %v979_v17, %v7441_v21  ;;  %v1147_v26 = vadd.s32 %v1146_v43, %v1142_v3  ;;  %v1203_v50 = vsel %vm1202_vm7, %v1201_v33, 0  ;;  %v1298_v45 = vand.u32 2139095040, %v8489_v55 }
 0x101   :  { %v977_v1 = vsel %vm975_vm3, %v7439_v46, %v976_v22  ;;  %v1057_v6 = vshrl.u32 %v1039_v7, %v1055_v9  ;;  %v1060_v15 = vadd.s32 127, %v1059_v39  ;;  %v1076_v30 = vadd.s32 3, %v1072_v24 }
 0x102   :  { %v981_v32 = vsel %vm974_vm1, %v977_v1, %v980_v41  ;;  %v1148_v29 = vadd.s32 536870912, %v1147_v26  ;;  %v1205_v53 = vand.u32 31, %v1203_v50  ;;  %v1199_v59 = vor.u32 8388608, %v1198_v54 }
 0x103   :  { %v982_v35 = vsel %vm971_vm15, nan, %v981_v32  ;;  %v1058_v23 = vor.u32 %v1057_v6, %v1056_v37  ;;  %v1061_v47 = vshll.u32 %v1060_v15, 23  ;;  %v1204_v57 = vshrl.u32 %v1203_v50, 5 }
 0x104   :  { %6814 = vst [vmem:[#allocation5 + $0x38] sm:$0xff] %v982_v35  ;;  %v8523_v31 = vshrl.u32 %v1148_v29, 30  ;;  %v1206_v16 = vsub.s32 32, %v1205_v53  ;;  %v1295_v8 = vand.u32 2147483647, %v8489_v55  ;;  %v1299_v12 = vshrl.u32 %v1298_v45, 23 }
 0x105   :  { %v1062_v10 = vor.u32 4788187, %v1061_v47  ;;  %v1065_v51 = vcvt.s32.f32 %v1058_v23  ;;  %v1208_v34 = vshll.u32 %v7717_v36, %v1205_v53  ;;  %v1211_v56 = vshll.u32 %v7718_v38, %v1205_v53 }
 0x106   :  { %v1150_v28 = vshll.u32 %v8523_v31, 30  ;;  %v1209_v20 = vshrl.u32 %v7718_v38, %v1206_v16  ;;  %v1212_v25 = vshrl.u32 %v7719_v40, %v1206_v16  ;;  %v1214_v58 = vshll.u32 %v7719_v40, %v1205_v53 }
 0x107   :  { %v1063_v27 = vand.u32 2147483647, %v1062_v10  ;;  %v1215_v60 = vshrl.u32 %v7720_v42, %v1206_v16  ;;  %v1217_v14 = vshll.u32 %v7720_v42, %v1205_v53  ;;  %v1218_v0 = vshrl.u32 %v7721_v44, %v1206_v16 }
 0x108   :  { %v8533_v48 = vsub.s32 %v1147_v26, %v1150_v28  ;;  %v8537_v2 = vand.u32 3, %v1076_v30  ;;  %v8539_v33 = vshll.u32 %v1199_v59, 8  ;;  %v6932_v46 = vadd.s32 4294967169, %v1299_v12 }
 0x109   :  { %v1066_v61 = vmul.f32 %v1065_v51, %v1063_v27  ;;  %v8543_v7 = vand.u32 8388607, %v1295_v8  ;;  %v1207_v17 = vshrl.u32 %v7717_v36, %v1206_v16  ;;  %v1210_v5 = vor.u32 %v1209_v20, %v1208_v34 }
 0x10a   :  { %v1153_v21 = vsub.s32 0, %v8533_v48  ;;  %v1213_v24 = vor.u32 %v1212_v25, %v1211_v56  ;;  %v1216_v22 = vor.u32 %v1215_v60, %v1214_v58  ;;  %v1220_v9 = vshll.u32 %v7721_v44, %v1205_v53 }
 0x10b   :  { %v1067_v3 = vxor.u32 2147483648, %v1066_v61  ;;  %v1221_v37 = vshrl.u32 %v7722_v52, %v1206_v16  ;;  %v1219_v43 = vor.u32 %v1218_v0, %v1217_v14  ;;  %vm1223_vm8 = vcmp.lt.s32.totalorder %v1204_v57, 1 }
 0x10c   :  { %v6925_v41 = vmin.u32 %v1153_v21, %v8533_v48  ;;  %vm1226_vm9 = vcmp.lt.s32.totalorder %v1204_v57, 4  ;;  %v1305_v6 = vadd.s32 1, %v6932_v46  ;;  %vm1224_vm10 = vcmp.lt.s32.totalorder %v1204_v57, 2 }
 0x10d   :  { %v1068_v39 = vsel %vm985_vm0, %v1067_v3, %v1066_v61  ;;  %v1222_v1 = vor.u32 %v1221_v37, %v1220_v9  ;;  %vm1225_vm11 = vcmp.lt.s32.totalorder %v1204_v57, 3  ;;  %v1227_v26 = vsel %vm1223_vm8, %v1207_v17, %v1210_v5 }
 0x10e   :  { %v1071_v54 = vsel %vm8500_vm2, %v8219_v13, %v1068_v39  ;;  %v1155_v15 = vclz %v6925_v41  ;;  %v1228_v32 = vsel %vm1226_vm9, %v1216_v22, 2102212464  ;;  %v1231_v50 = vsel %vm1223_vm8, %v1210_v5, %v1213_v24 }
 0x10f   :  { %7442 = vcosq.f32 %v1071_v54  ;;  %v1229_v35 = vsel %vm1225_vm11, %v1213_v24, %v1228_v32  ;;  %v1232_v62 = vsel %vm1226_vm9, %v1219_v43, 920167782  ;;  %v1235_v23 = vsel %vm1223_vm8, %v1213_v24, %v1216_v22 }
 0x110   :  { %7444 = vsinq.f32 %v1071_v54  ;;  %v6926_v45 = vadd.s32 4294967294, %v1155_v15  ;;  %vm1079_vm12 = vcmp.eq.s32.totalorder %v8537_v2, 0  ;;  %v1143_v47 = vadd.s32 %v8485_v63, %v8496_v11 }
 0x111   :  { %v1233_v29 = vsel %vm1225_vm11, %v1216_v22, %v1232_v62  ;;  %v1236_v30 = vsel %vm1226_vm9, %v1222_v1, 1326507024  ;;  %vm1306_vm13 = vcmp.gt.s32.totalorder %v1305_v6, 0  ;;  %vm1078_vm14 = vcmp.lt.s32.totalorder %v8537_v2, 2 }
 0x112   :  { %vm6927_vm15 = vcmp.lt.s32.totalorder %v6926_v45, 0  ;;  %v1230_v53 = vsel %vm1224_vm10, %v1227_v26, %v1229_v35  ;;  %v1234_v10 = vsel %vm1224_vm10, %v1231_v50, %v1233_v29  ;;  %v1237_v51 = vsel %vm1225_vm11, %v1219_v43, %v1236_v30 }
 0x113   :  { %vm1075_vm0 = vweird.f32 %v8219_v13  ;;  %v1158_v59 = vsel %vm6927_vm15, 0, %v6926_v45  ;;  %v1238_v16 = vsel %vm1224_vm10, %v1235_v23, %v1237_v51  ;;  %vm1089_vm1 = vcmp.lt.s32.totalorder %v8288_v49, 0 }
 0x114   :  { %v8573_v63 = vmul.u32.u64.low %v8539_v33, %v1234_v10  ;;  %v8574_v11 = vmul.u32.u64.high %v8539_v33, %v1234_v10, %v8573_v63  ;;  %v1159_v12 = vsub.s32 32, %v1158_v59  ;;  %v1160_v27 = vshll.u32 %v8533_v48, %v1158_v59 }
 0x115   :  { %v1163_v28 = vsub.s32 4294967266, %v1158_v59  ;;  %v1307_v34 = vsel %vm1306_vm13, %v1305_v6, 0  ;;  %vm1082_vm2 = vcmp.eq.s32.totalorder %v8537_v2, 2  ;;  %v1173_v60 = vsub.s32 4, %v8523_v31  ;;  %v35_v2 = vld [vmem:[#allocation2 + $0x60] sm:$0xff] }
 0x116   :  { %v8581_v56 = vmul.u32.u64.low %v8539_v33, %v1238_v16  ;;  %v8582_v20 = vmul.u32.u64.high %v8539_v33, %v1238_v16, %v8581_v56  ;;  %v1309_v57 = vand.u32 31, %v1307_v34  ;;  %v1161_v25 = vshrl.u32 %v1143_v47, %v1159_v12 }
 0x117   :  { %v1164_v58 = vadd.s32 127, %v1163_v28  ;;  %v1303_v61 = vor.u32 8388608, %v8543_v7  ;;  %v1246_v14 = vmul.u32 %v8539_v33, %v1230_v53  ;;  %v1249_v0 = vadd.s32 1, %v8574_v11 }
 0x118   :  { %v8588_v48 = vshrl.u32 %v1307_v34, 5  ;;  %v1310_v46 = vsub.s32 32, %v1309_v57  ;;  %vm8592_vm3 = vcmp.le.f32.partialorder %v1087_v4, 0.7853982  ;;  %v1162_v17 = vor.u32 %v1161_v25, %v1160_v27 }
 0x119   :  { %v7443_v3 = vpop.eup %7442  ;;  %v1165_v5 = vshll.u32 %v1164_v58, 23  ;;  %v1312_v24 = vshll.u32 %v7717_v36, %v1309_v57  ;;  %v1315_v7 = vshll.u32 %v7718_v38, %v1309_v57  ;;  %vm1248_vm4 = vc.u32 %v8582_v20, %v8573_v63 }
 0x11a   :  { %v7445_v22 = vpop.eup %7444  ;;  %v1083_v33 = vxor.u32 2147483648, %v7443_v3  ;;  %v1318_v9 = vshll.u32 %v7719_v40, %v1309_v57  ;;  %v1321_v37 = vshll.u32 %v7720_v42, %v1309_v57  ;;  %v1169_v41 = vcvt.s32.f32 %v1162_v17 }
 0x11b   :  { %v1080_v39 = vxor.u32 2147483648, %v7445_v22  ;;  %v1166_v4 = vor.u32 4788187, %v1165_v5  ;;  %v1250_v43 = vsel %vm1248_vm4, %v1249_v0, %v8574_v11  ;;  %v1313_v6 = vshrl.u32 %v7718_v38, %v1310_v46 }
 0x11c   :  { %v1084_v54 = vsel %vm1082_vm2, %v1083_v33, %v7445_v22  ;;  %v1251_v1 = vadd.s32 %v1250_v43, %v1246_v14  ;;  %v1316_v15 = vshrl.u32 %v7719_v40, %v1310_v46  ;;  %v1319_v50 = vshrl.u32 %v7720_v42, %v1310_v46 }
 0x11d   :  { %v1081_v26 = vsel %vm1079_vm12, %v7443_v3, %v1080_v39  ;;  %v1167_v32 = vand.u32 2147483647, %v1166_v4  ;;  %v1322_v45 = vshrl.u32 %v7721_v44, %v1310_v46  ;;  %v1174_v62 = vsel %vm1089_vm1, %v1173_v60, %v8523_v31 }
 0x11e   :  { %v1085_v35 = vsel %vm1078_vm14, %v1081_v26, %v1084_v54  ;;  %v1252_v23 = vadd.s32 536870912, %v1251_v1  ;;  %v1314_v47 = vor.u32 %v1313_v6, %v1312_v24  ;;  %v1317_v53 = vor.u32 %v1316_v15, %v1315_v7  ;;  %v36_v24 = vld [vmem:[#allocation2 + $0x68] sm:$0xff] }
 0x11f   :  { %v1086_v29 = vsel %vm1075_vm0, nan, %v1085_v35  ;;  %v1170_v30 = vmul.f32 %v1169_v41, %v1167_v32  ;;  %v1323_v10 = vor.u32 %v1322_v45, %v1321_v37  ;;  %v1324_v59 = vshll.u32 %v7721_v44, %v1309_v57 }
 0x120   :  { %v1253_v51 = vshrl.u32 %v1252_v23, 30  ;;  %v1325_v16 = vshrl.u32 %v7722_v52, %v1310_v46  ;;  %vm1327_vm5 = vcmp.lt.s32.totalorder %v8588_v48, 1  ;;  %6815 = vst [vmem:[#allocation5 + $0x40] sm:$0xff] %v1086_v29  ;;  %v1320_v12 = vor.u32 %v1319_v50, %v1318_v9 }
 0x121   :  { %v1171_v11 = vxor.u32 2147483648, %v1170_v30  ;;  %vm1330_vm6 = vcmp.lt.s32.totalorder %v8588_v48, 4  ;;  %v8622_v31 = vshll.u32 %v1303_v61, 8  ;;  %v1176_v13 = vsel %vm8592_vm3, 0, %v1174_v62 }
 0x122   :  { %v1254_v27 = vshll.u32 %v1253_v51, 30  ;;  %vm1328_vm7 = vcmp.lt.s32.totalorder %v8588_v48, 2  ;;  %vm1329_vm8 = vcmp.lt.s32.totalorder %v8588_v48, 3  ;;  %v1326_v34 = vor.u32 %v1325_v16, %v1324_v59 }
 0x123   :  { %v1172_v28 = vsel %vm1089_vm1, %v1171_v11, %v1170_v30  ;;  %v1335_v56 = vsel %vm1327_vm5, %v1314_v47, %v1317_v53  ;;  %v1336_v57 = vsel %vm1330_vm6, %v1323_v10, 920167782  ;;  %v8634_v25 = vmul.f32 30.0, %v35_v2 }
 0x124   :  { %v1175_v58 = vsel %vm8592_vm3, %v8288_v49, %v1172_v28  ;;  %v8639_v60 = vsub.s32 %v1251_v1, %v1254_v27  ;;  %v1311_v61 = vshrl.u32 %v7717_v36, %v1310_v46  ;;  %v1180_v14 = vadd.s32 3, %v1176_v13 }
 0x125   :  { %7446 = vcosq.f32 %v1175_v58  ;;  %v1332_v0 = vsel %vm1330_vm6, %v1320_v12, 2102212464  ;;  %v1337_v3 = vsel %vm1329_vm8, %v1320_v12, %v1336_v57  ;;  %v1277_v5 = vsub.s32 4, %v1253_v51 }
 0x126   :  { %7448 = vsinq.f32 %v1175_v58  ;;  %v1257_v17 = vsub.s32 0, %v8639_v60  ;;  %v1338_v21 = vsel %vm1328_vm7, %v1335_v56, %v1337_v3  ;;  %v1339_v7 = vsel %vm1327_vm5, %v1317_v53, %v1320_v12 }
 0x127   :  { %v1340_v46 = vsel %vm1330_vm6, %v1326_v34, 1326507024  ;;  %v8654_v22 = vmul.u32.u64.low %v8622_v31, %v1338_v21  ;;  %v8655_v33 = vmul.u32.u64.high %v8622_v31, %v1338_v21, %v8654_v22  ;;  %v1331_v37 = vsel %vm1327_vm5, %v1311_v61, %v1314_v47 }
 0x128   :  { %v6929_v9 = vmin.u32 %v1257_v17, %v8639_v60  ;;  %v1333_v39 = vsel %vm1329_vm8, %v1317_v53, %v1332_v0  ;;  %v1341_v4 = vsel %vm1329_vm8, %v1323_v10, %v1340_v46  ;;  %v1181_v41 = vand.u32 3, %v1180_v14 }
 0x129   :  { %v1342_v43 = vsel %vm1328_vm7, %v1339_v7, %v1341_v4  ;;  %v1402_v54 = vand.u32 2139095040, %v8634_v25  ;;  %v8668_v1 = vmul.f32 30.0, %v36_v24  ;;  %vm1179_vm9 = vweird.f32 %v8288_v49 }
 0x12a   :  { %vm1193_vm10 = vcmp.lt.s32.totalorder %v8444_v18, 0  ;;  %v1259_v6 = vclz %v6929_v9  ;;  %v1334_v15 = vsel %vm1328_vm7, %v1331_v37, %v1333_v39  ;;  %vm8680_vm11 = vcmp.le.f32.partialorder %v1191_v19, 0.7853982 }
 0x12b   :  { %v8675_v26 = vmul.u32.u64.low %v8622_v31, %v1342_v43  ;;  %v8676_v32 = vmul.u32.u64.high %v8622_v31, %v1342_v43, %v8675_v26  ;;  %v1403_v50 = vshrl.u32 %v1402_v54, 23  ;;  %v1278_v62 = vsel %vm1193_vm10, %v1277_v5, %v1253_v51 }
 0x12c   :  { %v6930_v35 = vadd.s32 4294967294, %v1259_v6  ;;  %v1399_v23 = vand.u32 2147483647, %v8634_v25  ;;  %vm1182_vm12 = vcmp.lt.s32.totalorder %v1181_v41, 2  ;;  %vm1183_vm13 = vcmp.eq.s32.totalorder %v1181_v41, 0 }
 0x12d   :  { %v1353_v48 = vadd.s32 1, %v8655_v33  ;;  %v6936_v47 = vadd.s32 4294967169, %v1403_v50  ;;  %vm1186_vm14 = vcmp.eq.s32.totalorder %v1181_v41, 2  ;;  %v1247_v29 = vadd.s32 %v8573_v63, %v8582_v20 }
 0x12e   :  { %vm6931_vm15 = vcmp.lt.s32.totalorder %v6930_v35, 0  ;;  %v1350_v19 = vmul.u32 %v8622_v31, %v1334_v15  ;;  %v1280_v10 = vsel %vm8680_vm11, 0, %v1278_v62  ;;  %vm1352_vm0 = vc.u32 %v8676_v32, %v8654_v22 }
 0x12f   :  { %v7447_v30 = vpop.eup %7446  ;;  %v1262_v53 = vsel %vm6931_vm15, 0, %v6930_v35  ;;  %v1409_v51 = vadd.s32 1, %v6936_v47  ;;  %v1354_v63 = vsel %vm1352_vm0, %v1353_v48, %v8655_v33  ;;  %v1406_v20 = vand.u32 8388607, %v1399_v23 }
 0x130   :  { %v7449_v59 = vpop.eup %7448  ;;  %v1187_v16 = vxor.u32 2147483648, %v7447_v30  ;;  %v1263_v2 = vsub.s32 32, %v1262_v53  ;;  %v1264_v11 = vshll.u32 %v8639_v60, %v1262_v53  ;;  %v1267_v12 = vsub.s32 4294967266, %v1262_v53 }
 0x131   :  { %v1184_v13 = vxor.u32 2147483648, %v7449_v59  ;;  %vm1410_vm1 = vcmp.gt.s32.totalorder %v1409_v51, 0  ;;  %v1355_v34 = vadd.s32 %v1354_v63, %v1350_v19  ;;  %v1506_v58 = vand.u32 2139095040, %v8668_v1 }
 0x132   :  { %v1188_v31 = vsel %vm1186_vm14, %v1187_v16, %v7449_v59  ;;  %v1265_v27 = vshrl.u32 %v1247_v29, %v1263_v2  ;;  %v1268_v28 = vadd.s32 127, %v1267_v12  ;;  %v1411_v57 = vsel %vm1410_vm1, %v1409_v51, 0 }
 0x133   :  { %v1185_v56 = vsel %vm1183_vm13, %v7447_v30, %v1184_v13  ;;  %v1356_v0 = vadd.s32 536870912, %v1355_v34  ;;  %v1284_v17 = vadd.s32 3, %v1280_v10  ;;  %v1413_v5 = vand.u32 31, %v1411_v57 }
 0x134   :  { %v1189_v60 = vsel %vm1182_vm12, %v1185_v56, %v1188_v31  ;;  %v1266_v61 = vor.u32 %v1265_v27, %v1264_v11  ;;  %v1269_v14 = vshll.u32 %v1268_v28, 23  ;;  %v1407_v46 = vor.u32 8388608, %v1406_v20 }
 0x135   :  { %v1190_v3 = vsel %vm1179_vm9, nan, %v1189_v60  ;;  %v8705_v7 = vshrl.u32 %v1356_v0, 30  ;;  %v1412_v33 = vshrl.u32 %v1411_v57, 5  ;;  %v1414_v9 = vsub.s32 32, %v1413_v5 }
 0x136   :  { %v1270_v21 = vor.u32 4788187, %v1269_v14  ;;  %v1273_v24 = vcvt.s32.f32 %v1266_v61  ;;  %6816 = vst [vmem:[#allocation5 + $0x48] sm:$0xff] %v1190_v3  ;;  %v1503_v37 = vand.u32 2147483647, %v8668_v1  ;;  %v1507_v39 = vshrl.u32 %v1506_v58, 23 }
 0x137   :  { %v1358_v41 = vshll.u32 %v8705_v7, 30  ;;  %v1416_v43 = vshll.u32 %v7717_v36, %v1413_v5  ;;  %v1419_v49 = vshll.u32 %v7718_v38, %v1413_v5  ;;  %v1417_v54 = vshrl.u32 %v7718_v38, %v1414_v9 }
 0x138   :  { %v1271_v4 = vand.u32 2147483647, %v1270_v21  ;;  %v1420_v6 = vshrl.u32 %v7719_v40, %v1414_v9  ;;  %v1422_v15 = vshll.u32 %v7719_v40, %v1413_v5  ;;  %v1423_v26 = vshrl.u32 %v7720_v42, %v1414_v9 }
 0x139   :  { %v8715_v35 = vsub.s32 %v1355_v34, %v1358_v41  ;;  %v1425_v62 = vshll.u32 %v7720_v42, %v1413_v5  ;;  %v1426_v48 = vshrl.u32 %v7721_v44, %v1414_v9  ;;  %v8719_v47 = vand.u32 3, %v1284_v17 }
 0x13a   :  { %v1274_v50 = vmul.f32 %v1273_v24, %v1271_v4  ;;  %v8721_v29 = vshll.u32 %v1407_v46, 8  ;;  %v6940_v19 = vadd.s32 4294967169, %v1507_v39  ;;  %v8725_v30 = vand.u32 8388607, %v1503_v37 }
 0x13b   :  { %v1361_v10 = vsub.s32 0, %v8715_v35  ;;  %v1415_v51 = vshrl.u32 %v7717_v36, %v1414_v9  ;;  %v1418_v59 = vor.u32 %v1417_v54, %v1416_v43  ;;  %v1421_v16 = vor.u32 %v1420_v6, %v1419_v49 }
 0x13c   :  { %v1275_v53 = vxor.u32 2147483648, %v1274_v50  ;;  %v1424_v2 = vor.u32 %v1423_v26, %v1422_v15  ;;  %v1428_v11 = vshll.u32 %v7721_v44, %v1413_v5  ;;  %v1429_v12 = vshrl.u32 %v7722_v52, %v1414_v9 }
 0x13d   :  { %v6933_v63 = vmin.u32 %v1361_v10, %v8715_v35  ;;  %v1427_v20 = vor.u32 %v1426_v48, %v1425_v62  ;;  %vm1431_vm2 = vcmp.lt.s32.totalorder %v1412_v33, 1  ;;  %vm1434_vm3 = vcmp.lt.s32.totalorder %v1412_v33, 4 }
 0x13e   :  { %v1276_v13 = vsel %vm1193_vm10, %v1275_v53, %v1274_v50  ;;  %v1430_v27 = vor.u32 %v1429_v12, %v1428_v11  ;;  %v1513_v28 = vadd.s32 1, %v6940_v19  ;;  %vm1432_vm4 = vcmp.lt.s32.totalorder %v1412_v33, 2 }
 0x13f   :  { %v1279_v31 = vsel %vm8680_vm11, %v8444_v18, %v1276_v13  ;;  %v1363_v34 = vclz %v6933_v63  ;;  %vm1433_vm5 = vcmp.lt.s32.totalorder %v1412_v33, 3  ;;  %v1435_v56 = vsel %vm1431_vm2, %v1415_v51, %v1418_v59 }
 0x140   :  { %7450 = vcosq.f32 %v1279_v31  ;;  %v1436_v57 = vsel %vm1434_vm3, %v1424_v2, 2102212464  ;;  %v1439_v58 = vsel %vm1431_vm2, %v1418_v59, %v1421_v16  ;;  %v1440_v45 = vsel %vm1434_vm3, %v1427_v20, 920167782 }
 0x141   :  { %7452 = vsinq.f32 %v1279_v31  ;;  %v6934_v60 = vadd.s32 4294967294, %v1363_v34  ;;  %v1437_v61 = vsel %vm1433_vm5, %v1421_v16, %v1436_v57  ;;  %v1443_v14 = vsel %vm1431_vm2, %v1421_v16, %v1424_v2 }
 0x142   :  { %vm1287_vm6 = vcmp.eq.s32.totalorder %v8719_v47, 0  ;;  %v1351_v0 = vadd.s32 %v8654_v22, %v8676_v32  ;;  %v1441_v3 = vsel %vm1433_vm5, %v1424_v2, %v1440_v45  ;;  %v1444_v17 = vsel %vm1434_vm3, %v1430_v27, 1326507024 }
 0x143   :  { %vm1514_vm7 = vcmp.gt.s32.totalorder %v1513_v28, 0  ;;  %vm1286_vm8 = vcmp.lt.s32.totalorder %v8719_v47, 2  ;;  %vm6935_vm9 = vcmp.lt.s32.totalorder %v6934_v60, 0  ;;  %v1438_v5 = vsel %vm1432_vm4, %v1435_v56, %v1437_v61 }
 0x144   :  { %v1442_v21 = vsel %vm1432_vm4, %v1439_v58, %v1441_v3  ;;  %v1445_v24 = vsel %vm1433_vm5, %v1427_v20, %v1444_v17  ;;  %vm1283_vm10 = vweird.f32 %v8444_v18  ;;  %v1366_v46 = vsel %vm6935_vm9, 0, %v6934_v60 }
 0x145   :  { %v1446_v9 = vsel %vm1432_vm4, %v1443_v14, %v1445_v24  ;;  %v8755_v22 = vmul.u32.u64.low %v8721_v29, %v1442_v21  ;;  %v8756_v32 = vmul.u32.u64.high %v8721_v29, %v1442_v21, %v8755_v22  ;;  %vm1297_vm11 = vcmp.lt.s32.totalorder %v8489_v55, 0 }
 0x146   :  { %v1367_v39 = vsub.s32 32, %v1366_v46  ;;  %v1368_v4 = vshll.u32 %v8715_v35, %v1366_v46  ;;  %v1371_v41 = vsub.s32 4294967266, %v1366_v46  ;;  %v1515_v43 = vsel %vm1514_vm7, %v1513_v28, 0 }
 0x147   :  { %vm1290_vm12 = vcmp.eq.s32.totalorder %v8719_v47, 2  ;;  %v8763_v49 = vmul.u32.u64.low %v8721_v29, %v1446_v9  ;;  %v8764_v54 = vmul.u32.u64.high %v8721_v29, %v1446_v9, %v8763_v49  ;;  %v1517_v33 = vand.u32 31, %v1515_v43  ;;  %v37_v47 = vld [vmem:[#allocation2 + $0x70] sm:$0xff] }
 0x148   :  { %v1369_v6 = vshrl.u32 %v1351_v0, %v1367_v39  ;;  %v1372_v15 = vadd.s32 127, %v1371_v41  ;;  %v1381_v26 = vsub.s32 4, %v8705_v7  ;;  %v1511_v50 = vor.u32 8388608, %v8725_v30 }
 0x149   :  { %v1454_v62 = vmul.u32 %v8721_v29, %v1438_v5  ;;  %v1457_v48 = vadd.s32 1, %v8756_v32  ;;  %v8770_v35 = vshrl.u32 %v1515_v43, 5  ;;  %v1518_v19 = vsub.s32 32, %v1517_v33 }
 0x14a   :  { %v7451_v53 = vpop.eup %7450  ;;  %vm8774_vm13 = vcmp.le.f32.partialorder %v1295_v8, 0.7853982  ;;  %v1370_v51 = vor.u32 %v1369_v6, %v1368_v4  ;;  %v1373_v59 = vshll.u32 %v1372_v15, 23  ;;  %v1520_v16 = vshll.u32 %v7717_v36, %v1517_v33 }
 0x14b   :  { %v1523_v30 = vshll.u32 %v7718_v38, %v1517_v33  ;;  %v7453_v2 = vpop.eup %7452  ;;  %v1291_v29 = vxor.u32 2147483648, %v7451_v53  ;;  %vm1456_vm14 = vc.u32 %v8764_v54, %v8755_v22  ;;  %v1526_v11 = vshll.u32 %v7719_v40, %v1517_v33 }
 0x14c   :  { %v1529_v12 = vshll.u32 %v7720_v42, %v1517_v33  ;;  %v1288_v13 = vxor.u32 2147483648, %v7453_v2  ;;  %v1374_v8 = vor.u32 4788187, %v1373_v59  ;;  %v1377_v63 = vcvt.s32.f32 %v1370_v51 }
 0x14d   :  { %v1458_v20 = vsel %vm1456_vm14, %v1457_v48, %v8756_v32  ;;  %v1292_v31 = vsel %vm1290_vm12, %v1291_v29, %v7453_v2  ;;  %v1521_v28 = vshrl.u32 %v7718_v38, %v1518_v19  ;;  %v1524_v34 = vshrl.u32 %v7719_v40, %v1518_v19 }
 0x14e   :  { %v1459_v27 = vadd.s32 %v1458_v20, %v1454_v62  ;;  %v1289_v56 = vsel %vm1287_vm6, %v7451_v53, %v1288_v13  ;;  %v1375_v57 = vand.u32 2147483647, %v1374_v8  ;;  %v1527_v58 = vshrl.u32 %v7720_v42, %v1518_v19 }
 0x14f   :  { %v1530_v60 = vshrl.u32 %v7721_v44, %v1518_v19  ;;  %v1293_v61 = vsel %vm1286_vm8, %v1289_v56, %v1292_v31  ;;  %v1382_v45 = vsel %vm1297_vm11, %v1381_v26, %v8705_v7  ;;  %v1522_v0 = vor.u32 %v1521_v28, %v1520_v16  ;;  %v38_v16 = vld [vmem:[#allocation2 + $0x78] sm:$0xff] }
 0x150   :  { %v1460_v14 = vadd.s32 536870912, %v1459_v27  ;;  %v1294_v3 = vsel %vm1283_vm10, nan, %v1293_v61  ;;  %v1378_v17 = vmul.f32 %v1377_v63, %v1375_v57  ;;  %v1525_v5 = vor.u32 %v1524_v34, %v1523_v30 }
 0x151   :  { %v1531_v21 = vor.u32 %v1530_v60, %v1529_v12  ;;  %v1532_v46 = vshll.u32 %v7721_v44, %v1517_v33  ;;  %v1533_v9 = vshrl.u32 %v7722_v52, %v1518_v19  ;;  %vm1535_vm15 = vcmp.lt.s32.totalorder %v8770_v35, 1  ;;  %6817 = vst [vmem:[#allocation5 + $0x50] sm:$0xff] %v1294_v3 }
 0x152   :  { %v1461_v24 = vshrl.u32 %v1460_v14, 30  ;;  %v1379_v32 = vxor.u32 2147483648, %v1378_v17  ;;  %v1528_v39 = vor.u32 %v1527_v58, %v1526_v11  ;;  %vm1538_vm0 = vcmp.lt.s32.totalorder %v8770_v35, 4 }
 0x153   :  { %v8804_v7 = vshll.u32 %v1511_v50, 8  ;;  %v1384_v18 = vsel %vm8774_vm13, 0, %v1382_v45  ;;  %vm1536_vm1 = vcmp.lt.s32.totalorder %v8770_v35, 2  ;;  %vm1537_vm2 = vcmp.lt.s32.totalorder %v8770_v35, 3 }
 0x154   :  { %v1462_v4 = vshll.u32 %v1461_v24, 30  ;;  %v1380_v41 = vsel %vm1297_vm11, %v1379_v32, %v1378_v17  ;;  %v1534_v43 = vor.u32 %v1533_v9, %v1532_v46  ;;  %v1543_v49 = vsel %vm1535_vm15, %v1522_v0, %v1525_v5 }
 0x155   :  { %v1544_v33 = vsel %vm1538_vm0, %v1531_v21, 920167782  ;;  %v8816_v6 = vmul.f32 30.0, %v37_v47  ;;  %v1383_v15 = vsel %vm8774_vm13, %v8489_v55, %v1380_v41  ;;  %v1519_v50 = vshrl.u32 %v7717_v36, %v1518_v19 }
 0x156   :  { %v8821_v26 = vsub.s32 %v1459_v27, %v1462_v4  ;;  %7454 = vcosq.f32 %v1383_v15  ;;  %v1388_v62 = vadd.s32 3, %v1384_v18  ;;  %v1540_v48 = vsel %vm1538_vm0, %v1528_v39, 2102212464 }
 0x157   :  { %v1545_v53 = vsel %vm1537_vm2, %v1528_v39, %v1544_v33  ;;  %7456 = vsinq.f32 %v1383_v15  ;;  %v1485_v59 = vsub.s32 4, %v1461_v24  ;;  %v1547_v30 = vsel %vm1535_vm15, %v1525_v5, %v1528_v39 }
 0x158   :  { %v1465_v51 = vsub.s32 0, %v8821_v26  ;;  %v1546_v10 = vsel %vm1536_vm1, %v1543_v49, %v1545_v53  ;;  %v1548_v19 = vsel %vm1538_vm0, %v1534_v43, 1326507024  ;;  %v1539_v12 = vsel %vm1535_vm15, %v1519_v50, %v1522_v0 }
 0x159   :  { %v8836_v2 = vmul.u32.u64.low %v8804_v7, %v1546_v10  ;;  %v8837_v29 = vmul.u32.u64.high %v8804_v7, %v1546_v10, %v8836_v2  ;;  %v1541_v13 = vsel %vm1537_vm2, %v1525_v5, %v1540_v48  ;;  %v1549_v8 = vsel %vm1537_vm2, %v1531_v21, %v1548_v19 }
 0x15a   :  { %v6937_v11 = vmin.u32 %v1465_v51, %v8821_v26  ;;  %v1389_v63 = vand.u32 3, %v1388_v62  ;;  %v1550_v20 = vsel %vm1536_vm1, %v1547_v30, %v1549_v8  ;;  %v1610_v31 = vand.u32 2139095040, %v8816_v6 }
 0x15b   :  { %v8850_v27 = vmul.f32 30.0, %v38_v16  ;;  %vm1387_vm3 = vweird.f32 %v8489_v55  ;;  %vm1401_vm4 = vcmp.lt.s32.totalorder %v8634_v25, 0  ;;  %v1542_v34 = vsel %vm1536_vm1, %v1539_v12, %v1541_v13 }
 0x15c   :  { %v1467_v28 = vclz %v6937_v11  ;;  %v8857_v56 = vmul.u32.u64.low %v8804_v7, %v1550_v20  ;;  %v8858_v57 = vmul.u32.u64.high %v8804_v7, %v1550_v20, %v8857_v56  ;;  %v1611_v58 = vshrl.u32 %v1610_v31, 23 }
 0x15d   :  { %vm8862_vm5 = vcmp.le.f32.partialorder %v1399_v23, 0.7853982  ;;  %v1486_v45 = vsel %vm1401_vm4, %v1485_v59, %v1461_v24  ;;  %v1607_v14 = vand.u32 2147483647, %v8816_v6  ;;  %vm1390_vm6 = vcmp.lt.s32.totalorder %v1389_v63, 2 }
 0x15e   :  { %v6938_v61 = vadd.s32 4294967294, %v1467_v28  ;;  %vm1391_vm7 = vcmp.eq.s32.totalorder %v1389_v63, 0  ;;  %v1561_v35 = vadd.s32 1, %v8837_v29  ;;  %v6944_v0 = vadd.s32 4294967169, %v1611_v58 }
 0x15f   :  { %vm1394_vm8 = vcmp.eq.s32.totalorder %v1389_v63, 2  ;;  %v1455_v3 = vadd.s32 %v8755_v22, %v8764_v54  ;;  %v1558_v23 = vmul.u32 %v8804_v7, %v1542_v34  ;;  %v1488_v21 = vsel %vm8862_vm5, 0, %v1486_v45 }
 0x160   :  { %vm6939_vm9 = vcmp.lt.s32.totalorder %v6938_v61, 0  ;;  %v7455_v17 = vpop.eup %7454  ;;  %vm1560_vm10 = vc.u32 %v8858_v57, %v8836_v2  ;;  %v1617_v24 = vadd.s32 1, %v6944_v0  ;;  %v1614_v54 = vand.u32 8388607, %v1607_v14 }
 0x161   :  { %v1470_v5 = vsel %vm6939_vm9, 0, %v6938_v61  ;;  %v7457_v46 = vpop.eup %7456  ;;  %v1395_v9 = vxor.u32 2147483648, %v7455_v17  ;;  %v1562_v22 = vsel %vm1560_vm10, %v1561_v35, %v8837_v29  ;;  %v1714_v15 = vand.u32 2139095040, %v8850_v27 }
 0x162   :  { %v1471_v47 = vsub.s32 32, %v1470_v5  ;;  %v1472_v32 = vshll.u32 %v8821_v26, %v1470_v5  ;;  %v1475_v39 = vsub.s32 4294967266, %v1470_v5  ;;  %v1392_v18 = vxor.u32 2147483648, %v7457_v46 }
 0x163   :  { %vm1618_vm11 = vcmp.gt.s32.totalorder %v1617_v24, 0  ;;  %v1396_v7 = vsel %vm1394_vm8, %v1395_v9, %v7457_v46  ;;  %v1563_v43 = vadd.s32 %v1562_v22, %v1558_v23  ;;  %v1492_v51 = vadd.s32 3, %v1488_v21 }
 0x164   :  { %v1473_v4 = vshrl.u32 %v1455_v3, %v1471_v47  ;;  %v1476_v41 = vadd.s32 127, %v1475_v39  ;;  %v1393_v49 = vsel %vm1391_vm7, %v7455_v17, %v1392_v18  ;;  %v1619_v33 = vsel %vm1618_vm11, %v1617_v24, 0 }
 0x165   :  { %v1397_v26 = vsel %vm1390_vm6, %v1393_v49, %v1396_v7  ;;  %v1564_v48 = vadd.s32 536870912, %v1563_v43  ;;  %v1621_v59 = vand.u32 31, %v1619_v33  ;;  %v1615_v19 = vor.u32 8388608, %v1614_v54 }
 0x166   :  { %v1474_v50 = vor.u32 %v1473_v4, %v1472_v32  ;;  %v1477_v62 = vshll.u32 %v1476_v41, 23  ;;  %v1398_v53 = vsel %vm1387_vm3, nan, %v1397_v26  ;;  %v1620_v29 = vshrl.u32 %v1619_v33, 5 }
 0x167   :  { %v8887_v30 = vshrl.u32 %v1564_v48, 30  ;;  %6818 = vst [vmem:[#allocation5 + $0x58] sm:$0xff] %v1398_v53  ;;  %v1622_v11 = vsub.s32 32, %v1621_v59  ;;  %v1711_v12 = vand.u32 2147483647, %v8850_v27  ;;  %v1715_v13 = vshrl.u32 %v1714_v15, 23 }
 0x168   :  { %v1478_v10 = vor.u32 4788187, %v1477_v62  ;;  %v1481_v16 = vcvt.s32.f32 %v1474_v50  ;;  %v1624_v20 = vshll.u32 %v7717_v36, %v1621_v59  ;;  %v1627_v55 = vshll.u32 %v7718_v38, %v1621_v59 }
 0x169   :  { %v1566_v63 = vshll.u32 %v8887_v30, 30  ;;  %v1625_v31 = vshrl.u32 %v7718_v38, %v1622_v11  ;;  %v1628_v28 = vshrl.u32 %v7719_v40, %v1622_v11  ;;  %v1630_v34 = vshll.u32 %v7719_v40, %v1621_v59 }
 0x16a   :  { %v1479_v8 = vand.u32 2147483647, %v1478_v10  ;;  %v1631_v56 = vshrl.u32 %v7720_v42, %v1622_v11  ;;  %v1633_v45 = vshll.u32 %v7720_v42, %v1621_v59  ;;  %v1634_v35 = vshrl.u32 %v7721_v44, %v1622_v11 }
 0x16b   :  { %v8897_v61 = vsub.s32 %v1563_v43, %v1566_v63  ;;  %v8901_v0 = vand.u32 3, %v1492_v51  ;;  %v8903_v3 = vshll.u32 %v1615_v19, 8  ;;  %v6948_v23 = vadd.s32 4294967169, %v1715_v13 }
 0x16c   :  { %v1482_v58 = vmul.f32 %v1481_v16, %v1479_v8  ;;  %v8907_v17 = vand.u32 8388607, %v1711_v12  ;;  %v1623_v24 = vshrl.u32 %v7717_v36, %v1622_v11  ;;  %v1626_v46 = vor.u32 %v1625_v31, %v1624_v20 }
 0x16d   :  { %v1569_v21 = vsub.s32 0, %v8897_v61  ;;  %v1629_v9 = vor.u32 %v1628_v28, %v1627_v55  ;;  %v1632_v47 = vor.u32 %v1631_v56, %v1630_v34  ;;  %v1636_v32 = vshll.u32 %v7721_v44, %v1621_v59 }
 0x16e   :  { %v1483_v5 = vxor.u32 2147483648, %v1482_v58  ;;  %v1637_v39 = vshrl.u32 %v7722_v52, %v1622_v11  ;;  %v1635_v54 = vor.u32 %v1634_v35, %v1633_v45  ;;  %vm1639_vm12 = vcmp.lt.s32.totalorder %v1620_v29, 1 }
 0x16f   :  { %v6941_v22 = vmin.u32 %v1569_v21, %v8897_v61  ;;  %vm1642_vm13 = vcmp.lt.s32.totalorder %v1620_v29, 4  ;;  %v1721_v41 = vadd.s32 1, %v6948_v23  ;;  %vm1640_vm14 = vcmp.lt.s32.totalorder %v1620_v29, 2 }
 0x170   :  { %v1484_v18 = vsel %vm1401_vm4, %v1483_v5, %v1482_v58  ;;  %v1638_v4 = vor.u32 %v1637_v39, %v1636_v32  ;;  %vm1641_vm15 = vcmp.lt.s32.totalorder %v1620_v29, 3  ;;  %v1643_v49 = vsel %vm1639_vm12, %v1623_v24, %v1626_v46 }
 0x171   :  { %v1487_v7 = vsel %vm8862_vm5, %v8634_v25, %v1484_v18  ;;  %v1571_v43 = vclz %v6941_v22  ;;  %v1644_v33 = vsel %vm1642_vm13, %v1632_v47, 2102212464  ;;  %v1647_v15 = vsel %vm1639_vm12, %v1626_v46, %v1629_v9 }
 0x172   :  { %7458 = vcosq.f32 %v1487_v7  ;;  %v1645_v50 = vsel %vm1641_vm15, %v1629_v9, %v1644_v33  ;;  %v1648_v60 = vsel %vm1642_vm13, %v1635_v54, 920167782  ;;  %v1651_v62 = vsel %vm1639_vm12, %v1629_v9, %v1632_v47 }
 0x173   :  { %7460 = vsinq.f32 %v1487_v7  ;;  %v6942_v26 = vadd.s32 4294967294, %v1571_v43  ;;  %vm1495_vm0 = vcmp.eq.s32.totalorder %v8901_v0, 0  ;;  %v1559_v48 = vadd.s32 %v8836_v2, %v8858_v57 }
 0x174   :  { %v1649_v53 = vsel %vm1641_vm15, %v1632_v47, %v1648_v60  ;;  %v1652_v51 = vsel %vm1642_vm13, %v1638_v4, 1326507024  ;;  %vm1722_vm1 = vcmp.gt.s32.totalorder %v1721_v41, 0  ;;  %vm1494_vm2 = vcmp.lt.s32.totalorder %v8901_v0, 2 }
 0x175   :  { %vm6943_vm3 = vcmp.lt.s32.totalorder %v6942_v26, 0  ;;  %v1646_v59 = vsel %vm1640_vm14, %v1643_v49, %v1645_v50  ;;  %v1650_v10 = vsel %vm1640_vm14, %v1647_v15, %v1649_v53  ;;  %v1653_v16 = vsel %vm1641_vm15, %v1635_v54, %v1652_v51 }
 0x176   :  { %vm1491_vm4 = vweird.f32 %v8634_v25  ;;  %v1574_v19 = vsel %vm6943_vm3, 0, %v6942_v26  ;;  %v1654_v11 = vsel %vm1640_vm14, %v1651_v62, %v1653_v16  ;;  %vm1505_vm5 = vcmp.lt.s32.totalorder %v8668_v1, 0 }
 0x177   :  { %v8937_v2 = vmul.u32.u64.low %v8903_v3, %v1650_v10  ;;  %v8938_v57 = vmul.u32.u64.high %v8903_v3, %v1650_v10, %v8937_v2  ;;  %v1575_v13 = vsub.s32 32, %v1574_v19  ;;  %v1576_v8 = vshll.u32 %v8897_v61, %v1574_v19 }
 0x178   :  { %v1579_v63 = vsub.s32 4294967266, %v1574_v19  ;;  %v1723_v20 = vsel %vm1722_vm1, %v1721_v41, 0  ;;  %vm1498_vm6 = vcmp.eq.s32.totalorder %v8901_v0, 2  ;;  %v1589_v56 = vsub.s32 4, %v8887_v30  ;;  %v39_v0 = vld [vmem:[#allocation2 + $0x80] sm:$0xff] }
 0x179   :  { %v8945_v55 = vmul.u32.u64.low %v8903_v3, %v1654_v11  ;;  %v8946_v31 = vmul.u32.u64.high %v8903_v3, %v1654_v11, %v8945_v55  ;;  %v1725_v29 = vand.u32 31, %v1723_v20  ;;  %v1577_v28 = vshrl.u32 %v1559_v48, %v1575_v13 }
 0x17a   :  { %v1580_v34 = vadd.s32 127, %v1579_v63  ;;  %v1719_v58 = vor.u32 8388608, %v8907_v17  ;;  %v1662_v45 = vmul.u32 %v8903_v3, %v1646_v59  ;;  %v1665_v35 = vadd.s32 1, %v8938_v57 }
 0x17b   :  { %v8952_v61 = vshrl.u32 %v1723_v20, 5  ;;  %v1726_v23 = vsub.s32 32, %v1725_v29  ;;  %vm8956_vm7 = vcmp.le.f32.partialorder %v1503_v37, 0.7853982  ;;  %v1578_v24 = vor.u32 %v1577_v28, %v1576_v8 }
 0x17c   :  { %v7459_v5 = vpop.eup %7458  ;;  %v1581_v46 = vshll.u32 %v1580_v34, 23  ;;  %v1728_v9 = vshll.u32 %v7717_v36, %v1725_v29  ;;  %v1731_v17 = vshll.u32 %v7718_v38, %v1725_v29  ;;  %vm1664_vm8 = vc.u32 %v8946_v31, %v8937_v2 }
 0x17d   :  { %v7461_v47 = vpop.eup %7460  ;;  %v1499_v3 = vxor.u32 2147483648, %v7459_v5  ;;  %v1734_v32 = vshll.u32 %v7719_v40, %v1725_v29  ;;  %v1737_v39 = vshll.u32 %v7720_v42, %v1725_v29  ;;  %v1585_v22 = vcvt.s32.f32 %v1578_v24 }
 0x17e   :  { %v1496_v18 = vxor.u32 2147483648, %v7461_v47  ;;  %v1582_v37 = vor.u32 4788187, %v1581_v46  ;;  %v1666_v54 = vsel %vm1664_vm8, %v1665_v35, %v8938_v57  ;;  %v1729_v41 = vshrl.u32 %v7718_v38, %v1726_v23 }
 0x17f   :  { %v1500_v7 = vsel %vm1498_vm6, %v1499_v3, %v7461_v47  ;;  %v1667_v4 = vadd.s32 %v1666_v54, %v1662_v45  ;;  %v1732_v43 = vshrl.u32 %v7719_v40, %v1726_v23  ;;  %v1735_v15 = vshrl.u32 %v7720_v42, %v1726_v23 }
 0x180   :  { %v1497_v49 = vsel %vm1495_vm0, %v7459_v5, %v1496_v18  ;;  %v1583_v33 = vand.u32 2147483647, %v1582_v37  ;;  %v1738_v26 = vshrl.u32 %v7721_v44, %v1726_v23  ;;  %v1590_v60 = vsel %vm1505_vm5, %v1589_v56, %v8887_v30 }
 0x181   :  { %v1501_v50 = vsel %vm1494_vm2, %v1497_v49, %v1500_v7  ;;  %v1668_v62 = vadd.s32 536870912, %v1667_v4  ;;  %v1730_v48 = vor.u32 %v1729_v41, %v1728_v9  ;;  %v1733_v59 = vor.u32 %v1732_v43, %v1731_v17  ;;  %v40_v9 = vld [vmem:[#allocation2 + $0x88] sm:$0xff] }
 0x182   :  { %v1502_v53 = vsel %vm1491_vm4, nan, %v1501_v50  ;;  %v1586_v51 = vmul.f32 %v1585_v22, %v1583_v33  ;;  %v1739_v10 = vor.u32 %v1738_v26, %v1737_v39  ;;  %v1740_v19 = vshll.u32 %v7721_v44, %v1725_v29 }
 0x183   :  { %v1669_v16 = vshrl.u32 %v1668_v62, 30  ;;  %v1741_v11 = vshrl.u32 %v7722_v52, %v1726_v23  ;;  %vm1743_vm9 = vcmp.lt.s32.totalorder %v8952_v61, 1  ;;  %6819 = vst [vmem:[#allocation5 + $0x60] sm:$0xff] %v1502_v53  ;;  %v1736_v13 = vor.u32 %v1735_v15, %v1734_v32 }
 0x184   :  { %v1587_v57 = vxor.u32 2147483648, %v1586_v51  ;;  %vm1746_vm10 = vcmp.lt.s32.totalorder %v8952_v61, 4  ;;  %v8986_v30 = vshll.u32 %v1719_v58, 8  ;;  %v1592_v25 = vsel %vm8956_vm7, 0, %v1590_v60 }
 0x185   :  { %v1670_v8 = vshll.u32 %v1669_v16, 30  ;;  %vm1744_vm11 = vcmp.lt.s32.totalorder %v8952_v61, 2  ;;  %vm1745_vm12 = vcmp.lt.s32.totalorder %v8952_v61, 3  ;;  %v1742_v20 = vor.u32 %v1741_v11, %v1740_v19 }
 0x186   :  { %v1588_v63 = vsel %vm1505_vm5, %v1587_v57, %v1586_v51  ;;  %v1751_v55 = vsel %vm1743_vm9, %v1730_v48, %v1733_v59  ;;  %v1752_v29 = vsel %vm1746_vm10, %v1739_v10, 920167782  ;;  %v8998_v28 = vmul.f32 30.0, %v39_v0 }
 0x187   :  { %v1591_v34 = vsel %vm8956_vm7, %v8668_v1, %v1588_v63  ;;  %v9003_v56 = vsub.s32 %v1667_v4, %v1670_v8  ;;  %v1727_v58 = vshrl.u32 %v7717_v36, %v1726_v23  ;;  %v1596_v45 = vadd.s32 3, %v1592_v25 }
 0x188   :  { %7462 = vcosq.f32 %v1591_v34  ;;  %v1748_v35 = vsel %vm1746_vm10, %v1736_v13, 2102212464  ;;  %v1753_v5 = vsel %vm1745_vm12, %v1736_v13, %v1752_v29  ;;  %v1693_v46 = vsub.s32 4, %v1669_v16 }
 0x189   :  { %7464 = vsinq.f32 %v1591_v34  ;;  %v1673_v24 = vsub.s32 0, %v9003_v56  ;;  %v1754_v21 = vsel %vm1744_vm11, %v1751_v55, %v1753_v5  ;;  %v1755_v17 = vsel %vm1743_vm9, %v1733_v59, %v1736_v13 }
 0x18a   :  { %v1756_v23 = vsel %vm1746_vm10, %v1742_v20, 1326507024  ;;  %v9018_v47 = vmul.u32.u64.low %v8986_v30, %v1754_v21  ;;  %v9019_v3 = vmul.u32.u64.high %v8986_v30, %v1754_v21, %v9018_v47  ;;  %v1747_v39 = vsel %vm1743_vm9, %v1727_v58, %v1730_v48 }
 0x18b   :  { %v6945_v32 = vmin.u32 %v1673_v24, %v9003_v56  ;;  %v1749_v18 = vsel %vm1745_vm12, %v1733_v59, %v1748_v35  ;;  %v1757_v37 = vsel %vm1745_vm12, %v1739_v10, %v1756_v23  ;;  %v1597_v22 = vand.u32 3, %v1596_v45 }
 0x18c   :  { %v1758_v54 = vsel %vm1744_vm11, %v1755_v17, %v1757_v37  ;;  %v1818_v7 = vand.u32 2139095040, %v8998_v28  ;;  %v9032_v4 = vmul.f32 30.0, %v40_v9  ;;  %vm1595_vm13 = vweird.f32 %v8668_v1 }
 0x18d   :  { %vm1609_vm14 = vcmp.lt.s32.totalorder %v8816_v6, 0  ;;  %v1675_v41 = vclz %v6945_v32  ;;  %v1750_v43 = vsel %vm1744_vm11, %v1747_v39, %v1749_v18  ;;  %vm9044_vm15 = vcmp.le.f32.partialorder %v1607_v14, 0.7853982 }
 0x18e   :  { %v9039_v49 = vmul.u32.u64.low %v8986_v30, %v1758_v54  ;;  %v9040_v33 = vmul.u32.u64.high %v8986_v30, %v1758_v54, %v9039_v49  ;;  %v1819_v15 = vshrl.u32 %v1818_v7, 23  ;;  %v1694_v60 = vsel %vm1609_vm14, %v1693_v46, %v1669_v16 }
 0x18f   :  { %v6946_v50 = vadd.s32 4294967294, %v1675_v41  ;;  %v1815_v62 = vand.u32 2147483647, %v8998_v28  ;;  %vm1598_vm0 = vcmp.lt.s32.totalorder %v1597_v22, 2  ;;  %vm1599_vm1 = vcmp.eq.s32.totalorder %v1597_v22, 0 }
 0x190   :  { %v1769_v61 = vadd.s32 1, %v9019_v3  ;;  %v6952_v48 = vadd.s32 4294967169, %v1819_v15  ;;  %vm1602_vm2 = vcmp.eq.s32.totalorder %v1597_v22, 2  ;;  %v1663_v53 = vadd.s32 %v8937_v2, %v8946_v31 }
 0x191   :  { %vm6947_vm3 = vcmp.lt.s32.totalorder %v6946_v50, 0  ;;  %v1766_v14 = vmul.u32 %v8986_v30, %v1750_v43  ;;  %v1696_v10 = vsel %vm9044_vm15, 0, %v1694_v60  ;;  %vm1768_vm4 = vc.u32 %v9040_v33, %v9018_v47 }
 0x192   :  { %v7463_v51 = vpop.eup %7462  ;;  %v1678_v59 = vsel %vm6947_vm3, 0, %v6946_v50  ;;  %v1825_v16 = vadd.s32 1, %v6952_v48  ;;  %v1770_v2 = vsel %vm1768_vm4, %v1769_v61, %v9019_v3  ;;  %v1822_v31 = vand.u32 8388607, %v1815_v62 }
 0x193   :  { %v7465_v19 = vpop.eup %7464  ;;  %v1603_v11 = vxor.u32 2147483648, %v7463_v51  ;;  %v1679_v0 = vsub.s32 32, %v1678_v59  ;;  %v1680_v57 = vshll.u32 %v9003_v56, %v1678_v59  ;;  %v1683_v13 = vsub.s32 4294967266, %v1678_v59 }
 0x194   :  { %v1600_v25 = vxor.u32 2147483648, %v7465_v19  ;;  %vm1826_vm5 = vcmp.gt.s32.totalorder %v1825_v16, 0  ;;  %v1771_v20 = vadd.s32 %v1770_v2, %v1766_v14  ;;  %v1922_v34 = vand.u32 2139095040, %v9032_v4 }
 0x195   :  { %v1604_v30 = vsel %vm1602_vm2, %v1603_v11, %v7465_v19  ;;  %v1681_v8 = vshrl.u32 %v1663_v53, %v1679_v0  ;;  %v1684_v63 = vadd.s32 127, %v1683_v13  ;;  %v1827_v29 = vsel %vm1826_vm5, %v1825_v16, 0 }
 0x196   :  { %v1601_v55 = vsel %vm1599_vm1, %v7463_v51, %v1600_v25  ;;  %v1772_v35 = vadd.s32 536870912, %v1771_v20  ;;  %v1700_v24 = vadd.s32 3, %v1696_v10  ;;  %v1829_v46 = vand.u32 31, %v1827_v29 }
 0x197   :  { %v1605_v56 = vsel %vm1598_vm0, %v1601_v55, %v1604_v30  ;;  %v1682_v58 = vor.u32 %v1681_v8, %v1680_v57  ;;  %v1685_v45 = vshll.u32 %v1684_v63, 23  ;;  %v1823_v23 = vor.u32 8388608, %v1822_v31 }
 0x198   :  { %v1606_v5 = vsel %vm1595_vm13, nan, %v1605_v56  ;;  %v9069_v17 = vshrl.u32 %v1772_v35, 30  ;;  %v1828_v3 = vshrl.u32 %v1827_v29, 5  ;;  %v1830_v32 = vsub.s32 32, %v1829_v46 }
 0x199   :  { %v1686_v21 = vor.u32 4788187, %v1685_v45  ;;  %v1689_v9 = vcvt.s32.f32 %v1682_v58  ;;  %6820 = vst [vmem:[#allocation5 + $0x68] sm:$0xff] %v1606_v5  ;;  %v1919_v39 = vand.u32 2147483647, %v9032_v4  ;;  %v1923_v18 = vshrl.u32 %v1922_v34, 23 }
 0x19a   :  { %v1774_v22 = vshll.u32 %v9069_v17, 30  ;;  %v1832_v54 = vshll.u32 %v7717_v36, %v1829_v46  ;;  %v1835_v1 = vshll.u32 %v7718_v38, %v1829_v46  ;;  %v1833_v7 = vshrl.u32 %v7718_v38, %v1830_v32 }
 0x19b   :  { %v1687_v37 = vand.u32 2147483647, %v1686_v21  ;;  %v1836_v41 = vshrl.u32 %v7719_v40, %v1830_v32  ;;  %v1838_v43 = vshll.u32 %v7719_v40, %v1829_v46  ;;  %v1839_v49 = vshrl.u32 %v7720_v42, %v1830_v32 }
 0x19c   :  { %v9079_v50 = vsub.s32 %v1771_v20, %v1774_v22  ;;  %v1841_v60 = vshll.u32 %v7720_v42, %v1829_v46  ;;  %v1842_v61 = vshrl.u32 %v7721_v44, %v1830_v32  ;;  %v9083_v48 = vand.u32 3, %v1700_v24 }
 0x19d   :  { %v1690_v15 = vmul.f32 %v1689_v9, %v1687_v37  ;;  %v9085_v53 = vshll.u32 %v1823_v23, 8  ;;  %v6956_v14 = vadd.s32 4294967169, %v1923_v18  ;;  %v9089_v51 = vand.u32 8388607, %v1919_v39 }
 0x19e   :  { %v1777_v10 = vsub.s32 0, %v9079_v50  ;;  %v1831_v16 = vshrl.u32 %v7717_v36, %v1830_v32  ;;  %v1834_v19 = vor.u32 %v1833_v7, %v1832_v54  ;;  %v1837_v11 = vor.u32 %v1836_v41, %v1835_v1 }
 0x19f   :  { %v1691_v59 = vxor.u32 2147483648, %v1690_v15  ;;  %v1840_v0 = vor.u32 %v1839_v49, %v1838_v43  ;;  %v1844_v57 = vshll.u32 %v7721_v44, %v1829_v46  ;;  %v1845_v13 = vshrl.u32 %v7722_v52, %v1830_v32 }
 0x1a0   :  { %v6949_v2 = vmin.u32 %v1777_v10, %v9079_v50  ;;  %v1843_v31 = vor.u32 %v1842_v61, %v1841_v60  ;;  %vm1847_vm6 = vcmp.lt.s32.totalorder %v1828_v3, 1  ;;  %vm1850_vm7 = vcmp.lt.s32.totalorder %v1828_v3, 4 }
 0x1a1   :  { %v1692_v25 = vsel %vm1609_vm14, %v1691_v59, %v1690_v15  ;;  %v1846_v8 = vor.u32 %v1845_v13, %v1844_v57  ;;  %v1929_v63 = vadd.s32 1, %v6956_v14  ;;  %vm1848_vm8 = vcmp.lt.s32.totalorder %v1828_v3, 2 }
 0x1a2   :  { %v1695_v30 = vsel %vm9044_vm15, %v8816_v6, %v1692_v25  ;;  %v1779_v20 = vclz %v6949_v2  ;;  %vm1849_vm9 = vcmp.lt.s32.totalorder %v1828_v3, 3  ;;  %v1851_v55 = vsel %vm1847_vm6, %v1831_v16, %v1834_v19 }
 0x1a3   :  { %7466 = vcosq.f32 %v1695_v30  ;;  %v1852_v29 = vsel %vm1850_vm7, %v1840_v0, 2102212464  ;;  %v1855_v34 = vsel %vm1847_vm6, %v1834_v19, %v1837_v11  ;;  %v1856_v26 = vsel %vm1850_vm7, %v1843_v31, 920167782 }
 0x1a4   :  { %7468 = vsinq.f32 %v1695_v30  ;;  %v6950_v56 = vadd.s32 4294967294, %v1779_v20  ;;  %v1853_v58 = vsel %vm1849_vm9, %v1837_v11, %v1852_v29  ;;  %v1859_v45 = vsel %vm1847_vm6, %v1837_v11, %v1840_v0 }
 0x1a5   :  { %vm1703_vm10 = vcmp.eq.s32.totalorder %v9083_v48, 0  ;;  %v1767_v35 = vadd.s32 %v9018_v47, %v9040_v33  ;;  %v1857_v5 = vsel %vm1849_vm9, %v1840_v0, %v1856_v26  ;;  %v1860_v24 = vsel %vm1850_vm7, %v1846_v8, 1326507024 }
 0x1a6   :  { %vm1930_vm11 = vcmp.gt.s32.totalorder %v1929_v63, 0  ;;  %vm1702_vm12 = vcmp.lt.s32.totalorder %v9083_v48, 2  ;;  %vm6951_vm13 = vcmp.lt.s32.totalorder %v6950_v56, 0  ;;  %v1854_v46 = vsel %vm1848_vm8, %v1851_v55, %v1853_v58 }
 0x1a7   :  { %v1858_v21 = vsel %vm1848_vm8, %v1855_v34, %v1857_v5  ;;  %v1861_v9 = vsel %vm1849_vm9, %v1843_v31, %v1860_v24  ;;  %vm1699_vm14 = vweird.f32 %v8816_v6  ;;  %v1782_v23 = vsel %vm6951_vm13, 0, %v6950_v56 }
 0x1a8   :  { %v1862_v32 = vsel %vm1848_vm8, %v1859_v45, %v1861_v9  ;;  %v9119_v47 = vmul.u32.u64.low %v9085_v53, %v1858_v21  ;;  %v9120_v33 = vmul.u32.u64.high %v9085_v53, %v1858_v21, %v9119_v47  ;;  %vm1713_vm15 = vcmp.lt.s32.totalorder %v8850_v27, 0 }
 0x1a9   :  { %v1783_v18 = vsub.s32 32, %v1782_v23  ;;  %v1784_v37 = vshll.u32 %v9079_v50, %v1782_v23  ;;  %v1787_v22 = vsub.s32 4294967266, %v1782_v23  ;;  %v1931_v54 = vsel %vm1930_vm11, %v1929_v63, 0 }
 0x1aa   :  { %vm1706_vm0 = vcmp.eq.s32.totalorder %v9083_v48, 2  ;;  %v9127_v1 = vmul.u32.u64.low %v9085_v53, %v1862_v32  ;;  %v9128_v7 = vmul.u32.u64.high %v9085_v53, %v1862_v32, %v9127_v1  ;;  %v1933_v3 = vand.u32 31, %v1931_v54  ;;  %v41_v48 = vld [vmem:[#allocation2 + $0x90] sm:$0xff] }
 0x1ab   :  { %v1785_v41 = vshrl.u32 %v1767_v35, %v1783_v18  ;;  %v1788_v43 = vadd.s32 127, %v1787_v22  ;;  %v1797_v49 = vsub.s32 4, %v9069_v17  ;;  %v1927_v15 = vor.u32 8388608, %v9089_v51 }
 0x1ac   :  { %v1870_v60 = vmul.u32 %v9085_v53, %v1854_v46  ;;  %v1873_v61 = vadd.s32 1, %v9120_v33  ;;  %v9134_v50 = vshrl.u32 %v1931_v54, 5  ;;  %v1934_v14 = vsub.s32 32, %v1933_v3 }
 0x1ad   :  { %v7467_v59 = vpop.eup %7466  ;;  %vm9138_vm1 = vcmp.le.f32.partialorder %v1711_v12, 0.7853982  ;;  %v1786_v16 = vor.u32 %v1785_v41, %v1784_v37  ;;  %v1789_v19 = vshll.u32 %v1788_v43, 23  ;;  %v1936_v11 = vshll.u32 %v7717_v36, %v1933_v3 }
 0x1ae   :  { %v1939_v51 = vshll.u32 %v7718_v38, %v1933_v3  ;;  %v7469_v0 = vpop.eup %7468  ;;  %v1707_v53 = vxor.u32 2147483648, %v7467_v59  ;;  %vm1872_vm2 = vc.u32 %v9128_v7, %v9119_v47  ;;  %v1942_v57 = vshll.u32 %v7719_v40, %v1933_v3 }
 0x1af   :  { %v1945_v13 = vshll.u32 %v7720_v42, %v1933_v3  ;;  %v1704_v25 = vxor.u32 2147483648, %v7469_v0  ;;  %v1790_v12 = vor.u32 4788187, %v1789_v19  ;;  %v1793_v2 = vcvt.s32.f32 %v1786_v16 }
 0x1b0   :  { %v1874_v31 = vsel %vm1872_vm2, %v1873_v61, %v9120_v33  ;;  %v1708_v30 = vsel %vm1706_vm0, %v1707_v53, %v7469_v0  ;;  %v1937_v63 = vshrl.u32 %v7718_v38, %v1934_v14  ;;  %v1940_v20 = vshrl.u32 %v7719_v40, %v1934_v14 }
 0x1b1   :  { %v1875_v8 = vadd.s32 %v1874_v31, %v1870_v60  ;;  %v1705_v55 = vsel %vm1703_vm10, %v7467_v59, %v1704_v25  ;;  %v1791_v29 = vand.u32 2147483647, %v1790_v12  ;;  %v1943_v34 = vshrl.u32 %v7720_v42, %v1934_v14 }
 0x1b2   :  { %v1946_v56 = vshrl.u32 %v7721_v44, %v1934_v14  ;;  %v1709_v58 = vsel %vm1702_vm12, %v1705_v55, %v1708_v30  ;;  %v1798_v26 = vsel %vm1713_vm15, %v1797_v49, %v9069_v17  ;;  %v1938_v35 = vor.u32 %v1937_v63, %v1936_v11  ;;  %v42_v11 = vld [vmem:[#allocation2 + $0x98] sm:$0xff] }
 0x1b3   :  { %v1876_v45 = vadd.s32 536870912, %v1875_v8  ;;  %v1710_v5 = vsel %vm1699_vm14, nan, %v1709_v58  ;;  %v1794_v24 = vmul.f32 %v1793_v2, %v1791_v29  ;;  %v1941_v46 = vor.u32 %v1940_v20, %v1939_v51 }
 0x1b4   :  { %v1947_v21 = vor.u32 %v1946_v56, %v1945_v13  ;;  %v1948_v23 = vshll.u32 %v7721_v44, %v1933_v3  ;;  %v1949_v32 = vshrl.u32 %v7722_v52, %v1934_v14  ;;  %vm1951_vm3 = vcmp.lt.s32.totalorder %v9134_v50, 1  ;;  %6821 = vst [vmem:[#allocation5 + $0x70] sm:$0xff] %v1710_v5 }
 0x1b5   :  { %v1877_v9 = vshrl.u32 %v1876_v45, 30  ;;  %v1795_v33 = vxor.u32 2147483648, %v1794_v24  ;;  %v1944_v18 = vor.u32 %v1943_v34, %v1942_v57  ;;  %vm1954_vm4 = vcmp.lt.s32.totalorder %v9134_v50, 4 }
 0x1b6   :  { %v9168_v17 = vshll.u32 %v1927_v15, 8  ;;  %v1800_v6 = vsel %vm9138_vm1, 0, %v1798_v26  ;;  %vm1952_vm5 = vcmp.lt.s32.totalorder %v9134_v50, 2  ;;  %vm1953_vm6 = vcmp.lt.s32.totalorder %v9134_v50, 3 }
 0x1b7   :  { %v1878_v37 = vshll.u32 %v1877_v9, 30  ;;  %v1796_v22 = vsel %vm1713_vm15, %v1795_v33, %v1794_v24  ;;  %v1950_v54 = vor.u32 %v1949_v32, %v1948_v23  ;;  %v1959_v1 = vsel %vm1951_vm3, %v1938_v35, %v1941_v46 }
 0x1b8   :  { %v1960_v3 = vsel %vm1954_vm4, %v1947_v21, 920167782  ;;  %v9180_v41 = vmul.f32 30.0, %v41_v48  ;;  %v1799_v43 = vsel %vm9138_vm1, %v8850_v27, %v1796_v22  ;;  %v1935_v15 = vshrl.u32 %v7717_v36, %v1934_v14 }
 0x1b9   :  { %v9185_v49 = vsub.s32 %v1875_v8, %v1878_v37  ;;  %7470 = vcosq.f32 %v1799_v43  ;;  %v1804_v60 = vadd.s32 3, %v1800_v6  ;;  %v1956_v61 = vsel %vm1954_vm4, %v1944_v18, 2102212464 }
 0x1ba   :  { %v1961_v59 = vsel %vm1953_vm6, %v1944_v18, %v1960_v3  ;;  %7472 = vsinq.f32 %v1799_v43  ;;  %v1901_v19 = vsub.s32 4, %v1877_v9  ;;  %v1963_v51 = vsel %vm1951_vm3, %v1941_v46, %v1944_v18 }
 0x1bb   :  { %v1881_v16 = vsub.s32 0, %v9185_v49  ;;  %v1962_v10 = vsel %vm1952_vm5, %v1959_v1, %v1961_v59  ;;  %v1964_v14 = vsel %vm1954_vm4, %v1950_v54, 1326507024  ;;  %v1955_v13 = vsel %vm1951_vm3, %v1935_v15, %v1938_v35 }
 0x1bc   :  { %v9200_v0 = vmul.u32.u64.low %v9168_v17, %v1962_v10  ;;  %v9201_v53 = vmul.u32.u64.high %v9168_v17, %v1962_v10, %v9200_v0  ;;  %v1957_v25 = vsel %vm1953_vm6, %v1941_v46, %v1956_v61  ;;  %v1965_v12 = vsel %vm1953_vm6, %v1947_v21, %v1964_v14 }
 0x1bd   :  { %v6953_v57 = vmin.u32 %v1881_v16, %v9185_v49  ;;  %v1805_v2 = vand.u32 3, %v1804_v60  ;;  %v1966_v31 = vsel %vm1952_vm5, %v1963_v51, %v1965_v12  ;;  %v2026_v30 = vand.u32 2139095040, %v9180_v41 }
 0x1be   :  { %v9214_v8 = vmul.f32 30.0, %v42_v11  ;;  %vm1803_vm7 = vweird.f32 %v8850_v27  ;;  %vm1817_vm8 = vcmp.lt.s32.totalorder %v8998_v28, 0  ;;  %v1958_v20 = vsel %vm1952_vm5, %v1955_v13, %v1957_v25 }
 0x1bf   :  { %v1883_v63 = vclz %v6953_v57  ;;  %v9221_v55 = vmul.u32.u64.low %v9168_v17, %v1966_v31  ;;  %v9222_v29 = vmul.u32.u64.high %v9168_v17, %v1966_v31, %v9221_v55  ;;  %v2027_v34 = vshrl.u32 %v2026_v30, 23 }
 0x1c0   :  { %vm9226_vm9 = vcmp.le.f32.partialorder %v1815_v62, 0.7853982  ;;  %v1902_v26 = vsel %vm1817_vm8, %v1901_v19, %v1877_v9  ;;  %v2023_v45 = vand.u32 2147483647, %v9180_v41  ;;  %vm1806_vm10 = vcmp.lt.s32.totalorder %v1805_v2, 2 }
 0x1c1   :  { %v6954_v58 = vadd.s32 4294967294, %v1883_v63  ;;  %vm1807_vm11 = vcmp.eq.s32.totalorder %v1805_v2, 0  ;;  %v1977_v50 = vadd.s32 1, %v9201_v53  ;;  %v6960_v35 = vadd.s32 4294967169, %v2027_v34 }
 0x1c2   :  { %vm1810_vm12 = vcmp.eq.s32.totalorder %v1805_v2, 2  ;;  %v1871_v5 = vadd.s32 %v9119_v47, %v9128_v7  ;;  %v1974_v62 = vmul.u32 %v9168_v17, %v1958_v20  ;;  %v1904_v21 = vsel %vm9226_vm9, 0, %v1902_v26 }
 0x1c3   :  { %vm6955_vm13 = vcmp.lt.s32.totalorder %v6954_v58, 0  ;;  %v7471_v24 = vpop.eup %7470  ;;  %vm1976_vm14 = vc.u32 %v9222_v29, %v9200_v0  ;;  %v2033_v9 = vadd.s32 1, %v6960_v35  ;;  %v2030_v7 = vand.u32 8388607, %v2023_v45 }
 0x1c4   :  { %v1886_v46 = vsel %vm6955_vm13, 0, %v6954_v58  ;;  %v7473_v23 = vpop.eup %7472  ;;  %v1811_v32 = vxor.u32 2147483648, %v7471_v24  ;;  %v1978_v47 = vsel %vm1976_vm14, %v1977_v50, %v9201_v53  ;;  %v2130_v43 = vand.u32 2139095040, %v9214_v8 }
 0x1c5   :  { %v1887_v48 = vsub.s32 32, %v1886_v46  ;;  %v1888_v33 = vshll.u32 %v9185_v49, %v1886_v46  ;;  %v1891_v18 = vsub.s32 4294967266, %v1886_v46  ;;  %v1808_v6 = vxor.u32 2147483648, %v7473_v23 }
 0x1c6   :  { %vm2034_vm15 = vcmp.gt.s32.totalorder %v2033_v9, 0  ;;  %v1812_v17 = vsel %vm1810_vm12, %v1811_v32, %v7473_v23  ;;  %v1979_v54 = vadd.s32 %v1978_v47, %v1974_v62  ;;  %v1908_v16 = vadd.s32 3, %v1904_v21 }
 0x1c7   :  { %v1889_v37 = vshrl.u32 %v1871_v5, %v1887_v48  ;;  %v1892_v22 = vadd.s32 127, %v1891_v18  ;;  %v1809_v1 = vsel %vm1807_vm11, %v7471_v24, %v1808_v6  ;;  %v2035_v3 = vsel %vm2034_vm15, %v2033_v9, 0 }
 0x1c8   :  { %v1813_v49 = vsel %vm1806_vm10, %v1809_v1, %v1812_v17  ;;  %v1980_v61 = vadd.s32 536870912, %v1979_v54  ;;  %v2037_v19 = vand.u32 31, %v2035_v3  ;;  %v2031_v14 = vor.u32 8388608, %v2030_v7 }
 0x1c9   :  { %v1890_v15 = vor.u32 %v1889_v37, %v1888_v33  ;;  %v1893_v60 = vshll.u32 %v1892_v22, 23  ;;  %v1814_v59 = vsel %vm1803_vm7, nan, %v1813_v49  ;;  %v2036_v53 = vshrl.u32 %v2035_v3, 5 }
 0x1ca   :  { %v9251_v51 = vshrl.u32 %v1980_v61, 30  ;;  %6822 = vst [vmem:[#allocation5 + $0x78] sm:$0xff] %v1814_v59  ;;  %v2038_v57 = vsub.s32 32, %v2037_v19  ;;  %v2127_v13 = vand.u32 2147483647, %v9214_v8  ;;  %v2131_v25 = vshrl.u32 %v2130_v43, 23 }
 0x1cb   :  { %v1894_v10 = vor.u32 4788187, %v1893_v60  ;;  %v1897_v11 = vcvt.s32.f32 %v1890_v15  ;;  %v2040_v31 = vshll.u32 %v7717_v36, %v2037_v19  ;;  %v2043_v27 = vshll.u32 %v7718_v38, %v2037_v19 }
 0x1cc   :  { %v1982_v2 = vshll.u32 %v9251_v51, 30  ;;  %v2041_v30 = vshrl.u32 %v7718_v38, %v2038_v57  ;;  %v2044_v63 = vshrl.u32 %v7719_v40, %v2038_v57  ;;  %v2046_v20 = vshll.u32 %v7719_v40, %v2037_v19 }
 0x1cd   :  { %v1895_v12 = vand.u32 2147483647, %v1894_v10  ;;  %v2047_v55 = vshrl.u32 %v7720_v42, %v2038_v57  ;;  %v2049_v26 = vshll.u32 %v7720_v42, %v2037_v19  ;;  %v2050_v50 = vshrl.u32 %v7721_v44, %v2038_v57 }
 0x1ce   :  { %v9261_v58 = vsub.s32 %v1979_v54, %v1982_v2  ;;  %v9265_v35 = vand.u32 3, %v1908_v16  ;;  %v9267_v5 = vshll.u32 %v2031_v14, 8  ;;  %v6964_v62 = vadd.s32 4294967169, %v2131_v25 }
 0x1cf   :  { %v1898_v34 = vmul.f32 %v1897_v11, %v1895_v12  ;;  %v9271_v24 = vand.u32 8388607, %v2127_v13  ;;  %v2039_v9 = vshrl.u32 %v7717_v36, %v2038_v57  ;;  %v2042_v23 = vor.u32 %v2041_v30, %v2040_v31 }
 0x1d0   :  { %v1985_v21 = vsub.s32 0, %v9261_v58  ;;  %v2045_v32 = vor.u32 %v2044_v63, %v2043_v27  ;;  %v2048_v48 = vor.u32 %v2047_v55, %v2046_v20  ;;  %v2052_v33 = vshll.u32 %v7721_v44, %v2037_v19 }
 0x1d1   :  { %v1899_v46 = vxor.u32 2147483648, %v1898_v34  ;;  %v2053_v18 = vshrl.u32 %v7722_v52, %v2038_v57  ;;  %v2051_v7 = vor.u32 %v2050_v50, %v2049_v26  ;;  %vm2055_vm0 = vcmp.lt.s32.totalorder %v2036_v53, 1 }
 0x1d2   :  { %v6957_v47 = vmin.u32 %v1985_v21, %v9261_v58  ;;  %vm2058_vm1 = vcmp.lt.s32.totalorder %v2036_v53, 4  ;;  %v2137_v22 = vadd.s32 1, %v6964_v62  ;;  %vm2056_vm2 = vcmp.lt.s32.totalorder %v2036_v53, 2 }
 0x1d3   :  { %v1900_v6 = vsel %vm1817_vm8, %v1899_v46, %v1898_v34  ;;  %v2054_v37 = vor.u32 %v2053_v18, %v2052_v33  ;;  %vm2057_vm3 = vcmp.lt.s32.totalorder %v2036_v53, 3  ;;  %v2059_v1 = vsel %vm2055_vm0, %v2039_v9, %v2042_v23 }
 0x1d4   :  { %v1903_v17 = vsel %vm9226_vm9, %v8998_v28, %v1900_v6  ;;  %v1987_v54 = vclz %v6957_v47  ;;  %v2060_v3 = vsel %vm2058_vm1, %v2048_v48, 2102212464  ;;  %v2063_v43 = vsel %vm2055_vm0, %v2042_v23, %v2045_v32 }
 0x1d5   :  { %7474 = vcosq.f32 %v1903_v17  ;;  %v2061_v15 = vsel %vm2057_vm3, %v2045_v32, %v2060_v3  ;;  %v2064_v56 = vsel %vm2058_vm1, %v2051_v7, 920167782  ;;  %v2067_v60 = vsel %vm2055_vm0, %v2045_v32, %v2048_v48 }
 0x1d6   :  { %7476 = vsinq.f32 %v1903_v17  ;;  %v6958_v49 = vadd.s32 4294967294, %v1987_v54  ;;  %vm1911_vm4 = vcmp.eq.s32.totalorder %v9265_v35, 0  ;;  %v1975_v61 = vadd.s32 %v9200_v0, %v9222_v29 }
 0x1d7   :  { %v2065_v59 = vsel %vm2057_vm3, %v2048_v48, %v2064_v56  ;;  %v2068_v16 = vsel %vm2058_vm1, %v2054_v37, 1326507024  ;;  %vm2138_vm5 = vcmp.gt.s32.totalorder %v2137_v22, 0  ;;  %vm1910_vm6 = vcmp.lt.s32.totalorder %v9265_v35, 2 }
 0x1d8   :  { %vm6959_vm7 = vcmp.lt.s32.totalorder %v6958_v49, 0  ;;  %v2062_v19 = vsel %vm2056_vm2, %v2059_v1, %v2061_v15  ;;  %v2066_v10 = vsel %vm2056_vm2, %v2063_v43, %v2065_v59  ;;  %v2069_v11 = vsel %vm2057_vm3, %v2051_v7, %v2068_v16 }
 0x1d9   :  { %vm1907_vm8 = vweird.f32 %v8998_v28  ;;  %v1990_v14 = vsel %vm6959_vm7, 0, %v6958_v49  ;;  %v2070_v57 = vsel %vm2056_vm2, %v2067_v60, %v2069_v11  ;;  %vm1921_vm9 = vcmp.lt.s32.totalorder %v9032_v4, 0 }
 0x1da   :  { %v9301_v0 = vmul.u32.u64.low %v9267_v5, %v2066_v10  ;;  %v9302_v29 = vmul.u32.u64.high %v9267_v5, %v2066_v10, %v9301_v0  ;;  %v1991_v25 = vsub.s32 32, %v1990_v14  ;;  %v1992_v12 = vshll.u32 %v9261_v58, %v1990_v14 }
 0x1db   :  { %v1995_v2 = vsub.s32 4294967266, %v1990_v14  ;;  %v2139_v31 = vsel %vm2138_vm5, %v2137_v22, 0  ;;  %vm1914_vm10 = vcmp.eq.s32.totalorder %v9265_v35, 2  ;;  %v2005_v55 = vsub.s32 4, %v9251_v51  ;;  %v43_v35 = vld [vmem:[#allocation2 + $0xa0] sm:$0xff] }
 0x1dc   :  { %v9309_v27 = vmul.u32.u64.low %v9267_v5, %v2070_v57  ;;  %v9310_v30 = vmul.u32.u64.high %v9267_v5, %v2070_v57, %v9309_v27  ;;  %v2141_v53 = vand.u32 31, %v2139_v31  ;;  %v1993_v63 = vshrl.u32 %v1975_v61, %v1991_v25 }
 0x1dd   :  { %v1996_v20 = vadd.s32 127, %v1995_v2  ;;  %v2135_v34 = vor.u32 8388608, %v9271_v24  ;;  %v2078_v26 = vmul.u32 %v9267_v5, %v2062_v19  ;;  %v2081_v50 = vadd.s32 1, %v9302_v29 }
 0x1de   :  { %v9316_v58 = vshrl.u32 %v2139_v31, 5  ;;  %v2142_v62 = vsub.s32 32, %v2141_v53  ;;  %vm9320_vm11 = vcmp.le.f32.partialorder %v1919_v39, 0.7853982  ;;  %v1994_v9 = vor.u32 %v1993_v63, %v1992_v12 }
 0x1df   :  { %v7475_v46 = vpop.eup %7474  ;;  %v1997_v23 = vshll.u32 %v1996_v20, 23  ;;  %v2144_v32 = vshll.u32 %v7717_v36, %v2141_v53  ;;  %v2147_v24 = vshll.u32 %v7718_v38, %v2141_v53  ;;  %vm2080_vm12 = vc.u32 %v9310_v30, %v9301_v0 }
 0x1e0   :  { %v7477_v48 = vpop.eup %7476  ;;  %v1915_v5 = vxor.u32 2147483648, %v7475_v46  ;;  %v2150_v33 = vshll.u32 %v7719_v40, %v2141_v53  ;;  %v2153_v18 = vshll.u32 %v7720_v42, %v2141_v53  ;;  %v2001_v47 = vcvt.s32.f32 %v1994_v9 }
 0x1e1   :  { %v1912_v6 = vxor.u32 2147483648, %v7477_v48  ;;  %v1998_v39 = vor.u32 4788187, %v1997_v23  ;;  %v2082_v7 = vsel %vm2080_vm12, %v2081_v50, %v9302_v29  ;;  %v2145_v22 = vshrl.u32 %v7718_v38, %v2142_v62 }
 0x1e2   :  { %v1916_v17 = vsel %vm1914_vm10, %v1915_v5, %v7477_v48  ;;  %v2083_v37 = vadd.s32 %v2082_v7, %v2078_v26  ;;  %v2148_v54 = vshrl.u32 %v7719_v40, %v2142_v62  ;;  %v2151_v43 = vshrl.u32 %v7720_v42, %v2142_v62 }
 0x1e3   :  { %v1913_v1 = vsel %vm1911_vm4, %v7475_v46, %v1912_v6  ;;  %v1999_v3 = vand.u32 2147483647, %v1998_v39  ;;  %v2154_v49 = vshrl.u32 %v7721_v44, %v2142_v62  ;;  %v2006_v56 = vsel %vm1921_vm9, %v2005_v55, %v9251_v51 }
 0x1e4   :  { %v1917_v15 = vsel %vm1910_vm6, %v1913_v1, %v1916_v17  ;;  %v2084_v60 = vadd.s32 536870912, %v2083_v37  ;;  %v2146_v61 = vor.u32 %v2145_v22, %v2144_v32  ;;  %v2149_v19 = vor.u32 %v2148_v54, %v2147_v24  ;;  %v44_v32 = vld [vmem:[#allocation2 + $0xa8] sm:$0xff] }
 0x1e5   :  { %v1918_v59 = vsel %vm1907_vm8, nan, %v1917_v15  ;;  %v2002_v16 = vmul.f32 %v2001_v47, %v1999_v3  ;;  %v2155_v10 = vor.u32 %v2154_v49, %v2153_v18  ;;  %v2156_v14 = vshll.u32 %v7721_v44, %v2141_v53 }
 0x1e6   :  { %v2085_v11 = vshrl.u32 %v2084_v60, 30  ;;  %v2157_v57 = vshrl.u32 %v7722_v52, %v2142_v62  ;;  %vm2159_vm13 = vcmp.lt.s32.totalorder %v9316_v58, 1  ;;  %6823 = vst [vmem:[#allocation5 + $0x80] sm:$0xff] %v1918_v59  ;;  %v2152_v25 = vor.u32 %v2151_v43, %v2150_v33 }
 0x1e7   :  { %v2003_v29 = vxor.u32 2147483648, %v2002_v16  ;;  %vm2162_vm14 = vcmp.lt.s32.totalorder %v9316_v58, 4  ;;  %v9350_v51 = vshll.u32 %v2135_v34, 8  ;;  %v2008_v28 = vsel %vm9320_vm11, 0, %v2006_v56 }
 0x1e8   :  { %v2086_v12 = vshll.u32 %v2085_v11, 30  ;;  %vm2160_vm15 = vcmp.lt.s32.totalorder %v9316_v58, 2  ;;  %vm2161_vm0 = vcmp.lt.s32.totalorder %v9316_v58, 3  ;;  %v2158_v31 = vor.u32 %v2157_v57, %v2156_v14 }
 0x1e9   :  { %v2004_v2 = vsel %vm1921_vm9, %v2003_v29, %v2002_v16  ;;  %v2167_v27 = vsel %vm2159_vm13, %v2146_v61, %v2149_v19  ;;  %v2168_v53 = vsel %vm2162_vm14, %v2155_v10, 920167782  ;;  %v9362_v63 = vmul.f32 30.0, %v43_v35 }
 0x1ea   :  { %v2007_v20 = vsel %vm9320_vm11, %v9032_v4, %v2004_v2  ;;  %v9367_v55 = vsub.s32 %v2083_v37, %v2086_v12  ;;  %v2143_v34 = vshrl.u32 %v7717_v36, %v2142_v62  ;;  %v2012_v26 = vadd.s32 3, %v2008_v28 }
 0x1eb   :  { %7478 = vcosq.f32 %v2007_v20  ;;  %v2164_v50 = vsel %vm2162_vm14, %v2152_v25, 2102212464  ;;  %v2169_v46 = vsel %vm2161_vm0, %v2152_v25, %v2168_v53  ;;  %v2109_v23 = vsub.s32 4, %v2085_v11 }
 0x1ec   :  { %7480 = vsinq.f32 %v2007_v20  ;;  %v2089_v9 = vsub.s32 0, %v9367_v55  ;;  %v2170_v21 = vsel %vm2160_vm15, %v2167_v27, %v2169_v46  ;;  %v2171_v24 = vsel %vm2159_vm13, %v2149_v19, %v2152_v25 }
 0x1ed   :  { %v2172_v62 = vsel %vm2162_vm14, %v2158_v31, 1326507024  ;;  %v9382_v48 = vmul.u32.u64.low %v9350_v51, %v2170_v21  ;;  %v9383_v5 = vmul.u32.u64.high %v9350_v51, %v2170_v21, %v9382_v48  ;;  %v2163_v18 = vsel %vm2159_vm13, %v2143_v34, %v2146_v61 }
 0x1ee   :  { %v6961_v33 = vmin.u32 %v2089_v9, %v9367_v55  ;;  %v2165_v6 = vsel %vm2161_vm0, %v2149_v19, %v2164_v50  ;;  %v2173_v39 = vsel %vm2161_vm0, %v2155_v10, %v2172_v62  ;;  %v2013_v47 = vand.u32 3, %v2012_v26 }
 0x1ef   :  { %v2174_v7 = vsel %vm2160_vm15, %v2171_v24, %v2173_v39  ;;  %v2234_v17 = vand.u32 2139095040, %v9362_v63  ;;  %v9396_v37 = vmul.f32 30.0, %v44_v32  ;;  %vm2011_vm1 = vweird.f32 %v9032_v4 }
 0x1f0   :  { %vm2025_vm2 = vcmp.lt.s32.totalorder %v9180_v41, 0  ;;  %v2091_v22 = vclz %v6961_v33  ;;  %v2166_v54 = vsel %vm2160_vm15, %v2163_v18, %v2165_v6  ;;  %vm9408_vm3 = vcmp.le.f32.partialorder %v2023_v45, 0.7853982 }
 0x1f1   :  { %v9403_v1 = vmul.u32.u64.low %v9350_v51, %v2174_v7  ;;  %v9404_v3 = vmul.u32.u64.high %v9350_v51, %v2174_v7, %v9403_v1  ;;  %v2235_v43 = vshrl.u32 %v2234_v17, 23  ;;  %v2110_v56 = vsel %vm2025_vm2, %v2109_v23, %v2085_v11 }
 0x1f2   :  { %v6962_v15 = vadd.s32 4294967294, %v2091_v22  ;;  %v2231_v60 = vand.u32 2147483647, %v9362_v63  ;;  %vm2014_vm4 = vcmp.lt.s32.totalorder %v2013_v47, 2  ;;  %vm2015_vm5 = vcmp.eq.s32.totalorder %v2013_v47, 0 }
 0x1f3   :  { %v2185_v58 = vadd.s32 1, %v9383_v5  ;;  %v6968_v61 = vadd.s32 4294967169, %v2235_v43  ;;  %vm2018_vm6 = vcmp.eq.s32.totalorder %v2013_v47, 2  ;;  %v2079_v59 = vadd.s32 %v9301_v0, %v9310_v30 }
 0x1f4   :  { %vm6963_vm7 = vcmp.lt.s32.totalorder %v6962_v15, 0  ;;  %v2182_v45 = vmul.u32 %v9350_v51, %v2166_v54  ;;  %v2112_v10 = vsel %vm9408_vm3, 0, %v2110_v56  ;;  %vm2184_vm8 = vc.u32 %v9404_v3, %v9382_v48 }
 0x1f5   :  { %v7479_v16 = vpop.eup %7478  ;;  %v2094_v19 = vsel %vm6963_vm7, 0, %v6962_v15  ;;  %v2241_v11 = vadd.s32 1, %v6968_v61  ;;  %v2186_v0 = vsel %vm2184_vm8, %v2185_v58, %v9383_v5  ;;  %v2238_v30 = vand.u32 8388607, %v2231_v60 }
 0x1f6   :  { %v7481_v14 = vpop.eup %7480  ;;  %v2019_v57 = vxor.u32 2147483648, %v7479_v16  ;;  %v2095_v35 = vsub.s32 32, %v2094_v19  ;;  %v2096_v29 = vshll.u32 %v9367_v55, %v2094_v19  ;;  %v2099_v25 = vsub.s32 4294967266, %v2094_v19 }
 0x1f7   :  { %v2016_v28 = vxor.u32 2147483648, %v7481_v14  ;;  %vm2242_vm9 = vcmp.gt.s32.totalorder %v2241_v11, 0  ;;  %v2187_v31 = vadd.s32 %v2186_v0, %v2182_v45  ;;  %v2338_v20 = vand.u32 2139095040, %v9396_v37 }
 0x1f8   :  { %v2020_v51 = vsel %vm2018_vm6, %v2019_v57, %v7481_v14  ;;  %v2097_v12 = vshrl.u32 %v2079_v59, %v2095_v35  ;;  %v2100_v2 = vadd.s32 127, %v2099_v25  ;;  %v2243_v53 = vsel %vm2242_vm9, %v2241_v11, 0 }
 0x1f9   :  { %v2017_v27 = vsel %vm2015_vm5, %v7479_v16, %v2016_v28  ;;  %v2188_v50 = vadd.s32 536870912, %v2187_v31  ;;  %v2116_v9 = vadd.s32 3, %v2112_v10  ;;  %v2245_v23 = vand.u32 31, %v2243_v53 }
 0x1fa   :  { %v2021_v55 = vsel %vm2014_vm4, %v2017_v27, %v2020_v51  ;;  %v2098_v34 = vor.u32 %v2097_v12, %v2096_v29  ;;  %v2101_v26 = vshll.u32 %v2100_v2, 23  ;;  %v2239_v62 = vor.u32 8388608, %v2238_v30 }
 0x1fb   :  { %v2022_v46 = vsel %vm2011_vm1, nan, %v2021_v55  ;;  %v9433_v24 = vshrl.u32 %v2188_v50, 30  ;;  %v2244_v5 = vshrl.u32 %v2243_v53, 5  ;;  %v2246_v33 = vsub.s32 32, %v2245_v23 }
 0x1fc   :  { %v2102_v21 = vor.u32 4788187, %v2101_v26  ;;  %v2105_v32 = vcvt.s32.f32 %v2098_v34  ;;  %6824 = vst [vmem:[#allocation5 + $0x88] sm:$0xff] %v2022_v46  ;;  %v2335_v18 = vand.u32 2147483647, %v9396_v37  ;;  %v2339_v6 = vshrl.u32 %v2338_v20, 23 }
 0x1fd   :  { %v2190_v47 = vshll.u32 %v9433_v24, 30  ;;  %v2248_v7 = vshll.u32 %v7717_v36, %v2245_v23  ;;  %v2251_v4 = vshll.u32 %v7718_v38, %v2245_v23  ;;  %v2249_v17 = vshrl.u32 %v7718_v38, %v2246_v33 }
 0x1fe   :  { %v2103_v39 = vand.u32 2147483647, %v2102_v21  ;;  %v2252_v22 = vshrl.u32 %v7719_v40, %v2246_v33  ;;  %v2254_v54 = vshll.u32 %v7719_v40, %v2245_v23  ;;  %v2255_v1 = vshrl.u32 %v7720_v42, %v2246_v33 }
 0x1ff   :  { %v9443_v15 = vsub.s32 %v2187_v31, %v2190_v47  ;;  %v2257_v56 = vshll.u32 %v7720_v42, %v2245_v23  ;;  %v2258_v58 = vshrl.u32 %v7721_v44, %v2246_v33  ;;  %v9447_v61 = vand.u32 3, %v2116_v9 }
 0x200   :  { %v2106_v43 = vmul.f32 %v2105_v32, %v2103_v39  ;;  %v9449_v59 = vshll.u32 %v2239_v62, 8  ;;  %v6972_v45 = vadd.s32 4294967169, %v2339_v6  ;;  %v9453_v16 = vand.u32 8388607, %v2335_v18 }
 0x201   :  { %v2193_v10 = vsub.s32 0, %v9443_v15  ;;  %v2247_v11 = vshrl.u32 %v7717_v36, %v2246_v33  ;;  %v2250_v14 = vor.u32 %v2249_v17, %v2248_v7  ;;  %v2253_v57 = vor.u32 %v2252_v22, %v2251_v4 }
 0x202   :  { %v2107_v19 = vxor.u32 2147483648, %v2106_v43  ;;  %v2256_v35 = vor.u32 %v2255_v1, %v2254_v54  ;;  %v2260_v29 = vshll.u32 %v7721_v44, %v2245_v23  ;;  %v2261_v25 = vshrl.u32 %v7722_v52, %v2246_v33 }
 0x203   :  { %v6965_v0 = vmin.u32 %v2193_v10, %v9443_v15  ;;  %v2259_v30 = vor.u32 %v2258_v58, %v2257_v56  ;;  %vm2263_vm10 = vcmp.lt.s32.totalorder %v2244_v5, 1  ;;  %vm2266_vm11 = vcmp.lt.s32.totalorder %v2244_v5, 4 }
 0x204   :  { %v2108_v28 = vsel %vm2025_vm2, %v2107_v19, %v2106_v43  ;;  %v2262_v12 = vor.u32 %v2261_v25, %v2260_v29  ;;  %v2345_v2 = vadd.s32 1, %v6972_v45  ;;  %vm2264_vm12 = vcmp.lt.s32.totalorder %v2244_v5, 2 }
 0x205   :  { %v2111_v51 = vsel %vm9408_vm3, %v9180_v41, %v2108_v28  ;;  %v2195_v31 = vclz %v6965_v0  ;;  %vm2265_vm13 = vcmp.lt.s32.totalorder %v2244_v5, 3  ;;  %v2267_v27 = vsel %vm2263_vm10, %v2247_v11, %v2250_v14 }
 0x206   :  { %7482 = vcosq.f32 %v2111_v51  ;;  %v2268_v53 = vsel %vm2266_vm11, %v2256_v35, 2102212464  ;;  %v2271_v20 = vsel %vm2263_vm10, %v2250_v14, %v2253_v57  ;;  %v2272_v49 = vsel %vm2266_vm11, %v2259_v30, 920167782 }
 0x207   :  { %7484 = vsinq.f32 %v2111_v51  ;;  %v6966_v55 = vadd.s32 4294967294, %v2195_v31  ;;  %v2269_v34 = vsel %vm2265_vm13, %v2253_v57, %v2268_v53  ;;  %v2275_v26 = vsel %vm2263_vm10, %v2253_v57, %v2256_v35 }
 0x208   :  { %vm2119_vm14 = vcmp.eq.s32.totalorder %v9447_v61, 0  ;;  %v2183_v50 = vadd.s32 %v9382_v48, %v9404_v3  ;;  %v2273_v46 = vsel %vm2265_vm13, %v2256_v35, %v2272_v49  ;;  %v2276_v9 = vsel %vm2266_vm11, %v2262_v12, 1326507024 }
 0x209   :  { %vm2346_vm15 = vcmp.gt.s32.totalorder %v2345_v2, 0  ;;  %vm2118_vm0 = vcmp.lt.s32.totalorder %v9447_v61, 2  ;;  %vm6967_vm1 = vcmp.lt.s32.totalorder %v6966_v55, 0  ;;  %v2270_v23 = vsel %vm2264_vm12, %v2267_v27, %v2269_v34 }
 0x20a   :  { %v2274_v21 = vsel %vm2264_vm12, %v2271_v20, %v2273_v46  ;;  %v2277_v32 = vsel %vm2265_vm13, %v2259_v30, %v2276_v9  ;;  %vm2115_vm2 = vweird.f32 %v9180_v41  ;;  %v2198_v62 = vsel %vm6967_vm1, 0, %v6966_v55 }
 0x20b   :  { %v2278_v33 = vsel %vm2264_vm12, %v2275_v26, %v2277_v32  ;;  %v9483_v48 = vmul.u32.u64.low %v9449_v59, %v2274_v21  ;;  %v9484_v3 = vmul.u32.u64.high %v9449_v59, %v2274_v21, %v9483_v48  ;;  %vm2129_vm3 = vcmp.lt.s32.totalorder %v9214_v8, 0 }
 0x20c   :  { %v2199_v6 = vsub.s32 32, %v2198_v62  ;;  %v2200_v39 = vshll.u32 %v9443_v15, %v2198_v62  ;;  %v2203_v47 = vsub.s32 4294967266, %v2198_v62  ;;  %v2347_v7 = vsel %vm2346_vm15, %v2345_v2, 0 }
 0x20d   :  { %vm2122_vm4 = vcmp.eq.s32.totalorder %v9447_v61, 2  ;;  %v9491_v4 = vmul.u32.u64.low %v9449_v59, %v2278_v33  ;;  %v9492_v17 = vmul.u32.u64.high %v9449_v59, %v2278_v33, %v9491_v4  ;;  %v2349_v5 = vand.u32 31, %v2347_v7  ;;  %v45_v61 = vld [vmem:[#allocation2 + $0xb0] sm:$0xff] }
 0x20e   :  { %v2201_v22 = vshrl.u32 %v2183_v50, %v2199_v6  ;;  %v2204_v54 = vadd.s32 127, %v2203_v47  ;;  %v2213_v1 = vsub.s32 4, %v9433_v24  ;;  %v2343_v43 = vor.u32 8388608, %v9453_v16 }
 0x20f   :  { %v2286_v56 = vmul.u32 %v9449_v59, %v2270_v23  ;;  %v2289_v58 = vadd.s32 1, %v9484_v3  ;;  %v9498_v15 = vshrl.u32 %v2347_v7, 5  ;;  %v2350_v45 = vsub.s32 32, %v2349_v5 }
 0x210   :  { %v7483_v19 = vpop.eup %7482  ;;  %vm9502_vm5 = vcmp.le.f32.partialorder %v2127_v13, 0.7853982  ;;  %v2202_v11 = vor.u32 %v2201_v22, %v2200_v39  ;;  %v2205_v14 = vshll.u32 %v2204_v54, 23  ;;  %v2352_v57 = vshll.u32 %v7717_v36, %v2349_v5 }
 0x211   :  { %v2355_v16 = vshll.u32 %v7718_v38, %v2349_v5  ;;  %v7485_v35 = vpop.eup %7484  ;;  %v2123_v59 = vxor.u32 2147483648, %v7483_v19  ;;  %vm2288_vm6 = vc.u32 %v9492_v17, %v9483_v48  ;;  %v2358_v29 = vshll.u32 %v7719_v40, %v2349_v5 }
 0x212   :  { %v2361_v25 = vshll.u32 %v7720_v42, %v2349_v5  ;;  %v2120_v28 = vxor.u32 2147483648, %v7485_v35  ;;  %v2206_v13 = vor.u32 4788187, %v2205_v14  ;;  %v2209_v0 = vcvt.s32.f32 %v2202_v11 }
 0x213   :  { %v2290_v30 = vsel %vm2288_vm6, %v2289_v58, %v9484_v3  ;;  %v2124_v51 = vsel %vm2122_vm4, %v2123_v59, %v7485_v35  ;;  %v2353_v2 = vshrl.u32 %v7718_v38, %v2350_v45  ;;  %v2356_v31 = vshrl.u32 %v7719_v40, %v2350_v45 }
 0x214   :  { %v2291_v12 = vadd.s32 %v2290_v30, %v2286_v56  ;;  %v2121_v27 = vsel %vm2119_vm14, %v7483_v19, %v2120_v28  ;;  %v2207_v53 = vand.u32 2147483647, %v2206_v13  ;;  %v2359_v20 = vshrl.u32 %v7720_v42, %v2350_v45 }
 0x215   :  { %v2362_v55 = vshrl.u32 %v7721_v44, %v2350_v45  ;;  %v2125_v34 = vsel %vm2118_vm0, %v2121_v27, %v2124_v51  ;;  %v2214_v49 = vsel %vm2129_vm3, %v2213_v1, %v9433_v24  ;;  %v2354_v50 = vor.u32 %v2353_v2, %v2352_v57  ;;  %v46_v57 = vld [vmem:[#allocation2 + $0xb8] sm:$0xff] }
 0x216   :  { %v2292_v26 = vadd.s32 536870912, %v2291_v12  ;;  %v2126_v46 = vsel %vm2115_vm2, nan, %v2125_v34  ;;  %v2210_v9 = vmul.f32 %v2209_v0, %v2207_v53  ;;  %v2357_v23 = vor.u32 %v2356_v31, %v2355_v16 }
 0x217   :  { %v2363_v21 = vor.u32 %v2362_v55, %v2361_v25  ;;  %v2364_v62 = vshll.u32 %v7721_v44, %v2349_v5  ;;  %v2365_v33 = vshrl.u32 %v7722_v52, %v2350_v45  ;;  %vm2367_vm7 = vcmp.lt.s32.totalorder %v9498_v15, 1  ;;  %6825 = vst [vmem:[#allocation5 + $0x90] sm:$0xff] %v2126_v46 }
 0x218   :  { %v2293_v32 = vshrl.u32 %v2292_v26, 30  ;;  %v2211_v3 = vxor.u32 2147483648, %v2210_v9  ;;  %v2360_v6 = vor.u32 %v2359_v20, %v2358_v29  ;;  %vm2370_vm8 = vcmp.lt.s32.totalorder %v9498_v15, 4 }
 0x219   :  { %v9532_v24 = vshll.u32 %v2343_v43, 8  ;;  %v2216_v41 = vsel %vm9502_vm5, 0, %v2214_v49  ;;  %vm2368_vm9 = vcmp.lt.s32.totalorder %v9498_v15, 2  ;;  %vm2369_vm10 = vcmp.lt.s32.totalorder %v9498_v15, 3 }
 0x21a   :  { %v2294_v39 = vshll.u32 %v2293_v32, 30  ;;  %v2212_v47 = vsel %vm2129_vm3, %v2211_v3, %v2210_v9  ;;  %v2366_v7 = vor.u32 %v2365_v33, %v2364_v62  ;;  %v2375_v4 = vsel %vm2367_vm7, %v2354_v50, %v2357_v23 }
 0x21b   :  { %v2376_v5 = vsel %vm2370_vm8, %v2363_v21, 920167782  ;;  %v9544_v22 = vmul.f32 30.0, %v45_v61  ;;  %v2215_v54 = vsel %vm9502_vm5, %v9214_v8, %v2212_v47  ;;  %v2351_v43 = vshrl.u32 %v7717_v36, %v2350_v45 }
 0x21c   :  { %v9549_v1 = vsub.s32 %v2291_v12, %v2294_v39  ;;  %7486 = vcosq.f32 %v2215_v54  ;;  %v2220_v56 = vadd.s32 3, %v2216_v41  ;;  %v2372_v58 = vsel %vm2370_vm8, %v2360_v6, 2102212464 }
 0x21d   :  { %v2377_v19 = vsel %vm2369_vm10, %v2360_v6, %v2376_v5  ;;  %7488 = vsinq.f32 %v2215_v54  ;;  %v2317_v14 = vsub.s32 4, %v2293_v32  ;;  %v2379_v16 = vsel %vm2367_vm7, %v2357_v23, %v2360_v6 }
 0x21e   :  { %v2297_v11 = vsub.s32 0, %v9549_v1  ;;  %v2378_v10 = vsel %vm2368_vm9, %v2375_v4, %v2377_v19  ;;  %v2380_v45 = vsel %vm2370_vm8, %v2366_v7, 1326507024  ;;  %v2371_v25 = vsel %vm2367_vm7, %v2351_v43, %v2354_v50 }
 0x21f   :  { %v9564_v35 = vmul.u32.u64.low %v9532_v24, %v2378_v10  ;;  %v9565_v59 = vmul.u32.u64.high %v9532_v24, %v2378_v10, %v9564_v35  ;;  %v2373_v28 = vsel %vm2369_vm10, %v2357_v23, %v2372_v58  ;;  %v2381_v13 = vsel %vm2369_vm10, %v2363_v21, %v2380_v45 }
 0x220   :  { %v6969_v29 = vmin.u32 %v2297_v11, %v9549_v1  ;;  %v2221_v0 = vand.u32 3, %v2220_v56  ;;  %v2382_v30 = vsel %vm2368_vm9, %v2379_v16, %v2381_v13  ;;  %v2442_v51 = vand.u32 2139095040, %v9544_v22 }
 0x221   :  { %v9578_v12 = vmul.f32 30.0, %v46_v57  ;;  %vm2219_vm11 = vweird.f32 %v9214_v8  ;;  %vm2233_vm12 = vcmp.lt.s32.totalorder %v9362_v63, 0  ;;  %v2374_v31 = vsel %vm2368_vm9, %v2371_v25, %v2373_v28 }
 0x222   :  { %v2299_v2 = vclz %v6969_v29  ;;  %v9585_v27 = vmul.u32.u64.low %v9532_v24, %v2382_v30  ;;  %v9586_v53 = vmul.u32.u64.high %v9532_v24, %v2382_v30, %v9585_v27  ;;  %v2443_v20 = vshrl.u32 %v2442_v51, 23 }
 0x223   :  { %vm9590_vm13 = vcmp.le.f32.partialorder %v2231_v60, 0.7853982  ;;  %v2318_v49 = vsel %vm2233_vm12, %v2317_v14, %v2293_v32  ;;  %v2439_v26 = vand.u32 2147483647, %v9544_v22  ;;  %vm2222_vm14 = vcmp.lt.s32.totalorder %v2221_v0, 2 }
 0x224   :  { %v6970_v34 = vadd.s32 4294967294, %v2299_v2  ;;  %vm2223_vm15 = vcmp.eq.s32.totalorder %v2221_v0, 0  ;;  %v2393_v15 = vadd.s32 1, %v9565_v59  ;;  %v6976_v50 = vadd.s32 4294967169, %v2443_v20 }
 0x225   :  { %vm2226_vm0 = vcmp.eq.s32.totalorder %v2221_v0, 2  ;;  %v2287_v46 = vadd.s32 %v9483_v48, %v9492_v17  ;;  %v2390_v60 = vmul.u32 %v9532_v24, %v2374_v31  ;;  %v2320_v21 = vsel %vm9590_vm13, 0, %v2318_v49 }
 0x226   :  { %vm6971_vm1 = vcmp.lt.s32.totalorder %v6970_v34, 0  ;;  %v7487_v9 = vpop.eup %7486  ;;  %vm2392_vm2 = vc.u32 %v9586_v53, %v9564_v35  ;;  %v2449_v32 = vadd.s32 1, %v6976_v50  ;;  %v2446_v17 = vand.u32 8388607, %v2439_v26 }
 0x227   :  { %v2302_v23 = vsel %vm6971_vm1, 0, %v6970_v34  ;;  %v7489_v62 = vpop.eup %7488  ;;  %v2227_v33 = vxor.u32 2147483648, %v7487_v9  ;;  %v2394_v48 = vsel %vm2392_vm2, %v2393_v15, %v9565_v59  ;;  %v2546_v54 = vand.u32 2139095040, %v9578_v12 }
 0x228   :  { %v2303_v61 = vsub.s32 32, %v2302_v23  ;;  %v2304_v3 = vshll.u32 %v9549_v1, %v2302_v23  ;;  %v2307_v6 = vsub.s32 4294967266, %v2302_v23  ;;  %v2224_v41 = vxor.u32 2147483648, %v7489_v62 }
 0x229   :  { %vm2450_vm3 = vcmp.gt.s32.totalorder %v2449_v32, 0  ;;  %v2228_v24 = vsel %vm2226_vm0, %v2227_v33, %v7489_v62  ;;  %v2395_v7 = vadd.s32 %v2394_v48, %v2390_v60  ;;  %v2324_v11 = vadd.s32 3, %v2320_v21 }
 0x22a   :  { %v2305_v39 = vshrl.u32 %v2287_v46, %v2303_v61  ;;  %v2308_v47 = vadd.s32 127, %v2307_v6  ;;  %v2225_v4 = vsel %vm2223_vm15, %v7487_v9, %v2224_v41  ;;  %v2451_v5 = vsel %vm2450_vm3, %v2449_v32, 0 }
 0x22b   :  { %v2229_v1 = vsel %vm2222_vm14, %v2225_v4, %v2228_v24  ;;  %v2396_v58 = vadd.s32 536870912, %v2395_v7  ;;  %v2453_v14 = vand.u32 31, %v2451_v5  ;;  %v2447_v45 = vor.u32 8388608, %v2446_v17 }
 0x22c   :  { %v2306_v43 = vor.u32 %v2305_v39, %v2304_v3  ;;  %v2309_v56 = vshll.u32 %v2308_v47, 23  ;;  %v2230_v19 = vsel %vm2219_vm11, nan, %v2229_v1  ;;  %v2452_v59 = vshrl.u32 %v2451_v5, 5 }
 0x22d   :  { %v9615_v16 = vshrl.u32 %v2396_v58, 30  ;;  %6826 = vst [vmem:[#allocation5 + $0x98] sm:$0xff] %v2230_v19  ;;  %v2454_v29 = vsub.s32 32, %v2453_v14  ;;  %v2543_v25 = vand.u32 2147483647, %v9578_v12  ;;  %v2547_v28 = vshrl.u32 %v2546_v54, 23 }
 0x22e   :  { %v2310_v10 = vor.u32 4788187, %v2309_v56  ;;  %v2313_v57 = vcvt.s32.f32 %v2306_v43  ;;  %v2456_v30 = vshll.u32 %v7717_v36, %v2453_v14  ;;  %v2459_v8 = vshll.u32 %v7718_v38, %v2453_v14 }
 0x22f   :  { %v2398_v0 = vshll.u32 %v9615_v16, 30  ;;  %v2457_v51 = vshrl.u32 %v7718_v38, %v2454_v29  ;;  %v2460_v2 = vshrl.u32 %v7719_v40, %v2454_v29  ;;  %v2462_v31 = vshll.u32 %v7719_v40, %v2453_v14 }
 0x230   :  { %v2311_v13 = vand.u32 2147483647, %v2310_v10  ;;  %v2463_v27 = vshrl.u32 %v7720_v42, %v2454_v29  ;;  %v2465_v49 = vshll.u32 %v7720_v42, %v2453_v14  ;;  %v2466_v15 = vshrl.u32 %v7721_v44, %v2454_v29 }
 0x231   :  { %v9625_v34 = vsub.s32 %v2395_v7, %v2398_v0  ;;  %v9629_v50 = vand.u32 3, %v2324_v11  ;;  %v9631_v46 = vshll.u32 %v2447_v45, 8  ;;  %v6980_v60 = vadd.s32 4294967169, %v2547_v28 }
 0x232   :  { %v2314_v20 = vmul.f32 %v2313_v57, %v2311_v13  ;;  %v9635_v9 = vand.u32 8388607, %v2543_v25  ;;  %v2455_v32 = vshrl.u32 %v7717_v36, %v2454_v29  ;;  %v2458_v62 = vor.u32 %v2457_v51, %v2456_v30 }
 0x233   :  { %v2401_v21 = vsub.s32 0, %v9625_v34  ;;  %v2461_v33 = vor.u32 %v2460_v2, %v2459_v8  ;;  %v2464_v61 = vor.u32 %v2463_v27, %v2462_v31  ;;  %v2468_v3 = vshll.u32 %v7721_v44, %v2453_v14 }
 0x234   :  { %v2315_v23 = vxor.u32 2147483648, %v2314_v20  ;;  %v2469_v6 = vshrl.u32 %v7722_v52, %v2454_v29  ;;  %v2467_v17 = vor.u32 %v2466_v15, %v2465_v49  ;;  %vm2471_vm4 = vcmp.lt.s32.totalorder %v2452_v59, 1 }
 0x235   :  { %v6973_v48 = vmin.u32 %v2401_v21, %v9625_v34  ;;  %vm2474_vm5 = vcmp.lt.s32.totalorder %v2452_v59, 4  ;;  %v2553_v47 = vadd.s32 1, %v6980_v60  ;;  %vm2472_vm6 = vcmp.lt.s32.totalorder %v2452_v59, 2 }
 0x236   :  { %v2316_v41 = vsel %vm2233_vm12, %v2315_v23, %v2314_v20  ;;  %v2470_v39 = vor.u32 %v2469_v6, %v2468_v3  ;;  %vm2473_vm7 = vcmp.lt.s32.totalorder %v2452_v59, 3  ;;  %v2475_v4 = vsel %vm2471_vm4, %v2455_v32, %v2458_v62 }
 0x237   :  { %v2319_v24 = vsel %vm9590_vm13, %v9362_v63, %v2316_v41  ;;  %v2403_v7 = vclz %v6973_v48  ;;  %v2476_v5 = vsel %vm2474_vm5, %v2464_v61, 2102212464  ;;  %v2479_v54 = vsel %vm2471_vm4, %v2458_v62, %v2461_v33 }
 0x238   :  { %7490 = vcosq.f32 %v2319_v24  ;;  %v2477_v43 = vsel %vm2473_vm7, %v2461_v33, %v2476_v5  ;;  %v2480_v55 = vsel %vm2474_vm5, %v2467_v17, 920167782  ;;  %v2483_v56 = vsel %vm2471_vm4, %v2461_v33, %v2464_v61 }
 0x239   :  { %7492 = vsinq.f32 %v2319_v24  ;;  %v6974_v1 = vadd.s32 4294967294, %v2403_v7  ;;  %vm2327_vm8 = vcmp.eq.s32.totalorder %v9629_v50, 0  ;;  %v2391_v58 = vadd.s32 %v9564_v35, %v9586_v53 }
 0x23a   :  { %v2481_v19 = vsel %vm2473_vm7, %v2464_v61, %v2480_v55  ;;  %v2484_v11 = vsel %vm2474_vm5, %v2470_v39, 1326507024  ;;  %vm2554_vm9 = vcmp.gt.s32.totalorder %v2553_v47, 0  ;;  %vm2326_vm10 = vcmp.lt.s32.totalorder %v9629_v50, 2 }
 0x23b   :  { %vm6975_vm11 = vcmp.lt.s32.totalorder %v6974_v1, 0  ;;  %v2478_v14 = vsel %vm2472_vm6, %v2475_v4, %v2477_v43  ;;  %v2482_v10 = vsel %vm2472_vm6, %v2479_v54, %v2481_v19  ;;  %v2485_v57 = vsel %vm2473_vm7, %v2467_v17, %v2484_v11 }
 0x23c   :  { %vm2323_vm12 = vweird.f32 %v9362_v63  ;;  %v2406_v45 = vsel %vm6975_vm11, 0, %v6974_v1  ;;  %v2486_v29 = vsel %vm2472_vm6, %v2483_v56, %v2485_v57  ;;  %vm2337_vm13 = vcmp.lt.s32.totalorder %v9396_v37, 0 }
 0x23d   :  { %v9665_v35 = vmul.u32.u64.low %v9631_v46, %v2482_v10  ;;  %v9666_v53 = vmul.u32.u64.high %v9631_v46, %v2482_v10, %v9665_v35  ;;  %v2407_v28 = vsub.s32 32, %v2406_v45  ;;  %v2408_v13 = vshll.u32 %v9625_v34, %v2406_v45 }
 0x23e   :  { %v2411_v0 = vsub.s32 4294967266, %v2406_v45  ;;  %v2555_v30 = vsel %vm2554_vm9, %v2553_v47, 0  ;;  %vm2330_vm14 = vcmp.eq.s32.totalorder %v9629_v50, 2  ;;  %v2421_v27 = vsub.s32 4, %v9615_v16  ;;  %v47_v50 = vld [vmem:[#allocation2 + $0xc0] sm:$0xff] }
 0x23f   :  { %v9673_v8 = vmul.u32.u64.low %v9631_v46, %v2486_v29  ;;  %v9674_v51 = vmul.u32.u64.high %v9631_v46, %v2486_v29, %v9673_v8  ;;  %v2557_v59 = vand.u32 31, %v2555_v30  ;;  %v2409_v2 = vshrl.u32 %v2391_v58, %v2407_v28 }
 0x240   :  { %v2412_v31 = vadd.s32 127, %v2411_v0  ;;  %v2551_v20 = vor.u32 8388608, %v9635_v9  ;;  %v2494_v49 = vmul.u32 %v9631_v46, %v2478_v14  ;;  %v2497_v15 = vadd.s32 1, %v9666_v53 }
 0x241   :  { %v9680_v34 = vshrl.u32 %v2555_v30, 5  ;;  %v2558_v60 = vsub.s32 32, %v2557_v59  ;;  %vm9684_vm15 = vcmp.le.f32.partialorder %v2335_v18, 0.7853982  ;;  %v2410_v32 = vor.u32 %v2409_v2, %v2408_v13 }
 0x242   :  { %v7491_v23 = vpop.eup %7490  ;;  %v2413_v62 = vshll.u32 %v2412_v31, 23  ;;  %v2560_v33 = vshll.u32 %v7717_v36, %v2557_v59  ;;  %v2563_v9 = vshll.u32 %v7718_v38, %v2557_v59  ;;  %vm2496_vm0 = vc.u32 %v9674_v51, %v9665_v35 }
 0x243   :  { %v7493_v61 = vpop.eup %7492  ;;  %v2331_v46 = vxor.u32 2147483648, %v7491_v23  ;;  %v2566_v3 = vshll.u32 %v7719_v40, %v2557_v59  ;;  %v2569_v6 = vshll.u32 %v7720_v42, %v2557_v59  ;;  %v2417_v48 = vcvt.s32.f32 %v2410_v32 }
 0x244   :  { %v2328_v41 = vxor.u32 2147483648, %v7493_v61  ;;  %v2414_v18 = vor.u32 4788187, %v2413_v62  ;;  %v2498_v17 = vsel %vm2496_vm0, %v2497_v15, %v9666_v53  ;;  %v2561_v47 = vshrl.u32 %v7718_v38, %v2558_v60 }
 0x245   :  { %v2332_v24 = vsel %vm2330_vm14, %v2331_v46, %v7493_v61  ;;  %v2499_v39 = vadd.s32 %v2498_v17, %v2494_v49  ;;  %v2564_v7 = vshrl.u32 %v7719_v40, %v2558_v60  ;;  %v2567_v54 = vshrl.u32 %v7720_v42, %v2558_v60 }
 0x246   :  { %v2329_v4 = vsel %vm2327_vm8, %v7491_v23, %v2328_v41  ;;  %v2415_v5 = vand.u32 2147483647, %v2414_v18  ;;  %v2570_v1 = vshrl.u32 %v7721_v44, %v2558_v60  ;;  %v2422_v55 = vsel %vm2337_vm13, %v2421_v27, %v9615_v16 }
 0x247   :  { %v2333_v43 = vsel %vm2326_vm10, %v2329_v4, %v2332_v24  ;;  %v2500_v56 = vadd.s32 536870912, %v2499_v39  ;;  %v2562_v58 = vor.u32 %v2561_v47, %v2560_v33  ;;  %v2565_v14 = vor.u32 %v2564_v7, %v2563_v9  ;;  %v48_v33 = vld [vmem:[#allocation2 + $0xc8] sm:$0xff] }
 0x248   :  { %v2334_v19 = vsel %vm2323_vm12, nan, %v2333_v43  ;;  %v2418_v11 = vmul.f32 %v2417_v48, %v2415_v5  ;;  %v2571_v10 = vor.u32 %v2570_v1, %v2569_v6  ;;  %v2572_v45 = vshll.u32 %v7721_v44, %v2557_v59 }
 0x249   :  { %v2501_v57 = vshrl.u32 %v2500_v56, 30  ;;  %v2573_v29 = vshrl.u32 %v7722_v52, %v2558_v60  ;;  %vm2575_vm1 = vcmp.lt.s32.totalorder %v9680_v34, 1  ;;  %6827 = vst [vmem:[#allocation5 + $0xa0] sm:$0xff] %v2334_v19  ;;  %v2568_v28 = vor.u32 %v2567_v54, %v2566_v3 }
 0x24a   :  { %v2419_v53 = vxor.u32 2147483648, %v2418_v11  ;;  %vm2578_vm2 = vcmp.lt.s32.totalorder %v9680_v34, 4  ;;  %v9714_v16 = vshll.u32 %v2551_v20, 8  ;;  %v2424_v63 = vsel %vm9684_vm15, 0, %v2422_v55 }
 0x24b   :  { %v2502_v13 = vshll.u32 %v2501_v57, 30  ;;  %vm2576_vm3 = vcmp.lt.s32.totalorder %v9680_v34, 2  ;;  %vm2577_vm4 = vcmp.lt.s32.totalorder %v9680_v34, 3  ;;  %v2574_v30 = vor.u32 %v2573_v29, %v2572_v45 }
 0x24c   :  { %v2420_v0 = vsel %vm2337_vm13, %v2419_v53, %v2418_v11  ;;  %v2583_v8 = vsel %vm2575_vm1, %v2562_v58, %v2565_v14  ;;  %v2584_v59 = vsel %vm2578_vm2, %v2571_v10, 920167782  ;;  %v9726_v2 = vmul.f32 30.0, %v47_v50 }
 0x24d   :  { %v2423_v31 = vsel %vm9684_vm15, %v9396_v37, %v2420_v0  ;;  %v9731_v27 = vsub.s32 %v2499_v39, %v2502_v13  ;;  %v2559_v20 = vshrl.u32 %v7717_v36, %v2558_v60  ;;  %v2428_v49 = vadd.s32 3, %v2424_v63 }
 0x24e   :  { %7494 = vcosq.f32 %v2423_v31  ;;  %v2580_v15 = vsel %vm2578_vm2, %v2568_v28, 2102212464  ;;  %v2585_v23 = vsel %vm2577_vm4, %v2568_v28, %v2584_v59  ;;  %v2525_v62 = vsub.s32 4, %v2501_v57 }
 0x24f   :  { %7496 = vsinq.f32 %v2423_v31  ;;  %v2505_v32 = vsub.s32 0, %v9731_v27  ;;  %v2586_v21 = vsel %vm2576_vm3, %v2583_v8, %v2585_v23  ;;  %v2587_v9 = vsel %vm2575_vm1, %v2565_v14, %v2568_v28 }
 0x250   :  { %v2588_v60 = vsel %vm2578_vm2, %v2574_v30, 1326507024  ;;  %v9746_v61 = vmul.u32.u64.low %v9714_v16, %v2586_v21  ;;  %v9747_v46 = vmul.u32.u64.high %v9714_v16, %v2586_v21, %v9746_v61  ;;  %v2579_v6 = vsel %vm2575_vm1, %v2559_v20, %v2562_v58 }
 0x251   :  { %v6977_v3 = vmin.u32 %v2505_v32, %v9731_v27  ;;  %v2581_v41 = vsel %vm2577_vm4, %v2565_v14, %v2580_v15  ;;  %v2589_v18 = vsel %vm2577_vm4, %v2571_v10, %v2588_v60  ;;  %v2429_v48 = vand.u32 3, %v2428_v49 }
 0x252   :  { %v2590_v17 = vsel %vm2576_vm3, %v2587_v9, %v2589_v18  ;;  %v2650_v24 = vand.u32 2139095040, %v9726_v2  ;;  %v9760_v39 = vmul.f32 30.0, %v48_v33  ;;  %vm2427_vm5 = vweird.f32 %v9396_v37 }
 0x253   :  { %vm2441_vm6 = vcmp.lt.s32.totalorder %v9544_v22, 0  ;;  %v2507_v47 = vclz %v6977_v3  ;;  %v2582_v7 = vsel %vm2576_vm3, %v2579_v6, %v2581_v41  ;;  %vm9772_vm7 = vcmp.le.f32.partialorder %v2439_v26, 0.7853982 }
 0x254   :  { %v9767_v4 = vmul.u32.u64.low %v9714_v16, %v2590_v17  ;;  %v9768_v5 = vmul.u32.u64.high %v9714_v16, %v2590_v17, %v9767_v4  ;;  %v2651_v54 = vshrl.u32 %v2650_v24, 23  ;;  %v2526_v55 = vsel %vm2441_vm6, %v2525_v62, %v2501_v57 }
 0x255   :  { %v6978_v43 = vadd.s32 4294967294, %v2507_v47  ;;  %v2647_v56 = vand.u32 2147483647, %v9726_v2  ;;  %vm2430_vm8 = vcmp.lt.s32.totalorder %v2429_v48, 2  ;;  %vm2431_vm9 = vcmp.eq.s32.totalorder %v2429_v48, 0 }
 0x256   :  { %v2601_v34 = vadd.s32 1, %v9747_v46  ;;  %v6984_v58 = vadd.s32 4294967169, %v2651_v54  ;;  %vm2434_vm10 = vcmp.eq.s32.totalorder %v2429_v48, 2  ;;  %v2495_v19 = vadd.s32 %v9665_v35, %v9674_v51 }
 0x257   :  { %vm6979_vm11 = vcmp.lt.s32.totalorder %v6978_v43, 0  ;;  %v2598_v26 = vmul.u32 %v9714_v16, %v2582_v7  ;;  %v2528_v10 = vsel %vm9772_vm7, 0, %v2526_v55  ;;  %vm2600_vm12 = vc.u32 %v9768_v5, %v9746_v61 }
 0x258   :  { %v7495_v11 = vpop.eup %7494  ;;  %v2510_v14 = vsel %vm6979_vm11, 0, %v6978_v43  ;;  %v2657_v57 = vadd.s32 1, %v6984_v58  ;;  %v2602_v35 = vsel %vm2600_vm12, %v2601_v34, %v9747_v46  ;;  %v2654_v51 = vand.u32 8388607, %v2647_v56 }
 0x259   :  { %v7497_v45 = vpop.eup %7496  ;;  %v2435_v29 = vxor.u32 2147483648, %v7495_v11  ;;  %v2511_v50 = vsub.s32 32, %v2510_v14  ;;  %v2512_v53 = vshll.u32 %v9731_v27, %v2510_v14  ;;  %v2515_v28 = vsub.s32 4294967266, %v2510_v14 }
 0x25a   :  { %v2432_v63 = vxor.u32 2147483648, %v7497_v45  ;;  %vm2658_vm13 = vcmp.gt.s32.totalorder %v2657_v57, 0  ;;  %v2603_v30 = vadd.s32 %v2602_v35, %v2598_v26  ;;  %v2754_v31 = vand.u32 2139095040, %v9760_v39 }
 0x25b   :  { %v2436_v16 = vsel %vm2434_vm10, %v2435_v29, %v7497_v45  ;;  %v2513_v13 = vshrl.u32 %v2495_v19, %v2511_v50  ;;  %v2516_v0 = vadd.s32 127, %v2515_v28  ;;  %v2659_v59 = vsel %vm2658_vm13, %v2657_v57, 0 }
 0x25c   :  { %v2433_v8 = vsel %vm2431_vm9, %v7495_v11, %v2432_v63  ;;  %v2604_v15 = vadd.s32 536870912, %v2603_v30  ;;  %v2532_v32 = vadd.s32 3, %v2528_v10  ;;  %v2661_v62 = vand.u32 31, %v2659_v59 }
 0x25d   :  { %v2437_v27 = vsel %vm2430_vm8, %v2433_v8, %v2436_v16  ;;  %v2514_v20 = vor.u32 %v2513_v13, %v2512_v53  ;;  %v2517_v49 = vshll.u32 %v2516_v0, 23  ;;  %v2655_v60 = vor.u32 8388608, %v2654_v51 }
 0x25e   :  { %v2438_v23 = vsel %vm2427_vm5, nan, %v2437_v27  ;;  %v9797_v9 = vshrl.u32 %v2604_v15, 30  ;;  %v2660_v46 = vshrl.u32 %v2659_v59, 5  ;;  %v2662_v3 = vsub.s32 32, %v2661_v62 }
 0x25f   :  { %v2518_v21 = vor.u32 4788187, %v2517_v49  ;;  %v2521_v33 = vcvt.s32.f32 %v2514_v20  ;;  %6828 = vst [vmem:[#allocation5 + $0xa8] sm:$0xff] %v2438_v23  ;;  %v2751_v6 = vand.u32 2147483647, %v9760_v39  ;;  %v2755_v41 = vshrl.u32 %v2754_v31, 23 }
 0x260   :  { %v2606_v48 = vshll.u32 %v9797_v9, 30  ;;  %v2664_v17 = vshll.u32 %v7717_v36, %v2661_v62  ;;  %v2667_v37 = vshll.u32 %v7718_v38, %v2661_v62  ;;  %v2665_v24 = vshrl.u32 %v7718_v38, %v2662_v3 }
 0x261   :  { %v2519_v18 = vand.u32 2147483647, %v2518_v21  ;;  %v2668_v47 = vshrl.u32 %v7719_v40, %v2662_v3  ;;  %v2670_v7 = vshll.u32 %v7719_v40, %v2661_v62  ;;  %v2671_v4 = vshrl.u32 %v7720_v42, %v2662_v3 }
 0x262   :  { %v9807_v43 = vsub.s32 %v2603_v30, %v2606_v48  ;;  %v2673_v55 = vshll.u32 %v7720_v42, %v2661_v62  ;;  %v2674_v34 = vshrl.u32 %v7721_v44, %v2662_v3  ;;  %v9811_v58 = vand.u32 3, %v2532_v32 }
 0x263   :  { %v2522_v54 = vmul.f32 %v2521_v33, %v2519_v18  ;;  %v9813_v19 = vshll.u32 %v2655_v60, 8  ;;  %v6988_v26 = vadd.s32 4294967169, %v2755_v41  ;;  %v9817_v11 = vand.u32 8388607, %v2751_v6 }
 0x264   :  { %v2609_v10 = vsub.s32 0, %v9807_v43  ;;  %v2663_v57 = vshrl.u32 %v7717_v36, %v2662_v3  ;;  %v2666_v45 = vor.u32 %v2665_v24, %v2664_v17  ;;  %v2669_v29 = vor.u32 %v2668_v47, %v2667_v37 }
 0x265   :  { %v2523_v14 = vxor.u32 2147483648, %v2522_v54  ;;  %v2672_v50 = vor.u32 %v2671_v4, %v2670_v7  ;;  %v2676_v53 = vshll.u32 %v7721_v44, %v2661_v62  ;;  %v2677_v28 = vshrl.u32 %v7722_v52, %v2662_v3 }
 0x266   :  { %v6981_v35 = vmin.u32 %v2609_v10, %v9807_v43  ;;  %v2675_v51 = vor.u32 %v2674_v34, %v2673_v55  ;;  %vm2679_vm14 = vcmp.lt.s32.totalorder %v2660_v46, 1  ;;  %vm2682_vm15 = vcmp.lt.s32.totalorder %v2660_v46, 4 }
 0x267   :  { %v2524_v63 = vsel %vm2441_vm6, %v2523_v14, %v2522_v54  ;;  %v2678_v13 = vor.u32 %v2677_v28, %v2676_v53  ;;  %v2761_v0 = vadd.s32 1, %v6988_v26  ;;  %vm2680_vm0 = vcmp.lt.s32.totalorder %v2660_v46, 2 }
 0x268   :  { %v2527_v16 = vsel %vm9772_vm7, %v9544_v22, %v2524_v63  ;;  %v2611_v30 = vclz %v6981_v35  ;;  %vm2681_vm1 = vcmp.lt.s32.totalorder %v2660_v46, 3  ;;  %v2683_v8 = vsel %vm2679_vm14, %v2663_v57, %v2666_v45 }
 0x269   :  { %7498 = vcosq.f32 %v2527_v16  ;;  %v2684_v59 = vsel %vm2682_vm15, %v2672_v50, 2102212464  ;;  %v2687_v31 = vsel %vm2679_vm14, %v2666_v45, %v2669_v29  ;;  %v2688_v1 = vsel %vm2682_vm15, %v2675_v51, 920167782 }
 0x26a   :  { %7500 = vsinq.f32 %v2527_v16  ;;  %v6982_v27 = vadd.s32 4294967294, %v2611_v30  ;;  %v2685_v20 = vsel %vm2681_vm1, %v2669_v29, %v2684_v59  ;;  %v2691_v49 = vsel %vm2679_vm14, %v2669_v29, %v2672_v50 }
 0x26b   :  { %vm2535_vm2 = vcmp.eq.s32.totalorder %v9811_v58, 0  ;;  %v2599_v15 = vadd.s32 %v9746_v61, %v9768_v5  ;;  %v2689_v23 = vsel %vm2681_vm1, %v2672_v50, %v2688_v1  ;;  %v2692_v32 = vsel %vm2682_vm15, %v2678_v13, 1326507024 }
 0x26c   :  { %vm2762_vm3 = vcmp.gt.s32.totalorder %v2761_v0, 0  ;;  %vm2534_vm4 = vcmp.lt.s32.totalorder %v9811_v58, 2  ;;  %vm6983_vm5 = vcmp.lt.s32.totalorder %v6982_v27, 0  ;;  %v2686_v62 = vsel %vm2680_vm0, %v2683_v8, %v2685_v20 }
 0x26d   :  { %v2690_v21 = vsel %vm2680_vm0, %v2687_v31, %v2689_v23  ;;  %v2693_v33 = vsel %vm2681_vm1, %v2675_v51, %v2692_v32  ;;  %vm2531_vm6 = vweird.f32 %v9544_v22  ;;  %v2614_v60 = vsel %vm6983_vm5, 0, %v6982_v27 }
 0x26e   :  { %v2694_v3 = vsel %vm2680_vm0, %v2691_v49, %v2693_v33  ;;  %v9847_v61 = vmul.u32.u64.low %v9813_v19, %v2690_v21  ;;  %v9848_v5 = vmul.u32.u64.high %v9813_v19, %v2690_v21, %v9847_v61  ;;  %vm2545_vm7 = vcmp.lt.s32.totalorder %v9578_v12, 0 }
 0x26f   :  { %v2615_v41 = vsub.s32 32, %v2614_v60  ;;  %v2616_v18 = vshll.u32 %v9807_v43, %v2614_v60  ;;  %v2619_v48 = vsub.s32 4294967266, %v2614_v60  ;;  %v2763_v17 = vsel %vm2762_vm3, %v2761_v0, 0 }
 0x270   :  { %vm2538_vm8 = vcmp.eq.s32.totalorder %v9811_v58, 2  ;;  %v9855_v37 = vmul.u32.u64.low %v9813_v19, %v2694_v3  ;;  %v9856_v24 = vmul.u32.u64.high %v9813_v19, %v2694_v3, %v9855_v37  ;;  %v2765_v46 = vand.u32 31, %v2763_v17  ;;  %v49_v58 = vld [vmem:[#allocation2 + $0xd0] sm:$0xff] }
 0x271   :  { %v2617_v47 = vshrl.u32 %v2599_v15, %v2615_v41  ;;  %v2620_v7 = vadd.s32 127, %v2619_v48  ;;  %v2629_v4 = vsub.s32 4, %v9797_v9  ;;  %v2759_v54 = vor.u32 8388608, %v9817_v11 }
 0x272   :  { %v2702_v55 = vmul.u32 %v9813_v19, %v2686_v62  ;;  %v2705_v34 = vadd.s32 1, %v9848_v5  ;;  %v9862_v43 = vshrl.u32 %v2763_v17, 5  ;;  %v2766_v26 = vsub.s32 32, %v2765_v46 }
 0x273   :  { %v7499_v14 = vpop.eup %7498  ;;  %vm9866_vm9 = vcmp.le.f32.partialorder %v2543_v25, 0.7853982  ;;  %v2618_v57 = vor.u32 %v2617_v47, %v2616_v18  ;;  %v2621_v45 = vshll.u32 %v2620_v7, 23  ;;  %v2768_v29 = vshll.u32 %v7717_v36, %v2765_v46 }
 0x274   :  { %v2771_v11 = vshll.u32 %v7718_v38, %v2765_v46  ;;  %v7501_v50 = vpop.eup %7500  ;;  %v2539_v19 = vxor.u32 2147483648, %v7499_v14  ;;  %vm2704_vm10 = vc.u32 %v9856_v24, %v9847_v61  ;;  %v2774_v53 = vshll.u32 %v7719_v40, %v2765_v46 }
 0x275   :  { %v2777_v28 = vshll.u32 %v7720_v42, %v2765_v46  ;;  %v2536_v63 = vxor.u32 2147483648, %v7501_v50  ;;  %v2622_v25 = vor.u32 4788187, %v2621_v45  ;;  %v2625_v35 = vcvt.s32.f32 %v2618_v57 }
 0x276   :  { %v2706_v51 = vsel %vm2704_vm10, %v2705_v34, %v9848_v5  ;;  %v2540_v16 = vsel %vm2538_vm8, %v2539_v19, %v7501_v50  ;;  %v2769_v0 = vshrl.u32 %v7718_v38, %v2766_v26  ;;  %v2772_v30 = vshrl.u32 %v7719_v40, %v2766_v26 }
 0x277   :  { %v2707_v13 = vadd.s32 %v2706_v51, %v2702_v55  ;;  %v2537_v8 = vsel %vm2535_vm2, %v7499_v14, %v2536_v63  ;;  %v2623_v59 = vand.u32 2147483647, %v2622_v25  ;;  %v2775_v31 = vshrl.u32 %v7720_v42, %v2766_v26 }
 0x278   :  { %v2778_v27 = vshrl.u32 %v7721_v44, %v2766_v26  ;;  %v2541_v20 = vsel %vm2534_vm4, %v2537_v8, %v2540_v16  ;;  %v2630_v1 = vsel %vm2545_vm7, %v2629_v4, %v9797_v9  ;;  %v2770_v15 = vor.u32 %v2769_v0, %v2768_v29  ;;  %v50_v29 = vld [vmem:[#allocation2 + $0xd8] sm:$0xff] }
 0x279   :  { %v2708_v49 = vadd.s32 536870912, %v2707_v13  ;;  %v2542_v23 = vsel %vm2531_vm6, nan, %v2541_v20  ;;  %v2626_v32 = vmul.f32 %v2625_v35, %v2623_v59  ;;  %v2773_v62 = vor.u32 %v2772_v30, %v2771_v11 }
 0x27a   :  { %v2779_v21 = vor.u32 %v2778_v27, %v2777_v28  ;;  %v2780_v60 = vshll.u32 %v7721_v44, %v2765_v46  ;;  %v2781_v3 = vshrl.u32 %v7722_v52, %v2766_v26  ;;  %vm2783_vm11 = vcmp.lt.s32.totalorder %v9862_v43, 1  ;;  %6829 = vst [vmem:[#allocation5 + $0xb0] sm:$0xff] %v2542_v23 }
 0x27b   :  { %v2709_v33 = vshrl.u32 %v2708_v49, 30  ;;  %v2627_v5 = vxor.u32 2147483648, %v2626_v32  ;;  %v2776_v41 = vor.u32 %v2775_v31, %v2774_v53  ;;  %vm2786_vm12 = vcmp.lt.s32.totalorder %v9862_v43, 4 }
 0x27c   :  { %v9896_v9 = vshll.u32 %v2759_v54, 8  ;;  %v2632_v22 = vsel %vm9866_vm9, 0, %v2630_v1  ;;  %vm2784_vm13 = vcmp.lt.s32.totalorder %v9862_v43, 2  ;;  %vm2785_vm14 = vcmp.lt.s32.totalorder %v9862_v43, 3 }
 0x27d   :  { %v2710_v18 = vshll.u32 %v2709_v33, 30  ;;  %v2628_v48 = vsel %vm2545_vm7, %v2627_v5, %v2626_v32  ;;  %v2782_v17 = vor.u32 %v2781_v3, %v2780_v60  ;;  %v2791_v37 = vsel %vm2783_vm11, %v2770_v15, %v2773_v62 }
 0x27e   :  { %v2792_v46 = vsel %vm2786_vm12, %v2779_v21, 920167782  ;;  %v9908_v47 = vmul.f32 30.0, %v49_v58  ;;  %v2631_v7 = vsel %vm9866_vm9, %v9578_v12, %v2628_v48  ;;  %v2767_v54 = vshrl.u32 %v7717_v36, %v2766_v26 }
 0x27f   :  { %v9913_v4 = vsub.s32 %v2707_v13, %v2710_v18  ;;  %7502 = vcosq.f32 %v2631_v7  ;;  %v2636_v55 = vadd.s32 3, %v2632_v22  ;;  %v2788_v34 = vsel %vm2786_vm12, %v2776_v41, 2102212464 }
 0x280   :  { %v2793_v14 = vsel %vm2785_vm14, %v2776_v41, %v2792_v46  ;;  %7504 = vsinq.f32 %v2631_v7  ;;  %v2733_v45 = vsub.s32 4, %v2709_v33  ;;  %v2795_v11 = vsel %vm2783_vm11, %v2773_v62, %v2776_v41 }
 0x281   :  { %v2713_v57 = vsub.s32 0, %v9913_v4  ;;  %v2794_v10 = vsel %vm2784_vm13, %v2791_v37, %v2793_v14  ;;  %v2796_v26 = vsel %vm2786_vm12, %v2782_v17, 1326507024  ;;  %v2787_v28 = vsel %vm2783_vm11, %v2767_v54, %v2770_v15 }
 0x282   :  { %v9928_v50 = vmul.u32.u64.low %v9896_v9, %v2794_v10  ;;  %v9929_v19 = vmul.u32.u64.high %v9896_v9, %v2794_v10, %v9928_v50  ;;  %v2789_v63 = vsel %vm2785_vm14, %v2773_v62, %v2788_v34  ;;  %v2797_v25 = vsel %vm2785_vm14, %v2779_v21, %v2796_v26 }
 0x283   :  { %v6985_v53 = vmin.u32 %v2713_v57, %v9913_v4  ;;  %v2637_v35 = vand.u32 3, %v2636_v55  ;;  %v2798_v51 = vsel %vm2784_vm13, %v2795_v11, %v2797_v25  ;;  %v2858_v16 = vand.u32 2139095040, %v9908_v47 }
 0x284   :  { %v9942_v13 = vmul.f32 30.0, %v50_v29  ;;  %vm2635_vm15 = vweird.f32 %v9578_v12  ;;  %vm2649_vm0 = vcmp.lt.s32.totalorder %v9726_v2, 0  ;;  %v2790_v30 = vsel %vm2784_vm13, %v2787_v28, %v2789_v63 }
 0x285   :  { %v2715_v0 = vclz %v6985_v53  ;;  %v9949_v8 = vmul.u32.u64.low %v9896_v9, %v2798_v51  ;;  %v9950_v59 = vmul.u32.u64.high %v9896_v9, %v2798_v51, %v9949_v8  ;;  %v2859_v31 = vshrl.u32 %v2858_v16, 23 }
 0x286   :  { %vm9954_vm1 = vcmp.le.f32.partialorder %v2647_v56, 0.7853982  ;;  %v2734_v1 = vsel %vm2649_vm0, %v2733_v45, %v2709_v33  ;;  %v2855_v49 = vand.u32 2147483647, %v9908_v47  ;;  %vm2638_vm2 = vcmp.lt.s32.totalorder %v2637_v35, 2 }
 0x287   :  { %v6986_v20 = vadd.s32 4294967294, %v2715_v0  ;;  %vm2639_vm3 = vcmp.eq.s32.totalorder %v2637_v35, 0  ;;  %v2809_v43 = vadd.s32 1, %v9929_v19  ;;  %v6992_v15 = vadd.s32 4294967169, %v2859_v31 }
 0x288   :  { %vm2642_vm4 = vcmp.eq.s32.totalorder %v2637_v35, 2  ;;  %v2703_v23 = vadd.s32 %v9847_v61, %v9856_v24  ;;  %v2806_v56 = vmul.u32 %v9896_v9, %v2790_v30  ;;  %v2736_v21 = vsel %vm9954_vm1, 0, %v2734_v1 }
 0x289   :  { %vm6987_vm5 = vcmp.lt.s32.totalorder %v6986_v20, 0  ;;  %v7503_v32 = vpop.eup %7502  ;;  %vm2808_vm6 = vc.u32 %v9950_v59, %v9928_v50  ;;  %v2865_v33 = vadd.s32 1, %v6992_v15  ;;  %v2862_v24 = vand.u32 8388607, %v2855_v49 }
 0x28a   :  { %v2718_v62 = vsel %vm6987_vm5, 0, %v6986_v20  ;;  %v7505_v60 = vpop.eup %7504  ;;  %v2643_v3 = vxor.u32 2147483648, %v7503_v32  ;;  %v2810_v61 = vsel %vm2808_vm6, %v2809_v43, %v9929_v19  ;;  %v2962_v7 = vand.u32 2139095040, %v9942_v13 }
 0x28b   :  { %v2719_v58 = vsub.s32 32, %v2718_v62  ;;  %v2720_v5 = vshll.u32 %v9913_v4, %v2718_v62  ;;  %v2723_v41 = vsub.s32 4294967266, %v2718_v62  ;;  %v2640_v22 = vxor.u32 2147483648, %v7505_v60 }
 0x28c   :  { %vm2866_vm7 = vcmp.gt.s32.totalorder %v2865_v33, 0  ;;  %v2644_v9 = vsel %vm2642_vm4, %v2643_v3, %v7505_v60  ;;  %v2811_v17 = vadd.s32 %v2810_v61, %v2806_v56  ;;  %v2740_v57 = vadd.s32 3, %v2736_v21 }
 0x28d   :  { %v2721_v18 = vshrl.u32 %v2703_v23, %v2719_v58  ;;  %v2724_v48 = vadd.s32 127, %v2723_v41  ;;  %v2641_v37 = vsel %vm2639_vm3, %v7503_v32, %v2640_v22  ;;  %v2867_v46 = vsel %vm2866_vm7, %v2865_v33, 0 }
 0x28e   :  { %v2645_v4 = vsel %vm2638_vm2, %v2641_v37, %v2644_v9  ;;  %v2812_v34 = vadd.s32 536870912, %v2811_v17  ;;  %v2869_v45 = vand.u32 31, %v2867_v46  ;;  %v2863_v26 = vor.u32 8388608, %v2862_v24 }
 0x28f   :  { %v2722_v54 = vor.u32 %v2721_v18, %v2720_v5  ;;  %v2725_v55 = vshll.u32 %v2724_v48, 23  ;;  %v2646_v14 = vsel %vm2635_vm15, nan, %v2645_v4  ;;  %v2868_v19 = vshrl.u32 %v2867_v46, 5 }
 0x290   :  { %v9979_v11 = vshrl.u32 %v2812_v34, 30  ;;  %6830 = vst [vmem:[#allocation5 + $0xb8] sm:$0xff] %v2646_v14  ;;  %v2870_v53 = vsub.s32 32, %v2869_v45  ;;  %v2959_v28 = vand.u32 2147483647, %v9942_v13  ;;  %v2963_v63 = vshrl.u32 %v2962_v7, 23 }
 0x291   :  { %v2726_v10 = vor.u32 4788187, %v2725_v55  ;;  %v2729_v29 = vcvt.s32.f32 %v2722_v54  ;;  %v2872_v51 = vshll.u32 %v7717_v36, %v2869_v45  ;;  %v2875_v12 = vshll.u32 %v7718_v38, %v2869_v45 }
 0x292   :  { %v2814_v35 = vshll.u32 %v9979_v11, 30  ;;  %v2873_v16 = vshrl.u32 %v7718_v38, %v2870_v53  ;;  %v2876_v0 = vshrl.u32 %v7719_v40, %v2870_v53  ;;  %v2878_v30 = vshll.u32 %v7719_v40, %v2869_v45 }
 0x293   :  { %v2727_v25 = vand.u32 2147483647, %v2726_v10  ;;  %v2879_v8 = vshrl.u32 %v7720_v42, %v2870_v53  ;;  %v2881_v1 = vshll.u32 %v7720_v42, %v2869_v45  ;;  %v2882_v43 = vshrl.u32 %v7721_v44, %v2870_v53 }
 0x294   :  { %v9989_v20 = vsub.s32 %v2811_v17, %v2814_v35  ;;  %v9993_v15 = vand.u32 3, %v2740_v57  ;;  %v9995_v23 = vshll.u32 %v2863_v26, 8  ;;  %v6996_v56 = vadd.s32 4294967169, %v2963_v63 }
 0x295   :  { %v2730_v31 = vmul.f32 %v2729_v29, %v2727_v25  ;;  %v9999_v32 = vand.u32 8388607, %v2959_v28  ;;  %v2871_v33 = vshrl.u32 %v7717_v36, %v2870_v53  ;;  %v2874_v60 = vor.u32 %v2873_v16, %v2872_v51 }
 0x296   :  { %v2817_v21 = vsub.s32 0, %v9989_v20  ;;  %v2877_v3 = vor.u32 %v2876_v0, %v2875_v12  ;;  %v2880_v58 = vor.u32 %v2879_v8, %v2878_v30  ;;  %v2884_v5 = vshll.u32 %v7721_v44, %v2869_v45 }
 0x297   :  { %v2731_v62 = vxor.u32 2147483648, %v2730_v31  ;;  %v2885_v41 = vshrl.u32 %v7722_v52, %v2870_v53  ;;  %v2883_v24 = vor.u32 %v2882_v43, %v2881_v1  ;;  %vm2887_vm8 = vcmp.lt.s32.totalorder %v2868_v19, 1 }
 0x298   :  { %v6989_v61 = vmin.u32 %v2817_v21, %v9989_v20  ;;  %vm2890_vm9 = vcmp.lt.s32.totalorder %v2868_v19, 4  ;;  %v2969_v48 = vadd.s32 1, %v6996_v56  ;;  %vm2888_vm10 = vcmp.lt.s32.totalorder %v2868_v19, 2 }
 0x299   :  { %v2732_v22 = vsel %vm2649_vm0, %v2731_v62, %v2730_v31  ;;  %v2886_v18 = vor.u32 %v2885_v41, %v2884_v5  ;;  %vm2889_vm11 = vcmp.lt.s32.totalorder %v2868_v19, 3  ;;  %v2891_v37 = vsel %vm2887_vm8, %v2871_v33, %v2874_v60 }
 0x29a   :  { %v2735_v9 = vsel %vm9954_vm1, %v9726_v2, %v2732_v22  ;;  %v2819_v17 = vclz %v6989_v61  ;;  %v2892_v46 = vsel %vm2890_vm9, %v2880_v58, 2102212464  ;;  %v2895_v7 = vsel %vm2887_vm8, %v2874_v60, %v2877_v3 }
 0x29b   :  { %7506 = vcosq.f32 %v2735_v9  ;;  %v2893_v54 = vsel %vm2889_vm11, %v2877_v3, %v2892_v46  ;;  %v2896_v27 = vsel %vm2890_vm9, %v2883_v24, 920167782  ;;  %v2899_v55 = vsel %vm2887_vm8, %v2877_v3, %v2880_v58 }
 0x29c   :  { %7508 = vsinq.f32 %v2735_v9  ;;  %v6990_v4 = vadd.s32 4294967294, %v2819_v17  ;;  %vm2743_vm12 = vcmp.eq.s32.totalorder %v9993_v15, 0  ;;  %v2807_v34 = vadd.s32 %v9928_v50, %v9950_v59 }
 0x29d   :  { %v2897_v14 = vsel %vm2889_vm11, %v2880_v58, %v2896_v27  ;;  %v2900_v57 = vsel %vm2890_vm9, %v2886_v18, 1326507024  ;;  %vm2970_vm13 = vcmp.gt.s32.totalorder %v2969_v48, 0  ;;  %vm2742_vm14 = vcmp.lt.s32.totalorder %v9993_v15, 2 }
 0x29e   :  { %vm6991_vm15 = vcmp.lt.s32.totalorder %v6990_v4, 0  ;;  %v2894_v45 = vsel %vm2888_vm10, %v2891_v37, %v2893_v54  ;;  %v2898_v10 = vsel %vm2888_vm10, %v2895_v7, %v2897_v14  ;;  %v2901_v29 = vsel %vm2889_vm11, %v2883_v24, %v2900_v57 }
 0x29f   :  { %vm2739_vm0 = vweird.f32 %v9726_v2  ;;  %v2822_v26 = vsel %vm6991_vm15, 0, %v6990_v4  ;;  %v2902_v53 = vsel %vm2888_vm10, %v2899_v55, %v2901_v29  ;;  %vm2753_vm1 = vcmp.lt.s32.totalorder %v9760_v39, 0 }
 0x2a0   :  { %v10029_v50 = vmul.u32.u64.low %v9995_v23, %v2898_v10  ;;  %v10030_v59 = vmul.u32.u64.high %v9995_v23, %v2898_v10, %v10029_v50  ;;  %v2823_v63 = vsub.s32 32, %v2822_v26  ;;  %v2824_v25 = vshll.u32 %v9989_v20, %v2822_v26 }
 0x2a1   :  { %v2827_v35 = vsub.s32 4294967266, %v2822_v26  ;;  %v2971_v51 = vsel %vm2970_vm13, %v2969_v48, 0  ;;  %vm2746_vm2 = vcmp.eq.s32.totalorder %v9993_v15, 2  ;;  %v2837_v8 = vsub.s32 4, %v9979_v11  ;;  %v51_v15 = vld [vmem:[#allocation2 + $0xe0] sm:$0xff] }
 0x2a2   :  { %v10037_v12 = vmul.u32.u64.low %v9995_v23, %v2902_v53  ;;  %v10038_v16 = vmul.u32.u64.high %v9995_v23, %v2902_v53, %v10037_v12  ;;  %v2973_v19 = vand.u32 31, %v2971_v51  ;;  %v2825_v0 = vshrl.u32 %v2807_v34, %v2823_v63 }
 0x2a3   :  { %v2828_v30 = vadd.s32 127, %v2827_v35  ;;  %v2967_v31 = vor.u32 8388608, %v9999_v32  ;;  %v2910_v1 = vmul.u32 %v9995_v23, %v2894_v45  ;;  %v2913_v43 = vadd.s32 1, %v10030_v59 }
 0x2a4   :  { %v10044_v20 = vshrl.u32 %v2971_v51, 5  ;;  %v2974_v56 = vsub.s32 32, %v2973_v19  ;;  %vm10048_vm3 = vcmp.le.f32.partialorder %v2751_v6, 0.7853982  ;;  %v2826_v33 = vor.u32 %v2825_v0, %v2824_v25 }
 0x2a5   :  { %v7507_v62 = vpop.eup %7506  ;;  %v2829_v60 = vshll.u32 %v2828_v30, 23  ;;  %v2976_v3 = vshll.u32 %v7717_v36, %v2973_v19  ;;  %v2979_v32 = vshll.u32 %v7718_v38, %v2973_v19  ;;  %vm2912_vm4 = vc.u32 %v10038_v16, %v10029_v50 }
 0x2a6   :  { %v7509_v58 = vpop.eup %7508  ;;  %v2747_v23 = vxor.u32 2147483648, %v7507_v62  ;;  %v2982_v5 = vshll.u32 %v7719_v40, %v2973_v19  ;;  %v2985_v41 = vshll.u32 %v7720_v42, %v2973_v19  ;;  %v2833_v61 = vcvt.s32.f32 %v2826_v33 }
 0x2a7   :  { %v2744_v22 = vxor.u32 2147483648, %v7509_v58  ;;  %v2830_v6 = vor.u32 4788187, %v2829_v60  ;;  %v2914_v24 = vsel %vm2912_vm4, %v2913_v43, %v10030_v59  ;;  %v2977_v48 = vshrl.u32 %v7718_v38, %v2974_v56 }
 0x2a8   :  { %v2748_v9 = vsel %vm2746_vm2, %v2747_v23, %v7509_v58  ;;  %v2915_v18 = vadd.s32 %v2914_v24, %v2910_v1  ;;  %v2980_v17 = vshrl.u32 %v7719_v40, %v2974_v56  ;;  %v2983_v7 = vshrl.u32 %v7720_v42, %v2974_v56 }
 0x2a9   :  { %v2745_v37 = vsel %vm2743_vm12, %v7507_v62, %v2744_v22  ;;  %v2831_v46 = vand.u32 2147483647, %v2830_v6  ;;  %v2986_v4 = vshrl.u32 %v7721_v44, %v2974_v56  ;;  %v2838_v27 = vsel %vm2753_vm1, %v2837_v8, %v9979_v11 }
 0x2aa   :  { %v2749_v54 = vsel %vm2742_vm14, %v2745_v37, %v2748_v9  ;;  %v2916_v55 = vadd.s32 536870912, %v2915_v18  ;;  %v2978_v34 = vor.u32 %v2977_v48, %v2976_v3  ;;  %v2981_v45 = vor.u32 %v2980_v17, %v2979_v32  ;;  %v52_v3 = vld [vmem:[#allocation2 + $0xe8] sm:$0xff] }
 0x2ab   :  { %v2750_v14 = vsel %vm2739_vm0, nan, %v2749_v54  ;;  %v2834_v57 = vmul.f32 %v2833_v61, %v2831_v46  ;;  %v2987_v10 = vor.u32 %v2986_v4, %v2985_v41  ;;  %v2988_v26 = vshll.u32 %v7721_v44, %v2973_v19 }
 0x2ac   :  { %v2917_v29 = vshrl.u32 %v2916_v55, 30  ;;  %v2989_v53 = vshrl.u32 %v7722_v52, %v2974_v56  ;;  %vm2991_vm5 = vcmp.lt.s32.totalorder %v10044_v20, 1  ;;  %6831 = vst [vmem:[#allocation5 + $0xc0] sm:$0xff] %v2750_v14  ;;  %v2984_v63 = vor.u32 %v2983_v7, %v2982_v5 }
 0x2ad   :  { %v2835_v59 = vxor.u32 2147483648, %v2834_v57  ;;  %vm2994_vm6 = vcmp.lt.s32.totalorder %v10044_v20, 4  ;;  %v10078_v11 = vshll.u32 %v2967_v31, 8  ;;  %v2840_v2 = vsel %vm10048_vm3, 0, %v2838_v27 }
 0x2ae   :  { %v2918_v25 = vshll.u32 %v2917_v29, 30  ;;  %vm2992_vm7 = vcmp.lt.s32.totalorder %v10044_v20, 2  ;;  %vm2993_vm8 = vcmp.lt.s32.totalorder %v10044_v20, 3  ;;  %v2990_v51 = vor.u32 %v2989_v53, %v2988_v26 }
 0x2af   :  { %v2836_v35 = vsel %vm2753_vm1, %v2835_v59, %v2834_v57  ;;  %v2999_v12 = vsel %vm2991_vm5, %v2978_v34, %v2981_v45  ;;  %v3000_v19 = vsel %vm2994_vm6, %v2987_v10, 920167782  ;;  %v10090_v0 = vmul.f32 30.0, %v51_v15 }
 0x2b0   :  { %v2839_v30 = vsel %vm10048_vm3, %v9760_v39, %v2836_v35  ;;  %v10095_v8 = vsub.s32 %v2915_v18, %v2918_v25  ;;  %v2975_v31 = vshrl.u32 %v7717_v36, %v2974_v56  ;;  %v2844_v1 = vadd.s32 3, %v2840_v2 }
 0x2b1   :  { %7510 = vcosq.f32 %v2839_v30  ;;  %v2996_v43 = vsel %vm2994_vm6, %v2984_v63, 2102212464  ;;  %v3001_v62 = vsel %vm2993_vm8, %v2984_v63, %v3000_v19  ;;  %v2941_v60 = vsub.s32 4, %v2917_v29 }
 0x2b2   :  { %7512 = vsinq.f32 %v2839_v30  ;;  %v2921_v33 = vsub.s32 0, %v10095_v8  ;;  %v3002_v21 = vsel %vm2992_vm7, %v2999_v12, %v3001_v62  ;;  %v3003_v32 = vsel %vm2991_vm5, %v2981_v45, %v2984_v63 }
 0x2b3   :  { %v3004_v56 = vsel %vm2994_vm6, %v2990_v51, 1326507024  ;;  %v10110_v58 = vmul.u32.u64.low %v10078_v11, %v3002_v21  ;;  %v10111_v23 = vmul.u32.u64.high %v10078_v11, %v3002_v21, %v10110_v58  ;;  %v2995_v41 = vsel %vm2991_vm5, %v2975_v31, %v2978_v34 }
 0x2b4   :  { %v6993_v5 = vmin.u32 %v2921_v33, %v10095_v8  ;;  %v2997_v22 = vsel %vm2993_vm8, %v2981_v45, %v2996_v43  ;;  %v3005_v6 = vsel %vm2993_vm8, %v2987_v10, %v3004_v56  ;;  %v2845_v61 = vand.u32 3, %v2844_v1 }
 0x2b5   :  { %v3006_v24 = vsel %vm2992_vm7, %v3003_v32, %v3005_v6  ;;  %v3066_v9 = vand.u32 2139095040, %v10090_v0  ;;  %v10124_v18 = vmul.f32 30.0, %v52_v3  ;;  %vm2843_vm9 = vweird.f32 %v9760_v39 }
 0x2b6   :  { %vm2857_vm10 = vcmp.lt.s32.totalorder %v9908_v47, 0  ;;  %v2923_v48 = vclz %v6993_v5  ;;  %v2998_v17 = vsel %vm2992_vm7, %v2995_v41, %v2997_v22  ;;  %vm10136_vm11 = vcmp.le.f32.partialorder %v2855_v49, 0.7853982 }
 0x2b7   :  { %v10131_v37 = vmul.u32.u64.low %v10078_v11, %v3006_v24  ;;  %v10132_v46 = vmul.u32.u64.high %v10078_v11, %v3006_v24, %v10131_v37  ;;  %v3067_v7 = vshrl.u32 %v3066_v9, 23  ;;  %v2942_v27 = vsel %vm2857_vm10, %v2941_v60, %v2917_v29 }
 0x2b8   :  { %v6994_v54 = vadd.s32 4294967294, %v2923_v48  ;;  %v3063_v55 = vand.u32 2147483647, %v10090_v0  ;;  %vm2846_vm12 = vcmp.lt.s32.totalorder %v2845_v61, 2  ;;  %vm2847_vm13 = vcmp.eq.s32.totalorder %v2845_v61, 0 }
 0x2b9   :  { %v3017_v20 = vadd.s32 1, %v10111_v23  ;;  %v7000_v34 = vadd.s32 4294967169, %v3067_v7  ;;  %vm2850_vm14 = vcmp.eq.s32.totalorder %v2845_v61, 2  ;;  %v2911_v14 = vadd.s32 %v10029_v50, %v10038_v16 }
 0x2ba   :  { %vm6995_vm15 = vcmp.lt.s32.totalorder %v6994_v54, 0  ;;  %v3014_v49 = vmul.u32 %v10078_v11, %v2998_v17  ;;  %v2944_v10 = vsel %vm10136_vm11, 0, %v2942_v27  ;;  %vm3016_vm0 = vc.u32 %v10132_v46, %v10110_v58 }
 0x2bb   :  { %v7511_v57 = vpop.eup %7510  ;;  %v2926_v45 = vsel %vm6995_vm15, 0, %v6994_v54  ;;  %v3073_v29 = vadd.s32 1, %v7000_v34  ;;  %v3018_v50 = vsel %vm3016_vm0, %v3017_v20, %v10111_v23  ;;  %v3070_v16 = vand.u32 8388607, %v3063_v55 }
 0x2bc   :  { %v7513_v26 = vpop.eup %7512  ;;  %v2851_v53 = vxor.u32 2147483648, %v7511_v57  ;;  %v2927_v15 = vsub.s32 32, %v2926_v45  ;;  %v2928_v59 = vshll.u32 %v10095_v8, %v2926_v45  ;;  %v2931_v63 = vsub.s32 4294967266, %v2926_v45 }
 0x2bd   :  { %v2848_v2 = vxor.u32 2147483648, %v7513_v26  ;;  %vm3074_vm1 = vcmp.gt.s32.totalorder %v3073_v29, 0  ;;  %v3019_v51 = vadd.s32 %v3018_v50, %v3014_v49  ;;  %v3170_v30 = vand.u32 2139095040, %v10124_v18 }
 0x2be   :  { %v2852_v11 = vsel %vm2850_vm14, %v2851_v53, %v7513_v26  ;;  %v2929_v25 = vshrl.u32 %v2911_v14, %v2927_v15  ;;  %v2932_v35 = vadd.s32 127, %v2931_v63  ;;  %v3075_v19 = vsel %vm3074_vm1, %v3073_v29, 0 }
 0x2bf   :  { %v2849_v12 = vsel %vm2847_vm13, %v7511_v57, %v2848_v2  ;;  %v3020_v43 = vadd.s32 536870912, %v3019_v51  ;;  %v2948_v33 = vadd.s32 3, %v2944_v10  ;;  %v3077_v60 = vand.u32 31, %v3075_v19 }
 0x2c0   :  { %v2853_v8 = vsel %vm2846_vm12, %v2849_v12, %v2852_v11  ;;  %v2930_v31 = vor.u32 %v2929_v25, %v2928_v59  ;;  %v2933_v1 = vshll.u32 %v2932_v35, 23  ;;  %v3071_v56 = vor.u32 8388608, %v3070_v16 }
 0x2c1   :  { %v2854_v62 = vsel %vm2843_vm9, nan, %v2853_v8  ;;  %v10161_v32 = vshrl.u32 %v3020_v43, 30  ;;  %v3076_v23 = vshrl.u32 %v3075_v19, 5  ;;  %v3078_v5 = vsub.s32 32, %v3077_v60 }
 0x2c2   :  { %v2934_v21 = vor.u32 4788187, %v2933_v1  ;;  %v2937_v3 = vcvt.s32.f32 %v2930_v31  ;;  %6832 = vst [vmem:[#allocation5 + $0xc8] sm:$0xff] %v2854_v62  ;;  %v3167_v41 = vand.u32 2147483647, %v10124_v18  ;;  %v3171_v22 = vshrl.u32 %v3170_v30, 23 }
 0x2c3   :  { %v3022_v61 = vshll.u32 %v10161_v32, 30  ;;  %v3080_v24 = vshll.u32 %v7717_v36, %v3077_v60  ;;  %v3083_v39 = vshll.u32 %v7718_v38, %v3077_v60  ;;  %v3081_v9 = vshrl.u32 %v7718_v38, %v3078_v5 }
 0x2c4   :  { %v2935_v6 = vand.u32 2147483647, %v2934_v21  ;;  %v3084_v48 = vshrl.u32 %v7719_v40, %v3078_v5  ;;  %v3086_v17 = vshll.u32 %v7719_v40, %v3077_v60  ;;  %v3087_v37 = vshrl.u32 %v7720_v42, %v3078_v5 }
 0x2c5   :  { %v10171_v54 = vsub.s32 %v3019_v51, %v3022_v61  ;;  %v3089_v27 = vshll.u32 %v7720_v42, %v3077_v60  ;;  %v3090_v20 = vshrl.u32 %v7721_v44, %v3078_v5  ;;  %v10175_v34 = vand.u32 3, %v2948_v33 }
 0x2c6   :  { %v2938_v7 = vmul.f32 %v2937_v3, %v2935_v6  ;;  %v10177_v14 = vshll.u32 %v3071_v56, 8  ;;  %v7004_v49 = vadd.s32 4294967169, %v3171_v22  ;;  %v10181_v57 = vand.u32 8388607, %v3167_v41 }
 0x2c7   :  { %v3025_v10 = vsub.s32 0, %v10171_v54  ;;  %v3079_v29 = vshrl.u32 %v7717_v36, %v3078_v5  ;;  %v3082_v26 = vor.u32 %v3081_v9, %v3080_v24  ;;  %v3085_v53 = vor.u32 %v3084_v48, %v3083_v39 }
 0x2c8   :  { %v2939_v45 = vxor.u32 2147483648, %v2938_v7  ;;  %v3088_v15 = vor.u32 %v3087_v37, %v3086_v17  ;;  %v3092_v59 = vshll.u32 %v7721_v44, %v3077_v60  ;;  %v3093_v63 = vshrl.u32 %v7722_v52, %v3078_v5 }
 0x2c9   :  { %v6997_v50 = vmin.u32 %v3025_v10, %v10171_v54  ;;  %v3091_v16 = vor.u32 %v3090_v20, %v3089_v27  ;;  %vm3095_vm2 = vcmp.lt.s32.totalorder %v3076_v23, 1  ;;  %vm3098_vm3 = vcmp.lt.s32.totalorder %v3076_v23, 4 }
 0x2ca   :  { %v2940_v2 = vsel %vm2857_vm10, %v2939_v45, %v2938_v7  ;;  %v3094_v25 = vor.u32 %v3093_v63, %v3092_v59  ;;  %v3177_v35 = vadd.s32 1, %v7004_v49  ;;  %vm3096_vm4 = vcmp.lt.s32.totalorder %v3076_v23, 2 }
 0x2cb   :  { %v2943_v11 = vsel %vm10136_vm11, %v9908_v47, %v2940_v2  ;;  %v3027_v51 = vclz %v6997_v50  ;;  %vm3097_vm5 = vcmp.lt.s32.totalorder %v3076_v23, 3  ;;  %v3099_v12 = vsel %vm3095_vm2, %v3079_v29, %v3082_v26 }
 0x2cc   :  { %7514 = vcosq.f32 %v2943_v11  ;;  %v3100_v19 = vsel %vm3098_vm3, %v3088_v15, 2102212464  ;;  %v3103_v30 = vsel %vm3095_vm2, %v3082_v26, %v3085_v53  ;;  %v3104_v4 = vsel %vm3098_vm3, %v3091_v16, 920167782 }
 0x2cd   :  { %7516 = vsinq.f32 %v2943_v11  ;;  %v6998_v8 = vadd.s32 4294967294, %v3027_v51  ;;  %v3101_v31 = vsel %vm3097_vm5, %v3085_v53, %v3100_v19  ;;  %v3107_v1 = vsel %vm3095_vm2, %v3085_v53, %v3088_v15 }
 0x2ce   :  { %vm2951_vm6 = vcmp.eq.s32.totalorder %v10175_v34, 0  ;;  %v3015_v43 = vadd.s32 %v10110_v58, %v10132_v46  ;;  %v3105_v62 = vsel %vm3097_vm5, %v3088_v15, %v3104_v4  ;;  %v3108_v33 = vsel %vm3098_vm3, %v3094_v25, 1326507024 }
 0x2cf   :  { %vm3178_vm7 = vcmp.gt.s32.totalorder %v3177_v35, 0  ;;  %vm2950_vm8 = vcmp.lt.s32.totalorder %v10175_v34, 2  ;;  %vm6999_vm9 = vcmp.lt.s32.totalorder %v6998_v8, 0  ;;  %v3102_v60 = vsel %vm3096_vm4, %v3099_v12, %v3101_v31 }
 0x2d0   :  { %v3106_v21 = vsel %vm3096_vm4, %v3103_v30, %v3105_v62  ;;  %v3109_v3 = vsel %vm3097_vm5, %v3091_v16, %v3108_v33  ;;  %vm2947_vm10 = vweird.f32 %v9908_v47  ;;  %v3030_v56 = vsel %vm6999_vm9, 0, %v6998_v8 }
 0x2d1   :  { %v3110_v5 = vsel %vm3096_vm4, %v3107_v1, %v3109_v3  ;;  %v10211_v58 = vmul.u32.u64.low %v10177_v14, %v3106_v21  ;;  %v10212_v46 = vmul.u32.u64.high %v10177_v14, %v3106_v21, %v10211_v58  ;;  %vm2961_vm11 = vcmp.lt.s32.totalorder %v9942_v13, 0 }
 0x2d2   :  { %v3031_v22 = vsub.s32 32, %v3030_v56  ;;  %v3032_v6 = vshll.u32 %v10171_v54, %v3030_v56  ;;  %v3035_v61 = vsub.s32 4294967266, %v3030_v56  ;;  %v3179_v24 = vsel %vm3178_vm7, %v3177_v35, 0 }
 0x2d3   :  { %vm2954_vm12 = vcmp.eq.s32.totalorder %v10175_v34, 2  ;;  %v10219_v39 = vmul.u32.u64.low %v10177_v14, %v3110_v5  ;;  %v10220_v9 = vmul.u32.u64.high %v10177_v14, %v3110_v5, %v10219_v39  ;;  %v3181_v23 = vand.u32 31, %v3179_v24  ;;  %v53_v34 = vld [vmem:[#allocation2 + $0xf0] sm:$0xff] }
 0x2d4   :  { %v3033_v48 = vshrl.u32 %v3015_v43, %v3031_v22  ;;  %v3036_v17 = vadd.s32 127, %v3035_v61  ;;  %v3045_v37 = vsub.s32 4, %v10161_v32  ;;  %v3175_v7 = vor.u32 8388608, %v10181_v57 }
 0x2d5   :  { %v3118_v27 = vmul.u32 %v10177_v14, %v3102_v60  ;;  %v3121_v20 = vadd.s32 1, %v10212_v46  ;;  %v10226_v54 = vshrl.u32 %v3179_v24, 5  ;;  %v3182_v49 = vsub.s32 32, %v3181_v23 }
 0x2d6   :  { %v7515_v45 = vpop.eup %7514  ;;  %vm10230_vm13 = vcmp.le.f32.partialorder %v2959_v28, 0.7853982  ;;  %v3034_v29 = vor.u32 %v3033_v48, %v3032_v6  ;;  %v3037_v26 = vshll.u32 %v3036_v17, 23  ;;  %v3184_v53 = vshll.u32 %v7717_v36, %v3181_v23 }
 0x2d7   :  { %v3187_v57 = vshll.u32 %v7718_v38, %v3181_v23  ;;  %v7517_v15 = vpop.eup %7516  ;;  %v2955_v14 = vxor.u32 2147483648, %v7515_v45  ;;  %vm3120_vm14 = vc.u32 %v10220_v9, %v10211_v58  ;;  %v3190_v59 = vshll.u32 %v7719_v40, %v3181_v23 }
 0x2d8   :  { %v3193_v63 = vshll.u32 %v7720_v42, %v3181_v23  ;;  %v2952_v2 = vxor.u32 2147483648, %v7517_v15  ;;  %v3038_v28 = vor.u32 4788187, %v3037_v26  ;;  %v3041_v50 = vcvt.s32.f32 %v3034_v29 }
 0x2d9   :  { %v3122_v16 = vsel %vm3120_vm14, %v3121_v20, %v10212_v46  ;;  %v2956_v11 = vsel %vm2954_vm12, %v2955_v14, %v7517_v15  ;;  %v3185_v35 = vshrl.u32 %v7718_v38, %v3182_v49  ;;  %v3188_v51 = vshrl.u32 %v7719_v40, %v3182_v49 }
 0x2da   :  { %v3123_v25 = vadd.s32 %v3122_v16, %v3118_v27  ;;  %v2953_v12 = vsel %vm2951_vm6, %v7515_v45, %v2952_v2  ;;  %v3039_v19 = vand.u32 2147483647, %v3038_v28  ;;  %v3191_v30 = vshrl.u32 %v7720_v42, %v3182_v49 }
 0x2db   :  { %v3194_v8 = vshrl.u32 %v7721_v44, %v3182_v49  ;;  %v2957_v31 = vsel %vm2950_vm8, %v2953_v12, %v2956_v11  ;;  %v3046_v4 = vsel %vm2961_vm11, %v3045_v37, %v10161_v32  ;;  %v3186_v43 = vor.u32 %v3185_v35, %v3184_v53  ;;  %v54_v53 = vld [vmem:[#allocation2 + $0xf8] sm:$0xff] }
 0x2dc   :  { %v3124_v1 = vadd.s32 536870912, %v3123_v25  ;;  %v2958_v62 = vsel %vm2947_vm10, nan, %v2957_v31  ;;  %v3042_v33 = vmul.f32 %v3041_v50, %v3039_v19  ;;  %v3189_v60 = vor.u32 %v3188_v51, %v3187_v57 }
 0x2dd   :  { %v3195_v21 = vor.u32 %v3194_v8, %v3193_v63  ;;  %v3196_v56 = vshll.u32 %v7721_v44, %v3181_v23  ;;  %v3197_v5 = vshrl.u32 %v7722_v52, %v3182_v49  ;;  %vm3199_vm15 = vcmp.lt.s32.totalorder %v10226_v54, 1  ;;  %6833 = vst [vmem:[#allocation5 + $0xd0] sm:$0xff] %v2958_v62 }
 0x2de   :  { %v3125_v3 = vshrl.u32 %v3124_v1, 30  ;;  %v3043_v46 = vxor.u32 2147483648, %v3042_v33  ;;  %v3192_v22 = vor.u32 %v3191_v30, %v3190_v59  ;;  %vm3202_vm0 = vcmp.lt.s32.totalorder %v10226_v54, 4 }
 0x2df   :  { %v10260_v32 = vshll.u32 %v3175_v7, 8  ;;  %v3048_v47 = vsel %vm10230_vm13, 0, %v3046_v4  ;;  %vm3200_vm1 = vcmp.lt.s32.totalorder %v10226_v54, 2  ;;  %vm3201_vm2 = vcmp.lt.s32.totalorder %v10226_v54, 3 }
 0x2e0   :  { %v3126_v6 = vshll.u32 %v3125_v3, 30  ;;  %v3044_v61 = vsel %vm2961_vm11, %v3043_v46, %v3042_v33  ;;  %v3198_v24 = vor.u32 %v3197_v5, %v3196_v56  ;;  %v3207_v39 = vsel %vm3199_vm15, %v3186_v43, %v3189_v60 }
 0x2e1   :  { %v3208_v23 = vsel %vm3202_vm0, %v3195_v21, 920167782  ;;  %v10272_v48 = vmul.f32 30.0, %v53_v34  ;;  %v3047_v17 = vsel %vm10230_vm13, %v9942_v13, %v3044_v61  ;;  %v3183_v7 = vshrl.u32 %v7717_v36, %v3182_v49 }
 0x2e2   :  { %v10277_v37 = vsub.s32 %v3123_v25, %v3126_v6  ;;  %7518 = vcosq.f32 %v3047_v17  ;;  %v3052_v27 = vadd.s32 3, %v3048_v47  ;;  %v3204_v20 = vsel %vm3202_vm0, %v3192_v22, 2102212464 }
 0x2e3   :  { %v3209_v45 = vsel %vm3201_vm2, %v3192_v22, %v3208_v23  ;;  %7520 = vsinq.f32 %v3047_v17  ;;  %v3149_v26 = vsub.s32 4, %v3125_v3  ;;  %v3211_v57 = vsel %vm3199_vm15, %v3189_v60, %v3192_v22 }
 0x2e4   :  { %v3129_v29 = vsub.s32 0, %v10277_v37  ;;  %v3210_v10 = vsel %vm3200_vm1, %v3207_v39, %v3209_v45  ;;  %v3212_v49 = vsel %vm3202_vm0, %v3198_v24, 1326507024  ;;  %v3203_v63 = vsel %vm3199_vm15, %v3183_v7, %v3186_v43 }
 0x2e5   :  { %v10292_v15 = vmul.u32.u64.low %v10260_v32, %v3210_v10  ;;  %v10293_v14 = vmul.u32.u64.high %v10260_v32, %v3210_v10, %v10292_v15  ;;  %v3205_v2 = vsel %vm3201_vm2, %v3189_v60, %v3204_v20  ;;  %v3213_v28 = vsel %vm3201_vm2, %v3195_v21, %v3212_v49 }
 0x2e6   :  { %v7001_v59 = vmin.u32 %v3129_v29, %v10277_v37  ;;  %v3053_v50 = vand.u32 3, %v3052_v27  ;;  %v3214_v16 = vsel %vm3200_vm1, %v3211_v57, %v3213_v28  ;;  %v3274_v11 = vand.u32 2139095040, %v10272_v48 }
 0x2e7   :  { %v10306_v25 = vmul.f32 30.0, %v54_v53  ;;  %vm3051_vm3 = vweird.f32 %v9942_v13  ;;  %vm3065_vm4 = vcmp.lt.s32.totalorder %v10090_v0, 0  ;;  %v3206_v51 = vsel %vm3200_vm1, %v3203_v63, %v3205_v2 }
 0x2e8   :  { %v3131_v35 = vclz %v7001_v59  ;;  %v10313_v12 = vmul.u32.u64.low %v10260_v32, %v3214_v16  ;;  %v10314_v19 = vmul.u32.u64.high %v10260_v32, %v3214_v16, %v10313_v12  ;;  %v3275_v30 = vshrl.u32 %v3274_v11, 23 }
 0x2e9   :  { %vm10318_vm5 = vcmp.le.f32.partialorder %v3063_v55, 0.7853982  ;;  %v3150_v4 = vsel %vm3065_vm4, %v3149_v26, %v3125_v3  ;;  %v3271_v1 = vand.u32 2147483647, %v10272_v48  ;;  %vm3054_vm6 = vcmp.lt.s32.totalorder %v3053_v50, 2 }
 0x2ea   :  { %v7002_v31 = vadd.s32 4294967294, %v3131_v35  ;;  %vm3055_vm7 = vcmp.eq.s32.totalorder %v3053_v50, 0  ;;  %v3225_v54 = vadd.s32 1, %v10293_v14  ;;  %v7008_v43 = vadd.s32 4294967169, %v3275_v30 }
 0x2eb   :  { %vm3058_vm8 = vcmp.eq.s32.totalorder %v3053_v50, 2  ;;  %v3119_v62 = vadd.s32 %v10211_v58, %v10220_v9  ;;  %v3222_v55 = vmul.u32 %v10260_v32, %v3206_v51  ;;  %v3152_v21 = vsel %vm10318_vm5, 0, %v3150_v4 }
 0x2ec   :  { %vm7003_vm9 = vcmp.lt.s32.totalorder %v7002_v31, 0  ;;  %v7519_v33 = vpop.eup %7518  ;;  %vm3224_vm10 = vc.u32 %v10314_v19, %v10292_v15  ;;  %v3281_v3 = vadd.s32 1, %v7008_v43  ;;  %v3278_v9 = vand.u32 8388607, %v3271_v1 }
 0x2ed   :  { %v3134_v60 = vsel %vm7003_vm9, 0, %v7002_v31  ;;  %v7521_v56 = vpop.eup %7520  ;;  %v3059_v5 = vxor.u32 2147483648, %v7519_v33  ;;  %v3226_v58 = vsel %vm3224_vm10, %v3225_v54, %v10293_v14  ;;  %v3378_v17 = vand.u32 2139095040, %v10306_v25 }
 0x2ee   :  { %v3135_v34 = vsub.s32 32, %v3134_v60  ;;  %v3136_v46 = vshll.u32 %v10277_v37, %v3134_v60  ;;  %v3139_v22 = vsub.s32 4294967266, %v3134_v60  ;;  %v3056_v47 = vxor.u32 2147483648, %v7521_v56 }
 0x2ef   :  { %vm3282_vm11 = vcmp.gt.s32.totalorder %v3281_v3, 0  ;;  %v3060_v32 = vsel %vm3058_vm8, %v3059_v5, %v7521_v56  ;;  %v3227_v24 = vadd.s32 %v3226_v58, %v3222_v55  ;;  %v3156_v29 = vadd.s32 3, %v3152_v21 }
 0x2f0   :  { %v3137_v6 = vshrl.u32 %v3119_v62, %v3135_v34  ;;  %v3140_v61 = vadd.s32 127, %v3139_v22  ;;  %v3057_v39 = vsel %vm3055_vm7, %v7519_v33, %v3056_v47  ;;  %v3283_v23 = vsel %vm3282_vm11, %v3281_v3, 0 }
 0x2f1   :  { %v3061_v37 = vsel %vm3054_vm6, %v3057_v39, %v3060_v32  ;;  %v3228_v20 = vadd.s32 536870912, %v3227_v24  ;;  %v3285_v26 = vand.u32 31, %v3283_v23  ;;  %v3279_v49 = vor.u32 8388608, %v3278_v9 }
 0x2f2   :  { %v3138_v7 = vor.u32 %v3137_v6, %v3136_v46  ;;  %v3141_v27 = vshll.u32 %v3140_v61, 23  ;;  %v3062_v45 = vsel %vm3051_vm3, nan, %v3061_v37  ;;  %v3284_v14 = vshrl.u32 %v3283_v23, 5 }
 0x2f3   :  { %v10343_v57 = vshrl.u32 %v3228_v20, 30  ;;  %6834 = vst [vmem:[#allocation5 + $0xd8] sm:$0xff] %v3062_v45  ;;  %v3286_v59 = vsub.s32 32, %v3285_v26  ;;  %v3375_v63 = vand.u32 2147483647, %v10306_v25  ;;  %v3379_v2 = vshrl.u32 %v3378_v17, 23 }
 0x2f4   :  { %v3142_v10 = vor.u32 4788187, %v3141_v27  ;;  %v3145_v53 = vcvt.s32.f32 %v3138_v7  ;;  %v3288_v16 = vshll.u32 %v7717_v36, %v3285_v26  ;;  %v3291_v13 = vshll.u32 %v7718_v38, %v3285_v26 }
 0x2f5   :  { %v3230_v50 = vshll.u32 %v10343_v57, 30  ;;  %v3289_v11 = vshrl.u32 %v7718_v38, %v3286_v59  ;;  %v3292_v35 = vshrl.u32 %v7719_v40, %v3286_v59  ;;  %v3294_v51 = vshll.u32 %v7719_v40, %v3285_v26 }
 0x2f6   :  { %v3143_v28 = vand.u32 2147483647, %v3142_v10  ;;  %v3295_v12 = vshrl.u32 %v7720_v42, %v3286_v59  ;;  %v3297_v4 = vshll.u32 %v7720_v42, %v3285_v26  ;;  %v3298_v54 = vshrl.u32 %v7721_v44, %v3286_v59 }
 0x2f7   :  { %v10353_v31 = vsub.s32 %v3227_v24, %v3230_v50  ;;  %v10357_v43 = vand.u32 3, %v3156_v29  ;;  %v10359_v62 = vshll.u32 %v3279_v49, 8  ;;  %v7012_v55 = vadd.s32 4294967169, %v3379_v2 }
 0x2f8   :  { %v3146_v30 = vmul.f32 %v3145_v53, %v3143_v28  ;;  %v10363_v33 = vand.u32 8388607, %v3375_v63  ;;  %v3287_v3 = vshrl.u32 %v7717_v36, %v3286_v59  ;;  %v3290_v56 = vor.u32 %v3289_v11, %v3288_v16 }
 0x2f9   :  { %v3233_v21 = vsub.s32 0, %v10353_v31  ;;  %v3293_v5 = vor.u32 %v3292_v35, %v3291_v13  ;;  %v3296_v34 = vor.u32 %v3295_v12, %v3294_v51  ;;  %v3300_v46 = vshll.u32 %v7721_v44, %v3285_v26 }
 0x2fa   :  { %v3147_v60 = vxor.u32 2147483648, %v3146_v30  ;;  %v3301_v22 = vshrl.u32 %v7722_v52, %v3286_v59  ;;  %v3299_v9 = vor.u32 %v3298_v54, %v3297_v4  ;;  %vm3303_vm12 = vcmp.lt.s32.totalorder %v3284_v14, 1 }
 0x2fb   :  { %v7005_v58 = vmin.u32 %v3233_v21, %v10353_v31  ;;  %vm3306_vm13 = vcmp.lt.s32.totalorder %v3284_v14, 4  ;;  %v3385_v61 = vadd.s32 1, %v7012_v55  ;;  %vm3304_vm14 = vcmp.lt.s32.totalorder %v3284_v14, 2 }
 0x2fc   :  { %v3148_v47 = vsel %vm3065_vm4, %v3147_v60, %v3146_v30  ;;  %v3302_v6 = vor.u32 %v3301_v22, %v3300_v46  ;;  %vm3305_vm15 = vcmp.lt.s32.totalorder %v3284_v14, 3  ;;  %v3307_v39 = vsel %vm3303_vm12, %v3287_v3, %v3290_v56 }
 0x2fd   :  { %v3151_v32 = vsel %vm10318_vm5, %v10090_v0, %v3148_v47  ;;  %v3235_v24 = vclz %v7005_v58  ;;  %v3308_v23 = vsel %vm3306_vm13, %v3296_v34, 2102212464  ;;  %v3311_v17 = vsel %vm3303_vm12, %v3290_v56, %v3293_v5 }
 0x2fe   :  { %7522 = vcosq.f32 %v3151_v32  ;;  %v3309_v7 = vsel %vm3305_vm15, %v3293_v5, %v3308_v23  ;;  %v3312_v8 = vsel %vm3306_vm13, %v3299_v9, 920167782  ;;  %v3315_v27 = vsel %vm3303_vm12, %v3293_v5, %v3296_v34 }
 0x2ff   :  { %7524 = vsinq.f32 %v3151_v32  ;;  %v7006_v37 = vadd.s32 4294967294, %v3235_v24  ;;  %vm3159_vm0 = vcmp.eq.s32.totalorder %v10357_v43, 0  ;;  %v3223_v20 = vadd.s32 %v10292_v15, %v10314_v19 }
 0x300   :  { %v3313_v45 = vsel %vm3305_vm15, %v3296_v34, %v3312_v8  ;;  %v3316_v29 = vsel %vm3306_vm13, %v3302_v6, 1326507024  ;;  %vm3386_vm1 = vcmp.gt.s32.totalorder %v3385_v61, 0  ;;  %vm3158_vm2 = vcmp.lt.s32.totalorder %v10357_v43, 2 }
 0x301   :  { %vm7007_vm3 = vcmp.lt.s32.totalorder %v7006_v37, 0  ;;  %v3310_v26 = vsel %vm3304_vm14, %v3307_v39, %v3309_v7  ;;  %v3314_v10 = vsel %vm3304_vm14, %v3311_v17, %v3313_v45  ;;  %v3317_v53 = vsel %vm3305_vm15, %v3299_v9, %v3316_v29 }
 0x302   :  { %vm3155_vm4 = vweird.f32 %v10090_v0  ;;  %v3238_v49 = vsel %vm7007_vm3, 0, %v7006_v37  ;;  %v3318_v59 = vsel %vm3304_vm14, %v3315_v27, %v3317_v53  ;;  %vm3169_vm5 = vcmp.lt.s32.totalorder %v10124_v18, 0 }
 0x303   :  { %v10393_v15 = vmul.u32.u64.low %v10359_v62, %v3314_v10  ;;  %v10394_v19 = vmul.u32.u64.high %v10359_v62, %v3314_v10, %v10393_v15  ;;  %v3239_v2 = vsub.s32 32, %v3238_v49  ;;  %v3240_v28 = vshll.u32 %v10353_v31, %v3238_v49 }
 0x304   :  { %v3243_v50 = vsub.s32 4294967266, %v3238_v49  ;;  %v3387_v16 = vsel %vm3386_vm1, %v3385_v61, 0  ;;  %vm3162_vm6 = vcmp.eq.s32.totalorder %v10357_v43, 2  ;;  %v3253_v12 = vsub.s32 4, %v10343_v57  ;;  %v55_v43 = vld [vmem:[#allocation2 + $0x100] sm:$0xff] }
 0x305   :  { %v10401_v13 = vmul.u32.u64.low %v10359_v62, %v3318_v59  ;;  %v10402_v11 = vmul.u32.u64.high %v10359_v62, %v3318_v59, %v10401_v13  ;;  %v3389_v14 = vand.u32 31, %v3387_v16  ;;  %v3241_v35 = vshrl.u32 %v3223_v20, %v3239_v2 }
 0x306   :  { %v3244_v51 = vadd.s32 127, %v3243_v50  ;;  %v3383_v30 = vor.u32 8388608, %v10363_v33  ;;  %v3326_v4 = vmul.u32 %v10359_v62, %v3310_v26  ;;  %v3329_v54 = vadd.s32 1, %v10394_v19 }
 0x307   :  { %v10408_v31 = vshrl.u32 %v3387_v16, 5  ;;  %v3390_v55 = vsub.s32 32, %v3389_v14  ;;  %vm10412_vm7 = vcmp.le.f32.partialorder %v3167_v41, 0.7853982  ;;  %v3242_v3 = vor.u32 %v3241_v35, %v3240_v28 }
 0x308   :  { %v7523_v60 = vpop.eup %7522  ;;  %v3245_v56 = vshll.u32 %v3244_v51, 23  ;;  %v3392_v5 = vshll.u32 %v7717_v36, %v3389_v14  ;;  %v3395_v33 = vshll.u32 %v7718_v38, %v3389_v14  ;;  %vm3328_vm8 = vc.u32 %v10402_v11, %v10393_v15 }
 0x309   :  { %v7525_v34 = vpop.eup %7524  ;;  %v3163_v62 = vxor.u32 2147483648, %v7523_v60  ;;  %v3398_v46 = vshll.u32 %v7719_v40, %v3389_v14  ;;  %v3401_v22 = vshll.u32 %v7720_v42, %v3389_v14  ;;  %v3249_v58 = vcvt.s32.f32 %v3242_v3 }
 0x30a   :  { %v3160_v47 = vxor.u32 2147483648, %v7525_v34  ;;  %v3246_v41 = vor.u32 4788187, %v3245_v56  ;;  %v3330_v9 = vsel %vm3328_vm8, %v3329_v54, %v10394_v19  ;;  %v3393_v61 = vshrl.u32 %v7718_v38, %v3390_v55 }
 0x30b   :  { %v3164_v32 = vsel %vm3162_vm6, %v3163_v62, %v7525_v34  ;;  %v3331_v6 = vadd.s32 %v3330_v9, %v3326_v4  ;;  %v3396_v24 = vshrl.u32 %v7719_v40, %v3390_v55  ;;  %v3399_v17 = vshrl.u32 %v7720_v42, %v3390_v55 }
 0x30c   :  { %v3161_v39 = vsel %vm3159_vm0, %v7523_v60, %v3160_v47  ;;  %v3247_v23 = vand.u32 2147483647, %v3246_v41  ;;  %v3402_v37 = vshrl.u32 %v7721_v44, %v3390_v55  ;;  %v3254_v8 = vsel %vm3169_vm5, %v3253_v12, %v10343_v57 }
 0x30d   :  { %v3165_v7 = vsel %vm3158_vm2, %v3161_v39, %v3164_v32  ;;  %v3332_v27 = vadd.s32 536870912, %v3331_v6  ;;  %v3394_v20 = vor.u32 %v3393_v61, %v3392_v5  ;;  %v3397_v26 = vor.u32 %v3396_v24, %v3395_v33  ;;  %v56_v5 = vld [vmem:[#allocation2 + $0x108] sm:$0xff] }
 0x30e   :  { %v3166_v45 = vsel %vm3155_vm4, nan, %v3165_v7  ;;  %v3250_v29 = vmul.f32 %v3249_v58, %v3247_v23  ;;  %v3403_v10 = vor.u32 %v3402_v37, %v3401_v22  ;;  %v3404_v49 = vshll.u32 %v7721_v44, %v3389_v14 }
 0x30f   :  { %v3333_v53 = vshrl.u32 %v3332_v27, 30  ;;  %v3405_v59 = vshrl.u32 %v7722_v52, %v3390_v55  ;;  %vm3407_vm9 = vcmp.lt.s32.totalorder %v10408_v31, 1  ;;  %6835 = vst [vmem:[#allocation5 + $0xe0] sm:$0xff] %v3166_v45  ;;  %v3400_v2 = vor.u32 %v3399_v17, %v3398_v46 }
 0x310   :  { %v3251_v19 = vxor.u32 2147483648, %v3250_v29  ;;  %vm3410_vm10 = vcmp.lt.s32.totalorder %v10408_v31, 4  ;;  %v10442_v57 = vshll.u32 %v3383_v30, 8  ;;  %v3256_v0 = vsel %vm10412_vm7, 0, %v3254_v8 }
 0x311   :  { %v3334_v28 = vshll.u32 %v3333_v53, 30  ;;  %vm3408_vm11 = vcmp.lt.s32.totalorder %v10408_v31, 2  ;;  %vm3409_vm12 = vcmp.lt.s32.totalorder %v10408_v31, 3  ;;  %v3406_v16 = vor.u32 %v3405_v59, %v3404_v49 }
 0x312   :  { %v3252_v50 = vsel %vm3169_vm5, %v3251_v19, %v3250_v29  ;;  %v3415_v13 = vsel %vm3407_vm9, %v3394_v20, %v3397_v26  ;;  %v3416_v14 = vsel %vm3410_vm10, %v3403_v10, 920167782  ;;  %v10454_v35 = vmul.f32 30.0, %v55_v43 }
 0x313   :  { %v3255_v51 = vsel %vm10412_vm7, %v10124_v18, %v3252_v50  ;;  %v10459_v12 = vsub.s32 %v3331_v6, %v3334_v28  ;;  %v3391_v30 = vshrl.u32 %v7717_v36, %v3390_v55  ;;  %v3260_v4 = vadd.s32 3, %v3256_v0 }
 0x314   :  { %7526 = vcosq.f32 %v3255_v51  ;;  %v3412_v54 = vsel %vm3410_vm10, %v3400_v2, 2102212464  ;;  %v3417_v60 = vsel %vm3409_vm12, %v3400_v2, %v3416_v14  ;;  %v3357_v56 = vsub.s32 4, %v3333_v53 }
 0x315   :  { %7528 = vsinq.f32 %v3255_v51  ;;  %v3337_v3 = vsub.s32 0, %v10459_v12  ;;  %v3418_v21 = vsel %vm3408_vm11, %v3415_v13, %v3417_v60  ;;  %v3419_v33 = vsel %vm3407_vm9, %v3397_v26, %v3400_v2 }
 0x316   :  { %v3420_v55 = vsel %vm3410_vm10, %v3406_v16, 1326507024  ;;  %v10474_v34 = vmul.u32.u64.low %v10442_v57, %v3418_v21  ;;  %v10475_v62 = vmul.u32.u64.high %v10442_v57, %v3418_v21, %v10474_v34  ;;  %v3411_v22 = vsel %vm3407_vm9, %v3391_v30, %v3394_v20 }
 0x317   :  { %v7009_v46 = vmin.u32 %v3337_v3, %v10459_v12  ;;  %v3413_v47 = vsel %vm3409_vm12, %v3397_v26, %v3412_v54  ;;  %v3421_v41 = vsel %vm3409_vm12, %v3403_v10, %v3420_v55  ;;  %v3261_v58 = vand.u32 3, %v3260_v4 }
 0x318   :  { %v3422_v9 = vsel %vm3408_vm11, %v3419_v33, %v3421_v41  ;;  %v3482_v32 = vand.u32 2139095040, %v10454_v35  ;;  %v10488_v6 = vmul.f32 30.0, %v56_v5  ;;  %vm3259_vm13 = vweird.f32 %v10124_v18 }
 0x319   :  { %vm3273_vm14 = vcmp.lt.s32.totalorder %v10272_v48, 0  ;;  %v3339_v61 = vclz %v7009_v46  ;;  %v3414_v24 = vsel %vm3408_vm11, %v3411_v22, %v3413_v47  ;;  %vm10500_vm15 = vcmp.le.f32.partialorder %v3271_v1, 0.7853982 }
 0x31a   :  { %v10495_v39 = vmul.u32.u64.low %v10442_v57, %v3422_v9  ;;  %v10496_v23 = vmul.u32.u64.high %v10442_v57, %v3422_v9, %v10495_v39  ;;  %v3483_v17 = vshrl.u32 %v3482_v32, 23  ;;  %v3358_v8 = vsel %vm3273_vm14, %v3357_v56, %v3333_v53 }
 0x31b   :  { %v7010_v7 = vadd.s32 4294967294, %v3339_v61  ;;  %v3479_v27 = vand.u32 2147483647, %v10454_v35  ;;  %vm3262_vm0 = vcmp.lt.s32.totalorder %v3261_v58, 2  ;;  %vm3263_vm1 = vcmp.eq.s32.totalorder %v3261_v58, 0 }
 0x31c   :  { %v3433_v31 = vadd.s32 1, %v10475_v62  ;;  %v7016_v20 = vadd.s32 4294967169, %v3483_v17  ;;  %vm3266_vm2 = vcmp.eq.s32.totalorder %v3261_v58, 2  ;;  %v3327_v45 = vadd.s32 %v10393_v15, %v10402_v11 }
 0x31d   :  { %vm7011_vm3 = vcmp.lt.s32.totalorder %v7010_v7, 0  ;;  %v3430_v1 = vmul.u32 %v10442_v57, %v3414_v24  ;;  %v3360_v10 = vsel %vm10500_vm15, 0, %v3358_v8  ;;  %vm3432_vm4 = vc.u32 %v10496_v23, %v10474_v34 }
 0x31e   :  { %v7527_v29 = vpop.eup %7526  ;;  %v3342_v26 = vsel %vm7011_vm3, 0, %v7010_v7  ;;  %v3489_v53 = vadd.s32 1, %v7016_v20  ;;  %v3434_v15 = vsel %vm3432_vm4, %v3433_v31, %v10475_v62  ;;  %v3486_v11 = vand.u32 8388607, %v3479_v27 }
 0x31f   :  { %v7529_v49 = vpop.eup %7528  ;;  %v3267_v59 = vxor.u32 2147483648, %v7527_v29  ;;  %v3343_v43 = vsub.s32 32, %v3342_v26  ;;  %v3344_v19 = vshll.u32 %v10459_v12, %v3342_v26  ;;  %v3347_v2 = vsub.s32 4294967266, %v3342_v26 }
 0x320   :  { %v3264_v0 = vxor.u32 2147483648, %v7529_v49  ;;  %vm3490_vm5 = vcmp.gt.s32.totalorder %v3489_v53, 0  ;;  %v3435_v16 = vadd.s32 %v3434_v15, %v3430_v1  ;;  %v3586_v51 = vand.u32 2139095040, %v10488_v6 }
 0x321   :  { %v3268_v57 = vsel %vm3266_vm2, %v3267_v59, %v7529_v49  ;;  %v3345_v28 = vshrl.u32 %v3327_v45, %v3343_v43  ;;  %v3348_v50 = vadd.s32 127, %v3347_v2  ;;  %v3491_v14 = vsel %vm3490_vm5, %v3489_v53, 0 }
 0x322   :  { %v3265_v13 = vsel %vm3263_vm1, %v7527_v29, %v3264_v0  ;;  %v3436_v54 = vadd.s32 536870912, %v3435_v16  ;;  %v3364_v3 = vadd.s32 3, %v3360_v10  ;;  %v3493_v56 = vand.u32 31, %v3491_v14 }
 0x323   :  { %v3269_v12 = vsel %vm3262_vm0, %v3265_v13, %v3268_v57  ;;  %v3346_v30 = vor.u32 %v3345_v28, %v3344_v19  ;;  %v3349_v4 = vshll.u32 %v3348_v50, 23  ;;  %v3487_v55 = vor.u32 8388608, %v3486_v11 }
 0x324   :  { %v3270_v60 = vsel %vm3259_vm13, nan, %v3269_v12  ;;  %v10525_v33 = vshrl.u32 %v3436_v54, 30  ;;  %v3492_v62 = vshrl.u32 %v3491_v14, 5  ;;  %v3494_v46 = vsub.s32 32, %v3493_v56 }
 0x325   :  { %v3350_v21 = vor.u32 4788187, %v3349_v4  ;;  %v3353_v5 = vcvt.s32.f32 %v3346_v30  ;;  %6836 = vst [vmem:[#allocation5 + $0xe8] sm:$0xff] %v3270_v60  ;;  %v3583_v22 = vand.u32 2147483647, %v10488_v6  ;;  %v3587_v47 = vshrl.u32 %v3586_v51, 23 }
 0x326   :  { %v3438_v58 = vshll.u32 %v10525_v33, 30  ;;  %v3496_v9 = vshll.u32 %v7717_v36, %v3493_v56  ;;  %v3499_v18 = vshll.u32 %v7718_v38, %v3493_v56  ;;  %v3497_v32 = vshrl.u32 %v7718_v38, %v3494_v46 }
 0x327   :  { %v3351_v41 = vand.u32 2147483647, %v3350_v21  ;;  %v3500_v61 = vshrl.u32 %v7719_v40, %v3494_v46  ;;  %v3502_v24 = vshll.u32 %v7719_v40, %v3493_v56  ;;  %v3503_v39 = vshrl.u32 %v7720_v42, %v3494_v46 }
 0x328   :  { %v10535_v7 = vsub.s32 %v3435_v16, %v3438_v58  ;;  %v3505_v8 = vshll.u32 %v7720_v42, %v3493_v56  ;;  %v3506_v31 = vshrl.u32 %v7721_v44, %v3494_v46  ;;  %v10539_v20 = vand.u32 3, %v3364_v3 }
 0x329   :  { %v3354_v17 = vmul.f32 %v3353_v5, %v3351_v41  ;;  %v10541_v45 = vshll.u32 %v3487_v55, 8  ;;  %v7020_v1 = vadd.s32 4294967169, %v3587_v47  ;;  %v10545_v29 = vand.u32 8388607, %v3583_v22 }
 0x32a   :  { %v3441_v10 = vsub.s32 0, %v10535_v7  ;;  %v3495_v53 = vshrl.u32 %v7717_v36, %v3494_v46  ;;  %v3498_v49 = vor.u32 %v3497_v32, %v3496_v9  ;;  %v3501_v59 = vor.u32 %v3500_v61, %v3499_v18 }
 0x32b   :  { %v3355_v26 = vxor.u32 2147483648, %v3354_v17  ;;  %v3504_v43 = vor.u32 %v3503_v39, %v3502_v24  ;;  %v3508_v19 = vshll.u32 %v7721_v44, %v3493_v56  ;;  %v3509_v2 = vshrl.u32 %v7722_v52, %v3494_v46 }
 0x32c   :  { %v7013_v15 = vmin.u32 %v3441_v10, %v10535_v7  ;;  %v3507_v11 = vor.u32 %v3506_v31, %v3505_v8  ;;  %vm3511_vm6 = vcmp.lt.s32.totalorder %v3492_v62, 1  ;;  %vm3514_vm7 = vcmp.lt.s32.totalorder %v3492_v62, 4 }
 0x32d   :  { %v3356_v0 = vsel %vm3273_vm14, %v3355_v26, %v3354_v17  ;;  %v3510_v28 = vor.u32 %v3509_v2, %v3508_v19  ;;  %v3593_v50 = vadd.s32 1, %v7020_v1  ;;  %vm3512_vm8 = vcmp.lt.s32.totalorder %v3492_v62, 2 }
 0x32e   :  { %v3359_v57 = vsel %vm10500_vm15, %v10272_v48, %v3356_v0  ;;  %v3443_v16 = vclz %v7013_v15  ;;  %vm3513_vm9 = vcmp.lt.s32.totalorder %v3492_v62, 3  ;;  %v3515_v13 = vsel %vm3511_vm6, %v3495_v53, %v3498_v49 }
 0x32f   :  { %7530 = vcosq.f32 %v3359_v57  ;;  %v3516_v14 = vsel %vm3514_vm7, %v3504_v43, 2102212464  ;;  %v3519_v51 = vsel %vm3511_vm6, %v3498_v49, %v3501_v59  ;;  %v3520_v37 = vsel %vm3514_vm7, %v3507_v11, 920167782 }
 0x330   :  { %7532 = vsinq.f32 %v3359_v57  ;;  %v7014_v12 = vadd.s32 4294967294, %v3443_v16  ;;  %v3517_v30 = vsel %vm3513_vm9, %v3501_v59, %v3516_v14  ;;  %v3523_v4 = vsel %vm3511_vm6, %v3501_v59, %v3504_v43 }
 0x331   :  { %vm3367_vm10 = vcmp.eq.s32.totalorder %v10539_v20, 0  ;;  %v3431_v54 = vadd.s32 %v10474_v34, %v10496_v23  ;;  %v3521_v60 = vsel %vm3513_vm9, %v3504_v43, %v3520_v37  ;;  %v3524_v3 = vsel %vm3514_vm7, %v3510_v28, 1326507024 }
 0x332   :  { %vm3594_vm11 = vcmp.gt.s32.totalorder %v3593_v50, 0  ;;  %vm3366_vm12 = vcmp.lt.s32.totalorder %v10539_v20, 2  ;;  %vm7015_vm13 = vcmp.lt.s32.totalorder %v7014_v12, 0  ;;  %v3518_v56 = vsel %vm3512_vm8, %v3515_v13, %v3517_v30 }
 0x333   :  { %v3522_v21 = vsel %vm3512_vm8, %v3519_v51, %v3521_v60  ;;  %v3525_v5 = vsel %vm3513_vm9, %v3507_v11, %v3524_v3  ;;  %vm3363_vm14 = vweird.f32 %v10272_v48  ;;  %v3446_v55 = vsel %vm7015_vm13, 0, %v7014_v12 }
 0x334   :  { %v3526_v46 = vsel %vm3512_vm8, %v3523_v4, %v3525_v5  ;;  %v10575_v34 = vmul.u32.u64.low %v10541_v45, %v3522_v21  ;;  %v10576_v23 = vmul.u32.u64.high %v10541_v45, %v3522_v21, %v10575_v34  ;;  %vm3377_vm15 = vcmp.lt.s32.totalorder %v10306_v25, 0 }
 0x335   :  { %v3447_v47 = vsub.s32 32, %v3446_v55  ;;  %v3448_v41 = vshll.u32 %v10535_v7, %v3446_v55  ;;  %v3451_v58 = vsub.s32 4294967266, %v3446_v55  ;;  %v3595_v9 = vsel %vm3594_vm11, %v3593_v50, 0 }
 0x336   :  { %vm3370_vm0 = vcmp.eq.s32.totalorder %v10539_v20, 2  ;;  %v10583_v18 = vmul.u32.u64.low %v10541_v45, %v3526_v46  ;;  %v10584_v32 = vmul.u32.u64.high %v10541_v45, %v3526_v46, %v10583_v18  ;;  %v3597_v62 = vand.u32 31, %v3595_v9  ;;  %v57_v20 = vld [vmem:[#allocation2 + $0x110] sm:$0xff] }
 0x337   :  { %v3449_v61 = vshrl.u32 %v3431_v54, %v3447_v47  ;;  %v3452_v24 = vadd.s32 127, %v3451_v58  ;;  %v3461_v39 = vsub.s32 4, %v10525_v33  ;;  %v3591_v17 = vor.u32 8388608, %v10545_v29 }
 0x338   :  { %v3534_v8 = vmul.u32 %v10541_v45, %v3518_v56  ;;  %v3537_v31 = vadd.s32 1, %v10576_v23  ;;  %v10590_v7 = vshrl.u32 %v3595_v9, 5  ;;  %v3598_v1 = vsub.s32 32, %v3597_v62 }
 0x339   :  { %v7531_v26 = vpop.eup %7530  ;;  %vm10594_vm1 = vcmp.le.f32.partialorder %v3375_v63, 0.7853982  ;;  %v3450_v53 = vor.u32 %v3449_v61, %v3448_v41  ;;  %v3453_v49 = vshll.u32 %v3452_v24, 23  ;;  %v3600_v59 = vshll.u32 %v7717_v36, %v3597_v62 }
 0x33a   :  { %v3603_v29 = vshll.u32 %v7718_v38, %v3597_v62  ;;  %v7533_v43 = vpop.eup %7532  ;;  %v3371_v45 = vxor.u32 2147483648, %v7531_v26  ;;  %vm3536_vm2 = vc.u32 %v10584_v32, %v10575_v34  ;;  %v3606_v19 = vshll.u32 %v7719_v40, %v3597_v62 }
 0x33b   :  { %v3609_v2 = vshll.u32 %v7720_v42, %v3597_v62  ;;  %v3368_v0 = vxor.u32 2147483648, %v7533_v43  ;;  %v3454_v63 = vor.u32 4788187, %v3453_v49  ;;  %v3457_v15 = vcvt.s32.f32 %v3450_v53 }
 0x33c   :  { %v3538_v11 = vsel %vm3536_vm2, %v3537_v31, %v10576_v23  ;;  %v3372_v57 = vsel %vm3370_vm0, %v3371_v45, %v7533_v43  ;;  %v3601_v50 = vshrl.u32 %v7718_v38, %v3598_v1  ;;  %v3604_v16 = vshrl.u32 %v7719_v40, %v3598_v1 }
 0x33d   :  { %v3539_v28 = vadd.s32 %v3538_v11, %v3534_v8  ;;  %v3369_v13 = vsel %vm3367_vm10, %v7531_v26, %v3368_v0  ;;  %v3455_v14 = vand.u32 2147483647, %v3454_v63  ;;  %v3607_v51 = vshrl.u32 %v7720_v42, %v3598_v1 }
 0x33e   :  { %v3610_v12 = vshrl.u32 %v7721_v44, %v3598_v1  ;;  %v3373_v30 = vsel %vm3366_vm12, %v3369_v13, %v3372_v57  ;;  %v3462_v37 = vsel %vm3377_vm15, %v3461_v39, %v10525_v33  ;;  %v3602_v54 = vor.u32 %v3601_v50, %v3600_v59  ;;  %v58_v59 = vld [vmem:[#allocation2 + $0x118] sm:$0xff] }
 0x33f   :  { %v3540_v4 = vadd.s32 536870912, %v3539_v28  ;;  %v3374_v60 = vsel %vm3363_vm14, nan, %v3373_v30  ;;  %v3458_v3 = vmul.f32 %v3457_v15, %v3455_v14  ;;  %v3605_v56 = vor.u32 %v3604_v16, %v3603_v29 }
 0x340   :  { %v3611_v21 = vor.u32 %v3610_v12, %v3609_v2  ;;  %v3612_v55 = vshll.u32 %v7721_v44, %v3597_v62  ;;  %v3613_v46 = vshrl.u32 %v7722_v52, %v3598_v1  ;;  %vm3615_vm3 = vcmp.lt.s32.totalorder %v10590_v7, 1  ;;  %6837 = vst [vmem:[#allocation5 + $0xf0] sm:$0xff] %v3374_v60 }
 0x341   :  { %v3541_v5 = vshrl.u32 %v3540_v4, 30  ;;  %v3459_v23 = vxor.u32 2147483648, %v3458_v3  ;;  %v3608_v47 = vor.u32 %v3607_v51, %v3606_v19  ;;  %vm3618_vm4 = vcmp.lt.s32.totalorder %v10590_v7, 4 }
 0x342   :  { %v10624_v33 = vshll.u32 %v3591_v17, 8  ;;  %v3464_v48 = vsel %vm10594_vm1, 0, %v3462_v37  ;;  %vm3616_vm5 = vcmp.lt.s32.totalorder %v10590_v7, 2  ;;  %vm3617_vm6 = vcmp.lt.s32.totalorder %v10590_v7, 3 }
 0x343   :  { %v3542_v41 = vshll.u32 %v3541_v5, 30  ;;  %v3460_v58 = vsel %vm3377_vm15, %v3459_v23, %v3458_v3  ;;  %v3614_v9 = vor.u32 %v3613_v46, %v3612_v55  ;;  %v3623_v18 = vsel %vm3615_vm3, %v3602_v54, %v3605_v56 }
 0x344   :  { %v3624_v62 = vsel %vm3618_vm4, %v3611_v21, 920167782  ;;  %v10636_v61 = vmul.f32 30.0, %v57_v20  ;;  %v3463_v24 = vsel %vm10594_vm1, %v10306_v25, %v3460_v58  ;;  %v3599_v17 = vshrl.u32 %v7717_v36, %v3598_v1 }
 0x345   :  { %v10641_v39 = vsub.s32 %v3539_v28, %v3542_v41  ;;  %7534 = vcosq.f32 %v3463_v24  ;;  %v3468_v8 = vadd.s32 3, %v3464_v48  ;;  %v3620_v31 = vsel %vm3618_vm4, %v3608_v47, 2102212464 }
 0x346   :  { %v3625_v26 = vsel %vm3617_vm6, %v3608_v47, %v3624_v62  ;;  %7536 = vsinq.f32 %v3463_v24  ;;  %v3565_v49 = vsub.s32 4, %v3541_v5  ;;  %v3627_v29 = vsel %vm3615_vm3, %v3605_v56, %v3608_v47 }
 0x347   :  { %v3545_v53 = vsub.s32 0, %v10641_v39  ;;  %v3626_v10 = vsel %vm3616_vm5, %v3623_v18, %v3625_v26  ;;  %v3628_v1 = vsel %vm3618_vm4, %v3614_v9, 1326507024  ;;  %v3619_v2 = vsel %vm3615_vm3, %v3599_v17, %v3602_v54 }
 0x348   :  { %v10656_v43 = vmul.u32.u64.low %v10624_v33, %v3626_v10  ;;  %v10657_v45 = vmul.u32.u64.high %v10624_v33, %v3626_v10, %v10656_v43  ;;  %v3621_v0 = vsel %vm3617_vm6, %v3605_v56, %v3620_v31  ;;  %v3629_v63 = vsel %vm3617_vm6, %v3611_v21, %v3628_v1 }
 0x349   :  { %v7017_v19 = vmin.u32 %v3545_v53, %v10641_v39  ;;  %v3469_v15 = vand.u32 3, %v3468_v8  ;;  %v3630_v11 = vsel %vm3616_vm5, %v3627_v29, %v3629_v63  ;;  %v3690_v57 = vand.u32 2139095040, %v10636_v61 }
 0x34a   :  { %v10670_v28 = vmul.f32 30.0, %v58_v59  ;;  %vm3467_vm7 = vweird.f32 %v10306_v25  ;;  %vm3481_vm8 = vcmp.lt.s32.totalorder %v10454_v35, 0  ;;  %v3622_v16 = vsel %vm3616_vm5, %v3619_v2, %v3621_v0 }
 0x34b   :  { %v3547_v50 = vclz %v7017_v19  ;;  %v10677_v13 = vmul.u32.u64.low %v10624_v33, %v3630_v11  ;;  %v10678_v14 = vmul.u32.u64.high %v10624_v33, %v3630_v11, %v10677_v13  ;;  %v3691_v51 = vshrl.u32 %v3690_v57, 23 }
 0x34c   :  { %vm10682_vm9 = vcmp.le.f32.partialorder %v3479_v27, 0.7853982  ;;  %v3566_v37 = vsel %vm3481_vm8, %v3565_v49, %v3541_v5  ;;  %v3687_v4 = vand.u32 2147483647, %v10636_v61  ;;  %vm3470_vm10 = vcmp.lt.s32.totalorder %v3469_v15, 2 }
 0x34d   :  { %v7018_v30 = vadd.s32 4294967294, %v3547_v50  ;;  %vm3471_vm11 = vcmp.eq.s32.totalorder %v3469_v15, 0  ;;  %v3641_v7 = vadd.s32 1, %v10657_v45  ;;  %v7024_v54 = vadd.s32 4294967169, %v3691_v51 }
 0x34e   :  { %vm3474_vm12 = vcmp.eq.s32.totalorder %v3469_v15, 2  ;;  %v3535_v60 = vadd.s32 %v10575_v34, %v10584_v32  ;;  %v3638_v27 = vmul.u32 %v10624_v33, %v3622_v16  ;;  %v3568_v21 = vsel %vm10682_vm9, 0, %v3566_v37 }
 0x34f   :  { %vm7019_vm13 = vcmp.lt.s32.totalorder %v7018_v30, 0  ;;  %v7535_v3 = vpop.eup %7534  ;;  %vm3640_vm14 = vc.u32 %v10678_v14, %v10656_v43  ;;  %v3697_v5 = vadd.s32 1, %v7024_v54  ;;  %v3694_v32 = vand.u32 8388607, %v3687_v4 }
 0x350   :  { %v3550_v56 = vsel %vm7019_vm13, 0, %v7018_v30  ;;  %v7537_v55 = vpop.eup %7536  ;;  %v3475_v46 = vxor.u32 2147483648, %v7535_v3  ;;  %v3642_v34 = vsel %vm3640_vm14, %v3641_v7, %v10657_v45  ;;  %v3794_v24 = vand.u32 2139095040, %v10670_v28 }
 0x351   :  { %v3551_v20 = vsub.s32 32, %v3550_v56  ;;  %v3552_v23 = vshll.u32 %v10641_v39, %v3550_v56  ;;  %v3555_v47 = vsub.s32 4294967266, %v3550_v56  ;;  %v3472_v48 = vxor.u32 2147483648, %v7537_v55 }
 0x352   :  { %vm3698_vm15 = vcmp.gt.s32.totalorder %v3697_v5, 0  ;;  %v3476_v33 = vsel %vm3474_vm12, %v3475_v46, %v7537_v55  ;;  %v3643_v9 = vadd.s32 %v3642_v34, %v3638_v27  ;;  %v3572_v53 = vadd.s32 3, %v3568_v21 }
 0x353   :  { %v3553_v41 = vshrl.u32 %v3535_v60, %v3551_v20  ;;  %v3556_v58 = vadd.s32 127, %v3555_v47  ;;  %v3473_v18 = vsel %vm3471_vm11, %v7535_v3, %v3472_v48  ;;  %v3699_v62 = vsel %vm3698_vm15, %v3697_v5, 0 }
 0x354   :  { %v3477_v39 = vsel %vm3470_vm10, %v3473_v18, %v3476_v33  ;;  %v3644_v31 = vadd.s32 536870912, %v3643_v9  ;;  %v3701_v49 = vand.u32 31, %v3699_v62  ;;  %v3695_v1 = vor.u32 8388608, %v3694_v32 }
 0x355   :  { %v3554_v17 = vor.u32 %v3553_v41, %v3552_v23  ;;  %v3557_v8 = vshll.u32 %v3556_v58, 23  ;;  %v3478_v26 = vsel %vm3467_vm7, nan, %v3477_v39  ;;  %v3700_v45 = vshrl.u32 %v3699_v62, 5 }
 0x356   :  { %v10707_v29 = vshrl.u32 %v3644_v31, 30  ;;  %6838 = vst [vmem:[#allocation5 + $0xf8] sm:$0xff] %v3478_v26  ;;  %v3702_v19 = vsub.s32 32, %v3701_v49  ;;  %v3791_v2 = vand.u32 2147483647, %v10670_v28  ;;  %v3795_v0 = vshrl.u32 %v3794_v24, 23 }
 0x357   :  { %v3558_v10 = vor.u32 4788187, %v3557_v8  ;;  %v3561_v59 = vcvt.s32.f32 %v3554_v17  ;;  %v3704_v11 = vshll.u32 %v7717_v36, %v3701_v49  ;;  %v3707_v25 = vshll.u32 %v7718_v38, %v3701_v49 }
 0x358   :  { %v3646_v15 = vshll.u32 %v10707_v29, 30  ;;  %v3705_v57 = vshrl.u32 %v7718_v38, %v3702_v19  ;;  %v3708_v50 = vshrl.u32 %v7719_v40, %v3702_v19  ;;  %v3710_v16 = vshll.u32 %v7719_v40, %v3701_v49 }
 0x359   :  { %v3559_v63 = vand.u32 2147483647, %v3558_v10  ;;  %v3711_v13 = vshrl.u32 %v7720_v42, %v3702_v19  ;;  %v3713_v37 = vshll.u32 %v7720_v42, %v3701_v49  ;;  %v3714_v7 = vshrl.u32 %v7721_v44, %v3702_v19 }
 0x35a   :  { %v10717_v30 = vsub.s32 %v3643_v9, %v3646_v15  ;;  %v10721_v54 = vand.u32 3, %v3572_v53  ;;  %v10723_v60 = vshll.u32 %v3695_v1, 8  ;;  %v7028_v27 = vadd.s32 4294967169, %v3795_v0 }
 0x35b   :  { %v3562_v51 = vmul.f32 %v3561_v59, %v3559_v63  ;;  %v10727_v3 = vand.u32 8388607, %v3791_v2  ;;  %v3703_v5 = vshrl.u32 %v7717_v36, %v3702_v19  ;;  %v3706_v55 = vor.u32 %v3705_v57, %v3704_v11 }
 0x35c   :  { %v3649_v21 = vsub.s32 0, %v10717_v30  ;;  %v3709_v46 = vor.u32 %v3708_v50, %v3707_v25  ;;  %v3712_v20 = vor.u32 %v3711_v13, %v3710_v16  ;;  %v3716_v23 = vshll.u32 %v7721_v44, %v3701_v49 }
 0x35d   :  { %v3563_v56 = vxor.u32 2147483648, %v3562_v51  ;;  %v3717_v47 = vshrl.u32 %v7722_v52, %v3702_v19  ;;  %v3715_v32 = vor.u32 %v3714_v7, %v3713_v37  ;;  %vm3719_vm0 = vcmp.lt.s32.totalorder %v3700_v45, 1 }
 0x35e   :  { %v7021_v34 = vmin.u32 %v3649_v21, %v10717_v30  ;;  %vm3722_vm1 = vcmp.lt.s32.totalorder %v3700_v45, 4  ;;  %v3801_v58 = vadd.s32 1, %v7028_v27  ;;  %vm3720_vm2 = vcmp.lt.s32.totalorder %v3700_v45, 2 }
 0x35f   :  { %v3564_v48 = vsel %vm3481_vm8, %v3563_v56, %v3562_v51  ;;  %v3718_v41 = vor.u32 %v3717_v47, %v3716_v23  ;;  %vm3721_vm3 = vcmp.lt.s32.totalorder %v3700_v45, 3  ;;  %v3723_v18 = vsel %vm3719_vm0, %v3703_v5, %v3706_v55 }
 0x360   :  { %v3567_v33 = vsel %vm10682_vm9, %v10454_v35, %v3564_v48  ;;  %v3651_v9 = vclz %v7021_v34  ;;  %v3724_v62 = vsel %vm3722_vm1, %v3712_v20, 2102212464  ;;  %v3727_v24 = vsel %vm3719_vm0, %v3706_v55, %v3709_v46 }
 0x361   :  { %7538 = vcosq.f32 %v3567_v33  ;;  %v3725_v17 = vsel %vm3721_vm3, %v3709_v46, %v3724_v62  ;;  %v3728_v12 = vsel %vm3722_vm1, %v3715_v32, 920167782  ;;  %v3731_v8 = vsel %vm3719_vm0, %v3709_v46, %v3712_v20 }
 0x362   :  { %7540 = vsinq.f32 %v3567_v33  ;;  %v7022_v39 = vadd.s32 4294967294, %v3651_v9  ;;  %vm3575_vm4 = vcmp.eq.s32.totalorder %v10721_v54, 0  ;;  %v3639_v31 = vadd.s32 %v10656_v43, %v10678_v14 }
 0x363   :  { %v3729_v26 = vsel %vm3721_vm3, %v3712_v20, %v3728_v12  ;;  %v3732_v53 = vsel %vm3722_vm1, %v3718_v41, 1326507024  ;;  %vm3802_vm5 = vcmp.gt.s32.totalorder %v3801_v58, 0  ;;  %vm3574_vm6 = vcmp.lt.s32.totalorder %v10721_v54, 2 }
 0x364   :  { %vm7023_vm7 = vcmp.lt.s32.totalorder %v7022_v39, 0  ;;  %v3726_v49 = vsel %vm3720_vm2, %v3723_v18, %v3725_v17  ;;  %v3730_v10 = vsel %vm3720_vm2, %v3727_v24, %v3729_v26  ;;  %v3733_v59 = vsel %vm3721_vm3, %v3715_v32, %v3732_v53 }
 0x365   :  { %vm3571_vm8 = vweird.f32 %v10454_v35  ;;  %v3654_v1 = vsel %vm7023_vm7, 0, %v7022_v39  ;;  %v3734_v19 = vsel %vm3720_vm2, %v3731_v8, %v3733_v59  ;;  %vm3585_vm9 = vcmp.lt.s32.totalorder %v10488_v6, 0 }
 0x366   :  { %v10757_v43 = vmul.u32.u64.low %v10723_v60, %v3730_v10  ;;  %v10758_v14 = vmul.u32.u64.high %v10723_v60, %v3730_v10, %v10757_v43  ;;  %v3655_v0 = vsub.s32 32, %v3654_v1  ;;  %v3656_v63 = vshll.u32 %v10717_v30, %v3654_v1 }
 0x367   :  { %v3659_v15 = vsub.s32 4294967266, %v3654_v1  ;;  %v3803_v11 = vsel %vm3802_vm5, %v3801_v58, 0  ;;  %vm3578_vm10 = vcmp.eq.s32.totalorder %v10721_v54, 2  ;;  %v3669_v13 = vsub.s32 4, %v10707_v29  ;;  %v59_v54 = vld [vmem:[#allocation2 + $0x120] sm:$0xff] }
 0x368   :  { %v10765_v25 = vmul.u32.u64.low %v10723_v60, %v3734_v19  ;;  %v10766_v57 = vmul.u32.u64.high %v10723_v60, %v3734_v19, %v10765_v25  ;;  %v3805_v45 = vand.u32 31, %v3803_v11  ;;  %v3657_v50 = vshrl.u32 %v3639_v31, %v3655_v0 }
 0x369   :  { %v3660_v16 = vadd.s32 127, %v3659_v15  ;;  %v3799_v51 = vor.u32 8388608, %v10727_v3  ;;  %v3742_v37 = vmul.u32 %v10723_v60, %v3726_v49  ;;  %v3745_v7 = vadd.s32 1, %v10758_v14 }
 0x36a   :  { %v10772_v30 = vshrl.u32 %v3803_v11, 5  ;;  %v3806_v27 = vsub.s32 32, %v3805_v45  ;;  %vm10776_vm11 = vcmp.le.f32.partialorder %v3583_v22, 0.7853982  ;;  %v3658_v5 = vor.u32 %v3657_v50, %v3656_v63 }
 0x36b   :  { %v7539_v56 = vpop.eup %7538  ;;  %v3661_v55 = vshll.u32 %v3660_v16, 23  ;;  %v3808_v46 = vshll.u32 %v7717_v36, %v3805_v45  ;;  %v3811_v3 = vshll.u32 %v7718_v38, %v3805_v45  ;;  %vm3744_vm12 = vc.u32 %v10766_v57, %v10757_v43 }
 0x36c   :  { %v7541_v20 = vpop.eup %7540  ;;  %v3579_v60 = vxor.u32 2147483648, %v7539_v56  ;;  %v3814_v23 = vshll.u32 %v7719_v40, %v3805_v45  ;;  %v3817_v47 = vshll.u32 %v7720_v42, %v3805_v45  ;;  %v3665_v34 = vcvt.s32.f32 %v3658_v5 }
 0x36d   :  { %v3576_v48 = vxor.u32 2147483648, %v7541_v20  ;;  %v3662_v22 = vor.u32 4788187, %v3661_v55  ;;  %v3746_v32 = vsel %vm3744_vm12, %v3745_v7, %v10758_v14  ;;  %v3809_v58 = vshrl.u32 %v7718_v38, %v3806_v27 }
 0x36e   :  { %v3580_v33 = vsel %vm3578_vm10, %v3579_v60, %v7541_v20  ;;  %v3747_v41 = vadd.s32 %v3746_v32, %v3742_v37  ;;  %v3812_v9 = vshrl.u32 %v7719_v40, %v3806_v27  ;;  %v3815_v24 = vshrl.u32 %v7720_v42, %v3806_v27 }
 0x36f   :  { %v3577_v18 = vsel %vm3575_vm4, %v7539_v56, %v3576_v48  ;;  %v3663_v62 = vand.u32 2147483647, %v3662_v22  ;;  %v3818_v39 = vshrl.u32 %v7721_v44, %v3806_v27  ;;  %v3670_v12 = vsel %vm3585_vm9, %v3669_v13, %v10707_v29 }
 0x370   :  { %v3581_v17 = vsel %vm3574_vm6, %v3577_v18, %v3580_v33  ;;  %v3748_v8 = vadd.s32 536870912, %v3747_v41  ;;  %v3810_v31 = vor.u32 %v3809_v58, %v3808_v46  ;;  %v3813_v49 = vor.u32 %v3812_v9, %v3811_v3  ;;  %v60_v46 = vld [vmem:[#allocation2 + $0x128] sm:$0xff] }
 0x371   :  { %v3582_v26 = vsel %vm3571_vm8, nan, %v3581_v17  ;;  %v3666_v53 = vmul.f32 %v3665_v34, %v3663_v62  ;;  %v3819_v10 = vor.u32 %v3818_v39, %v3817_v47  ;;  %v3820_v1 = vshll.u32 %v7721_v44, %v3805_v45 }
 0x372   :  { %v3749_v59 = vshrl.u32 %v3748_v8, 30  ;;  %v3821_v19 = vshrl.u32 %v7722_v52, %v3806_v27  ;;  %vm3823_vm13 = vcmp.lt.s32.totalorder %v10772_v30, 1  ;;  %6839 = vst [vmem:[#allocation5 + $0x100] sm:$0xff] %v3582_v26  ;;  %v3816_v0 = vor.u32 %v3815_v24, %v3814_v23 }
 0x373   :  { %v3667_v14 = vxor.u32 2147483648, %v3666_v53  ;;  %vm3826_vm14 = vcmp.lt.s32.totalorder %v10772_v30, 4  ;;  %v10806_v29 = vshll.u32 %v3799_v51, 8  ;;  %v3672_v35 = vsel %vm10776_vm11, 0, %v3670_v12 }
 0x374   :  { %v3750_v63 = vshll.u32 %v3749_v59, 30  ;;  %vm3824_vm15 = vcmp.lt.s32.totalorder %v10772_v30, 2  ;;  %vm3825_vm0 = vcmp.lt.s32.totalorder %v10772_v30, 3  ;;  %v3822_v11 = vor.u32 %v3821_v19, %v3820_v1 }
 0x375   :  { %v3668_v15 = vsel %vm3585_vm9, %v3667_v14, %v3666_v53  ;;  %v3831_v25 = vsel %vm3823_vm13, %v3810_v31, %v3813_v49  ;;  %v3832_v45 = vsel %vm3826_vm14, %v3819_v10, 920167782  ;;  %v10818_v50 = vmul.f32 30.0, %v59_v54 }
 0x376   :  { %v3671_v16 = vsel %vm10776_vm11, %v10488_v6, %v3668_v15  ;;  %v10823_v13 = vsub.s32 %v3747_v41, %v3750_v63  ;;  %v3807_v51 = vshrl.u32 %v7717_v36, %v3806_v27  ;;  %v3676_v37 = vadd.s32 3, %v3672_v35 }
 0x377   :  { %7542 = vcosq.f32 %v3671_v16  ;;  %v3828_v7 = vsel %vm3826_vm14, %v3816_v0, 2102212464  ;;  %v3833_v56 = vsel %vm3825_vm0, %v3816_v0, %v3832_v45  ;;  %v3773_v55 = vsub.s32 4, %v3749_v59 }
 0x378   :  { %7544 = vsinq.f32 %v3671_v16  ;;  %v3753_v5 = vsub.s32 0, %v10823_v13  ;;  %v3834_v21 = vsel %vm3824_vm15, %v3831_v25, %v3833_v56  ;;  %v3835_v3 = vsel %vm3823_vm13, %v3813_v49, %v3816_v0 }
 0x379   :  { %v3836_v27 = vsel %vm3826_vm14, %v3822_v11, 1326507024  ;;  %v10838_v20 = vmul.u32.u64.low %v10806_v29, %v3834_v21  ;;  %v10839_v60 = vmul.u32.u64.high %v10806_v29, %v3834_v21, %v10838_v20  ;;  %v3827_v47 = vsel %vm3823_vm13, %v3807_v51, %v3810_v31 }
 0x37a   :  { %v7025_v23 = vmin.u32 %v3753_v5, %v10823_v13  ;;  %v3829_v48 = vsel %vm3825_vm0, %v3813_v49, %v3828_v7  ;;  %v3837_v22 = vsel %vm3825_vm0, %v3819_v10, %v3836_v27  ;;  %v3677_v34 = vand.u32 3, %v3676_v37 }
 0x37b   :  { %v3838_v32 = vsel %vm3824_vm15, %v3835_v3, %v3837_v22  ;;  %v3898_v33 = vand.u32 2139095040, %v10818_v50  ;;  %v10852_v41 = vmul.f32 30.0, %v60_v46  ;;  %vm3675_vm1 = vweird.f32 %v10488_v6 }
 0x37c   :  { %vm3689_vm2 = vcmp.lt.s32.totalorder %v10636_v61, 0  ;;  %v3755_v58 = vclz %v7025_v23  ;;  %v3830_v9 = vsel %vm3824_vm15, %v3827_v47, %v3829_v48  ;;  %vm10864_vm3 = vcmp.le.f32.partialorder %v3687_v4, 0.7853982 }
 0x37d   :  { %v10859_v18 = vmul.u32.u64.low %v10806_v29, %v3838_v32  ;;  %v10860_v62 = vmul.u32.u64.high %v10806_v29, %v3838_v32, %v10859_v18  ;;  %v3899_v24 = vshrl.u32 %v3898_v33, 23  ;;  %v3774_v12 = vsel %vm3689_vm2, %v3773_v55, %v3749_v59 }
 0x37e   :  { %v7026_v17 = vadd.s32 4294967294, %v3755_v58  ;;  %v3895_v8 = vand.u32 2147483647, %v10818_v50  ;;  %vm3678_vm4 = vcmp.lt.s32.totalorder %v3677_v34, 2  ;;  %vm3679_vm5 = vcmp.eq.s32.totalorder %v3677_v34, 0 }
 0x37f   :  { %v3849_v30 = vadd.s32 1, %v10839_v60  ;;  %v7032_v31 = vadd.s32 4294967169, %v3899_v24  ;;  %vm3682_vm6 = vcmp.eq.s32.totalorder %v3677_v34, 2  ;;  %v3743_v26 = vadd.s32 %v10757_v43, %v10766_v57 }
 0x380   :  { %vm7027_vm7 = vcmp.lt.s32.totalorder %v7026_v17, 0  ;;  %v3846_v4 = vmul.u32 %v10806_v29, %v3830_v9  ;;  %v3776_v10 = vsel %vm10864_vm3, 0, %v3774_v12  ;;  %vm3848_vm8 = vc.u32 %v10860_v62, %v10838_v20 }
 0x381   :  { %v7543_v53 = vpop.eup %7542  ;;  %v3758_v49 = vsel %vm7027_vm7, 0, %v7026_v17  ;;  %v3905_v59 = vadd.s32 1, %v7032_v31  ;;  %v3850_v43 = vsel %vm3848_vm8, %v3849_v30, %v10839_v60  ;;  %v3902_v57 = vand.u32 8388607, %v3895_v8 }
 0x382   :  { %v7545_v1 = vpop.eup %7544  ;;  %v3683_v19 = vxor.u32 2147483648, %v7543_v53  ;;  %v3759_v54 = vsub.s32 32, %v3758_v49  ;;  %v3760_v14 = vshll.u32 %v10823_v13, %v3758_v49  ;;  %v3763_v0 = vsub.s32 4294967266, %v3758_v49 }
 0x383   :  { %v3680_v35 = vxor.u32 2147483648, %v7545_v1  ;;  %vm3906_vm9 = vcmp.gt.s32.totalorder %v3905_v59, 0  ;;  %v3851_v11 = vadd.s32 %v3850_v43, %v3846_v4  ;;  %v4002_v16 = vand.u32 2139095040, %v10852_v41 }
 0x384   :  { %v3684_v29 = vsel %vm3682_vm6, %v3683_v19, %v7545_v1  ;;  %v3761_v63 = vshrl.u32 %v3743_v26, %v3759_v54  ;;  %v3764_v15 = vadd.s32 127, %v3763_v0  ;;  %v3907_v45 = vsel %vm3906_vm9, %v3905_v59, 0 }
 0x385   :  { %v3681_v25 = vsel %vm3679_vm5, %v7543_v53, %v3680_v35  ;;  %v3852_v7 = vadd.s32 536870912, %v3851_v11  ;;  %v3780_v5 = vadd.s32 3, %v3776_v10  ;;  %v3909_v55 = vand.u32 31, %v3907_v45 }
 0x386   :  { %v3685_v13 = vsel %vm3678_vm4, %v3681_v25, %v3684_v29  ;;  %v3762_v51 = vor.u32 %v3761_v63, %v3760_v14  ;;  %v3765_v37 = vshll.u32 %v3764_v15, 23  ;;  %v3903_v27 = vor.u32 8388608, %v3902_v57 }
 0x387   :  { %v3686_v56 = vsel %vm3675_vm1, nan, %v3685_v13  ;;  %v10889_v3 = vshrl.u32 %v3852_v7, 30  ;;  %v3908_v60 = vshrl.u32 %v3907_v45, 5  ;;  %v3910_v23 = vsub.s32 32, %v3909_v55 }
 0x388   :  { %v3766_v21 = vor.u32 4788187, %v3765_v37  ;;  %v3769_v46 = vcvt.s32.f32 %v3762_v51  ;;  %6840 = vst [vmem:[#allocation5 + $0x108] sm:$0xff] %v3686_v56  ;;  %v3999_v47 = vand.u32 2147483647, %v10852_v41  ;;  %v4003_v48 = vshrl.u32 %v4002_v16, 23 }
 0x389   :  { %v3854_v34 = vshll.u32 %v10889_v3, 30  ;;  %v3912_v32 = vshll.u32 %v7717_v36, %v3909_v55  ;;  %v3915_v6 = vshll.u32 %v7718_v38, %v3909_v55  ;;  %v3913_v33 = vshrl.u32 %v7718_v38, %v3910_v23 }
 0x38a   :  { %v3767_v22 = vand.u32 2147483647, %v3766_v21  ;;  %v3916_v58 = vshrl.u32 %v7719_v40, %v3910_v23  ;;  %v3918_v9 = vshll.u32 %v7719_v40, %v3909_v55  ;;  %v3919_v18 = vshrl.u32 %v7720_v42, %v3910_v23 }
 0x38b   :  { %v10899_v17 = vsub.s32 %v3851_v11, %v3854_v34  ;;  %v3921_v12 = vshll.u32 %v7720_v42, %v3909_v55  ;;  %v3922_v30 = vshrl.u32 %v7721_v44, %v3910_v23  ;;  %v10903_v31 = vand.u32 3, %v3780_v5 }
 0x38c   :  { %v3770_v24 = vmul.f32 %v3769_v46, %v3767_v22  ;;  %v10905_v26 = vshll.u32 %v3903_v27, 8  ;;  %v7036_v4 = vadd.s32 4294967169, %v4003_v48  ;;  %v10909_v53 = vand.u32 8388607, %v3999_v47 }
 0x38d   :  { %v3857_v10 = vsub.s32 0, %v10899_v17  ;;  %v3911_v59 = vshrl.u32 %v7717_v36, %v3910_v23  ;;  %v3914_v1 = vor.u32 %v3913_v33, %v3912_v32  ;;  %v3917_v19 = vor.u32 %v3916_v58, %v3915_v6 }
 0x38e   :  { %v3771_v49 = vxor.u32 2147483648, %v3770_v24  ;;  %v3920_v54 = vor.u32 %v3919_v18, %v3918_v9  ;;  %v3924_v14 = vshll.u32 %v7721_v44, %v3909_v55  ;;  %v3925_v0 = vshrl.u32 %v7722_v52, %v3910_v23 }
 0x38f   :  { %v7029_v43 = vmin.u32 %v3857_v10, %v10899_v17  ;;  %v3923_v57 = vor.u32 %v3922_v30, %v3921_v12  ;;  %vm3927_vm10 = vcmp.lt.s32.totalorder %v3908_v60, 1  ;;  %vm3930_vm11 = vcmp.lt.s32.totalorder %v3908_v60, 4 }
 0x390   :  { %v3772_v35 = vsel %vm3689_vm2, %v3771_v49, %v3770_v24  ;;  %v3926_v63 = vor.u32 %v3925_v0, %v3924_v14  ;;  %v4009_v15 = vadd.s32 1, %v7036_v4  ;;  %vm3928_vm12 = vcmp.lt.s32.totalorder %v3908_v60, 2 }
 0x391   :  { %v3775_v29 = vsel %vm10864_vm3, %v10636_v61, %v3772_v35  ;;  %v3859_v11 = vclz %v7029_v43  ;;  %vm3929_vm13 = vcmp.lt.s32.totalorder %v3908_v60, 3  ;;  %v3931_v25 = vsel %vm3927_vm10, %v3911_v59, %v3914_v1 }
 0x392   :  { %7546 = vcosq.f32 %v3775_v29  ;;  %v3932_v45 = vsel %vm3930_vm11, %v3920_v54, 2102212464  ;;  %v3935_v16 = vsel %vm3927_vm10, %v3914_v1, %v3917_v19  ;;  %v3936_v39 = vsel %vm3930_vm11, %v3923_v57, 920167782 }
 0x393   :  { %7548 = vsinq.f32 %v3775_v29  ;;  %v7030_v13 = vadd.s32 4294967294, %v3859_v11  ;;  %v3933_v51 = vsel %vm3929_vm13, %v3917_v19, %v3932_v45  ;;  %v3939_v37 = vsel %vm3927_vm10, %v3917_v19, %v3920_v54 }
 0x394   :  { %vm3783_vm14 = vcmp.eq.s32.totalorder %v10903_v31, 0  ;;  %v3847_v7 = vadd.s32 %v10838_v20, %v10860_v62  ;;  %v3937_v56 = vsel %vm3929_vm13, %v3920_v54, %v3936_v39  ;;  %v3940_v5 = vsel %vm3930_vm11, %v3926_v63, 1326507024 }
 0x395   :  { %vm4010_vm15 = vcmp.gt.s32.totalorder %v4009_v15, 0  ;;  %vm3782_vm0 = vcmp.lt.s32.totalorder %v10903_v31, 2  ;;  %vm7031_vm1 = vcmp.lt.s32.totalorder %v7030_v13, 0  ;;  %v3934_v55 = vsel %vm3928_vm12, %v3931_v25, %v3933_v51 }
 0x396   :  { %v3938_v21 = vsel %vm3928_vm12, %v3935_v16, %v3937_v56  ;;  %v3941_v46 = vsel %vm3929_vm13, %v3923_v57, %v3940_v5  ;;  %vm3779_vm2 = vweird.f32 %v10636_v61  ;;  %v3862_v27 = vsel %vm7031_vm1, 0, %v7030_v13 }
 0x397   :  { %v3942_v23 = vsel %vm3928_vm12, %v3939_v37, %v3941_v46  ;;  %v10939_v20 = vmul.u32.u64.low %v10905_v26, %v3938_v21  ;;  %v10940_v62 = vmul.u32.u64.high %v10905_v26, %v3938_v21, %v10939_v20  ;;  %vm3793_vm3 = vcmp.lt.s32.totalorder %v10670_v28, 0 }
 0x398   :  { %v3863_v48 = vsub.s32 32, %v3862_v27  ;;  %v3864_v22 = vshll.u32 %v10899_v17, %v3862_v27  ;;  %v3867_v34 = vsub.s32 4294967266, %v3862_v27  ;;  %v4011_v32 = vsel %vm4010_vm15, %v4009_v15, 0 }
 0x399   :  { %vm3786_vm4 = vcmp.eq.s32.totalorder %v10903_v31, 2  ;;  %v10947_v6 = vmul.u32.u64.low %v10905_v26, %v3942_v23  ;;  %v10948_v33 = vmul.u32.u64.high %v10905_v26, %v3942_v23, %v10947_v6  ;;  %v4013_v60 = vand.u32 31, %v4011_v32  ;;  %v61_v31 = vld [vmem:[#allocation2 + $0x130] sm:$0xff] }
 0x39a   :  { %v3865_v58 = vshrl.u32 %v3847_v7, %v3863_v48  ;;  %v3868_v9 = vadd.s32 127, %v3867_v34  ;;  %v3877_v18 = vsub.s32 4, %v10889_v3  ;;  %v4007_v24 = vor.u32 8388608, %v10909_v53 }
 0x39b   :  { %v3950_v12 = vmul.u32 %v10905_v26, %v3934_v55  ;;  %v3953_v30 = vadd.s32 1, %v10940_v62  ;;  %v10954_v17 = vshrl.u32 %v4011_v32, 5  ;;  %v4014_v4 = vsub.s32 32, %v4013_v60 }
 0x39c   :  { %v7547_v49 = vpop.eup %7546  ;;  %vm10958_vm5 = vcmp.le.f32.partialorder %v3791_v2, 0.7853982  ;;  %v3866_v59 = vor.u32 %v3865_v58, %v3864_v22  ;;  %v3869_v1 = vshll.u32 %v3868_v9, 23  ;;  %v4016_v19 = vshll.u32 %v7717_v36, %v4013_v60 }
 0x39d   :  { %v4019_v53 = vshll.u32 %v7718_v38, %v4013_v60  ;;  %v7549_v54 = vpop.eup %7548  ;;  %v3787_v26 = vxor.u32 2147483648, %v7547_v49  ;;  %vm3952_vm6 = vc.u32 %v10948_v33, %v10939_v20  ;;  %v4022_v14 = vshll.u32 %v7719_v40, %v4013_v60 }
 0x39e   :  { %v4025_v0 = vshll.u32 %v7720_v42, %v4013_v60  ;;  %v3784_v35 = vxor.u32 2147483648, %v7549_v54  ;;  %v3870_v2 = vor.u32 4788187, %v3869_v1  ;;  %v3873_v43 = vcvt.s32.f32 %v3866_v59 }
 0x39f   :  { %v3954_v57 = vsel %vm3952_vm6, %v3953_v30, %v10940_v62  ;;  %v3788_v29 = vsel %vm3786_vm4, %v3787_v26, %v7549_v54  ;;  %v4017_v15 = vshrl.u32 %v7718_v38, %v4014_v4  ;;  %v4020_v11 = vshrl.u32 %v7719_v40, %v4014_v4 }
 0x3a0   :  { %v3955_v63 = vadd.s32 %v3954_v57, %v3950_v12  ;;  %v3785_v25 = vsel %vm3783_vm14, %v7547_v49, %v3784_v35  ;;  %v3871_v45 = vand.u32 2147483647, %v3870_v2  ;;  %v4023_v16 = vshrl.u32 %v7720_v42, %v4014_v4 }
 0x3a1   :  { %v4026_v13 = vshrl.u32 %v7721_v44, %v4014_v4  ;;  %v3789_v51 = vsel %vm3782_vm0, %v3785_v25, %v3788_v29  ;;  %v3878_v39 = vsel %vm3793_vm3, %v3877_v18, %v10889_v3  ;;  %v4018_v7 = vor.u32 %v4017_v15, %v4016_v19  ;;  %v62_v19 = vld [vmem:[#allocation2 + $0x138] sm:$0xff] }
 0x3a2   :  { %v3956_v37 = vadd.s32 536870912, %v3955_v63  ;;  %v3790_v56 = vsel %vm3779_vm2, nan, %v3789_v51  ;;  %v3874_v5 = vmul.f32 %v3873_v43, %v3871_v45  ;;  %v4021_v55 = vor.u32 %v4020_v11, %v4019_v53 }
 0x3a3   :  { %v4027_v21 = vor.u32 %v4026_v13, %v4025_v0  ;;  %v4028_v27 = vshll.u32 %v7721_v44, %v4013_v60  ;;  %v4029_v23 = vshrl.u32 %v7722_v52, %v4014_v4  ;;  %vm4031_vm7 = vcmp.lt.s32.totalorder %v10954_v17, 1  ;;  %6841 = vst [vmem:[#allocation5 + $0x110] sm:$0xff] %v3790_v56 }
 0x3a4   :  { %v3957_v46 = vshrl.u32 %v3956_v37, 30  ;;  %v3875_v62 = vxor.u32 2147483648, %v3874_v5  ;;  %v4024_v48 = vor.u32 %v4023_v16, %v4022_v14  ;;  %vm4034_vm8 = vcmp.lt.s32.totalorder %v10954_v17, 4 }
 0x3a5   :  { %v10988_v3 = vshll.u32 %v4007_v24, 8  ;;  %v3880_v61 = vsel %vm10958_vm5, 0, %v3878_v39  ;;  %vm4032_vm9 = vcmp.lt.s32.totalorder %v10954_v17, 2  ;;  %vm4033_vm10 = vcmp.lt.s32.totalorder %v10954_v17, 3 }
 0x3a6   :  { %v3958_v22 = vshll.u32 %v3957_v46, 30  ;;  %v3876_v34 = vsel %vm3793_vm3, %v3875_v62, %v3874_v5  ;;  %v4030_v32 = vor.u32 %v4029_v23, %v4028_v27  ;;  %v4039_v6 = vsel %vm4031_vm7, %v4018_v7, %v4021_v55 }
 0x3a7   :  { %v4040_v60 = vsel %vm4034_vm8, %v4027_v21, 920167782  ;;  %v11000_v58 = vmul.f32 30.0, %v61_v31  ;;  %v3879_v9 = vsel %vm10958_vm5, %v10670_v28, %v3876_v34  ;;  %v4015_v24 = vshrl.u32 %v7717_v36, %v4014_v4 }
 0x3a8   :  { %v11005_v18 = vsub.s32 %v3955_v63, %v3958_v22  ;;  %7550 = vcosq.f32 %v3879_v9  ;;  %v3884_v12 = vadd.s32 3, %v3880_v61  ;;  %v4036_v30 = vsel %vm4034_vm8, %v4024_v48, 2102212464 }
 0x3a9   :  { %v4041_v49 = vsel %vm4033_vm10, %v4024_v48, %v4040_v60  ;;  %7552 = vsinq.f32 %v3879_v9  ;;  %v3981_v1 = vsub.s32 4, %v3957_v46  ;;  %v4043_v53 = vsel %vm4031_vm7, %v4021_v55, %v4024_v48 }
 0x3aa   :  { %v3961_v59 = vsub.s32 0, %v11005_v18  ;;  %v4042_v10 = vsel %vm4032_vm9, %v4039_v6, %v4041_v49  ;;  %v4044_v4 = vsel %vm4034_vm8, %v4030_v32, 1326507024  ;;  %v4035_v0 = vsel %vm4031_vm7, %v4015_v24, %v4018_v7 }
 0x3ab   :  { %v11020_v54 = vmul.u32.u64.low %v10988_v3, %v4042_v10  ;;  %v11021_v26 = vmul.u32.u64.high %v10988_v3, %v4042_v10, %v11020_v54  ;;  %v4037_v35 = vsel %vm4033_vm10, %v4021_v55, %v4036_v30  ;;  %v4045_v2 = vsel %vm4033_vm10, %v4027_v21, %v4044_v4 }
 0x3ac   :  { %v7033_v14 = vmin.u32 %v3961_v59, %v11005_v18  ;;  %v3885_v43 = vand.u32 3, %v3884_v12  ;;  %v4046_v57 = vsel %vm4032_vm9, %v4043_v53, %v4045_v2  ;;  %v4106_v29 = vand.u32 2139095040, %v11000_v58 }
 0x3ad   :  { %v11034_v63 = vmul.f32 30.0, %v62_v19  ;;  %vm3883_vm11 = vweird.f32 %v10670_v28  ;;  %vm3897_vm12 = vcmp.lt.s32.totalorder %v10818_v50, 0  ;;  %v4038_v11 = vsel %vm4032_vm9, %v4035_v0, %v4037_v35 }
 0x3ae   :  { %v3963_v15 = vclz %v7033_v14  ;;  %v11041_v25 = vmul.u32.u64.low %v10988_v3, %v4046_v57  ;;  %v11042_v45 = vmul.u32.u64.high %v10988_v3, %v4046_v57, %v11041_v25  ;;  %v4107_v16 = vshrl.u32 %v4106_v29, 23 }
 0x3af   :  { %vm11046_vm13 = vcmp.le.f32.partialorder %v3895_v8, 0.7853982  ;;  %v3982_v39 = vsel %vm3897_vm12, %v3981_v1, %v3957_v46  ;;  %v4103_v37 = vand.u32 2147483647, %v11000_v58  ;;  %vm3886_vm14 = vcmp.lt.s32.totalorder %v3885_v43, 2 }
 0x3b0   :  { %v7034_v51 = vadd.s32 4294967294, %v3963_v15  ;;  %vm3887_vm15 = vcmp.eq.s32.totalorder %v3885_v43, 0  ;;  %v4057_v17 = vadd.s32 1, %v11021_v26  ;;  %v7040_v7 = vadd.s32 4294967169, %v4107_v16 }
 0x3b1   :  { %vm3890_vm0 = vcmp.eq.s32.totalorder %v3885_v43, 2  ;;  %v3951_v56 = vadd.s32 %v10939_v20, %v10948_v33  ;;  %v4054_v8 = vmul.u32 %v10988_v3, %v4038_v11  ;;  %v3984_v21 = vsel %vm11046_vm13, 0, %v3982_v39 }
 0x3b2   :  { %vm7035_vm1 = vcmp.lt.s32.totalorder %v7034_v51, 0  ;;  %v7551_v5 = vpop.eup %7550  ;;  %vm4056_vm2 = vc.u32 %v11042_v45, %v11020_v54  ;;  %v4113_v46 = vadd.s32 1, %v7040_v7  ;;  %v4110_v33 = vand.u32 8388607, %v4103_v37 }
 0x3b3   :  { %v3966_v55 = vsel %vm7035_vm1, 0, %v7034_v51  ;;  %v7553_v27 = vpop.eup %7552  ;;  %v3891_v23 = vxor.u32 2147483648, %v7551_v5  ;;  %v4058_v20 = vsel %vm4056_vm2, %v4057_v17, %v11021_v26  ;;  %v4210_v9 = vand.u32 2139095040, %v11034_v63 }
 0x3b4   :  { %v3967_v31 = vsub.s32 32, %v3966_v55  ;;  %v3968_v62 = vshll.u32 %v11005_v18, %v3966_v55  ;;  %v3971_v48 = vsub.s32 4294967266, %v3966_v55  ;;  %v3888_v61 = vxor.u32 2147483648, %v7553_v27 }
 0x3b5   :  { %vm4114_vm3 = vcmp.gt.s32.totalorder %v4113_v46, 0  ;;  %v3892_v3 = vsel %vm3890_vm0, %v3891_v23, %v7553_v27  ;;  %v4059_v32 = vadd.s32 %v4058_v20, %v4054_v8  ;;  %v3988_v59 = vadd.s32 3, %v3984_v21 }
 0x3b6   :  { %v3969_v22 = vshrl.u32 %v3951_v56, %v3967_v31  ;;  %v3972_v34 = vadd.s32 127, %v3971_v48  ;;  %v3889_v6 = vsel %vm3887_vm15, %v7551_v5, %v3888_v61  ;;  %v4115_v60 = vsel %vm4114_vm3, %v4113_v46, 0 }
 0x3b7   :  { %v3893_v18 = vsel %vm3886_vm14, %v3889_v6, %v3892_v3  ;;  %v4060_v30 = vadd.s32 536870912, %v4059_v32  ;;  %v4117_v1 = vand.u32 31, %v4115_v60  ;;  %v4111_v4 = vor.u32 8388608, %v4110_v33 }
 0x3b8   :  { %v3970_v24 = vor.u32 %v3969_v22, %v3968_v62  ;;  %v3973_v12 = vshll.u32 %v3972_v34, 23  ;;  %v3894_v49 = vsel %vm3883_vm11, nan, %v3893_v18  ;;  %v4116_v26 = vshrl.u32 %v4115_v60, 5 }
 0x3b9   :  { %v11071_v53 = vshrl.u32 %v4060_v30, 30  ;;  %6842 = vst [vmem:[#allocation5 + $0x118] sm:$0xff] %v3894_v49  ;;  %v4118_v14 = vsub.s32 32, %v4117_v1  ;;  %v4207_v0 = vand.u32 2147483647, %v11034_v63  ;;  %v4211_v35 = vshrl.u32 %v4210_v9, 23 }
 0x3ba   :  { %v3974_v10 = vor.u32 4788187, %v3973_v12  ;;  %v3977_v19 = vcvt.s32.f32 %v3970_v24  ;;  %v4120_v57 = vshll.u32 %v7717_v36, %v4117_v1  ;;  %v4123_v28 = vshll.u32 %v7718_v38, %v4117_v1 }
 0x3bb   :  { %v4062_v43 = vshll.u32 %v11071_v53, 30  ;;  %v4121_v29 = vshrl.u32 %v7718_v38, %v4118_v14  ;;  %v4124_v15 = vshrl.u32 %v7719_v40, %v4118_v14  ;;  %v4126_v11 = vshll.u32 %v7719_v40, %v4117_v1 }
 0x3bc   :  { %v3975_v2 = vand.u32 2147483647, %v3974_v10  ;;  %v4127_v25 = vshrl.u32 %v7720_v42, %v4118_v14  ;;  %v4129_v39 = vshll.u32 %v7720_v42, %v4117_v1  ;;  %v4130_v17 = vshrl.u32 %v7721_v44, %v4118_v14 }
 0x3bd   :  { %v11081_v51 = vsub.s32 %v4059_v32, %v4062_v43  ;;  %v11085_v7 = vand.u32 3, %v3988_v59  ;;  %v11087_v56 = vshll.u32 %v4111_v4, 8  ;;  %v7044_v8 = vadd.s32 4294967169, %v4211_v35 }
 0x3be   :  { %v3978_v16 = vmul.f32 %v3977_v19, %v3975_v2  ;;  %v11091_v5 = vand.u32 8388607, %v4207_v0  ;;  %v4119_v46 = vshrl.u32 %v7717_v36, %v4118_v14  ;;  %v4122_v27 = vor.u32 %v4121_v29, %v4120_v57 }
 0x3bf   :  { %v4065_v21 = vsub.s32 0, %v11081_v51  ;;  %v4125_v23 = vor.u32 %v4124_v15, %v4123_v28  ;;  %v4128_v31 = vor.u32 %v4127_v25, %v4126_v11  ;;  %v4132_v62 = vshll.u32 %v7721_v44, %v4117_v1 }
 0x3c0   :  { %v3979_v55 = vxor.u32 2147483648, %v3978_v16  ;;  %v4133_v48 = vshrl.u32 %v7722_v52, %v4118_v14  ;;  %v4131_v33 = vor.u32 %v4130_v17, %v4129_v39  ;;  %vm4135_vm4 = vcmp.lt.s32.totalorder %v4116_v26, 1 }
 0x3c1   :  { %v7037_v20 = vmin.u32 %v4065_v21, %v11081_v51  ;;  %vm4138_vm5 = vcmp.lt.s32.totalorder %v4116_v26, 4  ;;  %v4217_v34 = vadd.s32 1, %v7044_v8  ;;  %vm4136_vm6 = vcmp.lt.s32.totalorder %v4116_v26, 2 }
 0x3c2   :  { %v3980_v61 = vsel %vm3897_vm12, %v3979_v55, %v3978_v16  ;;  %v4134_v22 = vor.u32 %v4133_v48, %v4132_v62  ;;  %vm4137_vm7 = vcmp.lt.s32.totalorder %v4116_v26, 3  ;;  %v4139_v6 = vsel %vm4135_vm4, %v4119_v46, %v4122_v27 }
 0x3c3   :  { %v3983_v3 = vsel %vm11046_vm13, %v10818_v50, %v3980_v61  ;;  %v4067_v32 = vclz %v7037_v20  ;;  %v4140_v60 = vsel %vm4138_vm5, %v4128_v31, 2102212464  ;;  %v4143_v9 = vsel %vm4135_vm4, %v4122_v27, %v4125_v23 }
 0x3c4   :  { %7554 = vcosq.f32 %v3983_v3  ;;  %v4141_v24 = vsel %vm4137_vm7, %v4125_v23, %v4140_v60  ;;  %v4144_v13 = vsel %vm4138_vm5, %v4131_v33, 920167782  ;;  %v4147_v12 = vsel %vm4135_vm4, %v4125_v23, %v4128_v31 }
 0x3c5   :  { %7556 = vsinq.f32 %v3983_v3  ;;  %v7038_v18 = vadd.s32 4294967294, %v4067_v32  ;;  %vm3991_vm8 = vcmp.eq.s32.totalorder %v11085_v7, 0  ;;  %v4055_v30 = vadd.s32 %v11020_v54, %v11042_v45 }
 0x3c6   :  { %v4145_v49 = vsel %vm4137_vm7, %v4128_v31, %v4144_v13  ;;  %v4148_v59 = vsel %vm4138_vm5, %v4134_v22, 1326507024  ;;  %vm4218_vm9 = vcmp.gt.s32.totalorder %v4217_v34, 0  ;;  %vm3990_vm10 = vcmp.lt.s32.totalorder %v11085_v7, 2 }
 0x3c7   :  { %vm7039_vm11 = vcmp.lt.s32.totalorder %v7038_v18, 0  ;;  %v4142_v1 = vsel %vm4136_vm6, %v4139_v6, %v4141_v24  ;;  %v4146_v10 = vsel %vm4136_vm6, %v4143_v9, %v4145_v49  ;;  %v4149_v19 = vsel %vm4137_vm7, %v4131_v33, %v4148_v59 }
 0x3c8   :  { %vm3987_vm12 = vweird.f32 %v10818_v50  ;;  %v4070_v4 = vsel %vm7039_vm11, 0, %v7038_v18  ;;  %v4150_v14 = vsel %vm4136_vm6, %v4147_v12, %v4149_v19  ;;  %vm4001_vm13 = vcmp.lt.s32.totalorder %v10852_v41, 0 }
 0x3c9   :  { %v11121_v54 = vmul.u32.u64.low %v11087_v56, %v4146_v10  ;;  %v11122_v45 = vmul.u32.u64.high %v11087_v56, %v4146_v10, %v11121_v54  ;;  %v4071_v35 = vsub.s32 32, %v4070_v4  ;;  %v4072_v2 = vshll.u32 %v11081_v51, %v4070_v4 }
 0x3ca   :  { %v4075_v43 = vsub.s32 4294967266, %v4070_v4  ;;  %v4219_v57 = vsel %vm4218_vm9, %v4217_v34, 0  ;;  %vm3994_vm14 = vcmp.eq.s32.totalorder %v11085_v7, 2  ;;  %v4085_v25 = vsub.s32 4, %v11071_v53  ;;  %v63_v7 = vld [vmem:[#allocation2 + $0x140] sm:$0xff] }
 0x3cb   :  { %v11129_v28 = vmul.u32.u64.low %v11087_v56, %v4150_v14  ;;  %v11130_v29 = vmul.u32.u64.high %v11087_v56, %v4150_v14, %v11129_v28  ;;  %v4221_v26 = vand.u32 31, %v4219_v57  ;;  %v4073_v15 = vshrl.u32 %v4055_v30, %v4071_v35 }
 0x3cc   :  { %v4076_v11 = vadd.s32 127, %v4075_v43  ;;  %v4215_v16 = vor.u32 8388608, %v11091_v5  ;;  %v4158_v39 = vmul.u32 %v11087_v56, %v4142_v1  ;;  %v4161_v17 = vadd.s32 1, %v11122_v45 }
 0x3cd   :  { %v11136_v51 = vshrl.u32 %v4219_v57, 5  ;;  %v4222_v8 = vsub.s32 32, %v4221_v26  ;;  %vm11140_vm15 = vcmp.le.f32.partialorder %v3999_v47, 0.7853982  ;;  %v4074_v46 = vor.u32 %v4073_v15, %v4072_v2 }
 0x3ce   :  { %v7555_v55 = vpop.eup %7554  ;;  %v4077_v27 = vshll.u32 %v4076_v11, 23  ;;  %v4224_v23 = vshll.u32 %v7717_v36, %v4221_v26  ;;  %v4227_v5 = vshll.u32 %v7718_v38, %v4221_v26  ;;  %vm4160_vm0 = vc.u32 %v11130_v29, %v11121_v54 }
 0x3cf   :  { %v7557_v31 = vpop.eup %7556  ;;  %v3995_v56 = vxor.u32 2147483648, %v7555_v55  ;;  %v4230_v62 = vshll.u32 %v7719_v40, %v4221_v26  ;;  %v4233_v48 = vshll.u32 %v7720_v42, %v4221_v26  ;;  %v4081_v20 = vcvt.s32.f32 %v4074_v46 }
 0x3d0   :  { %v3992_v61 = vxor.u32 2147483648, %v7557_v31  ;;  %v4078_v47 = vor.u32 4788187, %v4077_v27  ;;  %v4162_v33 = vsel %vm4160_vm0, %v4161_v17, %v11122_v45  ;;  %v4225_v34 = vshrl.u32 %v7718_v38, %v4222_v8 }
 0x3d1   :  { %v3996_v3 = vsel %vm3994_vm14, %v3995_v56, %v7557_v31  ;;  %v4163_v22 = vadd.s32 %v4162_v33, %v4158_v39  ;;  %v4228_v32 = vshrl.u32 %v7719_v40, %v4222_v8  ;;  %v4231_v9 = vshrl.u32 %v7720_v42, %v4222_v8 }
 0x3d2   :  { %v3993_v6 = vsel %vm3991_vm8, %v7555_v55, %v3992_v61  ;;  %v4079_v60 = vand.u32 2147483647, %v4078_v47  ;;  %v4234_v18 = vshrl.u32 %v7721_v44, %v4222_v8  ;;  %v4086_v13 = vsel %vm4001_vm13, %v4085_v25, %v11071_v53 }
 0x3d3   :  { %v3997_v24 = vsel %vm3990_vm10, %v3993_v6, %v3996_v3  ;;  %v4164_v12 = vadd.s32 536870912, %v4163_v22  ;;  %v4226_v30 = vor.u32 %v4225_v34, %v4224_v23  ;;  %v4229_v1 = vor.u32 %v4228_v32, %v4227_v5  ;;  %v64_v23 = vld [vmem:[#allocation2 + $0x148] sm:$0xff] }
 0x3d4   :  { %v3998_v49 = vsel %vm3987_vm12, nan, %v3997_v24  ;;  %v4082_v59 = vmul.f32 %v4081_v20, %v4079_v60  ;;  %v4235_v10 = vor.u32 %v4234_v18, %v4233_v48  ;;  %v4236_v4 = vshll.u32 %v7721_v44, %v4221_v26 }
 0x3d5   :  { %v4165_v19 = vshrl.u32 %v4164_v12, 30  ;;  %v4237_v14 = vshrl.u32 %v7722_v52, %v4222_v8  ;;  %vm4239_vm1 = vcmp.lt.s32.totalorder %v11136_v51, 1  ;;  %6843 = vst [vmem:[#allocation5 + $0x120] sm:$0xff] %v3998_v49  ;;  %v4232_v35 = vor.u32 %v4231_v9, %v4230_v62 }
 0x3d6   :  { %v4083_v45 = vxor.u32 2147483648, %v4082_v59  ;;  %vm4242_vm2 = vcmp.lt.s32.totalorder %v11136_v51, 4  ;;  %v11170_v53 = vshll.u32 %v4215_v16, 8  ;;  %v4088_v50 = vsel %vm11140_vm15, 0, %v4086_v13 }
 0x3d7   :  { %v4166_v2 = vshll.u32 %v4165_v19, 30  ;;  %vm4240_vm3 = vcmp.lt.s32.totalorder %v11136_v51, 2  ;;  %vm4241_vm4 = vcmp.lt.s32.totalorder %v11136_v51, 3  ;;  %v4238_v57 = vor.u32 %v4237_v14, %v4236_v4 }
 0x3d8   :  { %v4084_v43 = vsel %vm4001_vm13, %v4083_v45, %v4082_v59  ;;  %v4247_v28 = vsel %vm4239_vm1, %v4226_v30, %v4229_v1  ;;  %v4248_v26 = vsel %vm4242_vm2, %v4235_v10, 920167782  ;;  %v11182_v15 = vmul.f32 30.0, %v63_v7 }
 0x3d9   :  { %v4087_v11 = vsel %vm11140_vm15, %v10852_v41, %v4084_v43  ;;  %v11187_v25 = vsub.s32 %v4163_v22, %v4166_v2  ;;  %v4223_v16 = vshrl.u32 %v7717_v36, %v4222_v8  ;;  %v4092_v39 = vadd.s32 3, %v4088_v50 }
 0x3da   :  { %7558 = vcosq.f32 %v4087_v11  ;;  %v4244_v17 = vsel %vm4242_vm2, %v4232_v35, 2102212464  ;;  %v4249_v55 = vsel %vm4241_vm4, %v4232_v35, %v4248_v26  ;;  %v4189_v27 = vsub.s32 4, %v4165_v19 }
 0x3db   :  { %7560 = vsinq.f32 %v4087_v11  ;;  %v4169_v46 = vsub.s32 0, %v11187_v25  ;;  %v4250_v21 = vsel %vm4240_vm3, %v4247_v28, %v4249_v55  ;;  %v4251_v5 = vsel %vm4239_vm1, %v4229_v1, %v4232_v35 }
 0x3dc   :  { %v4252_v8 = vsel %vm4242_vm2, %v4238_v57, 1326507024  ;;  %v11202_v31 = vmul.u32.u64.low %v11170_v53, %v4250_v21  ;;  %v11203_v56 = vmul.u32.u64.high %v11170_v53, %v4250_v21, %v11202_v31  ;;  %v4243_v48 = vsel %vm4239_vm1, %v4223_v16, %v4226_v30 }
 0x3dd   :  { %v7041_v62 = vmin.u32 %v4169_v46, %v11187_v25  ;;  %v4245_v61 = vsel %vm4241_vm4, %v4229_v1, %v4244_v17  ;;  %v4253_v47 = vsel %vm4241_vm4, %v4235_v10, %v4252_v8  ;;  %v4093_v20 = vand.u32 3, %v4092_v39 }
 0x3de   :  { %v4254_v33 = vsel %vm4240_vm3, %v4251_v5, %v4253_v47  ;;  %v4314_v3 = vand.u32 2139095040, %v11182_v15  ;;  %v11216_v22 = vmul.f32 30.0, %v64_v23  ;;  %vm4091_vm5 = vweird.f32 %v10852_v41 }
 0x3df   :  { %vm4105_vm6 = vcmp.lt.s32.totalorder %v11000_v58, 0  ;;  %v4171_v34 = vclz %v7041_v62  ;;  %v4246_v32 = vsel %vm4240_vm3, %v4243_v48, %v4245_v61  ;;  %vm11228_vm7 = vcmp.le.f32.partialorder %v4103_v37, 0.7853982 }
 0x3e0   :  { %v11223_v6 = vmul.u32.u64.low %v11170_v53, %v4254_v33  ;;  %v11224_v60 = vmul.u32.u64.high %v11170_v53, %v4254_v33, %v11223_v6  ;;  %v4315_v9 = vshrl.u32 %v4314_v3, 23  ;;  %v4190_v13 = vsel %vm4105_vm6, %v4189_v27, %v4165_v19 }
 0x3e1   :  { %v7042_v24 = vadd.s32 4294967294, %v4171_v34  ;;  %v4311_v12 = vand.u32 2147483647, %v11182_v15  ;;  %vm4094_vm8 = vcmp.lt.s32.totalorder %v4093_v20, 2  ;;  %vm4095_vm9 = vcmp.eq.s32.totalorder %v4093_v20, 0 }
 0x3e2   :  { %v4265_v51 = vadd.s32 1, %v11203_v56  ;;  %v7048_v30 = vadd.s32 4294967169, %v4315_v9  ;;  %vm4098_vm10 = vcmp.eq.s32.totalorder %v4093_v20, 2  ;;  %v4159_v49 = vadd.s32 %v11121_v54, %v11130_v29 }
 0x3e3   :  { %vm7043_vm11 = vcmp.lt.s32.totalorder %v7042_v24, 0  ;;  %v4262_v37 = vmul.u32 %v11170_v53, %v4246_v32  ;;  %v4192_v10 = vsel %vm11228_vm7, 0, %v4190_v13  ;;  %vm4264_vm12 = vc.u32 %v11224_v60, %v11202_v31 }
 0x3e4   :  { %v7559_v59 = vpop.eup %7558  ;;  %v4174_v1 = vsel %vm7043_vm11, 0, %v7042_v24  ;;  %v4321_v19 = vadd.s32 1, %v7048_v30  ;;  %v4266_v54 = vsel %vm4264_vm12, %v4265_v51, %v11203_v56  ;;  %v4318_v29 = vand.u32 8388607, %v4311_v12 }
 0x3e5   :  { %v7561_v4 = vpop.eup %7560  ;;  %v4099_v14 = vxor.u32 2147483648, %v7559_v59  ;;  %v4175_v7 = vsub.s32 32, %v4174_v1  ;;  %v4176_v45 = vshll.u32 %v11187_v25, %v4174_v1  ;;  %v4179_v35 = vsub.s32 4294967266, %v4174_v1 }
 0x3e6   :  { %v4096_v50 = vxor.u32 2147483648, %v7561_v4  ;;  %vm4322_vm13 = vcmp.gt.s32.totalorder %v4321_v19, 0  ;;  %v4267_v57 = vadd.s32 %v4266_v54, %v4262_v37  ;;  %v4418_v11 = vand.u32 2139095040, %v11216_v22 }
 0x3e7   :  { %v4100_v53 = vsel %vm4098_vm10, %v4099_v14, %v7561_v4  ;;  %v4177_v2 = vshrl.u32 %v4159_v49, %v4175_v7  ;;  %v4180_v43 = vadd.s32 127, %v4179_v35  ;;  %v4323_v26 = vsel %vm4322_vm13, %v4321_v19, 0 }
 0x3e8   :  { %v4097_v28 = vsel %vm4095_vm9, %v7559_v59, %v4096_v50  ;;  %v4268_v17 = vadd.s32 536870912, %v4267_v57  ;;  %v4196_v46 = vadd.s32 3, %v4192_v10  ;;  %v4325_v27 = vand.u32 31, %v4323_v26 }
 0x3e9   :  { %v4101_v25 = vsel %vm4094_vm8, %v4097_v28, %v4100_v53  ;;  %v4178_v16 = vor.u32 %v4177_v2, %v4176_v45  ;;  %v4181_v39 = vshll.u32 %v4180_v43, 23  ;;  %v4319_v8 = vor.u32 8388608, %v4318_v29 }
 0x3ea   :  { %v4102_v55 = vsel %vm4091_vm5, nan, %v4101_v25  ;;  %v11253_v5 = vshrl.u32 %v4268_v17, 30  ;;  %v4324_v56 = vshrl.u32 %v4323_v26, 5  ;;  %v4326_v62 = vsub.s32 32, %v4325_v27 }
 0x3eb   :  { %v4182_v21 = vor.u32 4788187, %v4181_v39  ;;  %v4185_v23 = vcvt.s32.f32 %v4178_v16  ;;  %6844 = vst [vmem:[#allocation5 + $0x128] sm:$0xff] %v4102_v55  ;;  %v4415_v48 = vand.u32 2147483647, %v11216_v22  ;;  %v4419_v61 = vshrl.u32 %v4418_v11, 23 }
 0x3ec   :  { %v4270_v20 = vshll.u32 %v11253_v5, 30  ;;  %v4328_v33 = vshll.u32 %v7717_v36, %v4325_v27  ;;  %v4331_v41 = vshll.u32 %v7718_v38, %v4325_v27  ;;  %v4329_v3 = vshrl.u32 %v7718_v38, %v4326_v62 }
 0x3ed   :  { %v4183_v47 = vand.u32 2147483647, %v4182_v21  ;;  %v4332_v34 = vshrl.u32 %v7719_v40, %v4326_v62  ;;  %v4334_v32 = vshll.u32 %v7719_v40, %v4325_v27  ;;  %v4335_v6 = vshrl.u32 %v7720_v42, %v4326_v62 }
 0x3ee   :  { %v11263_v24 = vsub.s32 %v4267_v57, %v4270_v20  ;;  %v4337_v13 = vshll.u32 %v7720_v42, %v4325_v27  ;;  %v4338_v51 = vshrl.u32 %v7721_v44, %v4326_v62  ;;  %v11267_v30 = vand.u32 3, %v4196_v46 }
 0x3ef   :  { %v4186_v9 = vmul.f32 %v4185_v23, %v4183_v47  ;;  %v11269_v49 = vshll.u32 %v4319_v8, 8  ;;  %v7052_v37 = vadd.s32 4294967169, %v4419_v61  ;;  %v11273_v59 = vand.u32 8388607, %v4415_v48 }
 0x3f0   :  { %v4273_v10 = vsub.s32 0, %v11263_v24  ;;  %v4327_v19 = vshrl.u32 %v7717_v36, %v4326_v62  ;;  %v4330_v4 = vor.u32 %v4329_v3, %v4328_v33  ;;  %v4333_v14 = vor.u32 %v4332_v34, %v4331_v41 }
 0x3f1   :  { %v4187_v1 = vxor.u32 2147483648, %v4186_v9  ;;  %v4336_v7 = vor.u32 %v4335_v6, %v4334_v32  ;;  %v4340_v45 = vshll.u32 %v7721_v44, %v4325_v27  ;;  %v4341_v35 = vshrl.u32 %v7722_v52, %v4326_v62 }
 0x3f2   :  { %v7045_v54 = vmin.u32 %v4273_v10, %v11263_v24  ;;  %v4339_v29 = vor.u32 %v4338_v51, %v4337_v13  ;;  %vm4343_vm14 = vcmp.lt.s32.totalorder %v4324_v56, 1  ;;  %vm4346_vm15 = vcmp.lt.s32.totalorder %v4324_v56, 4 }
 0x3f3   :  { %v4188_v50 = vsel %vm4105_vm6, %v4187_v1, %v4186_v9  ;;  %v4342_v2 = vor.u32 %v4341_v35, %v4340_v45  ;;  %v4425_v43 = vadd.s32 1, %v7052_v37  ;;  %vm4344_vm0 = vcmp.lt.s32.totalorder %v4324_v56, 2 }
 0x3f4   :  { %v4191_v53 = vsel %vm11228_vm7, %v11000_v58, %v4188_v50  ;;  %v4275_v57 = vclz %v7045_v54  ;;  %vm4345_vm1 = vcmp.lt.s32.totalorder %v4324_v56, 3  ;;  %v4347_v28 = vsel %vm4343_vm14, %v4327_v19, %v4330_v4 }
 0x3f5   :  { %7562 = vcosq.f32 %v4191_v53  ;;  %v4348_v26 = vsel %vm4346_vm15, %v4336_v7, 2102212464  ;;  %v4351_v11 = vsel %vm4343_vm14, %v4330_v4, %v4333_v14  ;;  %v4352_v18 = vsel %vm4346_vm15, %v4339_v29, 920167782 }
 0x3f6   :  { %7564 = vsinq.f32 %v4191_v53  ;;  %v7046_v25 = vadd.s32 4294967294, %v4275_v57  ;;  %v4349_v16 = vsel %vm4345_vm1, %v4333_v14, %v4348_v26  ;;  %v4355_v39 = vsel %vm4343_vm14, %v4333_v14, %v4336_v7 }
 0x3f7   :  { %vm4199_vm2 = vcmp.eq.s32.totalorder %v11267_v30, 0  ;;  %v4263_v17 = vadd.s32 %v11202_v31, %v11224_v60  ;;  %v4353_v55 = vsel %vm4345_vm1, %v4336_v7, %v4352_v18  ;;  %v4356_v46 = vsel %vm4346_vm15, %v4342_v2, 1326507024 }
 0x3f8   :  { %vm4426_vm3 = vcmp.gt.s32.totalorder %v4425_v43, 0  ;;  %vm4198_vm4 = vcmp.lt.s32.totalorder %v11267_v30, 2  ;;  %vm7047_vm5 = vcmp.lt.s32.totalorder %v7046_v25, 0  ;;  %v4350_v27 = vsel %vm4344_vm0, %v4347_v28, %v4349_v16 }
 0x3f9   :  { %v4354_v21 = vsel %vm4344_vm0, %v4351_v11, %v4353_v55  ;;  %v4357_v23 = vsel %vm4345_vm1, %v4339_v29, %v4356_v46  ;;  %vm4195_vm6 = vweird.f32 %v11000_v58  ;;  %v4278_v8 = vsel %vm7047_vm5, 0, %v7046_v25 }
 0x3fa   :  { %v4358_v62 = vsel %vm4344_vm0, %v4355_v39, %v4357_v23  ;;  %v11303_v31 = vmul.u32.u64.low %v11269_v49, %v4354_v21  ;;  %v11304_v60 = vmul.u32.u64.high %v11269_v49, %v4354_v21, %v11303_v31  ;;  %vm4209_vm7 = vcmp.lt.s32.totalorder %v11034_v63, 0 }
 0x3fb   :  { %v4279_v61 = vsub.s32 32, %v4278_v8  ;;  %v4280_v47 = vshll.u32 %v11263_v24, %v4278_v8  ;;  %v4283_v20 = vsub.s32 4294967266, %v4278_v8  ;;  %v4427_v33 = vsel %vm4426_vm3, %v4425_v43, 0 }
 0x3fc   :  { %vm4202_vm8 = vcmp.eq.s32.totalorder %v11267_v30, 2  ;;  %v11311_v41 = vmul.u32.u64.low %v11269_v49, %v4358_v62  ;;  %v11312_v3 = vmul.u32.u64.high %v11269_v49, %v4358_v62, %v11311_v41  ;;  %v4429_v56 = vand.u32 31, %v4427_v33  ;;  %v65_v30 = vld [vmem:[#allocation2 + $0x150] sm:$0xff] }
 0x3fd   :  { %v4281_v34 = vshrl.u32 %v4263_v17, %v4279_v61  ;;  %v4284_v32 = vadd.s32 127, %v4283_v20  ;;  %v4293_v6 = vsub.s32 4, %v11253_v5  ;;  %v4423_v9 = vor.u32 8388608, %v11273_v59 }
 0x3fe   :  { %v4366_v13 = vmul.u32 %v11269_v49, %v4350_v27  ;;  %v4369_v51 = vadd.s32 1, %v11304_v60  ;;  %v11318_v24 = vshrl.u32 %v4427_v33, 5  ;;  %v4430_v37 = vsub.s32 32, %v4429_v56 }
 0x3ff   :  { %v7563_v1 = vpop.eup %7562  ;;  %vm11322_vm9 = vcmp.le.f32.partialorder %v4207_v0, 0.7853982  ;;  %v4282_v19 = vor.u32 %v4281_v34, %v4280_v47  ;;  %v4285_v4 = vshll.u32 %v4284_v32, 23  ;;  %v4432_v14 = vshll.u32 %v7717_v36, %v4429_v56 }
 0x400   :  { %v4435_v59 = vshll.u32 %v7718_v38, %v4429_v56  ;;  %v7565_v7 = vpop.eup %7564  ;;  %v4203_v49 = vxor.u32 2147483648, %v7563_v1  ;;  %vm4368_vm10 = vc.u32 %v11312_v3, %v11303_v31  ;;  %v4438_v45 = vshll.u32 %v7719_v40, %v4429_v56 }
 0x401   :  { %v4441_v35 = vshll.u32 %v7720_v42, %v4429_v56  ;;  %v4200_v50 = vxor.u32 2147483648, %v7565_v7  ;;  %v4286_v0 = vor.u32 4788187, %v4285_v4  ;;  %v4289_v54 = vcvt.s32.f32 %v4282_v19 }
 0x402   :  { %v4370_v29 = vsel %vm4368_vm10, %v4369_v51, %v11304_v60  ;;  %v4204_v53 = vsel %vm4202_vm8, %v4203_v49, %v7565_v7  ;;  %v4433_v43 = vshrl.u32 %v7718_v38, %v4430_v37  ;;  %v4436_v57 = vshrl.u32 %v7719_v40, %v4430_v37 }
 0x403   :  { %v4371_v2 = vadd.s32 %v4370_v29, %v4366_v13  ;;  %v4201_v28 = vsel %vm4199_vm2, %v7563_v1, %v4200_v50  ;;  %v4287_v26 = vand.u32 2147483647, %v4286_v0  ;;  %v4439_v11 = vshrl.u32 %v7720_v42, %v4430_v37 }
 0x404   :  { %v4442_v25 = vshrl.u32 %v7721_v44, %v4430_v37  ;;  %v4205_v16 = vsel %vm4198_vm4, %v4201_v28, %v4204_v53  ;;  %v4294_v18 = vsel %vm4209_vm7, %v4293_v6, %v11253_v5  ;;  %v4434_v17 = vor.u32 %v4433_v43, %v4432_v14  ;;  %v66_v14 = vld [vmem:[#allocation2 + $0x158] sm:$0xff] }
 0x405   :  { %v4372_v39 = vadd.s32 536870912, %v4371_v2  ;;  %v4206_v55 = vsel %vm4195_vm6, nan, %v4205_v16  ;;  %v4290_v46 = vmul.f32 %v4289_v54, %v4287_v26  ;;  %v4437_v27 = vor.u32 %v4436_v57, %v4435_v59 }
 0x406   :  { %v4443_v21 = vor.u32 %v4442_v25, %v4441_v35  ;;  %v4444_v8 = vshll.u32 %v7721_v44, %v4429_v56  ;;  %v4445_v62 = vshrl.u32 %v7722_v52, %v4430_v37  ;;  %vm4447_vm11 = vcmp.lt.s32.totalorder %v11318_v24, 1  ;;  %6845 = vst [vmem:[#allocation5 + $0x130] sm:$0xff] %v4206_v55 }
 0x407   :  { %v4373_v23 = vshrl.u32 %v4372_v39, 30  ;;  %v4291_v60 = vxor.u32 2147483648, %v4290_v46  ;;  %v4440_v61 = vor.u32 %v4439_v11, %v4438_v45  ;;  %vm4450_vm12 = vcmp.lt.s32.totalorder %v11318_v24, 4 }
 0x408   :  { %v11352_v5 = vshll.u32 %v4423_v9, 8  ;;  %v4296_v58 = vsel %vm11322_vm9, 0, %v4294_v18  ;;  %vm4448_vm13 = vcmp.lt.s32.totalorder %v11318_v24, 2  ;;  %vm4449_vm14 = vcmp.lt.s32.totalorder %v11318_v24, 3 }
 0x409   :  { %v4374_v47 = vshll.u32 %v4373_v23, 30  ;;  %v4292_v20 = vsel %vm4209_vm7, %v4291_v60, %v4290_v46  ;;  %v4446_v33 = vor.u32 %v4445_v62, %v4444_v8  ;;  %v4455_v41 = vsel %vm4447_vm11, %v4434_v17, %v4437_v27 }
 0x40a   :  { %v4456_v56 = vsel %vm4450_vm12, %v4443_v21, 920167782  ;;  %v11364_v34 = vmul.f32 30.0, %v65_v30  ;;  %v4295_v32 = vsel %vm11322_vm9, %v11034_v63, %v4292_v20  ;;  %v4431_v9 = vshrl.u32 %v7717_v36, %v4430_v37 }
 0x40b   :  { %v11369_v6 = vsub.s32 %v4371_v2, %v4374_v47  ;;  %7566 = vcosq.f32 %v4295_v32  ;;  %v4300_v13 = vadd.s32 3, %v4296_v58  ;;  %v4452_v51 = vsel %vm4450_vm12, %v4440_v61, 2102212464 }
 0x40c   :  { %v4457_v1 = vsel %vm4449_vm14, %v4440_v61, %v4456_v56  ;;  %7568 = vsinq.f32 %v4295_v32  ;;  %v4397_v4 = vsub.s32 4, %v4373_v23  ;;  %v4459_v59 = vsel %vm4447_vm11, %v4437_v27, %v4440_v61 }
 0x40d   :  { %v4377_v19 = vsub.s32 0, %v11369_v6  ;;  %v4458_v10 = vsel %vm4448_vm13, %v4455_v41, %v4457_v1  ;;  %v4460_v37 = vsel %vm4450_vm12, %v4446_v33, 1326507024  ;;  %v4451_v35 = vsel %vm4447_vm11, %v4431_v9, %v4434_v17 }
 0x40e   :  { %v11384_v7 = vmul.u32.u64.low %v11352_v5, %v4458_v10  ;;  %v11385_v49 = vmul.u32.u64.high %v11352_v5, %v4458_v10, %v11384_v7  ;;  %v4453_v50 = vsel %vm4449_vm14, %v4437_v27, %v4452_v51  ;;  %v4461_v0 = vsel %vm4449_vm14, %v4443_v21, %v4460_v37 }
 0x40f   :  { %v7049_v45 = vmin.u32 %v4377_v19, %v11369_v6  ;;  %v4301_v54 = vand.u32 3, %v4300_v13  ;;  %v4462_v29 = vsel %vm4448_vm13, %v4459_v59, %v4461_v0  ;;  %v4522_v53 = vand.u32 2139095040, %v11364_v34 }
 0x410   :  { %v11398_v2 = vmul.f32 30.0, %v66_v14  ;;  %vm4299_vm15 = vweird.f32 %v11034_v63  ;;  %vm4313_vm0 = vcmp.lt.s32.totalorder %v11182_v15, 0  ;;  %v4454_v57 = vsel %vm4448_vm13, %v4451_v35, %v4453_v50 }
 0x411   :  { %v4379_v43 = vclz %v7049_v45  ;;  %v11405_v28 = vmul.u32.u64.low %v11352_v5, %v4462_v29  ;;  %v11406_v26 = vmul.u32.u64.high %v11352_v5, %v4462_v29, %v11405_v28  ;;  %v4523_v11 = vshrl.u32 %v4522_v53, 23 }
 0x412   :  { %vm11410_vm1 = vcmp.le.f32.partialorder %v4311_v12, 0.7853982  ;;  %v4398_v18 = vsel %vm4313_vm0, %v4397_v4, %v4373_v23  ;;  %v4519_v39 = vand.u32 2147483647, %v11364_v34  ;;  %vm4302_vm2 = vcmp.lt.s32.totalorder %v4301_v54, 2 }
 0x413   :  { %v7050_v16 = vadd.s32 4294967294, %v4379_v43  ;;  %vm4303_vm3 = vcmp.eq.s32.totalorder %v4301_v54, 0  ;;  %v4473_v24 = vadd.s32 1, %v11385_v49  ;;  %v7056_v17 = vadd.s32 4294967169, %v4523_v11 }
 0x414   :  { %vm4306_vm4 = vcmp.eq.s32.totalorder %v4301_v54, 2  ;;  %v4367_v55 = vadd.s32 %v11303_v31, %v11312_v3  ;;  %v4470_v12 = vmul.u32 %v11352_v5, %v4454_v57  ;;  %v4400_v21 = vsel %vm11410_vm1, 0, %v4398_v18 }
 0x415   :  { %vm7051_vm5 = vcmp.lt.s32.totalorder %v7050_v16, 0  ;;  %v7567_v46 = vpop.eup %7566  ;;  %vm4472_vm6 = vc.u32 %v11406_v26, %v11384_v7  ;;  %v4529_v23 = vadd.s32 1, %v7056_v17  ;;  %v4526_v3 = vand.u32 8388607, %v4519_v39 }
 0x416   :  { %v4382_v27 = vsel %vm7051_vm5, 0, %v7050_v16  ;;  %v7569_v8 = vpop.eup %7568  ;;  %v4307_v62 = vxor.u32 2147483648, %v7567_v46  ;;  %v4474_v31 = vsel %vm4472_vm6, %v4473_v24, %v11385_v49  ;;  %v4626_v32 = vand.u32 2139095040, %v11398_v2 }
 0x417   :  { %v4383_v30 = vsub.s32 32, %v4382_v27  ;;  %v4384_v60 = vshll.u32 %v11369_v6, %v4382_v27  ;;  %v4387_v61 = vsub.s32 4294967266, %v4382_v27  ;;  %v4304_v58 = vxor.u32 2147483648, %v7569_v8 }
 0x418   :  { %vm4530_vm7 = vcmp.gt.s32.totalorder %v4529_v23, 0  ;;  %v4308_v5 = vsel %vm4306_vm4, %v4307_v62, %v7569_v8  ;;  %v4475_v33 = vadd.s32 %v4474_v31, %v4470_v12  ;;  %v4404_v19 = vadd.s32 3, %v4400_v21 }
 0x419   :  { %v4385_v47 = vshrl.u32 %v4367_v55, %v4383_v30  ;;  %v4388_v20 = vadd.s32 127, %v4387_v61  ;;  %v4305_v41 = vsel %vm4303_vm3, %v7567_v46, %v4304_v58  ;;  %v4531_v56 = vsel %vm4530_vm7, %v4529_v23, 0 }
 0x41a   :  { %v4309_v6 = vsel %vm4302_vm2, %v4305_v41, %v4308_v5  ;;  %v4476_v51 = vadd.s32 536870912, %v4475_v33  ;;  %v4533_v4 = vand.u32 31, %v4531_v56  ;;  %v4527_v37 = vor.u32 8388608, %v4526_v3 }
 0x41b   :  { %v4386_v9 = vor.u32 %v4385_v47, %v4384_v60  ;;  %v4389_v13 = vshll.u32 %v4388_v20, 23  ;;  %v4310_v1 = vsel %vm4299_vm15, nan, %v4309_v6  ;;  %v4532_v49 = vshrl.u32 %v4531_v56, 5 }
 0x41c   :  { %v11435_v59 = vshrl.u32 %v4476_v51, 30  ;;  %6846 = vst [vmem:[#allocation5 + $0x138] sm:$0xff] %v4310_v1  ;;  %v4534_v45 = vsub.s32 32, %v4533_v4  ;;  %v4623_v35 = vand.u32 2147483647, %v11398_v2  ;;  %v4627_v50 = vshrl.u32 %v4626_v32, 23 }
 0x41d   :  { %v4390_v10 = vor.u32 4788187, %v4389_v13  ;;  %v4393_v14 = vcvt.s32.f32 %v4386_v9  ;;  %v4536_v29 = vshll.u32 %v7717_v36, %v4533_v4  ;;  %v4539_v63 = vshll.u32 %v7718_v38, %v4533_v4 }
 0x41e   :  { %v4478_v54 = vshll.u32 %v11435_v59, 30  ;;  %v4537_v53 = vshrl.u32 %v7718_v38, %v4534_v45  ;;  %v4540_v43 = vshrl.u32 %v7719_v40, %v4534_v45  ;;  %v4542_v57 = vshll.u32 %v7719_v40, %v4533_v4 }
 0x41f   :  { %v4391_v0 = vand.u32 2147483647, %v4390_v10  ;;  %v4543_v28 = vshrl.u32 %v7720_v42, %v4534_v45  ;;  %v4545_v18 = vshll.u32 %v7720_v42, %v4533_v4  ;;  %v4546_v24 = vshrl.u32 %v7721_v44, %v4534_v45 }
 0x420   :  { %v11445_v16 = vsub.s32 %v4475_v33, %v4478_v54  ;;  %v11449_v17 = vand.u32 3, %v4404_v19  ;;  %v11451_v55 = vshll.u32 %v4527_v37, 8  ;;  %v7060_v12 = vadd.s32 4294967169, %v4627_v50 }
 0x421   :  { %v4394_v11 = vmul.f32 %v4393_v14, %v4391_v0  ;;  %v11455_v46 = vand.u32 8388607, %v4623_v35  ;;  %v4535_v23 = vshrl.u32 %v7717_v36, %v4534_v45  ;;  %v4538_v8 = vor.u32 %v4537_v53, %v4536_v29 }
 0x422   :  { %v4481_v21 = vsub.s32 0, %v11445_v16  ;;  %v4541_v62 = vor.u32 %v4540_v43, %v4539_v63  ;;  %v4544_v30 = vor.u32 %v4543_v28, %v4542_v57  ;;  %v4548_v60 = vshll.u32 %v7721_v44, %v4533_v4 }
 0x423   :  { %v4395_v27 = vxor.u32 2147483648, %v4394_v11  ;;  %v4549_v61 = vshrl.u32 %v7722_v52, %v4534_v45  ;;  %v4547_v3 = vor.u32 %v4546_v24, %v4545_v18  ;;  %vm4551_vm8 = vcmp.lt.s32.totalorder %v4532_v49, 1 }
 0x424   :  { %v7053_v31 = vmin.u32 %v4481_v21, %v11445_v16  ;;  %vm4554_vm9 = vcmp.lt.s32.totalorder %v4532_v49, 4  ;;  %v4633_v20 = vadd.s32 1, %v7060_v12  ;;  %vm4552_vm10 = vcmp.lt.s32.totalorder %v4532_v49, 2 }
 0x425   :  { %v4396_v58 = vsel %vm4313_vm0, %v4395_v27, %v4394_v11  ;;  %v4550_v47 = vor.u32 %v4549_v61, %v4548_v60  ;;  %vm4553_vm11 = vcmp.lt.s32.totalorder %v4532_v49, 3  ;;  %v4555_v41 = vsel %vm4551_vm8, %v4535_v23, %v4538_v8 }
 0x426   :  { %v4399_v5 = vsel %vm11410_vm1, %v11182_v15, %v4396_v58  ;;  %v4483_v33 = vclz %v7053_v31  ;;  %v4556_v56 = vsel %vm4554_vm9, %v4544_v30, 2102212464  ;;  %v4559_v32 = vsel %vm4551_vm8, %v4538_v8, %v4541_v62 }
 0x427   :  { %7570 = vcosq.f32 %v4399_v5  ;;  %v4557_v9 = vsel %vm4553_vm11, %v4541_v62, %v4556_v56  ;;  %v4560_v25 = vsel %vm4554_vm9, %v4547_v3, 920167782  ;;  %v4563_v13 = vsel %vm4551_vm8, %v4541_v62, %v4544_v30 }
 0x428   :  { %7572 = vsinq.f32 %v4399_v5  ;;  %v7054_v6 = vadd.s32 4294967294, %v4483_v33  ;;  %vm4407_vm12 = vcmp.eq.s32.totalorder %v11449_v17, 0  ;;  %v4471_v51 = vadd.s32 %v11384_v7, %v11406_v26 }
 0x429   :  { %v4561_v1 = vsel %vm4553_vm11, %v4544_v30, %v4560_v25  ;;  %v4564_v19 = vsel %vm4554_vm9, %v4550_v47, 1326507024  ;;  %vm4634_vm13 = vcmp.gt.s32.totalorder %v4633_v20, 0  ;;  %vm4406_vm14 = vcmp.lt.s32.totalorder %v11449_v17, 2 }
 0x42a   :  { %vm7055_vm15 = vcmp.lt.s32.totalorder %v7054_v6, 0  ;;  %v4558_v4 = vsel %vm4552_vm10, %v4555_v41, %v4557_v9  ;;  %v4562_v10 = vsel %vm4552_vm10, %v4559_v32, %v4561_v1  ;;  %v4565_v14 = vsel %vm4553_vm11, %v4547_v3, %v4564_v19 }
 0x42b   :  { %vm4403_vm0 = vweird.f32 %v11182_v15  ;;  %v4486_v37 = vsel %vm7055_vm15, 0, %v7054_v6  ;;  %v4566_v45 = vsel %vm4552_vm10, %v4563_v13, %v4565_v14  ;;  %vm4417_vm1 = vcmp.lt.s32.totalorder %v11216_v22, 0 }
 0x42c   :  { %v11485_v7 = vmul.u32.u64.low %v11451_v55, %v4562_v10  ;;  %v11486_v26 = vmul.u32.u64.high %v11451_v55, %v4562_v10, %v11485_v7  ;;  %v4487_v50 = vsub.s32 32, %v4486_v37  ;;  %v4488_v0 = vshll.u32 %v11445_v16, %v4486_v37 }
 0x42d   :  { %v4491_v54 = vsub.s32 4294967266, %v4486_v37  ;;  %v4635_v29 = vsel %vm4634_vm13, %v4633_v20, 0  ;;  %vm4410_vm2 = vcmp.eq.s32.totalorder %v11449_v17, 2  ;;  %v4501_v28 = vsub.s32 4, %v11435_v59  ;;  %v67_v17 = vld [vmem:[#allocation2 + $0x160] sm:$0xff] }
 0x42e   :  { %v11493_v63 = vmul.u32.u64.low %v11451_v55, %v4566_v45  ;;  %v11494_v53 = vmul.u32.u64.high %v11451_v55, %v4566_v45, %v11493_v63  ;;  %v4637_v49 = vand.u32 31, %v4635_v29  ;;  %v4489_v43 = vshrl.u32 %v4471_v51, %v4487_v50 }
 0x42f   :  { %v4492_v57 = vadd.s32 127, %v4491_v54  ;;  %v4631_v11 = vor.u32 8388608, %v11455_v46  ;;  %v4574_v18 = vmul.u32 %v11451_v55, %v4558_v4  ;;  %v4577_v24 = vadd.s32 1, %v11486_v26 }
 0x430   :  { %v11500_v16 = vshrl.u32 %v4635_v29, 5  ;;  %v4638_v12 = vsub.s32 32, %v4637_v49  ;;  %vm11504_vm3 = vcmp.le.f32.partialorder %v4415_v48, 0.7853982  ;;  %v4490_v23 = vor.u32 %v4489_v43, %v4488_v0 }
 0x431   :  { %v7571_v27 = vpop.eup %7570  ;;  %v4493_v8 = vshll.u32 %v4492_v57, 23  ;;  %v4640_v62 = vshll.u32 %v7717_v36, %v4637_v49  ;;  %v4643_v46 = vshll.u32 %v7718_v38, %v4637_v49  ;;  %vm4576_vm4 = vc.u32 %v11494_v53, %v11485_v7 }
 0x432   :  { %v7573_v30 = vpop.eup %7572  ;;  %v4411_v55 = vxor.u32 2147483648, %v7571_v27  ;;  %v4646_v60 = vshll.u32 %v7719_v40, %v4637_v49  ;;  %v4649_v61 = vshll.u32 %v7720_v42, %v4637_v49  ;;  %v4497_v31 = vcvt.s32.f32 %v4490_v23 }
 0x433   :  { %v4408_v58 = vxor.u32 2147483648, %v7573_v30  ;;  %v4494_v48 = vor.u32 4788187, %v4493_v8  ;;  %v4578_v3 = vsel %vm4576_vm4, %v4577_v24, %v11486_v26  ;;  %v4641_v20 = vshrl.u32 %v7718_v38, %v4638_v12 }
 0x434   :  { %v4412_v5 = vsel %vm4410_vm2, %v4411_v55, %v7573_v30  ;;  %v4579_v47 = vadd.s32 %v4578_v3, %v4574_v18  ;;  %v4644_v33 = vshrl.u32 %v7719_v40, %v4638_v12  ;;  %v4647_v32 = vshrl.u32 %v7720_v42, %v4638_v12 }
 0x435   :  { %v4409_v41 = vsel %vm4407_vm12, %v7571_v27, %v4408_v58  ;;  %v4495_v56 = vand.u32 2147483647, %v4494_v48  ;;  %v4650_v6 = vshrl.u32 %v7721_v44, %v4638_v12  ;;  %v4502_v25 = vsel %vm4417_vm1, %v4501_v28, %v11435_v59 }
 0x436   :  { %v4413_v9 = vsel %vm4406_vm14, %v4409_v41, %v4412_v5  ;;  %v4580_v13 = vadd.s32 536870912, %v4579_v47  ;;  %v4642_v51 = vor.u32 %v4641_v20, %v4640_v62  ;;  %v4645_v4 = vor.u32 %v4644_v33, %v4643_v46  ;;  %v68_v62 = vld [vmem:[#allocation2 + $0x168] sm:$0xff] }
 0x437   :  { %v4414_v1 = vsel %vm4403_vm0, nan, %v4413_v9  ;;  %v4498_v19 = vmul.f32 %v4497_v31, %v4495_v56  ;;  %v4651_v10 = vor.u32 %v4650_v6, %v4649_v61  ;;  %v4652_v37 = vshll.u32 %v7721_v44, %v4637_v49 }
 0x438   :  { %v4581_v14 = vshrl.u32 %v4580_v13, 30  ;;  %v4653_v45 = vshrl.u32 %v7722_v52, %v4638_v12  ;;  %vm4655_vm5 = vcmp.lt.s32.totalorder %v11500_v16, 1  ;;  %6847 = vst [vmem:[#allocation5 + $0x140] sm:$0xff] %v4414_v1  ;;  %v4648_v50 = vor.u32 %v4647_v32, %v4646_v60 }
 0x439   :  { %v4499_v26 = vxor.u32 2147483648, %v4498_v19  ;;  %vm4658_vm6 = vcmp.lt.s32.totalorder %v11500_v16, 4  ;;  %v11534_v59 = vshll.u32 %v4631_v11, 8  ;;  %v4504_v15 = vsel %vm11504_vm3, 0, %v4502_v25 }
 0x43a   :  { %v4582_v0 = vshll.u32 %v4581_v14, 30  ;;  %vm4656_vm7 = vcmp.lt.s32.totalorder %v11500_v16, 2  ;;  %vm4657_vm8 = vcmp.lt.s32.totalorder %v11500_v16, 3  ;;  %v4654_v29 = vor.u32 %v4653_v45, %v4652_v37 }
 0x43b   :  { %v4500_v54 = vsel %vm4417_vm1, %v4499_v26, %v4498_v19  ;;  %v4663_v63 = vsel %vm4655_vm5, %v4642_v51, %v4645_v4  ;;  %v4664_v49 = vsel %vm4658_vm6, %v4651_v10, 920167782  ;;  %v11546_v43 = vmul.f32 30.0, %v67_v17 }
 0x43c   :  { %v4503_v57 = vsel %vm11504_vm3, %v11216_v22, %v4500_v54  ;;  %v11551_v28 = vsub.s32 %v4579_v47, %v4582_v0  ;;  %v4639_v11 = vshrl.u32 %v7717_v36, %v4638_v12  ;;  %v4508_v18 = vadd.s32 3, %v4504_v15 }
 0x43d   :  { %7574 = vcosq.f32 %v4503_v57  ;;  %v4660_v24 = vsel %vm4658_vm6, %v4648_v50, 2102212464  ;;  %v4665_v27 = vsel %vm4657_vm8, %v4648_v50, %v4664_v49  ;;  %v4605_v8 = vsub.s32 4, %v4581_v14 }
 0x43e   :  { %7576 = vsinq.f32 %v4503_v57  ;;  %v4585_v23 = vsub.s32 0, %v11551_v28  ;;  %v4666_v21 = vsel %vm4656_vm7, %v4663_v63, %v4665_v27  ;;  %v4667_v46 = vsel %vm4655_vm5, %v4645_v4, %v4648_v50 }
 0x43f   :  { %v4668_v12 = vsel %vm4658_vm6, %v4654_v29, 1326507024  ;;  %v11566_v30 = vmul.u32.u64.low %v11534_v59, %v4666_v21  ;;  %v11567_v55 = vmul.u32.u64.high %v11534_v59, %v4666_v21, %v11566_v30  ;;  %v4659_v61 = vsel %vm4655_vm5, %v4639_v11, %v4642_v51 }
 0x440   :  { %v7057_v60 = vmin.u32 %v4585_v23, %v11551_v28  ;;  %v4661_v58 = vsel %vm4657_vm8, %v4645_v4, %v4660_v24  ;;  %v4669_v48 = vsel %vm4657_vm8, %v4651_v10, %v4668_v12  ;;  %v4509_v31 = vand.u32 3, %v4508_v18 }
 0x441   :  { %v4670_v3 = vsel %vm4656_vm7, %v4667_v46, %v4669_v48  ;;  %v4730_v5 = vand.u32 2139095040, %v11546_v43  ;;  %v11580_v47 = vmul.f32 30.0, %v68_v62  ;;  %vm4507_vm9 = vweird.f32 %v11216_v22 }
 0x442   :  { %vm4521_vm10 = vcmp.lt.s32.totalorder %v11364_v34, 0  ;;  %v4587_v20 = vclz %v7057_v60  ;;  %v4662_v33 = vsel %vm4656_vm7, %v4659_v61, %v4661_v58  ;;  %vm11592_vm11 = vcmp.le.f32.partialorder %v4519_v39, 0.7853982 }
 0x443   :  { %v11587_v41 = vmul.u32.u64.low %v11534_v59, %v4670_v3  ;;  %v11588_v56 = vmul.u32.u64.high %v11534_v59, %v4670_v3, %v11587_v41  ;;  %v4731_v32 = vshrl.u32 %v4730_v5, 23  ;;  %v4606_v25 = vsel %vm4521_vm10, %v4605_v8, %v4581_v14 }
 0x444   :  { %v7058_v9 = vadd.s32 4294967294, %v4587_v20  ;;  %v4727_v13 = vand.u32 2147483647, %v11546_v43  ;;  %vm4510_vm12 = vcmp.lt.s32.totalorder %v4509_v31, 2  ;;  %vm4511_vm13 = vcmp.eq.s32.totalorder %v4509_v31, 0 }
 0x445   :  { %v4681_v16 = vadd.s32 1, %v11567_v55  ;;  %v7064_v51 = vadd.s32 4294967169, %v4731_v32  ;;  %vm4514_vm14 = vcmp.eq.s32.totalorder %v4509_v31, 2  ;;  %v4575_v1 = vadd.s32 %v11485_v7, %v11494_v53 }
 0x446   :  { %vm7059_vm15 = vcmp.lt.s32.totalorder %v7058_v9, 0  ;;  %v4678_v39 = vmul.u32 %v11534_v59, %v4662_v33  ;;  %v4608_v10 = vsel %vm11592_vm11, 0, %v4606_v25  ;;  %vm4680_vm0 = vc.u32 %v11588_v56, %v11566_v30 }
 0x447   :  { %v7575_v19 = vpop.eup %7574  ;;  %v4590_v4 = vsel %vm7059_vm15, 0, %v7058_v9  ;;  %v4737_v14 = vadd.s32 1, %v7064_v51  ;;  %v4682_v7 = vsel %vm4680_vm0, %v4681_v16, %v11567_v55  ;;  %v4734_v53 = vand.u32 8388607, %v4727_v13 }
 0x448   :  { %v7577_v37 = vpop.eup %7576  ;;  %v4515_v45 = vxor.u32 2147483648, %v7575_v19  ;;  %v4591_v17 = vsub.s32 32, %v4590_v4  ;;  %v4592_v26 = vshll.u32 %v11551_v28, %v4590_v4  ;;  %v4595_v50 = vsub.s32 4294967266, %v4590_v4 }
 0x449   :  { %v4512_v15 = vxor.u32 2147483648, %v7577_v37  ;;  %vm4738_vm1 = vcmp.gt.s32.totalorder %v4737_v14, 0  ;;  %v4683_v29 = vadd.s32 %v4682_v7, %v4678_v39  ;;  %v4834_v57 = vand.u32 2139095040, %v11580_v47 }
 0x44a   :  { %v4516_v59 = vsel %vm4514_vm14, %v4515_v45, %v7577_v37  ;;  %v4593_v0 = vshrl.u32 %v4575_v1, %v4591_v17  ;;  %v4596_v54 = vadd.s32 127, %v4595_v50  ;;  %v4739_v49 = vsel %vm4738_vm1, %v4737_v14, 0 }
 0x44b   :  { %v4513_v63 = vsel %vm4511_vm13, %v7575_v19, %v4512_v15  ;;  %v4684_v24 = vadd.s32 536870912, %v4683_v29  ;;  %v4612_v23 = vadd.s32 3, %v4608_v10  ;;  %v4741_v8 = vand.u32 31, %v4739_v49 }
 0x44c   :  { %v4517_v28 = vsel %vm4510_vm12, %v4513_v63, %v4516_v59  ;;  %v4594_v11 = vor.u32 %v4593_v0, %v4592_v26  ;;  %v4597_v18 = vshll.u32 %v4596_v54, 23  ;;  %v4735_v12 = vor.u32 8388608, %v4734_v53 }
 0x44d   :  { %v4518_v27 = vsel %vm4507_vm9, nan, %v4517_v28  ;;  %v11617_v46 = vshrl.u32 %v4684_v24, 30  ;;  %v4740_v55 = vshrl.u32 %v4739_v49, 5  ;;  %v4742_v60 = vsub.s32 32, %v4741_v8 }
 0x44e   :  { %v4598_v21 = vor.u32 4788187, %v4597_v18  ;;  %v4601_v62 = vcvt.s32.f32 %v4594_v11  ;;  %6848 = vst [vmem:[#allocation5 + $0x148] sm:$0xff] %v4518_v27  ;;  %v4831_v61 = vand.u32 2147483647, %v11580_v47  ;;  %v4835_v58 = vshrl.u32 %v4834_v57, 23 }
 0x44f   :  { %v4686_v31 = vshll.u32 %v11617_v46, 30  ;;  %v4744_v3 = vshll.u32 %v7717_v36, %v4741_v8  ;;  %v4747_v22 = vshll.u32 %v7718_v38, %v4741_v8  ;;  %v4745_v5 = vshrl.u32 %v7718_v38, %v4742_v60 }
 0x450   :  { %v4599_v48 = vand.u32 2147483647, %v4598_v21  ;;  %v4748_v20 = vshrl.u32 %v7719_v40, %v4742_v60  ;;  %v4750_v33 = vshll.u32 %v7719_v40, %v4741_v8  ;;  %v4751_v41 = vshrl.u32 %v7720_v42, %v4742_v60 }
 0x451   :  { %v11627_v9 = vsub.s32 %v4683_v29, %v4686_v31  ;;  %v4753_v25 = vshll.u32 %v7720_v42, %v4741_v8  ;;  %v4754_v16 = vshrl.u32 %v7721_v44, %v4742_v60  ;;  %v11631_v51 = vand.u32 3, %v4612_v23 }
 0x452   :  { %v4602_v32 = vmul.f32 %v4601_v62, %v4599_v48  ;;  %v11633_v1 = vshll.u32 %v4735_v12, 8  ;;  %v7068_v39 = vadd.s32 4294967169, %v4835_v58  ;;  %v11637_v19 = vand.u32 8388607, %v4831_v61 }
 0x453   :  { %v4689_v10 = vsub.s32 0, %v11627_v9  ;;  %v4743_v14 = vshrl.u32 %v7717_v36, %v4742_v60  ;;  %v4746_v37 = vor.u32 %v4745_v5, %v4744_v3  ;;  %v4749_v45 = vor.u32 %v4748_v20, %v4747_v22 }
 0x454   :  { %v4603_v4 = vxor.u32 2147483648, %v4602_v32  ;;  %v4752_v17 = vor.u32 %v4751_v41, %v4750_v33  ;;  %v4756_v26 = vshll.u32 %v7721_v44, %v4741_v8  ;;  %v4757_v50 = vshrl.u32 %v7722_v52, %v4742_v60 }
 0x455   :  { %v7061_v7 = vmin.u32 %v4689_v10, %v11627_v9  ;;  %v4755_v53 = vor.u32 %v4754_v16, %v4753_v25  ;;  %vm4759_vm2 = vcmp.lt.s32.totalorder %v4740_v55, 1  ;;  %vm4762_vm3 = vcmp.lt.s32.totalorder %v4740_v55, 4 }
 0x456   :  { %v4604_v15 = vsel %vm4521_vm10, %v4603_v4, %v4602_v32  ;;  %v4758_v0 = vor.u32 %v4757_v50, %v4756_v26  ;;  %v4841_v54 = vadd.s32 1, %v7068_v39  ;;  %vm4760_vm4 = vcmp.lt.s32.totalorder %v4740_v55, 2 }
 0x457   :  { %v4607_v59 = vsel %vm11592_vm11, %v11364_v34, %v4604_v15  ;;  %v4691_v29 = vclz %v7061_v7  ;;  %vm4761_vm5 = vcmp.lt.s32.totalorder %v4740_v55, 3  ;;  %v4763_v63 = vsel %vm4759_vm2, %v4743_v14, %v4746_v37 }
 0x458   :  { %7578 = vcosq.f32 %v4607_v59  ;;  %v4764_v49 = vsel %vm4762_vm3, %v4752_v17, 2102212464  ;;  %v4767_v57 = vsel %vm4759_vm2, %v4746_v37, %v4749_v45  ;;  %v4768_v6 = vsel %vm4762_vm3, %v4755_v53, 920167782 }
 0x459   :  { %7580 = vsinq.f32 %v4607_v59  ;;  %v7062_v28 = vadd.s32 4294967294, %v4691_v29  ;;  %v4765_v11 = vsel %vm4761_vm5, %v4749_v45, %v4764_v49  ;;  %v4771_v18 = vsel %vm4759_vm2, %v4749_v45, %v4752_v17 }
 0x45a   :  { %vm4615_vm6 = vcmp.eq.s32.totalorder %v11631_v51, 0  ;;  %v4679_v24 = vadd.s32 %v11566_v30, %v11588_v56  ;;  %v4769_v27 = vsel %vm4761_vm5, %v4752_v17, %v4768_v6  ;;  %v4772_v23 = vsel %vm4762_vm3, %v4758_v0, 1326507024 }
 0x45b   :  { %vm4842_vm7 = vcmp.gt.s32.totalorder %v4841_v54, 0  ;;  %vm4614_vm8 = vcmp.lt.s32.totalorder %v11631_v51, 2  ;;  %vm7063_vm9 = vcmp.lt.s32.totalorder %v7062_v28, 0  ;;  %v4766_v8 = vsel %vm4760_vm4, %v4763_v63, %v4765_v11 }
 0x45c   :  { %v4770_v21 = vsel %vm4760_vm4, %v4767_v57, %v4769_v27  ;;  %v4773_v62 = vsel %vm4761_vm5, %v4755_v53, %v4772_v23  ;;  %vm4611_vm10 = vweird.f32 %v11364_v34  ;;  %v4694_v12 = vsel %vm7063_vm9, 0, %v7062_v28 }
 0x45d   :  { %v4774_v60 = vsel %vm4760_vm4, %v4771_v18, %v4773_v62  ;;  %v11667_v30 = vmul.u32.u64.low %v11633_v1, %v4770_v21  ;;  %v11668_v56 = vmul.u32.u64.high %v11633_v1, %v4770_v21, %v11667_v30  ;;  %vm4625_vm11 = vcmp.lt.s32.totalorder %v11398_v2, 0 }
 0x45e   :  { %v4695_v58 = vsub.s32 32, %v4694_v12  ;;  %v4696_v48 = vshll.u32 %v11627_v9, %v4694_v12  ;;  %v4699_v31 = vsub.s32 4294967266, %v4694_v12  ;;  %v4843_v3 = vsel %vm4842_vm7, %v4841_v54, 0 }
 0x45f   :  { %vm4618_vm12 = vcmp.eq.s32.totalorder %v11631_v51, 2  ;;  %v11675_v22 = vmul.u32.u64.low %v11633_v1, %v4774_v60  ;;  %v11676_v5 = vmul.u32.u64.high %v11633_v1, %v4774_v60, %v11675_v22  ;;  %v4845_v55 = vand.u32 31, %v4843_v3  ;;  %v69_v51 = vld [vmem:[#allocation2 + $0x170] sm:$0xff] }
 0x460   :  { %v4697_v20 = vshrl.u32 %v4679_v24, %v4695_v58  ;;  %v4700_v33 = vadd.s32 127, %v4699_v31  ;;  %v4709_v41 = vsub.s32 4, %v11617_v46  ;;  %v4839_v32 = vor.u32 8388608, %v11637_v19 }
 0x461   :  { %v4782_v25 = vmul.u32 %v11633_v1, %v4766_v8  ;;  %v4785_v16 = vadd.s32 1, %v11668_v56  ;;  %v11682_v9 = vshrl.u32 %v4843_v3, 5  ;;  %v4846_v39 = vsub.s32 32, %v4845_v55 }
 0x462   :  { %v7579_v4 = vpop.eup %7578  ;;  %vm11686_vm13 = vcmp.le.f32.partialorder %v4623_v35, 0.7853982  ;;  %v4698_v14 = vor.u32 %v4697_v20, %v4696_v48  ;;  %v4701_v37 = vshll.u32 %v4700_v33, 23  ;;  %v4848_v45 = vshll.u32 %v7717_v36, %v4845_v55 }
 0x463   :  { %v4851_v19 = vshll.u32 %v7718_v38, %v4845_v55  ;;  %v7581_v17 = vpop.eup %7580  ;;  %v4619_v1 = vxor.u32 2147483648, %v7579_v4  ;;  %vm4784_vm14 = vc.u32 %v11676_v5, %v11667_v30  ;;  %v4854_v26 = vshll.u32 %v7719_v40, %v4845_v55 }
 0x464   :  { %v4857_v50 = vshll.u32 %v7720_v42, %v4845_v55  ;;  %v4616_v15 = vxor.u32 2147483648, %v7581_v17  ;;  %v4702_v35 = vor.u32 4788187, %v4701_v37  ;;  %v4705_v7 = vcvt.s32.f32 %v4698_v14 }
 0x465   :  { %v4786_v53 = vsel %vm4784_vm14, %v4785_v16, %v11668_v56  ;;  %v4620_v59 = vsel %vm4618_vm12, %v4619_v1, %v7581_v17  ;;  %v4849_v54 = vshrl.u32 %v7718_v38, %v4846_v39  ;;  %v4852_v29 = vshrl.u32 %v7719_v40, %v4846_v39 }
 0x466   :  { %v4787_v0 = vadd.s32 %v4786_v53, %v4782_v25  ;;  %v4617_v63 = vsel %vm4615_vm6, %v7579_v4, %v4616_v15  ;;  %v4703_v49 = vand.u32 2147483647, %v4702_v35  ;;  %v4855_v57 = vshrl.u32 %v7720_v42, %v4846_v39 }
 0x467   :  { %v4858_v28 = vshrl.u32 %v7721_v44, %v4846_v39  ;;  %v4621_v11 = vsel %vm4614_vm8, %v4617_v63, %v4620_v59  ;;  %v4710_v6 = vsel %vm4625_vm11, %v4709_v41, %v11617_v46  ;;  %v4850_v24 = vor.u32 %v4849_v54, %v4848_v45  ;;  %v70_v45 = vld [vmem:[#allocation2 + $0x178] sm:$0xff] }
 0x468   :  { %v4788_v18 = vadd.s32 536870912, %v4787_v0  ;;  %v4622_v27 = vsel %vm4611_vm10, nan, %v4621_v11  ;;  %v4706_v23 = vmul.f32 %v4705_v7, %v4703_v49  ;;  %v4853_v8 = vor.u32 %v4852_v29, %v4851_v19 }
 0x469   :  { %v4859_v21 = vor.u32 %v4858_v28, %v4857_v50  ;;  %v4860_v12 = vshll.u32 %v7721_v44, %v4845_v55  ;;  %v4861_v60 = vshrl.u32 %v7722_v52, %v4846_v39  ;;  %vm4863_vm15 = vcmp.lt.s32.totalorder %v11682_v9, 1  ;;  %6849 = vst [vmem:[#allocation5 + $0x150] sm:$0xff] %v4622_v27 }
 0x46a   :  { %v4789_v62 = vshrl.u32 %v4788_v18, 30  ;;  %v4707_v56 = vxor.u32 2147483648, %v4706_v23  ;;  %v4856_v58 = vor.u32 %v4855_v57, %v4854_v26  ;;  %vm4866_vm0 = vcmp.lt.s32.totalorder %v11682_v9, 4 }
 0x46b   :  { %v11716_v46 = vshll.u32 %v4839_v32, 8  ;;  %v4712_v34 = vsel %vm11686_vm13, 0, %v4710_v6  ;;  %vm4864_vm1 = vcmp.lt.s32.totalorder %v11682_v9, 2  ;;  %vm4865_vm2 = vcmp.lt.s32.totalorder %v11682_v9, 3 }
 0x46c   :  { %v4790_v48 = vshll.u32 %v4789_v62, 30  ;;  %v4708_v31 = vsel %vm4625_vm11, %v4707_v56, %v4706_v23  ;;  %v4862_v3 = vor.u32 %v4861_v60, %v4860_v12  ;;  %v4871_v22 = vsel %vm4863_vm15, %v4850_v24, %v4853_v8 }
 0x46d   :  { %v4872_v55 = vsel %vm4866_vm0, %v4859_v21, 920167782  ;;  %v11728_v20 = vmul.f32 30.0, %v69_v51  ;;  %v4711_v33 = vsel %vm11686_vm13, %v11398_v2, %v4708_v31  ;;  %v4847_v32 = vshrl.u32 %v7717_v36, %v4846_v39 }
 0x46e   :  { %v11733_v41 = vsub.s32 %v4787_v0, %v4790_v48  ;;  %7582 = vcosq.f32 %v4711_v33  ;;  %v4716_v25 = vadd.s32 3, %v4712_v34  ;;  %v4868_v16 = vsel %vm4866_vm0, %v4856_v58, 2102212464 }
 0x46f   :  { %v4873_v4 = vsel %vm4865_vm2, %v4856_v58, %v4872_v55  ;;  %7584 = vsinq.f32 %v4711_v33  ;;  %v4813_v37 = vsub.s32 4, %v4789_v62  ;;  %v4875_v19 = vsel %vm4863_vm15, %v4853_v8, %v4856_v58 }
 0x470   :  { %v4793_v14 = vsub.s32 0, %v11733_v41  ;;  %v4874_v10 = vsel %vm4864_vm1, %v4871_v22, %v4873_v4  ;;  %v4876_v39 = vsel %vm4866_vm0, %v4862_v3, 1326507024  ;;  %v4867_v50 = vsel %vm4863_vm15, %v4847_v32, %v4850_v24 }
 0x471   :  { %v11748_v17 = vmul.u32.u64.low %v11716_v46, %v4874_v10  ;;  %v11749_v1 = vmul.u32.u64.high %v11716_v46, %v4874_v10, %v11748_v17  ;;  %v4869_v15 = vsel %vm4865_vm2, %v4853_v8, %v4868_v16  ;;  %v4877_v35 = vsel %vm4865_vm2, %v4859_v21, %v4876_v39 }
 0x472   :  { %v7065_v26 = vmin.u32 %v4793_v14, %v11733_v41  ;;  %v4717_v7 = vand.u32 3, %v4716_v25  ;;  %v4878_v53 = vsel %vm4864_vm1, %v4875_v19, %v4877_v35  ;;  %v4938_v59 = vand.u32 2139095040, %v11728_v20 }
 0x473   :  { %v11762_v0 = vmul.f32 30.0, %v70_v45  ;;  %vm4715_vm3 = vweird.f32 %v11398_v2  ;;  %vm4729_vm4 = vcmp.lt.s32.totalorder %v11546_v43, 0  ;;  %v4870_v29 = vsel %vm4864_vm1, %v4867_v50, %v4869_v15 }
 0x474   :  { %v4795_v54 = vclz %v7065_v26  ;;  %v11769_v63 = vmul.u32.u64.low %v11716_v46, %v4878_v53  ;;  %v11770_v49 = vmul.u32.u64.high %v11716_v46, %v4878_v53, %v11769_v63  ;;  %v4939_v57 = vshrl.u32 %v4938_v59, 23 }
 0x475   :  { %vm11774_vm5 = vcmp.le.f32.partialorder %v4727_v13, 0.7853982  ;;  %v4814_v6 = vsel %vm4729_vm4, %v4813_v37, %v4789_v62  ;;  %v4935_v18 = vand.u32 2147483647, %v11728_v20  ;;  %vm4718_vm6 = vcmp.lt.s32.totalorder %v4717_v7, 2 }
 0x476   :  { %v7066_v11 = vadd.s32 4294967294, %v4795_v54  ;;  %vm4719_vm7 = vcmp.eq.s32.totalorder %v4717_v7, 0  ;;  %v4889_v9 = vadd.s32 1, %v11749_v1  ;;  %v7072_v24 = vadd.s32 4294967169, %v4939_v57 }
 0x477   :  { %vm4722_vm8 = vcmp.eq.s32.totalorder %v4717_v7, 2  ;;  %v4783_v27 = vadd.s32 %v11667_v30, %v11676_v5  ;;  %v4886_v13 = vmul.u32 %v11716_v46, %v4870_v29  ;;  %v4816_v21 = vsel %vm11774_vm5, 0, %v4814_v6 }
 0x478   :  { %vm7067_vm9 = vcmp.lt.s32.totalorder %v7066_v11, 0  ;;  %v7583_v23 = vpop.eup %7582  ;;  %vm4888_vm10 = vc.u32 %v11770_v49, %v11748_v17  ;;  %v4945_v62 = vadd.s32 1, %v7072_v24  ;;  %v4942_v5 = vand.u32 8388607, %v4935_v18 }
 0x479   :  { %v4798_v8 = vsel %vm7067_vm9, 0, %v7066_v11  ;;  %v7585_v12 = vpop.eup %7584  ;;  %v4723_v60 = vxor.u32 2147483648, %v7583_v23  ;;  %v4890_v30 = vsel %vm4888_vm10, %v4889_v9, %v11749_v1  ;;  %v5042_v33 = vand.u32 2139095040, %v11762_v0 }
 0x47a   :  { %v4799_v51 = vsub.s32 32, %v4798_v8  ;;  %v4800_v56 = vshll.u32 %v11733_v41, %v4798_v8  ;;  %v4803_v58 = vsub.s32 4294967266, %v4798_v8  ;;  %v4720_v34 = vxor.u32 2147483648, %v7585_v12 }
 0x47b   :  { %vm4946_vm11 = vcmp.gt.s32.totalorder %v4945_v62, 0  ;;  %v4724_v46 = vsel %vm4722_vm8, %v4723_v60, %v7585_v12  ;;  %v4891_v3 = vadd.s32 %v4890_v30, %v4886_v13  ;;  %v4820_v14 = vadd.s32 3, %v4816_v21 }
 0x47c   :  { %v4801_v48 = vshrl.u32 %v4783_v27, %v4799_v51  ;;  %v4804_v31 = vadd.s32 127, %v4803_v58  ;;  %v4721_v22 = vsel %vm4719_vm7, %v7583_v23, %v4720_v34  ;;  %v4947_v55 = vsel %vm4946_vm11, %v4945_v62, 0 }
 0x47d   :  { %v4725_v41 = vsel %vm4718_vm6, %v4721_v22, %v4724_v46  ;;  %v4892_v16 = vadd.s32 536870912, %v4891_v3  ;;  %v4949_v37 = vand.u32 31, %v4947_v55  ;;  %v4943_v39 = vor.u32 8388608, %v4942_v5 }
 0x47e   :  { %v4802_v32 = vor.u32 %v4801_v48, %v4800_v56  ;;  %v4805_v25 = vshll.u32 %v4804_v31, 23  ;;  %v4726_v4 = vsel %vm4715_vm3, nan, %v4725_v41  ;;  %v4948_v1 = vshrl.u32 %v4947_v55, 5 }
 0x47f   :  { %v11799_v19 = vshrl.u32 %v4892_v16, 30  ;;  %6850 = vst [vmem:[#allocation5 + $0x158] sm:$0xff] %v4726_v4  ;;  %v4950_v26 = vsub.s32 32, %v4949_v37  ;;  %v5039_v50 = vand.u32 2147483647, %v11762_v0  ;;  %v5043_v15 = vshrl.u32 %v5042_v33, 23 }
 0x480   :  { %v4806_v10 = vor.u32 4788187, %v4805_v25  ;;  %v4809_v45 = vcvt.s32.f32 %v4802_v32  ;;  %v4952_v53 = vshll.u32 %v7717_v36, %v4949_v37  ;;  %v4955_v2 = vshll.u32 %v7718_v38, %v4949_v37 }
 0x481   :  { %v4894_v7 = vshll.u32 %v11799_v19, 30  ;;  %v4953_v59 = vshrl.u32 %v7718_v38, %v4950_v26  ;;  %v4956_v54 = vshrl.u32 %v7719_v40, %v4950_v26  ;;  %v4958_v29 = vshll.u32 %v7719_v40, %v4949_v37 }
 0x482   :  { %v4807_v35 = vand.u32 2147483647, %v4806_v10  ;;  %v4959_v63 = vshrl.u32 %v7720_v42, %v4950_v26  ;;  %v4961_v6 = vshll.u32 %v7720_v42, %v4949_v37  ;;  %v4962_v9 = vshrl.u32 %v7721_v44, %v4950_v26 }
 0x483   :  { %v11809_v11 = vsub.s32 %v4891_v3, %v4894_v7  ;;  %v11813_v24 = vand.u32 3, %v4820_v14  ;;  %v11815_v27 = vshll.u32 %v4943_v39, 8  ;;  %v7076_v13 = vadd.s32 4294967169, %v5043_v15 }
 0x484   :  { %v4810_v57 = vmul.f32 %v4809_v45, %v4807_v35  ;;  %v11819_v23 = vand.u32 8388607, %v5039_v50  ;;  %v4951_v62 = vshrl.u32 %v7717_v36, %v4950_v26  ;;  %v4954_v12 = vor.u32 %v4953_v59, %v4952_v53 }
 0x485   :  { %v4897_v21 = vsub.s32 0, %v11809_v11  ;;  %v4957_v60 = vor.u32 %v4956_v54, %v4955_v2  ;;  %v4960_v51 = vor.u32 %v4959_v63, %v4958_v29  ;;  %v4964_v56 = vshll.u32 %v7721_v44, %v4949_v37 }
 0x486   :  { %v4811_v8 = vxor.u32 2147483648, %v4810_v57  ;;  %v4965_v58 = vshrl.u32 %v7722_v52, %v4950_v26  ;;  %v4963_v5 = vor.u32 %v4962_v9, %v4961_v6  ;;  %vm4967_vm12 = vcmp.lt.s32.totalorder %v4948_v1, 1 }
 0x487   :  { %v7069_v30 = vmin.u32 %v4897_v21, %v11809_v11  ;;  %vm4970_vm13 = vcmp.lt.s32.totalorder %v4948_v1, 4  ;;  %v5049_v31 = vadd.s32 1, %v7076_v13  ;;  %vm4968_vm14 = vcmp.lt.s32.totalorder %v4948_v1, 2 }
 0x488   :  { %v4812_v34 = vsel %vm4729_vm4, %v4811_v8, %v4810_v57  ;;  %v4966_v48 = vor.u32 %v4965_v58, %v4964_v56  ;;  %vm4969_vm15 = vcmp.lt.s32.totalorder %v4948_v1, 3  ;;  %v4971_v22 = vsel %vm4967_vm12, %v4951_v62, %v4954_v12 }
 0x489   :  { %v4815_v46 = vsel %vm11774_vm5, %v11546_v43, %v4812_v34  ;;  %v4899_v3 = vclz %v7069_v30  ;;  %v4972_v55 = vsel %vm4970_vm13, %v4960_v51, 2102212464  ;;  %v4975_v33 = vsel %vm4967_vm12, %v4954_v12, %v4957_v60 }
 0x48a   :  { %7586 = vcosq.f32 %v4815_v46  ;;  %v4973_v32 = vsel %vm4969_vm15, %v4957_v60, %v4972_v55  ;;  %v4976_v28 = vsel %vm4970_vm13, %v4963_v5, 920167782  ;;  %v4979_v25 = vsel %vm4967_vm12, %v4957_v60, %v4960_v51 }
 0x48b   :  { %7588 = vsinq.f32 %v4815_v46  ;;  %v7070_v41 = vadd.s32 4294967294, %v4899_v3  ;;  %vm4823_vm0 = vcmp.eq.s32.totalorder %v11813_v24, 0  ;;  %v4887_v16 = vadd.s32 %v11748_v17, %v11770_v49 }
 0x48c   :  { %v4977_v4 = vsel %vm4969_vm15, %v4960_v51, %v4976_v28  ;;  %v4980_v14 = vsel %vm4970_vm13, %v4966_v48, 1326507024  ;;  %vm5050_vm1 = vcmp.gt.s32.totalorder %v5049_v31, 0  ;;  %vm4822_vm2 = vcmp.lt.s32.totalorder %v11813_v24, 2 }
 0x48d   :  { %vm7071_vm3 = vcmp.lt.s32.totalorder %v7070_v41, 0  ;;  %v4974_v37 = vsel %vm4968_vm14, %v4971_v22, %v4973_v32  ;;  %v4978_v10 = vsel %vm4968_vm14, %v4975_v33, %v4977_v4  ;;  %v4981_v45 = vsel %vm4969_vm15, %v4963_v5, %v4980_v14 }
 0x48e   :  { %vm4819_vm4 = vweird.f32 %v11546_v43  ;;  %v4902_v39 = vsel %vm7071_vm3, 0, %v7070_v41  ;;  %v4982_v26 = vsel %vm4968_vm14, %v4979_v25, %v4981_v45  ;;  %vm4833_vm5 = vcmp.lt.s32.totalorder %v11580_v47, 0 }
 0x48f   :  { %v11849_v17 = vmul.u32.u64.low %v11815_v27, %v4978_v10  ;;  %v11850_v49 = vmul.u32.u64.high %v11815_v27, %v4978_v10, %v11849_v17  ;;  %v4903_v15 = vsub.s32 32, %v4902_v39  ;;  %v4904_v35 = vshll.u32 %v11809_v11, %v4902_v39 }
 0x490   :  { %v4907_v7 = vsub.s32 4294967266, %v4902_v39  ;;  %v5051_v53 = vsel %vm5050_vm1, %v5049_v31, 0  ;;  %vm4826_vm6 = vcmp.eq.s32.totalorder %v11813_v24, 2  ;;  %v4917_v63 = vsub.s32 4, %v11799_v19  ;;  %v71_v24 = vld [vmem:[#allocation2 + $0x180] sm:$0xff] }
 0x491   :  { %v11857_v2 = vmul.u32.u64.low %v11815_v27, %v4982_v26  ;;  %v11858_v59 = vmul.u32.u64.high %v11815_v27, %v4982_v26, %v11857_v2  ;;  %v5053_v1 = vand.u32 31, %v5051_v53  ;;  %v4905_v54 = vshrl.u32 %v4887_v16, %v4903_v15 }
 0x492   :  { %v4908_v29 = vadd.s32 127, %v4907_v7  ;;  %v5047_v57 = vor.u32 8388608, %v11819_v23  ;;  %v4990_v6 = vmul.u32 %v11815_v27, %v4974_v37  ;;  %v4993_v9 = vadd.s32 1, %v11850_v49 }
 0x493   :  { %v11864_v11 = vshrl.u32 %v5051_v53, 5  ;;  %v5054_v13 = vsub.s32 32, %v5053_v1  ;;  %vm11868_vm7 = vcmp.le.f32.partialorder %v4831_v61, 0.7853982  ;;  %v4906_v62 = vor.u32 %v4905_v54, %v4904_v35 }
 0x494   :  { %v7587_v8 = vpop.eup %7586  ;;  %v4909_v12 = vshll.u32 %v4908_v29, 23  ;;  %v5056_v60 = vshll.u32 %v7717_v36, %v5053_v1  ;;  %v5059_v23 = vshll.u32 %v7718_v38, %v5053_v1  ;;  %vm4992_vm8 = vc.u32 %v11858_v59, %v11849_v17 }
 0x495   :  { %v7589_v51 = vpop.eup %7588  ;;  %v4827_v27 = vxor.u32 2147483648, %v7587_v8  ;;  %v5062_v56 = vshll.u32 %v7719_v40, %v5053_v1  ;;  %v5065_v58 = vshll.u32 %v7720_v42, %v5053_v1  ;;  %v4913_v30 = vcvt.s32.f32 %v4906_v62 }
 0x496   :  { %v4824_v34 = vxor.u32 2147483648, %v7589_v51  ;;  %v4910_v61 = vor.u32 4788187, %v4909_v12  ;;  %v4994_v5 = vsel %vm4992_vm8, %v4993_v9, %v11850_v49  ;;  %v5057_v31 = vshrl.u32 %v7718_v38, %v5054_v13 }
 0x497   :  { %v4828_v46 = vsel %vm4826_vm6, %v4827_v27, %v7589_v51  ;;  %v4995_v48 = vadd.s32 %v4994_v5, %v4990_v6  ;;  %v5060_v3 = vshrl.u32 %v7719_v40, %v5054_v13  ;;  %v5063_v33 = vshrl.u32 %v7720_v42, %v5054_v13 }
 0x498   :  { %v4825_v22 = vsel %vm4823_vm0, %v7587_v8, %v4824_v34  ;;  %v4911_v55 = vand.u32 2147483647, %v4910_v61  ;;  %v5066_v41 = vshrl.u32 %v7721_v44, %v5054_v13  ;;  %v4918_v28 = vsel %vm4833_vm5, %v4917_v63, %v11799_v19 }
 0x499   :  { %v4829_v32 = vsel %vm4822_vm2, %v4825_v22, %v4828_v46  ;;  %v4996_v25 = vadd.s32 536870912, %v4995_v48  ;;  %v5058_v16 = vor.u32 %v5057_v31, %v5056_v60  ;;  %v5061_v37 = vor.u32 %v5060_v3, %v5059_v23  ;;  %v72_v60 = vld [vmem:[#allocation2 + $0x188] sm:$0xff] }
 0x49a   :  { %v4830_v4 = vsel %vm4819_vm4, nan, %v4829_v32  ;;  %v4914_v14 = vmul.f32 %v4913_v30, %v4911_v55  ;;  %v5067_v10 = vor.u32 %v5066_v41, %v5065_v58  ;;  %v5068_v39 = vshll.u32 %v7721_v44, %v5053_v1 }
 0x49b   :  { %v4997_v45 = vshrl.u32 %v4996_v25, 30  ;;  %v5069_v26 = vshrl.u32 %v7722_v52, %v5054_v13  ;;  %vm5071_vm9 = vcmp.lt.s32.totalorder %v11864_v11, 1  ;;  %6851 = vst [vmem:[#allocation5 + $0x160] sm:$0xff] %v4830_v4  ;;  %v5064_v15 = vor.u32 %v5063_v33, %v5062_v56 }
 0x49c   :  { %v4915_v49 = vxor.u32 2147483648, %v4914_v14  ;;  %vm5074_vm10 = vcmp.lt.s32.totalorder %v11864_v11, 4  ;;  %v11898_v19 = vshll.u32 %v5047_v57, 8  ;;  %v4920_v43 = vsel %vm11868_vm7, 0, %v4918_v28 }
 0x49d   :  { %v4998_v35 = vshll.u32 %v4997_v45, 30  ;;  %vm5072_vm11 = vcmp.lt.s32.totalorder %v11864_v11, 2  ;;  %vm5073_vm12 = vcmp.lt.s32.totalorder %v11864_v11, 3  ;;  %v5070_v53 = vor.u32 %v5069_v26, %v5068_v39 }
 0x49e   :  { %v4916_v7 = vsel %vm4833_vm5, %v4915_v49, %v4914_v14  ;;  %v5079_v2 = vsel %vm5071_vm9, %v5058_v16, %v5061_v37  ;;  %v5080_v1 = vsel %vm5074_vm10, %v5067_v10, 920167782  ;;  %v11910_v54 = vmul.f32 30.0, %v71_v24 }
 0x49f   :  { %v4919_v29 = vsel %vm11868_vm7, %v11580_v47, %v4916_v7  ;;  %v11915_v63 = vsub.s32 %v4995_v48, %v4998_v35  ;;  %v5055_v57 = vshrl.u32 %v7717_v36, %v5054_v13  ;;  %v4924_v6 = vadd.s32 3, %v4920_v43 }
 0x4a0   :  { %7590 = vcosq.f32 %v4919_v29  ;;  %v5076_v9 = vsel %vm5074_vm10, %v5064_v15, 2102212464  ;;  %v5081_v8 = vsel %vm5073_vm12, %v5064_v15, %v5080_v1  ;;  %v5021_v12 = vsub.s32 4, %v4997_v45 }
 0x4a1   :  { %7592 = vsinq.f32 %v4919_v29  ;;  %v5001_v62 = vsub.s32 0, %v11915_v63  ;;  %v5082_v21 = vsel %vm5072_vm11, %v5079_v2, %v5081_v8  ;;  %v5083_v23 = vsel %vm5071_vm9, %v5061_v37, %v5064_v15 }
 0x4a2   :  { %v5084_v13 = vsel %vm5074_vm10, %v5070_v53, 1326507024  ;;  %v11930_v51 = vmul.u32.u64.low %v11898_v19, %v5082_v21  ;;  %v11931_v27 = vmul.u32.u64.high %v11898_v19, %v5082_v21, %v11930_v51  ;;  %v5075_v58 = vsel %vm5071_vm9, %v5055_v57, %v5058_v16 }
 0x4a3   :  { %v7073_v56 = vmin.u32 %v5001_v62, %v11915_v63  ;;  %v5077_v34 = vsel %vm5073_vm12, %v5061_v37, %v5076_v9  ;;  %v5085_v61 = vsel %vm5073_vm12, %v5067_v10, %v5084_v13  ;;  %v4925_v30 = vand.u32 3, %v4924_v6 }
 0x4a4   :  { %v5086_v5 = vsel %vm5072_vm11, %v5083_v23, %v5085_v61  ;;  %v5146_v46 = vand.u32 2139095040, %v11910_v54  ;;  %v11944_v48 = vmul.f32 30.0, %v72_v60  ;;  %vm4923_vm13 = vweird.f32 %v11580_v47 }
 0x4a5   :  { %vm4937_vm14 = vcmp.lt.s32.totalorder %v11728_v20, 0  ;;  %v5003_v31 = vclz %v7073_v56  ;;  %v5078_v3 = vsel %vm5072_vm11, %v5075_v58, %v5077_v34  ;;  %vm11956_vm15 = vcmp.le.f32.partialorder %v4935_v18, 0.7853982 }
 0x4a6   :  { %v11951_v22 = vmul.u32.u64.low %v11898_v19, %v5086_v5  ;;  %v11952_v55 = vmul.u32.u64.high %v11898_v19, %v5086_v5, %v11951_v22  ;;  %v5147_v33 = vshrl.u32 %v5146_v46, 23  ;;  %v5022_v28 = vsel %vm4937_vm14, %v5021_v12, %v4997_v45 }
 0x4a7   :  { %v7074_v32 = vadd.s32 4294967294, %v5003_v31  ;;  %v5143_v25 = vand.u32 2147483647, %v11910_v54  ;;  %vm4926_vm0 = vcmp.lt.s32.totalorder %v4925_v30, 2  ;;  %vm4927_vm1 = vcmp.eq.s32.totalorder %v4925_v30, 0 }
 0x4a8   :  { %v5097_v11 = vadd.s32 1, %v11931_v27  ;;  %v7080_v16 = vadd.s32 4294967169, %v5147_v33  ;;  %vm4930_vm2 = vcmp.eq.s32.totalorder %v4925_v30, 2  ;;  %v4991_v4 = vadd.s32 %v11849_v17, %v11858_v59 }
 0x4a9   :  { %vm7075_vm3 = vcmp.lt.s32.totalorder %v7074_v32, 0  ;;  %v5094_v18 = vmul.u32 %v11898_v19, %v5078_v3  ;;  %v5024_v10 = vsel %vm11956_vm15, 0, %v5022_v28  ;;  %vm5096_vm4 = vc.u32 %v11952_v55, %v11930_v51 }
 0x4aa   :  { %v7591_v14 = vpop.eup %7590  ;;  %v5006_v37 = vsel %vm7075_vm3, 0, %v7074_v32  ;;  %v5153_v45 = vadd.s32 1, %v7080_v16  ;;  %v5098_v17 = vsel %vm5096_vm4, %v5097_v11, %v11931_v27  ;;  %v5150_v59 = vand.u32 8388607, %v5143_v25 }
 0x4ab   :  { %v7593_v39 = vpop.eup %7592  ;;  %v4931_v26 = vxor.u32 2147483648, %v7591_v14  ;;  %v5007_v24 = vsub.s32 32, %v5006_v37  ;;  %v5008_v49 = vshll.u32 %v11915_v63, %v5006_v37  ;;  %v5011_v15 = vsub.s32 4294967266, %v5006_v37 }
 0x4ac   :  { %v4928_v43 = vxor.u32 2147483648, %v7593_v39  ;;  %vm5154_vm5 = vcmp.gt.s32.totalorder %v5153_v45, 0  ;;  %v5099_v53 = vadd.s32 %v5098_v17, %v5094_v18  ;;  %v5250_v29 = vand.u32 2139095040, %v11944_v48 }
 0x4ad   :  { %v4932_v19 = vsel %vm4930_vm2, %v4931_v26, %v7593_v39  ;;  %v5009_v35 = vshrl.u32 %v4991_v4, %v5007_v24  ;;  %v5012_v7 = vadd.s32 127, %v5011_v15  ;;  %v5155_v1 = vsel %vm5154_vm5, %v5153_v45, 0 }
 0x4ae   :  { %v4929_v2 = vsel %vm4927_vm1, %v7591_v14, %v4928_v43  ;;  %v5100_v9 = vadd.s32 536870912, %v5099_v53  ;;  %v5028_v62 = vadd.s32 3, %v5024_v10  ;;  %v5157_v12 = vand.u32 31, %v5155_v1 }
 0x4af   :  { %v4933_v63 = vsel %vm4926_vm0, %v4929_v2, %v4932_v19  ;;  %v5010_v57 = vor.u32 %v5009_v35, %v5008_v49  ;;  %v5013_v6 = vshll.u32 %v5012_v7, 23  ;;  %v5151_v13 = vor.u32 8388608, %v5150_v59 }
 0x4b0   :  { %v4934_v8 = vsel %vm4923_vm13, nan, %v4933_v63  ;;  %v11981_v23 = vshrl.u32 %v5100_v9, 30  ;;  %v5156_v27 = vshrl.u32 %v5155_v1, 5  ;;  %v5158_v56 = vsub.s32 32, %v5157_v12 }
 0x4b1   :  { %v5014_v21 = vor.u32 4788187, %v5013_v6  ;;  %v5017_v60 = vcvt.s32.f32 %v5010_v57  ;;  %6852 = vst [vmem:[#allocation5 + $0x168] sm:$0xff] %v4934_v8  ;;  %v5247_v58 = vand.u32 2147483647, %v11944_v48  ;;  %v5251_v34 = vshrl.u32 %v5250_v29, 23 }
 0x4b2   :  { %v5102_v30 = vshll.u32 %v11981_v23, 30  ;;  %v5160_v5 = vshll.u32 %v7717_v36, %v5157_v12  ;;  %v5163_v47 = vshll.u32 %v7718_v38, %v5157_v12  ;;  %v5161_v46 = vshrl.u32 %v7718_v38, %v5158_v56 }
 0x4b3   :  { %v5015_v61 = vand.u32 2147483647, %v5014_v21  ;;  %v5164_v31 = vshrl.u32 %v7719_v40, %v5158_v56  ;;  %v5166_v3 = vshll.u32 %v7719_v40, %v5157_v12  ;;  %v5167_v22 = vshrl.u32 %v7720_v42, %v5158_v56 }
 0x4b4   :  { %v11991_v32 = vsub.s32 %v5099_v53, %v5102_v30  ;;  %v5169_v28 = vshll.u32 %v7720_v42, %v5157_v12  ;;  %v5170_v11 = vshrl.u32 %v7721_v44, %v5158_v56  ;;  %v11995_v16 = vand.u32 3, %v5028_v62 }
 0x4b5   :  { %v5018_v33 = vmul.f32 %v5017_v60, %v5015_v61  ;;  %v11997_v4 = vshll.u32 %v5151_v13, 8  ;;  %v7084_v18 = vadd.s32 4294967169, %v5251_v34  ;;  %v12001_v14 = vand.u32 8388607, %v5247_v58 }
 0x4b6   :  { %v5105_v10 = vsub.s32 0, %v11991_v32  ;;  %v5159_v45 = vshrl.u32 %v7717_v36, %v5158_v56  ;;  %v5162_v39 = vor.u32 %v5161_v46, %v5160_v5  ;;  %v5165_v26 = vor.u32 %v5164_v31, %v5163_v47 }
 0x4b7   :  { %v5019_v37 = vxor.u32 2147483648, %v5018_v33  ;;  %v5168_v24 = vor.u32 %v5167_v22, %v5166_v3  ;;  %v5172_v49 = vshll.u32 %v7721_v44, %v5157_v12  ;;  %v5173_v15 = vshrl.u32 %v7722_v52, %v5158_v56 }
 0x4b8   :  { %v7077_v17 = vmin.u32 %v5105_v10, %v11991_v32  ;;  %v5171_v59 = vor.u32 %v5170_v11, %v5169_v28  ;;  %vm5175_vm6 = vcmp.lt.s32.totalorder %v5156_v27, 1  ;;  %vm5178_vm7 = vcmp.lt.s32.totalorder %v5156_v27, 4 }
 0x4b9   :  { %v5020_v43 = vsel %vm4937_vm14, %v5019_v37, %v5018_v33  ;;  %v5174_v35 = vor.u32 %v5173_v15, %v5172_v49  ;;  %v5257_v7 = vadd.s32 1, %v7084_v18  ;;  %vm5176_vm8 = vcmp.lt.s32.totalorder %v5156_v27, 2 }
 0x4ba   :  { %v5023_v19 = vsel %vm11956_vm15, %v11728_v20, %v5020_v43  ;;  %v5107_v53 = vclz %v7077_v17  ;;  %vm5177_vm9 = vcmp.lt.s32.totalorder %v5156_v27, 3  ;;  %v5179_v2 = vsel %vm5175_vm6, %v5159_v45, %v5162_v39 }
 0x4bb   :  { %7594 = vcosq.f32 %v5023_v19  ;;  %v5180_v1 = vsel %vm5178_vm7, %v5168_v24, 2102212464  ;;  %v5183_v29 = vsel %vm5175_vm6, %v5162_v39, %v5165_v26  ;;  %v5184_v41 = vsel %vm5178_vm7, %v5171_v59, 920167782 }
 0x4bc   :  { %7596 = vsinq.f32 %v5023_v19  ;;  %v7078_v63 = vadd.s32 4294967294, %v5107_v53  ;;  %v5181_v57 = vsel %vm5177_vm9, %v5165_v26, %v5180_v1  ;;  %v5187_v6 = vsel %vm5175_vm6, %v5165_v26, %v5168_v24 }
 0x4bd   :  { %vm5031_vm10 = vcmp.eq.s32.totalorder %v11995_v16, 0  ;;  %v5095_v9 = vadd.s32 %v11930_v51, %v11952_v55  ;;  %v5185_v8 = vsel %vm5177_vm9, %v5168_v24, %v5184_v41  ;;  %v5188_v62 = vsel %vm5178_vm7, %v5174_v35, 1326507024 }
 0x4be   :  { %vm5258_vm11 = vcmp.gt.s32.totalorder %v5257_v7, 0  ;;  %vm5030_vm12 = vcmp.lt.s32.totalorder %v11995_v16, 2  ;;  %vm7079_vm13 = vcmp.lt.s32.totalorder %v7078_v63, 0  ;;  %v5182_v12 = vsel %vm5176_vm8, %v5179_v2, %v5181_v57 }
 0x4bf   :  { %v5186_v21 = vsel %vm5176_vm8, %v5183_v29, %v5185_v8  ;;  %v5189_v60 = vsel %vm5177_vm9, %v5171_v59, %v5188_v62  ;;  %vm5027_vm14 = vweird.f32 %v11728_v20  ;;  %v5110_v13 = vsel %vm7079_vm13, 0, %v7078_v63 }
 0x4c0   :  { %v5190_v56 = vsel %vm5176_vm8, %v5187_v6, %v5189_v60  ;;  %v12031_v51 = vmul.u32.u64.low %v11997_v4, %v5186_v21  ;;  %v12032_v55 = vmul.u32.u64.high %v11997_v4, %v5186_v21, %v12031_v51  ;;  %vm5041_vm15 = vcmp.lt.s32.totalorder %v11762_v0, 0 }
 0x4c1   :  { %v5111_v34 = vsub.s32 32, %v5110_v13  ;;  %v5112_v61 = vshll.u32 %v11991_v32, %v5110_v13  ;;  %v5115_v30 = vsub.s32 4294967266, %v5110_v13  ;;  %v5259_v5 = vsel %vm5258_vm11, %v5257_v7, 0 }
 0x4c2   :  { %vm5034_vm0 = vcmp.eq.s32.totalorder %v11995_v16, 2  ;;  %v12039_v47 = vmul.u32.u64.low %v11997_v4, %v5190_v56  ;;  %v12040_v46 = vmul.u32.u64.high %v11997_v4, %v5190_v56, %v12039_v47  ;;  %v5261_v27 = vand.u32 31, %v5259_v5  ;;  %v73_v16 = vld [vmem:[#allocation2 + $0x190] sm:$0xff] }
 0x4c3   :  { %v5113_v31 = vshrl.u32 %v5095_v9, %v5111_v34  ;;  %v5116_v3 = vadd.s32 127, %v5115_v30  ;;  %v5125_v22 = vsub.s32 4, %v11981_v23  ;;  %v5255_v33 = vor.u32 8388608, %v12001_v14 }
 0x4c4   :  { %v5198_v28 = vmul.u32 %v11997_v4, %v5182_v12  ;;  %v5201_v11 = vadd.s32 1, %v12032_v55  ;;  %v12046_v32 = vshrl.u32 %v5259_v5, 5  ;;  %v5262_v18 = vsub.s32 32, %v5261_v27 }
 0x4c5   :  { %v7595_v37 = vpop.eup %7594  ;;  %vm12050_vm1 = vcmp.le.f32.partialorder %v5039_v50, 0.7853982  ;;  %v5114_v45 = vor.u32 %v5113_v31, %v5112_v61  ;;  %v5117_v39 = vshll.u32 %v5116_v3, 23  ;;  %v5264_v26 = vshll.u32 %v7717_v36, %v5261_v27 }
 0x4c6   :  { %v5267_v14 = vshll.u32 %v7718_v38, %v5261_v27  ;;  %v7597_v24 = vpop.eup %7596  ;;  %v5035_v4 = vxor.u32 2147483648, %v7595_v37  ;;  %vm5200_vm2 = vc.u32 %v12040_v46, %v12031_v51  ;;  %v5270_v49 = vshll.u32 %v7719_v40, %v5261_v27 }
 0x4c7   :  { %v5273_v15 = vshll.u32 %v7720_v42, %v5261_v27  ;;  %v5032_v43 = vxor.u32 2147483648, %v7597_v24  ;;  %v5118_v50 = vor.u32 4788187, %v5117_v39  ;;  %v5121_v17 = vcvt.s32.f32 %v5114_v45 }
 0x4c8   :  { %v5202_v59 = vsel %vm5200_vm2, %v5201_v11, %v12032_v55  ;;  %v5036_v19 = vsel %vm5034_vm0, %v5035_v4, %v7597_v24  ;;  %v5265_v7 = vshrl.u32 %v7718_v38, %v5262_v18  ;;  %v5268_v53 = vshrl.u32 %v7719_v40, %v5262_v18 }
 0x4c9   :  { %v5203_v35 = vadd.s32 %v5202_v59, %v5198_v28  ;;  %v5033_v2 = vsel %vm5031_vm10, %v7595_v37, %v5032_v43  ;;  %v5119_v1 = vand.u32 2147483647, %v5118_v50  ;;  %v5271_v29 = vshrl.u32 %v7720_v42, %v5262_v18 }
 0x4ca   :  { %v5274_v63 = vshrl.u32 %v7721_v44, %v5262_v18  ;;  %v5037_v57 = vsel %vm5030_vm12, %v5033_v2, %v5036_v19  ;;  %v5126_v41 = vsel %vm5041_vm15, %v5125_v22, %v11981_v23  ;;  %v5266_v9 = vor.u32 %v5265_v7, %v5264_v26  ;;  %v74_v26 = vld [vmem:[#allocation2 + $0x198] sm:$0xff] }
 0x4cb   :  { %v5204_v6 = vadd.s32 536870912, %v5203_v35  ;;  %v5038_v8 = vsel %vm5027_vm14, nan, %v5037_v57  ;;  %v5122_v62 = vmul.f32 %v5121_v17, %v5119_v1  ;;  %v5269_v12 = vor.u32 %v5268_v53, %v5267_v14 }
 0x4cc   :  { %v5275_v21 = vor.u32 %v5274_v63, %v5273_v15  ;;  %v5276_v13 = vshll.u32 %v7721_v44, %v5261_v27  ;;  %v5277_v56 = vshrl.u32 %v7722_v52, %v5262_v18  ;;  %vm5279_vm3 = vcmp.lt.s32.totalorder %v12046_v32, 1  ;;  %6853 = vst [vmem:[#allocation5 + $0x170] sm:$0xff] %v5038_v8 }
 0x4cd   :  { %v5205_v60 = vshrl.u32 %v5204_v6, 30  ;;  %v5123_v55 = vxor.u32 2147483648, %v5122_v62  ;;  %v5272_v34 = vor.u32 %v5271_v29, %v5270_v49  ;;  %vm5282_vm4 = vcmp.lt.s32.totalorder %v12046_v32, 4 }
 0x4ce   :  { %v12080_v23 = vshll.u32 %v5255_v33, 8  ;;  %v5128_v20 = vsel %vm12050_vm1, 0, %v5126_v41  ;;  %vm5280_vm5 = vcmp.lt.s32.totalorder %v12046_v32, 2  ;;  %vm5281_vm6 = vcmp.lt.s32.totalorder %v12046_v32, 3 }
 0x4cf   :  { %v5206_v61 = vshll.u32 %v5205_v60, 30  ;;  %v5124_v30 = vsel %vm5041_vm15, %v5123_v55, %v5122_v62  ;;  %v5278_v5 = vor.u32 %v5277_v56, %v5276_v13  ;;  %v5287_v47 = vsel %vm5279_vm3, %v5266_v9, %v5269_v12 }
 0x4d0   :  { %v5288_v27 = vsel %vm5282_vm4, %v5275_v21, 920167782  ;;  %v12092_v31 = vmul.f32 30.0, %v73_v16  ;;  %v5127_v3 = vsel %vm12050_vm1, %v11762_v0, %v5124_v30  ;;  %v5263_v33 = vshrl.u32 %v7717_v36, %v5262_v18 }
 0x4d1   :  { %v12097_v22 = vsub.s32 %v5203_v35, %v5206_v61  ;;  %7598 = vcosq.f32 %v5127_v3  ;;  %v5132_v28 = vadd.s32 3, %v5128_v20  ;;  %v5284_v11 = vsel %vm5282_vm4, %v5272_v34, 2102212464 }
 0x4d2   :  { %v5289_v37 = vsel %vm5281_vm6, %v5272_v34, %v5288_v27  ;;  %7600 = vsinq.f32 %v5127_v3  ;;  %v5229_v39 = vsub.s32 4, %v5205_v60  ;;  %v5291_v14 = vsel %vm5279_vm3, %v5269_v12, %v5272_v34 }
 0x4d3   :  { %v5209_v45 = vsub.s32 0, %v12097_v22  ;;  %v5290_v10 = vsel %vm5280_vm5, %v5287_v47, %v5289_v37  ;;  %v5292_v18 = vsel %vm5282_vm4, %v5278_v5, 1326507024  ;;  %v5283_v15 = vsel %vm5279_vm3, %v5263_v33, %v5266_v9 }
 0x4d4   :  { %v12112_v24 = vmul.u32.u64.low %v12080_v23, %v5290_v10  ;;  %v12113_v4 = vmul.u32.u64.high %v12080_v23, %v5290_v10, %v12112_v24  ;;  %v5285_v43 = vsel %vm5281_vm6, %v5269_v12, %v5284_v11  ;;  %v5293_v50 = vsel %vm5281_vm6, %v5275_v21, %v5292_v18 }
 0x4d5   :  { %v7081_v49 = vmin.u32 %v5209_v45, %v12097_v22  ;;  %v5133_v17 = vand.u32 3, %v5132_v28  ;;  %v5294_v59 = vsel %vm5280_vm5, %v5291_v14, %v5293_v50  ;;  %v5354_v19 = vand.u32 2139095040, %v12092_v31 }
 0x4d6   :  { %v12126_v35 = vmul.f32 30.0, %v74_v26  ;;  %vm5131_vm7 = vweird.f32 %v11762_v0  ;;  %vm5145_vm8 = vcmp.lt.s32.totalorder %v11910_v54, 0  ;;  %v5286_v53 = vsel %vm5280_vm5, %v5283_v15, %v5285_v43 }
 0x4d7   :  { %v5211_v7 = vclz %v7081_v49  ;;  %v12133_v2 = vmul.u32.u64.low %v12080_v23, %v5294_v59  ;;  %v12134_v1 = vmul.u32.u64.high %v12080_v23, %v5294_v59, %v12133_v2  ;;  %v5355_v29 = vshrl.u32 %v5354_v19, 23 }
 0x4d8   :  { %vm12138_vm9 = vcmp.le.f32.partialorder %v5143_v25, 0.7853982  ;;  %v5230_v41 = vsel %vm5145_vm8, %v5229_v39, %v5205_v60  ;;  %v5351_v6 = vand.u32 2147483647, %v12092_v31  ;;  %vm5134_vm10 = vcmp.lt.s32.totalorder %v5133_v17, 2 }
 0x4d9   :  { %v7082_v57 = vadd.s32 4294967294, %v5211_v7  ;;  %vm5135_vm11 = vcmp.eq.s32.totalorder %v5133_v17, 0  ;;  %v5305_v32 = vadd.s32 1, %v12113_v4  ;;  %v7088_v9 = vadd.s32 4294967169, %v5355_v29 }
 0x4da   :  { %vm5138_vm12 = vcmp.eq.s32.totalorder %v5133_v17, 2  ;;  %v5199_v8 = vadd.s32 %v12031_v51, %v12040_v46  ;;  %v5302_v25 = vmul.u32 %v12080_v23, %v5286_v53  ;;  %v5232_v21 = vsel %vm12138_vm9, 0, %v5230_v41 }
 0x4db   :  { %vm7083_vm13 = vcmp.lt.s32.totalorder %v7082_v57, 0  ;;  %v7599_v62 = vpop.eup %7598  ;;  %vm5304_vm14 = vc.u32 %v12134_v1, %v12112_v24  ;;  %v5361_v60 = vadd.s32 1, %v7088_v9  ;;  %v5358_v46 = vand.u32 8388607, %v5351_v6 }
 0x4dc   :  { %v5214_v12 = vsel %vm7083_vm13, 0, %v7082_v57  ;;  %v7601_v13 = vpop.eup %7600  ;;  %v5139_v56 = vxor.u32 2147483648, %v7599_v62  ;;  %v5306_v51 = vsel %vm5304_vm14, %v5305_v32, %v12113_v4  ;;  %v5458_v3 = vand.u32 2139095040, %v12126_v35 }
 0x4dd   :  { %v5215_v16 = vsub.s32 32, %v5214_v12  ;;  %v5216_v55 = vshll.u32 %v12097_v22, %v5214_v12  ;;  %v5219_v34 = vsub.s32 4294967266, %v5214_v12  ;;  %v5136_v20 = vxor.u32 2147483648, %v7601_v13 }
 0x4de   :  { %vm5362_vm15 = vcmp.gt.s32.totalorder %v5361_v60, 0  ;;  %v5140_v23 = vsel %vm5138_vm12, %v5139_v56, %v7601_v13  ;;  %v5307_v5 = vadd.s32 %v5306_v51, %v5302_v25  ;;  %v5236_v45 = vadd.s32 3, %v5232_v21 }
 0x4df   :  { %v5217_v61 = vshrl.u32 %v5199_v8, %v5215_v16  ;;  %v5220_v30 = vadd.s32 127, %v5219_v34  ;;  %v5137_v47 = vsel %vm5135_vm11, %v7599_v62, %v5136_v20  ;;  %v5363_v27 = vsel %vm5362_vm15, %v5361_v60, 0 }
 0x4e0   :  { %v5141_v22 = vsel %vm5134_vm10, %v5137_v47, %v5140_v23  ;;  %v5308_v11 = vadd.s32 536870912, %v5307_v5  ;;  %v5365_v39 = vand.u32 31, %v5363_v27  ;;  %v5359_v18 = vor.u32 8388608, %v5358_v46 }
 0x4e1   :  { %v5218_v33 = vor.u32 %v5217_v61, %v5216_v55  ;;  %v5221_v28 = vshll.u32 %v5220_v30, 23  ;;  %v5142_v37 = vsel %vm5131_vm7, nan, %v5141_v22  ;;  %v5364_v4 = vshrl.u32 %v5363_v27, 5 }
 0x4e2   :  { %v12163_v14 = vshrl.u32 %v5308_v11, 30  ;;  %6854 = vst [vmem:[#allocation5 + $0x178] sm:$0xff] %v5142_v37  ;;  %v5366_v49 = vsub.s32 32, %v5365_v39  ;;  %v5455_v15 = vand.u32 2147483647, %v12126_v35  ;;  %v5459_v43 = vshrl.u32 %v5458_v3, 23 }
 0x4e3   :  { %v5222_v10 = vor.u32 4788187, %v5221_v28  ;;  %v5225_v26 = vcvt.s32.f32 %v5218_v33  ;;  %v5368_v59 = vshll.u32 %v7717_v36, %v5365_v39  ;;  %v5371_v0 = vshll.u32 %v7718_v38, %v5365_v39 }
 0x4e4   :  { %v5310_v17 = vshll.u32 %v12163_v14, 30  ;;  %v5369_v19 = vshrl.u32 %v7718_v38, %v5366_v49  ;;  %v5372_v7 = vshrl.u32 %v7719_v40, %v5366_v49  ;;  %v5374_v53 = vshll.u32 %v7719_v40, %v5365_v39 }
 0x4e5   :  { %v5223_v50 = vand.u32 2147483647, %v5222_v10  ;;  %v5375_v2 = vshrl.u32 %v7720_v42, %v5366_v49  ;;  %v5377_v41 = vshll.u32 %v7720_v42, %v5365_v39  ;;  %v5378_v32 = vshrl.u32 %v7721_v44, %v5366_v49 }
 0x4e6   :  { %v12173_v57 = vsub.s32 %v5307_v5, %v5310_v17  ;;  %v12177_v9 = vand.u32 3, %v5236_v45  ;;  %v12179_v8 = vshll.u32 %v5359_v18, 8  ;;  %v7092_v25 = vadd.s32 4294967169, %v5459_v43 }
 0x4e7   :  { %v5226_v29 = vmul.f32 %v5225_v26, %v5223_v50  ;;  %v12183_v62 = vand.u32 8388607, %v5455_v15  ;;  %v5367_v60 = vshrl.u32 %v7717_v36, %v5366_v49  ;;  %v5370_v13 = vor.u32 %v5369_v19, %v5368_v59 }
 0x4e8   :  { %v5313_v21 = vsub.s32 0, %v12173_v57  ;;  %v5373_v56 = vor.u32 %v5372_v7, %v5371_v0  ;;  %v5376_v16 = vor.u32 %v5375_v2, %v5374_v53  ;;  %v5380_v55 = vshll.u32 %v7721_v44, %v5365_v39 }
 0x4e9   :  { %v5227_v12 = vxor.u32 2147483648, %v5226_v29  ;;  %v5381_v34 = vshrl.u32 %v7722_v52, %v5366_v49  ;;  %v5379_v46 = vor.u32 %v5378_v32, %v5377_v41  ;;  %vm5383_vm0 = vcmp.lt.s32.totalorder %v5364_v4, 1 }
 0x4ea   :  { %v7085_v51 = vmin.u32 %v5313_v21, %v12173_v57  ;;  %vm5386_vm1 = vcmp.lt.s32.totalorder %v5364_v4, 4  ;;  %v5465_v30 = vadd.s32 1, %v7092_v25  ;;  %vm5384_vm2 = vcmp.lt.s32.totalorder %v5364_v4, 2 }
 0x4eb   :  { %v5228_v20 = vsel %vm5145_vm8, %v5227_v12, %v5226_v29  ;;  %v5382_v61 = vor.u32 %v5381_v34, %v5380_v55  ;;  %vm5385_vm3 = vcmp.lt.s32.totalorder %v5364_v4, 3  ;;  %v5387_v47 = vsel %vm5383_vm0, %v5367_v60, %v5370_v13 }
 0x4ec   :  { %v5231_v23 = vsel %vm12138_vm9, %v11910_v54, %v5228_v20  ;;  %v5315_v5 = vclz %v7085_v51  ;;  %v5388_v27 = vsel %vm5386_vm1, %v5376_v16, 2102212464  ;;  %v5391_v3 = vsel %vm5383_vm0, %v5370_v13, %v5373_v56 }
 0x4ed   :  { %7602 = vcosq.f32 %v5231_v23  ;;  %v5389_v33 = vsel %vm5385_vm3, %v5373_v56, %v5388_v27  ;;  %v5392_v63 = vsel %vm5386_vm1, %v5379_v46, 920167782  ;;  %v5395_v28 = vsel %vm5383_vm0, %v5373_v56, %v5376_v16 }
 0x4ee   :  { %7604 = vsinq.f32 %v5231_v23  ;;  %v7086_v22 = vadd.s32 4294967294, %v5315_v5  ;;  %vm5239_vm4 = vcmp.eq.s32.totalorder %v12177_v9, 0  ;;  %v5303_v11 = vadd.s32 %v12112_v24, %v12134_v1 }
 0x4ef   :  { %v5393_v37 = vsel %vm5385_vm3, %v5376_v16, %v5392_v63  ;;  %v5396_v45 = vsel %vm5386_vm1, %v5382_v61, 1326507024  ;;  %vm5466_vm5 = vcmp.gt.s32.totalorder %v5465_v30, 0  ;;  %vm5238_vm6 = vcmp.lt.s32.totalorder %v12177_v9, 2 }
 0x4f0   :  { %vm7087_vm7 = vcmp.lt.s32.totalorder %v7086_v22, 0  ;;  %v5390_v39 = vsel %vm5384_vm2, %v5387_v47, %v5389_v33  ;;  %v5394_v10 = vsel %vm5384_vm2, %v5391_v3, %v5393_v37  ;;  %v5397_v26 = vsel %vm5385_vm3, %v5379_v46, %v5396_v45 }
 0x4f1   :  { %vm5235_vm8 = vweird.f32 %v11910_v54  ;;  %v5318_v18 = vsel %vm7087_vm7, 0, %v7086_v22  ;;  %v5398_v49 = vsel %vm5384_vm2, %v5395_v28, %v5397_v26  ;;  %vm5249_vm9 = vcmp.lt.s32.totalorder %v11944_v48, 0 }
 0x4f2   :  { %v12213_v24 = vmul.u32.u64.low %v12179_v8, %v5394_v10  ;;  %v12214_v1 = vmul.u32.u64.high %v12179_v8, %v5394_v10, %v12213_v24  ;;  %v5319_v43 = vsub.s32 32, %v5318_v18  ;;  %v5320_v50 = vshll.u32 %v12173_v57, %v5318_v18 }
 0x4f3   :  { %v5323_v17 = vsub.s32 4294967266, %v5318_v18  ;;  %v5467_v59 = vsel %vm5466_vm5, %v5465_v30, 0  ;;  %vm5242_vm10 = vcmp.eq.s32.totalorder %v12177_v9, 2  ;;  %v5333_v2 = vsub.s32 4, %v12163_v14  ;;  %v75_v9 = vld [vmem:[#allocation2 + $0x1a0] sm:$0xff] }
 0x4f4   :  { %v12221_v0 = vmul.u32.u64.low %v12179_v8, %v5398_v49  ;;  %v12222_v19 = vmul.u32.u64.high %v12179_v8, %v5398_v49, %v12221_v0  ;;  %v5469_v4 = vand.u32 31, %v5467_v59  ;;  %v5321_v7 = vshrl.u32 %v5303_v11, %v5319_v43 }
 0x4f5   :  { %v5324_v53 = vadd.s32 127, %v5323_v17  ;;  %v5463_v29 = vor.u32 8388608, %v12183_v62  ;;  %v5406_v41 = vmul.u32 %v12179_v8, %v5390_v39  ;;  %v5409_v32 = vadd.s32 1, %v12214_v1 }
 0x4f6   :  { %v12228_v57 = vshrl.u32 %v5467_v59, 5  ;;  %v5470_v25 = vsub.s32 32, %v5469_v4  ;;  %vm12232_vm11 = vcmp.le.f32.partialorder %v5247_v58, 0.7853982  ;;  %v5322_v60 = vor.u32 %v5321_v7, %v5320_v50 }
 0x4f7   :  { %v7603_v12 = vpop.eup %7602  ;;  %v5325_v13 = vshll.u32 %v5324_v53, 23  ;;  %v5472_v56 = vshll.u32 %v7717_v36, %v5469_v4  ;;  %v5475_v62 = vshll.u32 %v7718_v38, %v5469_v4  ;;  %vm5408_vm12 = vc.u32 %v12222_v19, %v12213_v24 }
 0x4f8   :  { %v7605_v16 = vpop.eup %7604  ;;  %v5243_v8 = vxor.u32 2147483648, %v7603_v12  ;;  %v5478_v55 = vshll.u32 %v7719_v40, %v5469_v4  ;;  %v5481_v34 = vshll.u32 %v7720_v42, %v5469_v4  ;;  %v5329_v51 = vcvt.s32.f32 %v5322_v60 }
 0x4f9   :  { %v5240_v20 = vxor.u32 2147483648, %v7605_v16  ;;  %v5326_v58 = vor.u32 4788187, %v5325_v13  ;;  %v5410_v46 = vsel %vm5408_vm12, %v5409_v32, %v12214_v1  ;;  %v5473_v30 = vshrl.u32 %v7718_v38, %v5470_v25 }
 0x4fa   :  { %v5244_v23 = vsel %vm5242_vm10, %v5243_v8, %v7605_v16  ;;  %v5411_v61 = vadd.s32 %v5410_v46, %v5406_v41  ;;  %v5476_v5 = vshrl.u32 %v7719_v40, %v5470_v25  ;;  %v5479_v3 = vshrl.u32 %v7720_v42, %v5470_v25 }
 0x4fb   :  { %v5241_v47 = vsel %vm5239_vm4, %v7603_v12, %v5240_v20  ;;  %v5327_v27 = vand.u32 2147483647, %v5326_v58  ;;  %v5482_v22 = vshrl.u32 %v7721_v44, %v5470_v25  ;;  %v5334_v63 = vsel %vm5249_vm9, %v5333_v2, %v12163_v14 }
 0x4fc   :  { %v5245_v33 = vsel %vm5238_vm6, %v5241_v47, %v5244_v23  ;;  %v5412_v28 = vadd.s32 536870912, %v5411_v61  ;;  %v5474_v11 = vor.u32 %v5473_v30, %v5472_v56  ;;  %v5477_v39 = vor.u32 %v5476_v5, %v5475_v62  ;;  %v76_v56 = vld [vmem:[#allocation2 + $0x1a8] sm:$0xff] }
 0x4fd   :  { %v5246_v37 = vsel %vm5235_vm8, nan, %v5245_v33  ;;  %v5330_v45 = vmul.f32 %v5329_v51, %v5327_v27  ;;  %v5483_v10 = vor.u32 %v5482_v22, %v5481_v34  ;;  %v5484_v18 = vshll.u32 %v7721_v44, %v5469_v4 }
 0x4fe   :  { %v5413_v26 = vshrl.u32 %v5412_v28, 30  ;;  %v5485_v49 = vshrl.u32 %v7722_v52, %v5470_v25  ;;  %vm5487_vm13 = vcmp.lt.s32.totalorder %v12228_v57, 1  ;;  %6855 = vst [vmem:[#allocation5 + $0x180] sm:$0xff] %v5246_v37  ;;  %v5480_v43 = vor.u32 %v5479_v3, %v5478_v55 }
 0x4ff   :  { %v5331_v1 = vxor.u32 2147483648, %v5330_v45  ;;  %vm5490_vm14 = vcmp.lt.s32.totalorder %v12228_v57, 4  ;;  %v12262_v14 = vshll.u32 %v5463_v29, 8  ;;  %v5336_v54 = vsel %vm12232_vm11, 0, %v5334_v63 }
 0x500   :  { %v5414_v50 = vshll.u32 %v5413_v26, 30  ;;  %vm5488_vm15 = vcmp.lt.s32.totalorder %v12228_v57, 2  ;;  %vm5489_vm0 = vcmp.lt.s32.totalorder %v12228_v57, 3  ;;  %v5486_v59 = vor.u32 %v5485_v49, %v5484_v18 }
 0x501   :  { %v5332_v17 = vsel %vm5249_vm9, %v5331_v1, %v5330_v45  ;;  %v5495_v0 = vsel %vm5487_vm13, %v5474_v11, %v5477_v39  ;;  %v5496_v4 = vsel %vm5490_vm14, %v5483_v10, 920167782  ;;  %v12274_v7 = vmul.f32 30.0, %v75_v9 }
 0x502   :  { %v5335_v53 = vsel %vm12232_vm11, %v11944_v48, %v5332_v17  ;;  %v12279_v2 = vsub.s32 %v5411_v61, %v5414_v50  ;;  %v5471_v29 = vshrl.u32 %v7717_v36, %v5470_v25  ;;  %v5340_v41 = vadd.s32 3, %v5336_v54 }
 0x503   :  { %7606 = vcosq.f32 %v5335_v53  ;;  %v5492_v32 = vsel %vm5490_vm14, %v5480_v43, 2102212464  ;;  %v5497_v12 = vsel %vm5489_vm0, %v5480_v43, %v5496_v4  ;;  %v5437_v13 = vsub.s32 4, %v5413_v26 }
 0x504   :  { %7608 = vsinq.f32 %v5335_v53  ;;  %v5417_v60 = vsub.s32 0, %v12279_v2  ;;  %v5498_v21 = vsel %vm5488_vm15, %v5495_v0, %v5497_v12  ;;  %v5499_v62 = vsel %vm5487_vm13, %v5477_v39, %v5480_v43 }
 0x505   :  { %v5500_v25 = vsel %vm5490_vm14, %v5486_v59, 1326507024  ;;  %v12294_v16 = vmul.u32.u64.low %v12262_v14, %v5498_v21  ;;  %v12295_v8 = vmul.u32.u64.high %v12262_v14, %v5498_v21, %v12294_v16  ;;  %v5491_v34 = vsel %vm5487_vm13, %v5471_v29, %v5474_v11 }
 0x506   :  { %v7089_v55 = vmin.u32 %v5417_v60, %v12279_v2  ;;  %v5493_v20 = vsel %vm5489_vm0, %v5477_v39, %v5492_v32  ;;  %v5501_v58 = vsel %vm5489_vm0, %v5483_v10, %v5500_v25  ;;  %v5341_v51 = vand.u32 3, %v5340_v41 }
 0x507   :  { %v5502_v46 = vsel %vm5488_vm15, %v5499_v62, %v5501_v58  ;;  %v5562_v23 = vand.u32 2139095040, %v12274_v7  ;;  %v12308_v61 = vmul.f32 30.0, %v76_v56  ;;  %vm5339_vm1 = vweird.f32 %v11944_v48 }
 0x508   :  { %vm5353_vm2 = vcmp.lt.s32.totalorder %v12092_v31, 0  ;;  %v5419_v30 = vclz %v7089_v55  ;;  %v5494_v5 = vsel %vm5488_vm15, %v5491_v34, %v5493_v20  ;;  %vm12320_vm3 = vcmp.le.f32.partialorder %v5351_v6, 0.7853982 }
 0x509   :  { %v12315_v47 = vmul.u32.u64.low %v12262_v14, %v5502_v46  ;;  %v12316_v27 = vmul.u32.u64.high %v12262_v14, %v5502_v46, %v12315_v47  ;;  %v5563_v3 = vshrl.u32 %v5562_v23, 23  ;;  %v5438_v63 = vsel %vm5353_vm2, %v5437_v13, %v5413_v26 }
 0x50a   :  { %v7090_v33 = vadd.s32 4294967294, %v5419_v30  ;;  %v5559_v28 = vand.u32 2147483647, %v12274_v7  ;;  %vm5342_vm4 = vcmp.lt.s32.totalorder %v5341_v51, 2  ;;  %vm5343_vm5 = vcmp.eq.s32.totalorder %v5341_v51, 0 }
 0x50b   :  { %v5513_v57 = vadd.s32 1, %v12295_v8  ;;  %v7096_v11 = vadd.s32 4294967169, %v5563_v3  ;;  %vm5346_vm6 = vcmp.eq.s32.totalorder %v5341_v51, 2  ;;  %v5407_v37 = vadd.s32 %v12213_v24, %v12222_v19 }
 0x50c   :  { %vm7091_vm7 = vcmp.lt.s32.totalorder %v7090_v33, 0  ;;  %v5510_v6 = vmul.u32 %v12262_v14, %v5494_v5  ;;  %v5440_v10 = vsel %vm12320_vm3, 0, %v5438_v63  ;;  %vm5512_vm8 = vc.u32 %v12316_v27, %v12294_v16 }
 0x50d   :  { %v7607_v45 = vpop.eup %7606  ;;  %v5422_v39 = vsel %vm7091_vm7, 0, %v7090_v33  ;;  %v5569_v26 = vadd.s32 1, %v7096_v11  ;;  %v5514_v24 = vsel %vm5512_vm8, %v5513_v57, %v12295_v8  ;;  %v5566_v19 = vand.u32 8388607, %v5559_v28 }
 0x50e   :  { %v7609_v18 = vpop.eup %7608  ;;  %v5347_v49 = vxor.u32 2147483648, %v7607_v45  ;;  %v5423_v9 = vsub.s32 32, %v5422_v39  ;;  %v5424_v1 = vshll.u32 %v12279_v2, %v5422_v39  ;;  %v5427_v43 = vsub.s32 4294967266, %v5422_v39 }
 0x50f   :  { %v5344_v54 = vxor.u32 2147483648, %v7609_v18  ;;  %vm5570_vm9 = vcmp.gt.s32.totalorder %v5569_v26, 0  ;;  %v5515_v59 = vadd.s32 %v5514_v24, %v5510_v6  ;;  %v5666_v53 = vand.u32 2139095040, %v12308_v61 }
 0x510   :  { %v5348_v14 = vsel %vm5346_vm6, %v5347_v49, %v7609_v18  ;;  %v5425_v50 = vshrl.u32 %v5407_v37, %v5423_v9  ;;  %v5428_v17 = vadd.s32 127, %v5427_v43  ;;  %v5571_v4 = vsel %vm5570_vm9, %v5569_v26, 0 }
 0x511   :  { %v5345_v0 = vsel %vm5343_vm5, %v7607_v45, %v5344_v54  ;;  %v5516_v32 = vadd.s32 536870912, %v5515_v59  ;;  %v5444_v60 = vadd.s32 3, %v5440_v10  ;;  %v5573_v13 = vand.u32 31, %v5571_v4 }
 0x512   :  { %v5349_v2 = vsel %vm5342_vm4, %v5345_v0, %v5348_v14  ;;  %v5426_v29 = vor.u32 %v5425_v50, %v5424_v1  ;;  %v5429_v41 = vshll.u32 %v5428_v17, 23  ;;  %v5567_v25 = vor.u32 8388608, %v5566_v19 }
 0x513   :  { %v5350_v12 = vsel %vm5339_vm1, nan, %v5349_v2  ;;  %v12345_v62 = vshrl.u32 %v5516_v32, 30  ;;  %v5572_v8 = vshrl.u32 %v5571_v4, 5  ;;  %v5574_v55 = vsub.s32 32, %v5573_v13 }
 0x514   :  { %v5430_v21 = vor.u32 4788187, %v5429_v41  ;;  %v5433_v56 = vcvt.s32.f32 %v5426_v29  ;;  %6856 = vst [vmem:[#allocation5 + $0x188] sm:$0xff] %v5350_v12  ;;  %v5663_v34 = vand.u32 2147483647, %v12308_v61  ;;  %v5667_v20 = vshrl.u32 %v5666_v53, 23 }
 0x515   :  { %v5518_v51 = vshll.u32 %v12345_v62, 30  ;;  %v5576_v46 = vshll.u32 %v7717_v36, %v5573_v13  ;;  %v5579_v48 = vshll.u32 %v7718_v38, %v5573_v13  ;;  %v5577_v23 = vshrl.u32 %v7718_v38, %v5574_v55 }
 0x516   :  { %v5431_v58 = vand.u32 2147483647, %v5430_v21  ;;  %v5580_v30 = vshrl.u32 %v7719_v40, %v5574_v55  ;;  %v5582_v5 = vshll.u32 %v7719_v40, %v5573_v13  ;;  %v5583_v47 = vshrl.u32 %v7720_v42, %v5574_v55 }
 0x517   :  { %v12355_v33 = vsub.s32 %v5515_v59, %v5518_v51  ;;  %v5585_v63 = vshll.u32 %v7720_v42, %v5573_v13  ;;  %v5586_v57 = vshrl.u32 %v7721_v44, %v5574_v55  ;;  %v12359_v11 = vand.u32 3, %v5444_v60 }
 0x518   :  { %v5434_v3 = vmul.f32 %v5433_v56, %v5431_v58  ;;  %v12361_v37 = vshll.u32 %v5567_v25, 8  ;;  %v7100_v6 = vadd.s32 4294967169, %v5667_v20  ;;  %v12365_v45 = vand.u32 8388607, %v5663_v34 }
 0x519   :  { %v5521_v10 = vsub.s32 0, %v12355_v33  ;;  %v5575_v26 = vshrl.u32 %v7717_v36, %v5574_v55  ;;  %v5578_v18 = vor.u32 %v5577_v23, %v5576_v46  ;;  %v5581_v49 = vor.u32 %v5580_v30, %v5579_v48 }
 0x51a   :  { %v5435_v39 = vxor.u32 2147483648, %v5434_v3  ;;  %v5584_v9 = vor.u32 %v5583_v47, %v5582_v5  ;;  %v5588_v1 = vshll.u32 %v7721_v44, %v5573_v13  ;;  %v5589_v43 = vshrl.u32 %v7722_v52, %v5574_v55 }
 0x51b   :  { %v7093_v24 = vmin.u32 %v5521_v10, %v12355_v33  ;;  %v5587_v19 = vor.u32 %v5586_v57, %v5585_v63  ;;  %vm5591_vm10 = vcmp.lt.s32.totalorder %v5572_v8, 1  ;;  %vm5594_vm11 = vcmp.lt.s32.totalorder %v5572_v8, 4 }
 0x51c   :  { %v5436_v54 = vsel %vm5353_vm2, %v5435_v39, %v5434_v3  ;;  %v5590_v50 = vor.u32 %v5589_v43, %v5588_v1  ;;  %v5673_v17 = vadd.s32 1, %v7100_v6  ;;  %vm5592_vm12 = vcmp.lt.s32.totalorder %v5572_v8, 2 }
 0x51d   :  { %v5439_v14 = vsel %vm12320_vm3, %v12092_v31, %v5436_v54  ;;  %v5523_v59 = vclz %v7093_v24  ;;  %vm5593_vm13 = vcmp.lt.s32.totalorder %v5572_v8, 3  ;;  %v5595_v0 = vsel %vm5591_vm10, %v5575_v26, %v5578_v18 }
 0x51e   :  { %7610 = vcosq.f32 %v5439_v14  ;;  %v5596_v4 = vsel %vm5594_vm11, %v5584_v9, 2102212464  ;;  %v5599_v53 = vsel %vm5591_vm10, %v5578_v18, %v5581_v49  ;;  %v5600_v22 = vsel %vm5594_vm11, %v5587_v19, 920167782 }
 0x51f   :  { %7612 = vsinq.f32 %v5439_v14  ;;  %v7094_v2 = vadd.s32 4294967294, %v5523_v59  ;;  %v5597_v29 = vsel %vm5593_vm13, %v5581_v49, %v5596_v4  ;;  %v5603_v41 = vsel %vm5591_vm10, %v5581_v49, %v5584_v9 }
 0x520   :  { %vm5447_vm14 = vcmp.eq.s32.totalorder %v12359_v11, 0  ;;  %v5511_v32 = vadd.s32 %v12294_v16, %v12316_v27  ;;  %v5601_v12 = vsel %vm5593_vm13, %v5584_v9, %v5600_v22  ;;  %v5604_v60 = vsel %vm5594_vm11, %v5590_v50, 1326507024 }
 0x521   :  { %vm5674_vm15 = vcmp.gt.s32.totalorder %v5673_v17, 0  ;;  %vm5446_vm0 = vcmp.lt.s32.totalorder %v12359_v11, 2  ;;  %vm7095_vm1 = vcmp.lt.s32.totalorder %v7094_v2, 0  ;;  %v5598_v13 = vsel %vm5592_vm12, %v5595_v0, %v5597_v29 }
 0x522   :  { %v5602_v21 = vsel %vm5592_vm12, %v5599_v53, %v5601_v12  ;;  %v5605_v56 = vsel %vm5593_vm13, %v5587_v19, %v5604_v60  ;;  %vm5443_vm2 = vweird.f32 %v12092_v31  ;;  %v5526_v25 = vsel %vm7095_vm1, 0, %v7094_v2 }
 0x523   :  { %v5606_v55 = vsel %vm5592_vm12, %v5603_v41, %v5605_v56  ;;  %v12395_v16 = vmul.u32.u64.low %v12361_v37, %v5602_v21  ;;  %v12396_v27 = vmul.u32.u64.high %v12361_v37, %v5602_v21, %v12395_v16  ;;  %vm5457_vm3 = vcmp.lt.s32.totalorder %v12126_v35, 0 }
 0x524   :  { %v5527_v20 = vsub.s32 32, %v5526_v25  ;;  %v5528_v58 = vshll.u32 %v12355_v33, %v5526_v25  ;;  %v5531_v51 = vsub.s32 4294967266, %v5526_v25  ;;  %v5675_v46 = vsel %vm5674_vm15, %v5673_v17, 0 }
 0x525   :  { %vm5450_vm4 = vcmp.eq.s32.totalorder %v12359_v11, 2  ;;  %v12403_v48 = vmul.u32.u64.low %v12361_v37, %v5606_v55  ;;  %v12404_v23 = vmul.u32.u64.high %v12361_v37, %v5606_v55, %v12403_v48  ;;  %v5677_v8 = vand.u32 31, %v5675_v46  ;;  %v77_v11 = vld [vmem:[#allocation2 + $0x1b0] sm:$0xff] }
 0x526   :  { %v5529_v30 = vshrl.u32 %v5511_v32, %v5527_v20  ;;  %v5532_v5 = vadd.s32 127, %v5531_v51  ;;  %v5541_v47 = vsub.s32 4, %v12345_v62  ;;  %v5671_v3 = vor.u32 8388608, %v12365_v45 }
 0x527   :  { %v5614_v63 = vmul.u32 %v12361_v37, %v5598_v13  ;;  %v5617_v57 = vadd.s32 1, %v12396_v27  ;;  %v12410_v33 = vshrl.u32 %v5675_v46, 5  ;;  %v5678_v6 = vsub.s32 32, %v5677_v8 }
 0x528   :  { %v7611_v39 = vpop.eup %7610  ;;  %vm12414_vm5 = vcmp.le.f32.partialorder %v5455_v15, 0.7853982  ;;  %v5530_v26 = vor.u32 %v5529_v30, %v5528_v58  ;;  %v5533_v18 = vshll.u32 %v5532_v5, 23  ;;  %v5680_v49 = vshll.u32 %v7717_v36, %v5677_v8 }
 0x529   :  { %v5683_v45 = vshll.u32 %v7718_v38, %v5677_v8  ;;  %v7613_v9 = vpop.eup %7612  ;;  %v5451_v37 = vxor.u32 2147483648, %v7611_v39  ;;  %vm5616_vm6 = vc.u32 %v12404_v23, %v12395_v16  ;;  %v5686_v1 = vshll.u32 %v7719_v40, %v5677_v8 }
 0x52a   :  { %v5689_v43 = vshll.u32 %v7720_v42, %v5677_v8  ;;  %v5448_v54 = vxor.u32 2147483648, %v7613_v9  ;;  %v5534_v15 = vor.u32 4788187, %v5533_v18  ;;  %v5537_v24 = vcvt.s32.f32 %v5530_v26 }
 0x52b   :  { %v5618_v19 = vsel %vm5616_vm6, %v5617_v57, %v12396_v27  ;;  %v5452_v14 = vsel %vm5450_vm4, %v5451_v37, %v7613_v9  ;;  %v5681_v17 = vshrl.u32 %v7718_v38, %v5678_v6  ;;  %v5684_v59 = vshrl.u32 %v7719_v40, %v5678_v6 }
 0x52c   :  { %v5619_v50 = vadd.s32 %v5618_v19, %v5614_v63  ;;  %v5449_v0 = vsel %vm5447_vm14, %v7611_v39, %v5448_v54  ;;  %v5535_v4 = vand.u32 2147483647, %v5534_v15  ;;  %v5687_v53 = vshrl.u32 %v7720_v42, %v5678_v6 }
 0x52d   :  { %v5690_v2 = vshrl.u32 %v7721_v44, %v5678_v6  ;;  %v5453_v29 = vsel %vm5446_vm0, %v5449_v0, %v5452_v14  ;;  %v5542_v22 = vsel %vm5457_vm3, %v5541_v47, %v12345_v62  ;;  %v5682_v32 = vor.u32 %v5681_v17, %v5680_v49  ;;  %v78_v49 = vld [vmem:[#allocation2 + $0x1b8] sm:$0xff] }
 0x52e   :  { %v5620_v41 = vadd.s32 536870912, %v5619_v50  ;;  %v5454_v12 = vsel %vm5443_vm2, nan, %v5453_v29  ;;  %v5538_v60 = vmul.f32 %v5537_v24, %v5535_v4  ;;  %v5685_v13 = vor.u32 %v5684_v59, %v5683_v45 }
 0x52f   :  { %v5691_v21 = vor.u32 %v5690_v2, %v5689_v43  ;;  %v5692_v25 = vshll.u32 %v7721_v44, %v5677_v8  ;;  %v5693_v55 = vshrl.u32 %v7722_v52, %v5678_v6  ;;  %vm5695_vm7 = vcmp.lt.s32.totalorder %v12410_v33, 1  ;;  %6857 = vst [vmem:[#allocation5 + $0x190] sm:$0xff] %v5454_v12 }
 0x530   :  { %v5621_v56 = vshrl.u32 %v5620_v41, 30  ;;  %v5539_v27 = vxor.u32 2147483648, %v5538_v60  ;;  %v5688_v20 = vor.u32 %v5687_v53, %v5686_v1  ;;  %vm5698_vm8 = vcmp.lt.s32.totalorder %v12410_v33, 4 }
 0x531   :  { %v12444_v62 = vshll.u32 %v5671_v3, 8  ;;  %v5544_v31 = vsel %vm12414_vm5, 0, %v5542_v22  ;;  %vm5696_vm9 = vcmp.lt.s32.totalorder %v12410_v33, 2  ;;  %vm5697_vm10 = vcmp.lt.s32.totalorder %v12410_v33, 3 }
 0x532   :  { %v5622_v58 = vshll.u32 %v5621_v56, 30  ;;  %v5540_v51 = vsel %vm5457_vm3, %v5539_v27, %v5538_v60  ;;  %v5694_v46 = vor.u32 %v5693_v55, %v5692_v25  ;;  %v5703_v48 = vsel %vm5695_vm7, %v5682_v32, %v5685_v13 }
 0x533   :  { %v5704_v8 = vsel %vm5698_vm8, %v5691_v21, 920167782  ;;  %v12456_v30 = vmul.f32 30.0, %v77_v11  ;;  %v5543_v5 = vsel %vm12414_vm5, %v12126_v35, %v5540_v51  ;;  %v5679_v3 = vshrl.u32 %v7717_v36, %v5678_v6 }
 0x534   :  { %v12461_v47 = vsub.s32 %v5619_v50, %v5622_v58  ;;  %7614 = vcosq.f32 %v5543_v5  ;;  %v5548_v63 = vadd.s32 3, %v5544_v31  ;;  %v5700_v57 = vsel %vm5698_vm8, %v5688_v20, 2102212464 }
 0x535   :  { %v5705_v39 = vsel %vm5697_vm10, %v5688_v20, %v5704_v8  ;;  %7616 = vsinq.f32 %v5543_v5  ;;  %v5645_v18 = vsub.s32 4, %v5621_v56  ;;  %v5707_v45 = vsel %vm5695_vm7, %v5685_v13, %v5688_v20 }
 0x536   :  { %v5625_v26 = vsub.s32 0, %v12461_v47  ;;  %v5706_v10 = vsel %vm5696_vm9, %v5703_v48, %v5705_v39  ;;  %v5708_v6 = vsel %vm5698_vm8, %v5694_v46, 1326507024  ;;  %v5699_v43 = vsel %vm5695_vm7, %v5679_v3, %v5682_v32 }
 0x537   :  { %v12476_v9 = vmul.u32.u64.low %v12444_v62, %v5706_v10  ;;  %v12477_v37 = vmul.u32.u64.high %v12444_v62, %v5706_v10, %v12476_v9  ;;  %v5701_v54 = vsel %vm5697_vm10, %v5685_v13, %v5700_v57  ;;  %v5709_v15 = vsel %vm5697_vm10, %v5691_v21, %v5708_v6 }
 0x538   :  { %v7097_v1 = vmin.u32 %v5625_v26, %v12461_v47  ;;  %v5549_v24 = vand.u32 3, %v5548_v63  ;;  %v5710_v19 = vsel %vm5696_vm9, %v5707_v45, %v5709_v15  ;;  %v5770_v14 = vand.u32 2139095040, %v12456_v30 }
 0x539   :  { %v12490_v50 = vmul.f32 30.0, %v78_v49  ;;  %vm5547_vm11 = vweird.f32 %v12126_v35  ;;  %vm5561_vm12 = vcmp.lt.s32.totalorder %v12274_v7, 0  ;;  %v5702_v59 = vsel %vm5696_vm9, %v5699_v43, %v5701_v54 }
 0x53a   :  { %v5627_v17 = vclz %v7097_v1  ;;  %v12497_v0 = vmul.u32.u64.low %v12444_v62, %v5710_v19  ;;  %v12498_v4 = vmul.u32.u64.high %v12444_v62, %v5710_v19, %v12497_v0  ;;  %v5771_v53 = vshrl.u32 %v5770_v14, 23 }
 0x53b   :  { %vm12502_vm13 = vcmp.le.f32.partialorder %v5559_v28, 0.7853982  ;;  %v5646_v22 = vsel %vm5561_vm12, %v5645_v18, %v5621_v56  ;;  %v5767_v41 = vand.u32 2147483647, %v12456_v30  ;;  %vm5550_vm14 = vcmp.lt.s32.totalorder %v5549_v24, 2 }
 0x53c   :  { %v7098_v29 = vadd.s32 4294967294, %v5627_v17  ;;  %vm5551_vm15 = vcmp.eq.s32.totalorder %v5549_v24, 0  ;;  %v5721_v33 = vadd.s32 1, %v12477_v37  ;;  %v7104_v32 = vadd.s32 4294967169, %v5771_v53 }
 0x53d   :  { %vm5554_vm0 = vcmp.eq.s32.totalorder %v5549_v24, 2  ;;  %v5615_v12 = vadd.s32 %v12395_v16, %v12404_v23  ;;  %v5718_v28 = vmul.u32 %v12444_v62, %v5702_v59  ;;  %v5648_v21 = vsel %vm12502_vm13, 0, %v5646_v22 }
 0x53e   :  { %vm7099_vm1 = vcmp.lt.s32.totalorder %v7098_v29, 0  ;;  %v7615_v60 = vpop.eup %7614  ;;  %vm5720_vm2 = vc.u32 %v12498_v4, %v12476_v9  ;;  %v5777_v56 = vadd.s32 1, %v7104_v32  ;;  %v5774_v23 = vand.u32 8388607, %v5767_v41 }
 0x53f   :  { %v5630_v13 = vsel %vm7099_vm1, 0, %v7098_v29  ;;  %v7617_v25 = vpop.eup %7616  ;;  %v5555_v55 = vxor.u32 2147483648, %v7615_v60  ;;  %v5722_v16 = vsel %vm5720_vm2, %v5721_v33, %v12477_v37  ;;  %v5874_v5 = vand.u32 2139095040, %v12490_v50 }
 0x540   :  { %v5631_v11 = vsub.s32 32, %v5630_v13  ;;  %v5632_v27 = vshll.u32 %v12461_v47, %v5630_v13  ;;  %v5635_v20 = vsub.s32 4294967266, %v5630_v13  ;;  %v5552_v31 = vxor.u32 2147483648, %v7617_v25 }
 0x541   :  { %vm5778_vm3 = vcmp.gt.s32.totalorder %v5777_v56, 0  ;;  %v5556_v62 = vsel %vm5554_vm0, %v5555_v55, %v7617_v25  ;;  %v5723_v46 = vadd.s32 %v5722_v16, %v5718_v28  ;;  %v5652_v26 = vadd.s32 3, %v5648_v21 }
 0x542   :  { %v5633_v58 = vshrl.u32 %v5615_v12, %v5631_v11  ;;  %v5636_v51 = vadd.s32 127, %v5635_v20  ;;  %v5553_v48 = vsel %vm5551_vm15, %v7615_v60, %v5552_v31  ;;  %v5779_v8 = vsel %vm5778_vm3, %v5777_v56, 0 }
 0x543   :  { %v5557_v47 = vsel %vm5550_vm14, %v5553_v48, %v5556_v62  ;;  %v5724_v57 = vadd.s32 536870912, %v5723_v46  ;;  %v5781_v18 = vand.u32 31, %v5779_v8  ;;  %v5775_v6 = vor.u32 8388608, %v5774_v23 }
 0x544   :  { %v5634_v3 = vor.u32 %v5633_v58, %v5632_v27  ;;  %v5637_v63 = vshll.u32 %v5636_v51, 23  ;;  %v5558_v39 = vsel %vm5547_vm11, nan, %v5557_v47  ;;  %v5780_v37 = vshrl.u32 %v5779_v8, 5 }
 0x545   :  { %v12527_v45 = vshrl.u32 %v5724_v57, 30  ;;  %6858 = vst [vmem:[#allocation5 + $0x198] sm:$0xff] %v5558_v39  ;;  %v5782_v1 = vsub.s32 32, %v5781_v18  ;;  %v5871_v43 = vand.u32 2147483647, %v12490_v50  ;;  %v5875_v54 = vshrl.u32 %v5874_v5, 23 }
 0x546   :  { %v5638_v10 = vor.u32 4788187, %v5637_v63  ;;  %v5641_v49 = vcvt.s32.f32 %v5634_v3  ;;  %v5784_v19 = vshll.u32 %v7717_v36, %v5781_v18  ;;  %v5787_v35 = vshll.u32 %v7718_v38, %v5781_v18 }
 0x547   :  { %v5726_v24 = vshll.u32 %v12527_v45, 30  ;;  %v5785_v14 = vshrl.u32 %v7718_v38, %v5782_v1  ;;  %v5788_v17 = vshrl.u32 %v7719_v40, %v5782_v1  ;;  %v5790_v59 = vshll.u32 %v7719_v40, %v5781_v18 }
 0x548   :  { %v5639_v15 = vand.u32 2147483647, %v5638_v10  ;;  %v5791_v0 = vshrl.u32 %v7720_v42, %v5782_v1  ;;  %v5793_v22 = vshll.u32 %v7720_v42, %v5781_v18  ;;  %v5794_v33 = vshrl.u32 %v7721_v44, %v5782_v1 }
 0x549   :  { %v12537_v29 = vsub.s32 %v5723_v46, %v5726_v24  ;;  %v12541_v32 = vand.u32 3, %v5652_v26  ;;  %v12543_v12 = vshll.u32 %v5775_v6, 8  ;;  %v7108_v28 = vadd.s32 4294967169, %v5875_v54 }
 0x54a   :  { %v5642_v53 = vmul.f32 %v5641_v49, %v5639_v15  ;;  %v12547_v60 = vand.u32 8388607, %v5871_v43  ;;  %v5783_v56 = vshrl.u32 %v7717_v36, %v5782_v1  ;;  %v5786_v25 = vor.u32 %v5785_v14, %v5784_v19 }
 0x54b   :  { %v5729_v21 = vsub.s32 0, %v12537_v29  ;;  %v5789_v55 = vor.u32 %v5788_v17, %v5787_v35  ;;  %v5792_v11 = vor.u32 %v5791_v0, %v5790_v59  ;;  %v5796_v27 = vshll.u32 %v7721_v44, %v5781_v18 }
 0x54c   :  { %v5643_v13 = vxor.u32 2147483648, %v5642_v53  ;;  %v5797_v20 = vshrl.u32 %v7722_v52, %v5782_v1  ;;  %v5795_v23 = vor.u32 %v5794_v33, %v5793_v22  ;;  %vm5799_vm4 = vcmp.lt.s32.totalorder %v5780_v37, 1 }
 0x54d   :  { %v7101_v16 = vmin.u32 %v5729_v21, %v12537_v29  ;;  %vm5802_vm5 = vcmp.lt.s32.totalorder %v5780_v37, 4  ;;  %v5881_v51 = vadd.s32 1, %v7108_v28  ;;  %vm5800_vm6 = vcmp.lt.s32.totalorder %v5780_v37, 2 }
 0x54e   :  { %v5644_v31 = vsel %vm5561_vm12, %v5643_v13, %v5642_v53  ;;  %v5798_v58 = vor.u32 %v5797_v20, %v5796_v27  ;;  %vm5801_vm7 = vcmp.lt.s32.totalorder %v5780_v37, 3  ;;  %v5803_v48 = vsel %vm5799_vm4, %v5783_v56, %v5786_v25 }
 0x54f   :  { %v5647_v62 = vsel %vm12502_vm13, %v12274_v7, %v5644_v31  ;;  %v5731_v46 = vclz %v7101_v16  ;;  %v5804_v8 = vsel %vm5802_vm5, %v5792_v11, 2102212464  ;;  %v5807_v5 = vsel %vm5799_vm4, %v5786_v25, %v5789_v55 }
 0x550   :  { %7618 = vcosq.f32 %v5647_v62  ;;  %v5805_v3 = vsel %vm5801_vm7, %v5789_v55, %v5804_v8  ;;  %v5808_v2 = vsel %vm5802_vm5, %v5795_v23, 920167782  ;;  %v5811_v63 = vsel %vm5799_vm4, %v5789_v55, %v5792_v11 }
 0x551   :  { %7620 = vsinq.f32 %v5647_v62  ;;  %v7102_v47 = vadd.s32 4294967294, %v5731_v46  ;;  %vm5655_vm8 = vcmp.eq.s32.totalorder %v12541_v32, 0  ;;  %v5719_v57 = vadd.s32 %v12476_v9, %v12498_v4 }
 0x552   :  { %v5809_v39 = vsel %vm5801_vm7, %v5792_v11, %v5808_v2  ;;  %v5812_v26 = vsel %vm5802_vm5, %v5798_v58, 1326507024  ;;  %vm5882_vm9 = vcmp.gt.s32.totalorder %v5881_v51, 0  ;;  %vm5654_vm10 = vcmp.lt.s32.totalorder %v12541_v32, 2 }
 0x553   :  { %vm7103_vm11 = vcmp.lt.s32.totalorder %v7102_v47, 0  ;;  %v5806_v18 = vsel %vm5800_vm6, %v5803_v48, %v5805_v3  ;;  %v5810_v10 = vsel %vm5800_vm6, %v5807_v5, %v5809_v39  ;;  %v5813_v49 = vsel %vm5801_vm7, %v5795_v23, %v5812_v26 }
 0x554   :  { %vm5651_vm12 = vweird.f32 %v12274_v7  ;;  %v5734_v6 = vsel %vm7103_vm11, 0, %v7102_v47  ;;  %v5814_v1 = vsel %vm5800_vm6, %v5811_v63, %v5813_v49  ;;  %vm5665_vm13 = vcmp.lt.s32.totalorder %v12308_v61, 0 }
 0x555   :  { %v12577_v9 = vmul.u32.u64.low %v12543_v12, %v5810_v10  ;;  %v12578_v4 = vmul.u32.u64.high %v12543_v12, %v5810_v10, %v12577_v9  ;;  %v5735_v54 = vsub.s32 32, %v5734_v6  ;;  %v5736_v15 = vshll.u32 %v12537_v29, %v5734_v6 }
 0x556   :  { %v5739_v24 = vsub.s32 4294967266, %v5734_v6  ;;  %v5883_v19 = vsel %vm5882_vm9, %v5881_v51, 0  ;;  %vm5658_vm14 = vcmp.eq.s32.totalorder %v12541_v32, 2  ;;  %v5749_v0 = vsub.s32 4, %v12527_v45  ;;  %v79_v32 = vld [vmem:[#allocation2 + $0x1c0] sm:$0xff] }
 0x557   :  { %v12585_v35 = vmul.u32.u64.low %v12543_v12, %v5814_v1  ;;  %v12586_v14 = vmul.u32.u64.high %v12543_v12, %v5814_v1, %v12585_v35  ;;  %v5885_v37 = vand.u32 31, %v5883_v19  ;;  %v5737_v17 = vshrl.u32 %v5719_v57, %v5735_v54 }
 0x558   :  { %v5740_v59 = vadd.s32 127, %v5739_v24  ;;  %v5879_v53 = vor.u32 8388608, %v12547_v60  ;;  %v5822_v22 = vmul.u32 %v12543_v12, %v5806_v18  ;;  %v5825_v33 = vadd.s32 1, %v12578_v4 }
 0x559   :  { %v12592_v29 = vshrl.u32 %v5883_v19, 5  ;;  %v5886_v28 = vsub.s32 32, %v5885_v37  ;;  %vm12596_vm15 = vcmp.le.f32.partialorder %v5663_v34, 0.7853982  ;;  %v5738_v56 = vor.u32 %v5737_v17, %v5736_v15 }
 0x55a   :  { %v7619_v13 = vpop.eup %7618  ;;  %v5741_v25 = vshll.u32 %v5740_v59, 23  ;;  %v5888_v55 = vshll.u32 %v7717_v36, %v5885_v37  ;;  %v5891_v60 = vshll.u32 %v7718_v38, %v5885_v37  ;;  %vm5824_vm0 = vc.u32 %v12586_v14, %v12577_v9 }
 0x55b   :  { %v7621_v11 = vpop.eup %7620  ;;  %v5659_v12 = vxor.u32 2147483648, %v7619_v13  ;;  %v5894_v27 = vshll.u32 %v7719_v40, %v5885_v37  ;;  %v5897_v20 = vshll.u32 %v7720_v42, %v5885_v37  ;;  %v5745_v16 = vcvt.s32.f32 %v5738_v56 }
 0x55c   :  { %v5656_v31 = vxor.u32 2147483648, %v7621_v11  ;;  %v5742_v34 = vor.u32 4788187, %v5741_v25  ;;  %v5826_v23 = vsel %vm5824_vm0, %v5825_v33, %v12578_v4  ;;  %v5889_v51 = vshrl.u32 %v7718_v38, %v5886_v28 }
 0x55d   :  { %v5660_v62 = vsel %vm5658_vm14, %v5659_v12, %v7621_v11  ;;  %v5827_v58 = vadd.s32 %v5826_v23, %v5822_v22  ;;  %v5892_v46 = vshrl.u32 %v7719_v40, %v5886_v28  ;;  %v5895_v5 = vshrl.u32 %v7720_v42, %v5886_v28 }
 0x55e   :  { %v5657_v48 = vsel %vm5655_vm8, %v7619_v13, %v5656_v31  ;;  %v5743_v8 = vand.u32 2147483647, %v5742_v34  ;;  %v5898_v47 = vshrl.u32 %v7721_v44, %v5886_v28  ;;  %v5750_v2 = vsel %vm5665_vm13, %v5749_v0, %v12527_v45 }
 0x55f   :  { %v5661_v3 = vsel %vm5654_vm10, %v5657_v48, %v5660_v62  ;;  %v5828_v63 = vadd.s32 536870912, %v5827_v58  ;;  %v5890_v57 = vor.u32 %v5889_v51, %v5888_v55  ;;  %v5893_v18 = vor.u32 %v5892_v46, %v5891_v60  ;;  %v80_v55 = vld [vmem:[#allocation2 + $0x1c8] sm:$0xff] }
 0x560   :  { %v5662_v39 = vsel %vm5651_vm12, nan, %v5661_v3  ;;  %v5746_v26 = vmul.f32 %v5745_v16, %v5743_v8  ;;  %v5899_v10 = vor.u32 %v5898_v47, %v5897_v20  ;;  %v5900_v6 = vshll.u32 %v7721_v44, %v5885_v37 }
 0x561   :  { %v5829_v49 = vshrl.u32 %v5828_v63, 30  ;;  %v5901_v1 = vshrl.u32 %v7722_v52, %v5886_v28  ;;  %vm5903_vm1 = vcmp.lt.s32.totalorder %v12592_v29, 1  ;;  %6859 = vst [vmem:[#allocation5 + $0x1a0] sm:$0xff] %v5662_v39  ;;  %v5896_v54 = vor.u32 %v5895_v5, %v5894_v27 }
 0x562   :  { %v5747_v4 = vxor.u32 2147483648, %v5746_v26  ;;  %vm5906_vm2 = vcmp.lt.s32.totalorder %v12592_v29, 4  ;;  %v12626_v45 = vshll.u32 %v5879_v53, 8  ;;  %v5752_v7 = vsel %vm12596_vm15, 0, %v5750_v2 }
 0x563   :  { %v5830_v15 = vshll.u32 %v5829_v49, 30  ;;  %vm5904_vm3 = vcmp.lt.s32.totalorder %v12592_v29, 2  ;;  %vm5905_vm4 = vcmp.lt.s32.totalorder %v12592_v29, 3  ;;  %v5902_v19 = vor.u32 %v5901_v1, %v5900_v6 }
 0x564   :  { %v5748_v24 = vsel %vm5665_vm13, %v5747_v4, %v5746_v26  ;;  %v5911_v35 = vsel %vm5903_vm1, %v5890_v57, %v5893_v18  ;;  %v5912_v37 = vsel %vm5906_vm2, %v5899_v10, 920167782  ;;  %v12638_v17 = vmul.f32 30.0, %v79_v32 }
 0x565   :  { %v5751_v59 = vsel %vm12596_vm15, %v12308_v61, %v5748_v24  ;;  %v12643_v0 = vsub.s32 %v5827_v58, %v5830_v15  ;;  %v5887_v53 = vshrl.u32 %v7717_v36, %v5886_v28  ;;  %v5756_v22 = vadd.s32 3, %v5752_v7 }
 0x566   :  { %7622 = vcosq.f32 %v5751_v59  ;;  %v5908_v33 = vsel %vm5906_vm2, %v5896_v54, 2102212464  ;;  %v5913_v13 = vsel %vm5905_vm4, %v5896_v54, %v5912_v37  ;;  %v5853_v25 = vsub.s32 4, %v5829_v49 }
 0x567   :  { %7624 = vsinq.f32 %v5751_v59  ;;  %v5833_v56 = vsub.s32 0, %v12643_v0  ;;  %v5914_v21 = vsel %vm5904_vm3, %v5911_v35, %v5913_v13  ;;  %v5915_v60 = vsel %vm5903_vm1, %v5893_v18, %v5896_v54 }
 0x568   :  { %v5916_v28 = vsel %vm5906_vm2, %v5902_v19, 1326507024  ;;  %v12658_v11 = vmul.u32.u64.low %v12626_v45, %v5914_v21  ;;  %v12659_v12 = vmul.u32.u64.high %v12626_v45, %v5914_v21, %v12658_v11  ;;  %v5907_v20 = vsel %vm5903_vm1, %v5887_v53, %v5890_v57 }
 0x569   :  { %v7105_v27 = vmin.u32 %v5833_v56, %v12643_v0  ;;  %v5909_v31 = vsel %vm5905_vm4, %v5893_v18, %v5908_v33  ;;  %v5917_v34 = vsel %vm5905_vm4, %v5899_v10, %v5916_v28  ;;  %v5757_v16 = vand.u32 3, %v5756_v22 }
 0x56a   :  { %v5918_v23 = vsel %vm5904_vm3, %v5915_v60, %v5917_v34  ;;  %v5978_v62 = vand.u32 2139095040, %v12638_v17  ;;  %v12672_v58 = vmul.f32 30.0, %v80_v55  ;;  %vm5755_vm5 = vweird.f32 %v12308_v61 }
 0x56b   :  { %vm5769_vm6 = vcmp.lt.s32.totalorder %v12456_v30, 0  ;;  %v5835_v51 = vclz %v7105_v27  ;;  %v5910_v46 = vsel %vm5904_vm3, %v5907_v20, %v5909_v31  ;;  %vm12684_vm7 = vcmp.le.f32.partialorder %v5767_v41, 0.7853982 }
 0x56c   :  { %v12679_v48 = vmul.u32.u64.low %v12626_v45, %v5918_v23  ;;  %v12680_v8 = vmul.u32.u64.high %v12626_v45, %v5918_v23, %v12679_v48  ;;  %v5979_v5 = vshrl.u32 %v5978_v62, 23  ;;  %v5854_v2 = vsel %vm5769_vm6, %v5853_v25, %v5829_v49 }
 0x56d   :  { %v7106_v3 = vadd.s32 4294967294, %v5835_v51  ;;  %v5975_v63 = vand.u32 2147483647, %v12638_v17  ;;  %vm5758_vm8 = vcmp.lt.s32.totalorder %v5757_v16, 2  ;;  %vm5759_vm9 = vcmp.eq.s32.totalorder %v5757_v16, 0 }
 0x56e   :  { %v5929_v29 = vadd.s32 1, %v12659_v12  ;;  %v7112_v57 = vadd.s32 4294967169, %v5979_v5  ;;  %vm5762_vm10 = vcmp.eq.s32.totalorder %v5757_v16, 2  ;;  %v5823_v39 = vadd.s32 %v12577_v9, %v12586_v14 }
 0x56f   :  { %vm7107_vm11 = vcmp.lt.s32.totalorder %v7106_v3, 0  ;;  %v5926_v41 = vmul.u32 %v12626_v45, %v5910_v46  ;;  %v5856_v10 = vsel %vm12684_vm7, 0, %v5854_v2  ;;  %vm5928_vm12 = vc.u32 %v12680_v8, %v12658_v11 }
 0x570   :  { %v7623_v26 = vpop.eup %7622  ;;  %v5838_v18 = vsel %vm7107_vm11, 0, %v7106_v3  ;;  %v5985_v49 = vadd.s32 1, %v7112_v57  ;;  %v5930_v9 = vsel %vm5928_vm12, %v5929_v29, %v12659_v12  ;;  %v5982_v14 = vand.u32 8388607, %v5975_v63 }
 0x571   :  { %v7625_v6 = vpop.eup %7624  ;;  %v5763_v1 = vxor.u32 2147483648, %v7623_v26  ;;  %v5839_v32 = vsub.s32 32, %v5838_v18  ;;  %v5840_v4 = vshll.u32 %v12643_v0, %v5838_v18  ;;  %v5843_v54 = vsub.s32 4294967266, %v5838_v18 }
 0x572   :  { %v5760_v7 = vxor.u32 2147483648, %v7625_v6  ;;  %vm5986_vm13 = vcmp.gt.s32.totalorder %v5985_v49, 0  ;;  %v5931_v19 = vadd.s32 %v5930_v9, %v5926_v41  ;;  %v6082_v59 = vand.u32 2139095040, %v12672_v58 }
 0x573   :  { %v5764_v45 = vsel %vm5762_vm10, %v5763_v1, %v7625_v6  ;;  %v5841_v15 = vshrl.u32 %v5823_v39, %v5839_v32  ;;  %v5844_v24 = vadd.s32 127, %v5843_v54  ;;  %v5987_v37 = vsel %vm5986_vm13, %v5985_v49, 0 }
 0x574   :  { %v5761_v35 = vsel %vm5759_vm9, %v7623_v26, %v5760_v7  ;;  %v5932_v33 = vadd.s32 536870912, %v5931_v19  ;;  %v5860_v56 = vadd.s32 3, %v5856_v10  ;;  %v5989_v25 = vand.u32 31, %v5987_v37 }
 0x575   :  { %v5765_v0 = vsel %vm5758_vm8, %v5761_v35, %v5764_v45  ;;  %v5842_v53 = vor.u32 %v5841_v15, %v5840_v4  ;;  %v5845_v22 = vshll.u32 %v5844_v24, 23  ;;  %v5983_v28 = vor.u32 8388608, %v5982_v14 }
 0x576   :  { %v5766_v13 = vsel %vm5755_vm5, nan, %v5765_v0  ;;  %v12709_v60 = vshrl.u32 %v5932_v33, 30  ;;  %v5988_v12 = vshrl.u32 %v5987_v37, 5  ;;  %v5990_v27 = vsub.s32 32, %v5989_v25 }
 0x577   :  { %v5846_v21 = vor.u32 4788187, %v5845_v22  ;;  %v5849_v55 = vcvt.s32.f32 %v5842_v53  ;;  %6860 = vst [vmem:[#allocation5 + $0x1a8] sm:$0xff] %v5766_v13  ;;  %v6079_v20 = vand.u32 2147483647, %v12672_v58  ;;  %v6083_v31 = vshrl.u32 %v6082_v59, 23 }
 0x578   :  { %v5934_v16 = vshll.u32 %v12709_v60, 30  ;;  %v5992_v23 = vshll.u32 %v7717_v36, %v5989_v25  ;;  %v5995_v61 = vshll.u32 %v7718_v38, %v5989_v25  ;;  %v5993_v62 = vshrl.u32 %v7718_v38, %v5990_v27 }
 0x579   :  { %v5847_v34 = vand.u32 2147483647, %v5846_v21  ;;  %v5996_v51 = vshrl.u32 %v7719_v40, %v5990_v27  ;;  %v5998_v46 = vshll.u32 %v7719_v40, %v5989_v25  ;;  %v5999_v48 = vshrl.u32 %v7720_v42, %v5990_v27 }
 0x57a   :  { %v12719_v3 = vsub.s32 %v5931_v19, %v5934_v16  ;;  %v6001_v2 = vshll.u32 %v7720_v42, %v5989_v25  ;;  %v6002_v29 = vshrl.u32 %v7721_v44, %v5990_v27  ;;  %v12723_v57 = vand.u32 3, %v5860_v56 }
 0x57b   :  { %v5850_v5 = vmul.f32 %v5849_v55, %v5847_v34  ;;  %v12725_v39 = vshll.u32 %v5983_v28, 8  ;;  %v7116_v41 = vadd.s32 4294967169, %v6083_v31  ;;  %v12729_v26 = vand.u32 8388607, %v6079_v20 }
 0x57c   :  { %v5937_v10 = vsub.s32 0, %v12719_v3  ;;  %v5991_v49 = vshrl.u32 %v7717_v36, %v5990_v27  ;;  %v5994_v6 = vor.u32 %v5993_v62, %v5992_v23  ;;  %v5997_v1 = vor.u32 %v5996_v51, %v5995_v61 }
 0x57d   :  { %v5851_v18 = vxor.u32 2147483648, %v5850_v5  ;;  %v6000_v32 = vor.u32 %v5999_v48, %v5998_v46  ;;  %v6004_v4 = vshll.u32 %v7721_v44, %v5989_v25  ;;  %v6005_v54 = vshrl.u32 %v7722_v52, %v5990_v27 }
 0x57e   :  { %v7109_v9 = vmin.u32 %v5937_v10, %v12719_v3  ;;  %v6003_v14 = vor.u32 %v6002_v29, %v6001_v2  ;;  %vm6007_vm14 = vcmp.lt.s32.totalorder %v5988_v12, 1  ;;  %vm6010_vm15 = vcmp.lt.s32.totalorder %v5988_v12, 4 }
 0x57f   :  { %v5852_v7 = vsel %vm5769_vm6, %v5851_v18, %v5850_v5  ;;  %v6006_v15 = vor.u32 %v6005_v54, %v6004_v4  ;;  %v6089_v24 = vadd.s32 1, %v7116_v41  ;;  %vm6008_vm0 = vcmp.lt.s32.totalorder %v5988_v12, 2 }
 0x580   :  { %v5855_v45 = vsel %vm12684_vm7, %v12456_v30, %v5852_v7  ;;  %v5939_v19 = vclz %v7109_v9  ;;  %vm6009_vm1 = vcmp.lt.s32.totalorder %v5988_v12, 3  ;;  %v6011_v35 = vsel %vm6007_vm14, %v5991_v49, %v5994_v6 }
 0x581   :  { %7626 = vcosq.f32 %v5855_v45  ;;  %v6012_v37 = vsel %vm6010_vm15, %v6000_v32, 2102212464  ;;  %v6015_v59 = vsel %vm6007_vm14, %v5994_v6, %v5997_v1  ;;  %v6016_v47 = vsel %vm6010_vm15, %v6003_v14, 920167782 }
 0x582   :  { %7628 = vsinq.f32 %v5855_v45  ;;  %v7110_v0 = vadd.s32 4294967294, %v5939_v19  ;;  %v6013_v53 = vsel %vm6009_vm1, %v5997_v1, %v6012_v37  ;;  %v6019_v22 = vsel %vm6007_vm14, %v5997_v1, %v6000_v32 }
 0x583   :  { %vm5863_vm2 = vcmp.eq.s32.totalorder %v12723_v57, 0  ;;  %v5927_v33 = vadd.s32 %v12658_v11, %v12680_v8  ;;  %v6017_v13 = vsel %vm6009_vm1, %v6000_v32, %v6016_v47  ;;  %v6020_v56 = vsel %vm6010_vm15, %v6006_v15, 1326507024 }
 0x584   :  { %vm6090_vm3 = vcmp.gt.s32.totalorder %v6089_v24, 0  ;;  %vm5862_vm4 = vcmp.lt.s32.totalorder %v12723_v57, 2  ;;  %vm7111_vm5 = vcmp.lt.s32.totalorder %v7110_v0, 0  ;;  %v6014_v25 = vsel %vm6008_vm0, %v6011_v35, %v6013_v53 }
 0x585   :  { %v6018_v21 = vsel %vm6008_vm0, %v6015_v59, %v6017_v13  ;;  %v6021_v55 = vsel %vm6009_vm1, %v6003_v14, %v6020_v56  ;;  %vm5859_vm6 = vweird.f32 %v12456_v30  ;;  %v5942_v28 = vsel %vm7111_vm5, 0, %v7110_v0 }
 0x586   :  { %v6022_v27 = vsel %vm6008_vm0, %v6019_v22, %v6021_v55  ;;  %v12759_v11 = vmul.u32.u64.low %v12725_v39, %v6018_v21  ;;  %v12760_v8 = vmul.u32.u64.high %v12725_v39, %v6018_v21, %v12759_v11  ;;  %vm5873_vm7 = vcmp.lt.s32.totalorder %v12490_v50, 0 }
 0x587   :  { %v5943_v31 = vsub.s32 32, %v5942_v28  ;;  %v5944_v34 = vshll.u32 %v12719_v3, %v5942_v28  ;;  %v5947_v16 = vsub.s32 4294967266, %v5942_v28  ;;  %v6091_v23 = vsel %vm6090_vm3, %v6089_v24, 0 }
 0x588   :  { %vm5866_vm8 = vcmp.eq.s32.totalorder %v12723_v57, 2  ;;  %v12767_v61 = vmul.u32.u64.low %v12725_v39, %v6022_v27  ;;  %v12768_v62 = vmul.u32.u64.high %v12725_v39, %v6022_v27, %v12767_v61  ;;  %v6093_v12 = vand.u32 31, %v6091_v23  ;;  %v81_v57 = vld [vmem:[#allocation2 + $0x1d0] sm:$0xff] }
 0x589   :  { %v5945_v51 = vshrl.u32 %v5927_v33, %v5943_v31  ;;  %v5948_v46 = vadd.s32 127, %v5947_v16  ;;  %v5957_v48 = vsub.s32 4, %v12709_v60  ;;  %v6087_v5 = vor.u32 8388608, %v12729_v26 }
 0x58a   :  { %v6030_v2 = vmul.u32 %v12725_v39, %v6014_v25  ;;  %v6033_v29 = vadd.s32 1, %v12760_v8  ;;  %v12774_v3 = vshrl.u32 %v6091_v23, 5  ;;  %v6094_v41 = vsub.s32 32, %v6093_v12 }
 0x58b   :  { %v7627_v18 = vpop.eup %7626  ;;  %vm12778_vm9 = vcmp.le.f32.partialorder %v5871_v43, 0.7853982  ;;  %v5946_v49 = vor.u32 %v5945_v51, %v5944_v34  ;;  %v5949_v6 = vshll.u32 %v5948_v46, 23  ;;  %v6096_v1 = vshll.u32 %v7717_v36, %v6093_v12 }
 0x58c   :  { %v6099_v26 = vshll.u32 %v7718_v38, %v6093_v12  ;;  %v7629_v32 = vpop.eup %7628  ;;  %v5867_v39 = vxor.u32 2147483648, %v7627_v18  ;;  %vm6032_vm10 = vc.u32 %v12768_v62, %v12759_v11  ;;  %v6102_v4 = vshll.u32 %v7719_v40, %v6093_v12 }
 0x58d   :  { %v6105_v54 = vshll.u32 %v7720_v42, %v6093_v12  ;;  %v5864_v7 = vxor.u32 2147483648, %v7629_v32  ;;  %v5950_v43 = vor.u32 4788187, %v5949_v6  ;;  %v5953_v9 = vcvt.s32.f32 %v5946_v49 }
 0x58e   :  { %v6034_v14 = vsel %vm6032_vm10, %v6033_v29, %v12760_v8  ;;  %v5868_v45 = vsel %vm5866_vm8, %v5867_v39, %v7629_v32  ;;  %v6097_v24 = vshrl.u32 %v7718_v38, %v6094_v41  ;;  %v6100_v19 = vshrl.u32 %v7719_v40, %v6094_v41 }
 0x58f   :  { %v6035_v15 = vadd.s32 %v6034_v14, %v6030_v2  ;;  %v5865_v35 = vsel %vm5863_vm2, %v7627_v18, %v5864_v7  ;;  %v5951_v37 = vand.u32 2147483647, %v5950_v43  ;;  %v6103_v59 = vshrl.u32 %v7720_v42, %v6094_v41 }
 0x590   :  { %v6106_v0 = vshrl.u32 %v7721_v44, %v6094_v41  ;;  %v5869_v53 = vsel %vm5862_vm4, %v5865_v35, %v5868_v45  ;;  %v5958_v47 = vsel %vm5873_vm7, %v5957_v48, %v12709_v60  ;;  %v6098_v33 = vor.u32 %v6097_v24, %v6096_v1  ;;  %v82_v1 = vld [vmem:[#allocation2 + $0x1d8] sm:$0xff] }
 0x591   :  { %v6036_v22 = vadd.s32 536870912, %v6035_v15  ;;  %v5870_v13 = vsel %vm5859_vm6, nan, %v5869_v53  ;;  %v5954_v56 = vmul.f32 %v5953_v9, %v5951_v37  ;;  %v6101_v25 = vor.u32 %v6100_v19, %v6099_v26 }
 0x592   :  { %v6107_v21 = vor.u32 %v6106_v0, %v6105_v54  ;;  %v6108_v28 = vshll.u32 %v7721_v44, %v6093_v12  ;;  %v6109_v27 = vshrl.u32 %v7722_v52, %v6094_v41  ;;  %vm6111_vm11 = vcmp.lt.s32.totalorder %v12774_v3, 1  ;;  %6861 = vst [vmem:[#allocation5 + $0x1b0] sm:$0xff] %v5870_v13 }
 0x593   :  { %v6037_v55 = vshrl.u32 %v6036_v22, 30  ;;  %v5955_v8 = vxor.u32 2147483648, %v5954_v56  ;;  %v6104_v31 = vor.u32 %v6103_v59, %v6102_v4  ;;  %vm6114_vm12 = vcmp.lt.s32.totalorder %v12774_v3, 4 }
 0x594   :  { %v12808_v60 = vshll.u32 %v6087_v5, 8  ;;  %v5960_v30 = vsel %vm12778_vm9, 0, %v5958_v47  ;;  %vm6112_vm13 = vcmp.lt.s32.totalorder %v12774_v3, 2  ;;  %vm6113_vm14 = vcmp.lt.s32.totalorder %v12774_v3, 3 }
 0x595   :  { %v6038_v34 = vshll.u32 %v6037_v55, 30  ;;  %v5956_v16 = vsel %vm5873_vm7, %v5955_v8, %v5954_v56  ;;  %v6110_v23 = vor.u32 %v6109_v27, %v6108_v28  ;;  %v6119_v61 = vsel %vm6111_vm11, %v6098_v33, %v6101_v25 }
 0x596   :  { %v6120_v12 = vsel %vm6114_vm12, %v6107_v21, 920167782  ;;  %v12820_v51 = vmul.f32 30.0, %v81_v57  ;;  %v5959_v46 = vsel %vm12778_vm9, %v12490_v50, %v5956_v16  ;;  %v6095_v5 = vshrl.u32 %v7717_v36, %v6094_v41 }
 0x597   :  { %v12825_v48 = vsub.s32 %v6035_v15, %v6038_v34  ;;  %7630 = vcosq.f32 %v5959_v46  ;;  %v5964_v2 = vadd.s32 3, %v5960_v30  ;;  %v6116_v29 = vsel %vm6114_vm12, %v6104_v31, 2102212464 }
 0x598   :  { %v6121_v18 = vsel %vm6113_vm14, %v6104_v31, %v6120_v12  ;;  %7632 = vsinq.f32 %v5959_v46  ;;  %v6061_v6 = vsub.s32 4, %v6037_v55  ;;  %v6123_v26 = vsel %vm6111_vm11, %v6101_v25, %v6104_v31 }
 0x599   :  { %v6041_v49 = vsub.s32 0, %v12825_v48  ;;  %v6122_v10 = vsel %vm6112_vm13, %v6119_v61, %v6121_v18  ;;  %v6124_v41 = vsel %vm6114_vm12, %v6110_v23, 1326507024  ;;  %v6115_v54 = vsel %vm6111_vm11, %v6095_v5, %v6098_v33 }
 0x59a   :  { %v12840_v32 = vmul.u32.u64.low %v12808_v60, %v6122_v10  ;;  %v12841_v39 = vmul.u32.u64.high %v12808_v60, %v6122_v10, %v12840_v32  ;;  %v6117_v7 = vsel %vm6113_vm14, %v6101_v25, %v6116_v29  ;;  %v6125_v43 = vsel %vm6113_vm14, %v6107_v21, %v6124_v41 }
 0x59b   :  { %v7113_v4 = vmin.u32 %v6041_v49, %v12825_v48  ;;  %v5965_v9 = vand.u32 3, %v5964_v2  ;;  %v6126_v14 = vsel %vm6112_vm13, %v6123_v26, %v6125_v43  ;;  %v6186_v45 = vand.u32 2139095040, %v12820_v51 }
 0x59c   :  { %v12854_v15 = vmul.f32 30.0, %v82_v1  ;;  %vm5963_vm15 = vweird.f32 %v12490_v50  ;;  %vm5977_vm0 = vcmp.lt.s32.totalorder %v12638_v17, 0  ;;  %v6118_v19 = vsel %vm6112_vm13, %v6115_v54, %v6117_v7 }
 0x59d   :  { %v6043_v24 = vclz %v7113_v4  ;;  %v12861_v35 = vmul.u32.u64.low %v12808_v60, %v6126_v14  ;;  %v12862_v37 = vmul.u32.u64.high %v12808_v60, %v6126_v14, %v12861_v35  ;;  %v6187_v59 = vshrl.u32 %v6186_v45, 23 }
 0x59e   :  { %vm12866_vm1 = vcmp.le.f32.partialorder %v5975_v63, 0.7853982  ;;  %v6062_v47 = vsel %vm5977_vm0, %v6061_v6, %v6037_v55  ;;  %v6183_v22 = vand.u32 2147483647, %v12820_v51  ;;  %vm5966_vm2 = vcmp.lt.s32.totalorder %v5965_v9, 2 }
 0x59f   :  { %v7114_v53 = vadd.s32 4294967294, %v6043_v24  ;;  %vm5967_vm3 = vcmp.eq.s32.totalorder %v5965_v9, 0  ;;  %v6137_v3 = vadd.s32 1, %v12841_v39  ;;  %v7120_v33 = vadd.s32 4294967169, %v6187_v59 }
 0x5a0   :  { %vm5970_vm4 = vcmp.eq.s32.totalorder %v5965_v9, 2  ;;  %v6031_v13 = vadd.s32 %v12759_v11, %v12768_v62  ;;  %v6134_v63 = vmul.u32 %v12808_v60, %v6118_v19  ;;  %v6064_v21 = vsel %vm12866_vm1, 0, %v6062_v47 }
 0x5a1   :  { %vm7115_vm5 = vcmp.lt.s32.totalorder %v7114_v53, 0  ;;  %v7631_v56 = vpop.eup %7630  ;;  %vm6136_vm6 = vc.u32 %v12862_v37, %v12840_v32  ;;  %v6193_v55 = vadd.s32 1, %v7120_v33  ;;  %v6190_v62 = vand.u32 8388607, %v6183_v22 }
 0x5a2   :  { %v6046_v25 = vsel %vm7115_vm5, 0, %v7114_v53  ;;  %v7633_v28 = vpop.eup %7632  ;;  %v5971_v27 = vxor.u32 2147483648, %v7631_v56  ;;  %v6138_v11 = vsel %vm6136_vm6, %v6137_v3, %v12841_v39  ;;  %v6290_v46 = vand.u32 2139095040, %v12854_v15 }
 0x5a3   :  { %v6047_v57 = vsub.s32 32, %v6046_v25  ;;  %v6048_v8 = vshll.u32 %v12825_v48, %v6046_v25  ;;  %v6051_v31 = vsub.s32 4294967266, %v6046_v25  ;;  %v5968_v30 = vxor.u32 2147483648, %v7633_v28 }
 0x5a4   :  { %vm6194_vm7 = vcmp.gt.s32.totalorder %v6193_v55, 0  ;;  %v5972_v60 = vsel %vm5970_vm4, %v5971_v27, %v7633_v28  ;;  %v6139_v23 = vadd.s32 %v6138_v11, %v6134_v63  ;;  %v6068_v49 = vadd.s32 3, %v6064_v21 }
 0x5a5   :  { %v6049_v34 = vshrl.u32 %v6031_v13, %v6047_v57  ;;  %v6052_v16 = vadd.s32 127, %v6051_v31  ;;  %v5969_v61 = vsel %vm5967_vm3, %v7631_v56, %v5968_v30  ;;  %v6195_v12 = vsel %vm6194_vm7, %v6193_v55, 0 }
 0x5a6   :  { %v5973_v48 = vsel %vm5966_vm2, %v5969_v61, %v5972_v60  ;;  %v6140_v29 = vadd.s32 536870912, %v6139_v23  ;;  %v6197_v6 = vand.u32 31, %v6195_v12  ;;  %v6191_v41 = vor.u32 8388608, %v6190_v62 }
 0x5a7   :  { %v6050_v5 = vor.u32 %v6049_v34, %v6048_v8  ;;  %v6053_v2 = vshll.u32 %v6052_v16, 23  ;;  %v5974_v18 = vsel %vm5963_vm15, nan, %v5973_v48  ;;  %v6196_v39 = vshrl.u32 %v6195_v12, 5 }
 0x5a8   :  { %v12891_v26 = vshrl.u32 %v6140_v29, 30  ;;  %6862 = vst [vmem:[#allocation5 + $0x1b8] sm:$0xff] %v5974_v18  ;;  %v6198_v4 = vsub.s32 32, %v6197_v6  ;;  %v6287_v54 = vand.u32 2147483647, %v12854_v15  ;;  %v6291_v7 = vshrl.u32 %v6290_v46, 23 }
 0x5a9   :  { %v6054_v10 = vor.u32 4788187, %v6053_v2  ;;  %v6057_v1 = vcvt.s32.f32 %v6050_v5  ;;  %v6200_v14 = vshll.u32 %v7717_v36, %v6197_v6  ;;  %v6203_v50 = vshll.u32 %v7718_v38, %v6197_v6 }
 0x5aa   :  { %v6142_v9 = vshll.u32 %v12891_v26, 30  ;;  %v6201_v45 = vshrl.u32 %v7718_v38, %v6198_v4  ;;  %v6204_v24 = vshrl.u32 %v7719_v40, %v6198_v4  ;;  %v6206_v19 = vshll.u32 %v7719_v40, %v6197_v6 }
 0x5ab   :  { %v6055_v43 = vand.u32 2147483647, %v6054_v10  ;;  %v6207_v35 = vshrl.u32 %v7720_v42, %v6198_v4  ;;  %v6209_v47 = vshll.u32 %v7720_v42, %v6197_v6  ;;  %v6210_v3 = vshrl.u32 %v7721_v44, %v6198_v4 }
 0x5ac   :  { %v12901_v53 = vsub.s32 %v6139_v23, %v6142_v9  ;;  %v12905_v33 = vand.u32 3, %v6068_v49  ;;  %v12907_v13 = vshll.u32 %v6191_v41, 8  ;;  %v7124_v63 = vadd.s32 4294967169, %v6291_v7 }
 0x5ad   :  { %v6058_v59 = vmul.f32 %v6057_v1, %v6055_v43  ;;  %v12911_v56 = vand.u32 8388607, %v6287_v54  ;;  %v6199_v55 = vshrl.u32 %v7717_v36, %v6198_v4  ;;  %v6202_v28 = vor.u32 %v6201_v45, %v6200_v14 }
 0x5ae   :  { %v6145_v21 = vsub.s32 0, %v12901_v53  ;;  %v6205_v27 = vor.u32 %v6204_v24, %v6203_v50  ;;  %v6208_v57 = vor.u32 %v6207_v35, %v6206_v19  ;;  %v6212_v8 = vshll.u32 %v7721_v44, %v6197_v6 }
 0x5af   :  { %v6059_v25 = vxor.u32 2147483648, %v6058_v59  ;;  %v6213_v31 = vshrl.u32 %v7722_v52, %v6198_v4  ;;  %v6211_v62 = vor.u32 %v6210_v3, %v6209_v47  ;;  %vm6215_vm8 = vcmp.lt.s32.totalorder %v6196_v39, 1 }
 0x5b0   :  { %v7117_v11 = vmin.u32 %v6145_v21, %v12901_v53  ;;  %vm6218_vm9 = vcmp.lt.s32.totalorder %v6196_v39, 4  ;;  %v6297_v16 = vadd.s32 1, %v7124_v63  ;;  %vm6216_vm10 = vcmp.lt.s32.totalorder %v6196_v39, 2 }
 0x5b1   :  { %v6060_v30 = vsel %vm5977_vm0, %v6059_v25, %v6058_v59  ;;  %v6214_v34 = vor.u32 %v6213_v31, %v6212_v8  ;;  %vm6217_vm11 = vcmp.lt.s32.totalorder %v6196_v39, 3  ;;  %v6219_v61 = vsel %vm6215_vm8, %v6199_v55, %v6202_v28 }
 0x5b2   :  { %v6063_v60 = vsel %vm12866_vm1, %v12638_v17, %v6060_v30  ;;  %v6147_v23 = vclz %v7117_v11  ;;  %v6220_v12 = vsel %vm6218_vm9, %v6208_v57, 2102212464  ;;  %v6223_v46 = vsel %vm6215_vm8, %v6202_v28, %v6205_v27 }
 0x5b3   :  { %7634 = vcosq.f32 %v6063_v60  ;;  %v6221_v5 = vsel %vm6217_vm11, %v6205_v27, %v6220_v12  ;;  %v6224_v0 = vsel %vm6218_vm9, %v6211_v62, 920167782  ;;  %v6227_v2 = vsel %vm6215_vm8, %v6205_v27, %v6208_v57 }
 0x5b4   :  { %7636 = vsinq.f32 %v6063_v60  ;;  %v7118_v48 = vadd.s32 4294967294, %v6147_v23  ;;  %vm6071_vm12 = vcmp.eq.s32.totalorder %v12905_v33, 0  ;;  %v6135_v29 = vadd.s32 %v12840_v32, %v12862_v37 }
 0x5b5   :  { %v6225_v18 = vsel %vm6217_vm11, %v6208_v57, %v6224_v0  ;;  %v6228_v49 = vsel %vm6218_vm9, %v6214_v34, 1326507024  ;;  %vm6298_vm13 = vcmp.gt.s32.totalorder %v6297_v16, 0  ;;  %vm6070_vm14 = vcmp.lt.s32.totalorder %v12905_v33, 2 }
 0x5b6   :  { %vm7119_vm15 = vcmp.lt.s32.totalorder %v7118_v48, 0  ;;  %v6222_v6 = vsel %vm6216_vm10, %v6219_v61, %v6221_v5  ;;  %v6226_v10 = vsel %vm6216_vm10, %v6223_v46, %v6225_v18  ;;  %v6229_v1 = vsel %vm6217_vm11, %v6211_v62, %v6228_v49 }
 0x5b7   :  { %vm6067_vm0 = vweird.f32 %v12638_v17  ;;  %v6150_v41 = vsel %vm7119_vm15, 0, %v7118_v48  ;;  %v6230_v4 = vsel %vm6216_vm10, %v6227_v2, %v6229_v1  ;;  %vm6081_vm1 = vcmp.lt.s32.totalorder %v12672_v58, 0 }
 0x5b8   :  { %v12941_v32 = vmul.u32.u64.low %v12907_v13, %v6226_v10  ;;  %v12942_v37 = vmul.u32.u64.high %v12907_v13, %v6226_v10, %v12941_v32  ;;  %v6151_v7 = vsub.s32 32, %v6150_v41  ;;  %v6152_v43 = vshll.u32 %v12901_v53, %v6150_v41 }
 0x5b9   :  { %v6155_v9 = vsub.s32 4294967266, %v6150_v41  ;;  %v6299_v14 = vsel %vm6298_vm13, %v6297_v16, 0  ;;  %vm6074_vm2 = vcmp.eq.s32.totalorder %v12905_v33, 2  ;;  %v6165_v35 = vsub.s32 4, %v12891_v26  ;;  %v83_v33 = vld [vmem:[#allocation2 + $0x1e0] sm:$0xff] }
 0x5ba   :  { %v12949_v50 = vmul.u32.u64.low %v12907_v13, %v6230_v4  ;;  %v12950_v45 = vmul.u32.u64.high %v12907_v13, %v6230_v4, %v12949_v50  ;;  %v6301_v39 = vand.u32 31, %v6299_v14  ;;  %v6153_v24 = vshrl.u32 %v6135_v29, %v6151_v7 }
 0x5bb   :  { %v6156_v19 = vadd.s32 127, %v6155_v9  ;;  %v6295_v59 = vor.u32 8388608, %v12911_v56  ;;  %v6238_v47 = vmul.u32 %v12907_v13, %v6222_v6  ;;  %v6241_v3 = vadd.s32 1, %v12942_v37 }
 0x5bc   :  { %v12956_v53 = vshrl.u32 %v6299_v14, 5  ;;  %v6302_v63 = vsub.s32 32, %v6301_v39  ;;  %vm12960_vm3 = vcmp.le.f32.partialorder %v6079_v20, 0.7853982  ;;  %v6154_v55 = vor.u32 %v6153_v24, %v6152_v43 }
 0x5bd   :  { %v7635_v25 = vpop.eup %7634  ;;  %v6157_v28 = vshll.u32 %v6156_v19, 23  ;;  %v6304_v27 = vshll.u32 %v7717_v36, %v6301_v39  ;;  %v6307_v56 = vshll.u32 %v7718_v38, %v6301_v39  ;;  %vm6240_vm4 = vc.u32 %v12950_v45, %v12941_v32 }
 0x5be   :  { %v7637_v57 = vpop.eup %7636  ;;  %v6075_v13 = vxor.u32 2147483648, %v7635_v25  ;;  %v6310_v8 = vshll.u32 %v7719_v40, %v6301_v39  ;;  %v6313_v31 = vshll.u32 %v7720_v42, %v6301_v39  ;;  %v6161_v11 = vcvt.s32.f32 %v6154_v55 }
 0x5bf   :  { %v6072_v30 = vxor.u32 2147483648, %v7637_v57  ;;  %v6158_v20 = vor.u32 4788187, %v6157_v28  ;;  %v6242_v62 = vsel %vm6240_vm4, %v6241_v3, %v12942_v37  ;;  %v6305_v16 = vshrl.u32 %v7718_v38, %v6302_v63 }
 0x5c0   :  { %v6076_v60 = vsel %vm6074_vm2, %v6075_v13, %v7637_v57  ;;  %v6243_v34 = vadd.s32 %v6242_v62, %v6238_v47  ;;  %v6308_v23 = vshrl.u32 %v7719_v40, %v6302_v63  ;;  %v6311_v46 = vshrl.u32 %v7720_v42, %v6302_v63 }
 0x5c1   :  { %v6073_v61 = vsel %vm6071_vm12, %v7635_v25, %v6072_v30  ;;  %v6159_v12 = vand.u32 2147483647, %v6158_v20  ;;  %v6314_v48 = vshrl.u32 %v7721_v44, %v6302_v63  ;;  %v6166_v0 = vsel %vm6081_vm1, %v6165_v35, %v12891_v26 }
 0x5c2   :  { %v6077_v5 = vsel %vm6070_vm14, %v6073_v61, %v6076_v60  ;;  %v6244_v2 = vadd.s32 536870912, %v6243_v34  ;;  %v6306_v29 = vor.u32 %v6305_v16, %v6304_v27  ;;  %v6309_v6 = vor.u32 %v6308_v23, %v6307_v56  ;;  %v84_v27 = vld [vmem:[#allocation2 + $0x1e8] sm:$0xff] }
 0x5c3   :  { %v6078_v18 = vsel %vm6067_vm0, nan, %v6077_v5  ;;  %v6162_v49 = vmul.f32 %v6161_v11, %v6159_v12  ;;  %v6315_v10 = vor.u32 %v6314_v48, %v6313_v31  ;;  %v6316_v41 = vshll.u32 %v7721_v44, %v6301_v39 }
 0x5c4   :  { %v6245_v1 = vshrl.u32 %v6244_v2, 30  ;;  %v6317_v4 = vshrl.u32 %v7722_v52, %v6302_v63  ;;  %vm6319_vm5 = vcmp.lt.s32.totalorder %v12956_v53, 1  ;;  %6863 = vst [vmem:[#allocation5 + $0x1c0] sm:$0xff] %v6078_v18  ;;  %v6312_v7 = vor.u32 %v6311_v46, %v6310_v8 }
 0x5c5   :  { %v6163_v37 = vxor.u32 2147483648, %v6162_v49  ;;  %vm6322_vm6 = vcmp.lt.s32.totalorder %v12956_v53, 4  ;;  %v12990_v26 = vshll.u32 %v6295_v59, 8  ;;  %v6168_v17 = vsel %vm12960_vm3, 0, %v6166_v0 }
 0x5c6   :  { %v6246_v43 = vshll.u32 %v6245_v1, 30  ;;  %vm6320_vm7 = vcmp.lt.s32.totalorder %v12956_v53, 2  ;;  %vm6321_vm8 = vcmp.lt.s32.totalorder %v12956_v53, 3  ;;  %v6318_v14 = vor.u32 %v6317_v4, %v6316_v41 }
 0x5c7   :  { %v6164_v9 = vsel %vm6081_vm1, %v6163_v37, %v6162_v49  ;;  %v6327_v50 = vsel %vm6319_vm5, %v6306_v29, %v6309_v6  ;;  %v6328_v39 = vsel %vm6322_vm6, %v6315_v10, 920167782  ;;  %v13002_v24 = vmul.f32 30.0, %v83_v33 }
 0x5c8   :  { %v6167_v19 = vsel %vm12960_vm3, %v12672_v58, %v6164_v9  ;;  %v13007_v35 = vsub.s32 %v6243_v34, %v6246_v43  ;;  %v6303_v59 = vshrl.u32 %v7717_v36, %v6302_v63  ;;  %v6172_v47 = vadd.s32 3, %v6168_v17 }
 0x5c9   :  { %7638 = vcosq.f32 %v6167_v19  ;;  %v6324_v3 = vsel %vm6322_vm6, %v6312_v7, 2102212464  ;;  %v6329_v25 = vsel %vm6321_vm8, %v6312_v7, %v6328_v39  ;;  %v6269_v28 = vsub.s32 4, %v6245_v1 }
 0x5ca   :  { %7640 = vsinq.f32 %v6167_v19  ;;  %v6249_v55 = vsub.s32 0, %v13007_v35  ;;  %v6330_v21 = vsel %vm6320_vm7, %v6327_v50, %v6329_v25  ;;  %v6331_v56 = vsel %vm6319_vm5, %v6309_v6, %v6312_v7 }
 0x5cb   :  { %v6332_v63 = vsel %vm6322_vm6, %v6318_v14, 1326507024  ;;  %v13022_v57 = vmul.u32.u64.low %v12990_v26, %v6330_v21  ;;  %v13023_v13 = vmul.u32.u64.high %v12990_v26, %v6330_v21, %v13022_v57  ;;  %v6323_v31 = vsel %vm6319_vm5, %v6303_v59, %v6306_v29 }
 0x5cc   :  { %v7121_v8 = vmin.u32 %v6249_v55, %v13007_v35  ;;  %v6325_v30 = vsel %vm6321_vm8, %v6309_v6, %v6324_v3  ;;  %v6333_v20 = vsel %vm6321_vm8, %v6315_v10, %v6332_v63  ;;  %v6173_v11 = vand.u32 3, %v6172_v47 }
 0x5cd   :  { %v6334_v62 = vsel %vm6320_vm7, %v6331_v56, %v6333_v20  ;;  %v6394_v60 = vand.u32 2139095040, %v13002_v24  ;;  %v13036_v34 = vmul.f32 30.0, %v84_v27  ;;  %vm6171_vm9 = vweird.f32 %v12672_v58 }
 0x5ce   :  { %vm6185_vm10 = vcmp.lt.s32.totalorder %v12820_v51, 0  ;;  %v6251_v16 = vclz %v7121_v8  ;;  %v6326_v23 = vsel %vm6320_vm7, %v6323_v31, %v6325_v30  ;;  %vm13048_vm11 = vcmp.le.f32.partialorder %v6183_v22, 0.7853982 }
 0x5cf   :  { %v13043_v61 = vmul.u32.u64.low %v12990_v26, %v6334_v62  ;;  %v13044_v12 = vmul.u32.u64.high %v12990_v26, %v6334_v62, %v13043_v61  ;;  %v6395_v46 = vshrl.u32 %v6394_v60, 23  ;;  %v6270_v0 = vsel %vm6185_vm10, %v6269_v28, %v6245_v1 }
 0x5d0   :  { %v7122_v5 = vadd.s32 4294967294, %v6251_v16  ;;  %v6391_v2 = vand.u32 2147483647, %v13002_v24  ;;  %vm6174_vm12 = vcmp.lt.s32.totalorder %v6173_v11, 2  ;;  %vm6175_vm13 = vcmp.eq.s32.totalorder %v6173_v11, 0 }
 0x5d1   :  { %v6345_v53 = vadd.s32 1, %v13023_v13  ;;  %v7128_v29 = vadd.s32 4294967169, %v6395_v46  ;;  %vm6178_vm14 = vcmp.eq.s32.totalorder %v6173_v11, 2  ;;  %v6239_v18 = vadd.s32 %v12941_v32, %v12950_v45 }
 0x5d2   :  { %vm7123_vm15 = vcmp.lt.s32.totalorder %v7122_v5, 0  ;;  %v6342_v22 = vmul.u32 %v12990_v26, %v6326_v23  ;;  %v6272_v10 = vsel %vm13048_vm11, 0, %v6270_v0  ;;  %vm6344_vm0 = vc.u32 %v13044_v12, %v13022_v57 }
 0x5d3   :  { %v7639_v49 = vpop.eup %7638  ;;  %v6254_v6 = vsel %vm7123_vm15, 0, %v7122_v5  ;;  %v6401_v1 = vadd.s32 1, %v7128_v29  ;;  %v6346_v32 = vsel %vm6344_vm0, %v6345_v53, %v13023_v13  ;;  %v6398_v45 = vand.u32 8388607, %v6391_v2 }
 0x5d4   :  { %v7641_v41 = vpop.eup %7640  ;;  %v6179_v4 = vxor.u32 2147483648, %v7639_v49  ;;  %v6255_v33 = vsub.s32 32, %v6254_v6  ;;  %v6256_v37 = vshll.u32 %v13007_v35, %v6254_v6  ;;  %v6259_v7 = vsub.s32 4294967266, %v6254_v6 }
 0x5d5   :  { %v6176_v17 = vxor.u32 2147483648, %v7641_v41  ;;  %vm6402_vm1 = vcmp.gt.s32.totalorder %v6401_v1, 0  ;;  %v6347_v14 = vadd.s32 %v6346_v32, %v6342_v22  ;;  %v6498_v19 = vand.u32 2139095040, %v13036_v34 }
 0x5d6   :  { %v6180_v26 = vsel %vm6178_vm14, %v6179_v4, %v7641_v41  ;;  %v6257_v43 = vshrl.u32 %v6239_v18, %v6255_v33  ;;  %v6260_v9 = vadd.s32 127, %v6259_v7  ;;  %v6403_v39 = vsel %vm6402_vm1, %v6401_v1, 0 }
 0x5d7   :  { %v6177_v50 = vsel %vm6175_vm13, %v7639_v49, %v6176_v17  ;;  %v6348_v3 = vadd.s32 536870912, %v6347_v14  ;;  %v6276_v55 = vadd.s32 3, %v6272_v10  ;;  %v6405_v28 = vand.u32 31, %v6403_v39 }
 0x5d8   :  { %v6181_v35 = vsel %vm6174_vm12, %v6177_v50, %v6180_v26  ;;  %v6258_v59 = vor.u32 %v6257_v43, %v6256_v37  ;;  %v6261_v47 = vshll.u32 %v6260_v9, 23  ;;  %v6399_v63 = vor.u32 8388608, %v6398_v45 }
 0x5d9   :  { %v6182_v25 = vsel %vm6171_vm9, nan, %v6181_v35  ;;  %v13073_v56 = vshrl.u32 %v6348_v3, 30  ;;  %v6404_v13 = vshrl.u32 %v6403_v39, 5  ;;  %v6406_v8 = vsub.s32 32, %v6405_v28 }
 0x5da   :  { %v6262_v21 = vor.u32 4788187, %v6261_v47  ;;  %v6265_v27 = vcvt.s32.f32 %v6258_v59  ;;  %6864 = vst [vmem:[#allocation5 + $0x1c8] sm:$0xff] %v6182_v25  ;;  %v6495_v31 = vand.u32 2147483647, %v13036_v34  ;;  %v6499_v30 = vshrl.u32 %v6498_v19, 23 }
 0x5db   :  { %v6350_v11 = vshll.u32 %v13073_v56, 30  ;;  %v6408_v62 = vshll.u32 %v7717_v36, %v6405_v28  ;;  %v6411_v58 = vshll.u32 %v7718_v38, %v6405_v28  ;;  %v6409_v60 = vshrl.u32 %v7718_v38, %v6406_v8 }
 0x5dc   :  { %v6263_v20 = vand.u32 2147483647, %v6262_v21  ;;  %v6412_v16 = vshrl.u32 %v7719_v40, %v6406_v8  ;;  %v6414_v23 = vshll.u32 %v7719_v40, %v6405_v28  ;;  %v6415_v61 = vshrl.u32 %v7720_v42, %v6406_v8 }
 0x5dd   :  { %v13083_v5 = vsub.s32 %v6347_v14, %v6350_v11  ;;  %v6417_v0 = vshll.u32 %v7720_v42, %v6405_v28  ;;  %v6418_v53 = vshrl.u32 %v7721_v44, %v6406_v8  ;;  %v13087_v29 = vand.u32 3, %v6276_v55 }
 0x5de   :  { %v6266_v46 = vmul.f32 %v6265_v27, %v6263_v20  ;;  %v13089_v18 = vshll.u32 %v6399_v63, 8  ;;  %v7132_v22 = vadd.s32 4294967169, %v6499_v30  ;;  %v13093_v49 = vand.u32 8388607, %v6495_v31 }
 0x5df   :  { %v6353_v10 = vsub.s32 0, %v13083_v5  ;;  %v6407_v1 = vshrl.u32 %v7717_v36, %v6406_v8  ;;  %v6410_v41 = vor.u32 %v6409_v60, %v6408_v62  ;;  %v6413_v4 = vor.u32 %v6412_v16, %v6411_v58 }
 0x5e0   :  { %v6267_v6 = vxor.u32 2147483648, %v6266_v46  ;;  %v6416_v33 = vor.u32 %v6415_v61, %v6414_v23  ;;  %v6420_v37 = vshll.u32 %v7721_v44, %v6405_v28  ;;  %v6421_v7 = vshrl.u32 %v7722_v52, %v6406_v8 }
 0x5e1   :  { %v7125_v32 = vmin.u32 %v6353_v10, %v13083_v5  ;;  %v6419_v45 = vor.u32 %v6418_v53, %v6417_v0  ;;  %vm6423_vm2 = vcmp.lt.s32.totalorder %v6404_v13, 1  ;;  %vm6426_vm3 = vcmp.lt.s32.totalorder %v6404_v13, 4 }
 0x5e2   :  { %v6268_v17 = vsel %vm6185_vm10, %v6267_v6, %v6266_v46  ;;  %v6422_v43 = vor.u32 %v6421_v7, %v6420_v37  ;;  %v6505_v9 = vadd.s32 1, %v7132_v22  ;;  %vm6424_vm4 = vcmp.lt.s32.totalorder %v6404_v13, 2 }
 0x5e3   :  { %v6271_v26 = vsel %vm13048_vm11, %v12820_v51, %v6268_v17  ;;  %v6355_v14 = vclz %v7125_v32  ;;  %vm6425_vm5 = vcmp.lt.s32.totalorder %v6404_v13, 3  ;;  %v6427_v50 = vsel %vm6423_vm2, %v6407_v1, %v6410_v41 }
 0x5e4   :  { %7642 = vcosq.f32 %v6271_v26  ;;  %v6428_v39 = vsel %vm6426_vm3, %v6416_v33, 2102212464  ;;  %v6431_v19 = vsel %vm6423_vm2, %v6410_v41, %v6413_v4  ;;  %v6432_v48 = vsel %vm6426_vm3, %v6419_v45, 920167782 }
 0x5e5   :  { %7644 = vsinq.f32 %v6271_v26  ;;  %v7126_v35 = vadd.s32 4294967294, %v6355_v14  ;;  %v6429_v59 = vsel %vm6425_vm5, %v6413_v4, %v6428_v39  ;;  %v6435_v47 = vsel %vm6423_vm2, %v6413_v4, %v6416_v33 }
 0x5e6   :  { %vm6279_vm6 = vcmp.eq.s32.totalorder %v13087_v29, 0  ;;  %v6343_v3 = vadd.s32 %v13022_v57, %v13044_v12  ;;  %v6433_v25 = vsel %vm6425_vm5, %v6416_v33, %v6432_v48  ;;  %v6436_v55 = vsel %vm6426_vm3, %v6422_v43, 1326507024 }
 0x5e7   :  { %vm6506_vm7 = vcmp.gt.s32.totalorder %v6505_v9, 0  ;;  %vm6278_vm8 = vcmp.lt.s32.totalorder %v13087_v29, 2  ;;  %vm7127_vm9 = vcmp.lt.s32.totalorder %v7126_v35, 0  ;;  %v6430_v28 = vsel %vm6424_vm4, %v6427_v50, %v6429_v59 }
 0x5e8   :  { %v6434_v21 = vsel %vm6424_vm4, %v6431_v19, %v6433_v25  ;;  %v6437_v27 = vsel %vm6425_vm5, %v6419_v45, %v6436_v55  ;;  %vm6275_vm10 = vweird.f32 %v12820_v51  ;;  %v6358_v63 = vsel %vm7127_vm9, 0, %v7126_v35 }
 0x5e9   :  { %v6438_v8 = vsel %vm6424_vm4, %v6435_v47, %v6437_v27  ;;  %v13123_v57 = vmul.u32.u64.low %v13089_v18, %v6434_v21  ;;  %v13124_v12 = vmul.u32.u64.high %v13089_v18, %v6434_v21, %v13123_v57  ;;  %vm6289_vm11 = vcmp.lt.s32.totalorder %v12854_v15, 0 }
 0x5ea   :  { %v6359_v30 = vsub.s32 32, %v6358_v63  ;;  %v6360_v20 = vshll.u32 %v13083_v5, %v6358_v63  ;;  %v6363_v11 = vsub.s32 4294967266, %v6358_v63  ;;  %v6507_v62 = vsel %vm6506_vm7, %v6505_v9, 0 }
 0x5eb   :  { %vm6282_vm12 = vcmp.eq.s32.totalorder %v13087_v29, 2  ;;  %v13131_v58 = vmul.u32.u64.low %v13089_v18, %v6438_v8  ;;  %v13132_v60 = vmul.u32.u64.high %v13089_v18, %v6438_v8, %v13131_v58  ;;  %v6509_v13 = vand.u32 31, %v6507_v62  ;;  %v85_v29 = vld [vmem:[#allocation2 + $0x1f0] sm:$0xff] }
 0x5ec   :  { %v6361_v16 = vshrl.u32 %v6343_v3, %v6359_v30  ;;  %v6364_v23 = vadd.s32 127, %v6363_v11  ;;  %v6373_v61 = vsub.s32 4, %v13073_v56  ;;  %v6503_v46 = vor.u32 8388608, %v13093_v49 }
 0x5ed   :  { %v6446_v0 = vmul.u32 %v13089_v18, %v6430_v28  ;;  %v6449_v53 = vadd.s32 1, %v13124_v12  ;;  %v13138_v5 = vshrl.u32 %v6507_v62, 5  ;;  %v6510_v22 = vsub.s32 32, %v6509_v13 }
 0x5ee   :  { %v7643_v6 = vpop.eup %7642  ;;  %vm13142_vm13 = vcmp.le.f32.partialorder %v6287_v54, 0.7853982  ;;  %v6362_v1 = vor.u32 %v6361_v16, %v6360_v20  ;;  %v6365_v41 = vshll.u32 %v6364_v23, 23  ;;  %v6512_v4 = vshll.u32 %v7717_v36, %v6509_v13 }
 0x5ef   :  { %v6515_v49 = vshll.u32 %v7718_v38, %v6509_v13  ;;  %v7645_v33 = vpop.eup %7644  ;;  %v6283_v18 = vxor.u32 2147483648, %v7643_v6  ;;  %vm6448_vm14 = vc.u32 %v13132_v60, %v13123_v57  ;;  %v6518_v37 = vshll.u32 %v7719_v40, %v6509_v13 }
 0x5f0   :  { %v6521_v7 = vshll.u32 %v7720_v42, %v6509_v13  ;;  %v6280_v17 = vxor.u32 2147483648, %v7645_v33  ;;  %v6366_v54 = vor.u32 4788187, %v6365_v41  ;;  %v6369_v32 = vcvt.s32.f32 %v6362_v1 }
 0x5f1   :  { %v6450_v45 = vsel %vm6448_vm14, %v6449_v53, %v13124_v12  ;;  %v6284_v26 = vsel %vm6282_vm12, %v6283_v18, %v7645_v33  ;;  %v6513_v9 = vshrl.u32 %v7718_v38, %v6510_v22  ;;  %v6516_v14 = vshrl.u32 %v7719_v40, %v6510_v22 }
 0x5f2   :  { %v6451_v43 = vadd.s32 %v6450_v45, %v6446_v0  ;;  %v6281_v50 = vsel %vm6279_vm6, %v7643_v6, %v6280_v17  ;;  %v6367_v39 = vand.u32 2147483647, %v6366_v54  ;;  %v6519_v19 = vshrl.u32 %v7720_v42, %v6510_v22 }
 0x5f3   :  { %v6522_v35 = vshrl.u32 %v7721_v44, %v6510_v22  ;;  %v6285_v59 = vsel %vm6278_vm8, %v6281_v50, %v6284_v26  ;;  %v6374_v48 = vsel %vm6289_vm11, %v6373_v61, %v13073_v56  ;;  %v6514_v3 = vor.u32 %v6513_v9, %v6512_v4  ;;  %v86_v4 = vld [vmem:[#allocation2 + $0x1f8] sm:$0xff] }
 0x5f4   :  { %v6452_v47 = vadd.s32 536870912, %v6451_v43  ;;  %v6286_v25 = vsel %vm6275_vm10, nan, %v6285_v59  ;;  %v6370_v55 = vmul.f32 %v6369_v32, %v6367_v39  ;;  %v6517_v28 = vor.u32 %v6516_v14, %v6515_v49 }
 0x5f5   :  { %v6523_v21 = vor.u32 %v6522_v35, %v6521_v7  ;;  %v6524_v63 = vshll.u32 %v7721_v44, %v6509_v13  ;;  %v6525_v8 = vshrl.u32 %v7722_v52, %v6510_v22  ;;  %vm6527_vm15 = vcmp.lt.s32.totalorder %v13138_v5, 1  ;;  %6865 = vst [vmem:[#allocation5 + $0x1d0] sm:$0xff] %v6286_v25 }
 0x5f6   :  { %v6453_v27 = vshrl.u32 %v6452_v47, 30  ;;  %v6371_v12 = vxor.u32 2147483648, %v6370_v55  ;;  %v6520_v30 = vor.u32 %v6519_v19, %v6518_v37  ;;  %vm6530_vm0 = vcmp.lt.s32.totalorder %v13138_v5, 4 }
 0x5f7   :  { %v13172_v56 = vshll.u32 %v6503_v46, 8  ;;  %v6376_v51 = vsel %vm13142_vm13, 0, %v6374_v48  ;;  %vm6528_vm1 = vcmp.lt.s32.totalorder %v13138_v5, 2  ;;  %vm6529_vm2 = vcmp.lt.s32.totalorder %v13138_v5, 3 }
 0x5f8   :  { %v6454_v20 = vshll.u32 %v6453_v27, 30  ;;  %v6372_v11 = vsel %vm6289_vm11, %v6371_v12, %v6370_v55  ;;  %v6526_v62 = vor.u32 %v6525_v8, %v6524_v63  ;;  %v6535_v58 = vsel %vm6527_vm15, %v6514_v3, %v6517_v28 }
 0x5f9   :  { %v6536_v13 = vsel %vm6530_vm0, %v6523_v21, 920167782  ;;  %v13184_v16 = vmul.f32 30.0, %v85_v29  ;;  %v6375_v23 = vsel %vm13142_vm13, %v12854_v15, %v6372_v11  ;;  %v6511_v46 = vshrl.u32 %v7717_v36, %v6510_v22 }
 0x5fa   :  { %v13189_v61 = vsub.s32 %v6451_v43, %v6454_v20  ;;  %7646 = vcosq.f32 %v6375_v23  ;;  %v6380_v0 = vadd.s32 3, %v6376_v51  ;;  %v6532_v53 = vsel %vm6530_vm0, %v6520_v30, 2102212464 }
 0x5fb   :  { %v6537_v6 = vsel %vm6529_vm2, %v6520_v30, %v6536_v13  ;;  %7648 = vsinq.f32 %v6375_v23  ;;  %v6477_v41 = vsub.s32 4, %v6453_v27  ;;  %v6539_v49 = vsel %vm6527_vm15, %v6517_v28, %v6520_v30 }
 0x5fc   :  { %v6457_v1 = vsub.s32 0, %v13189_v61  ;;  %v6538_v10 = vsel %vm6528_vm1, %v6535_v58, %v6537_v6  ;;  %v6540_v22 = vsel %vm6530_vm0, %v6526_v62, 1326507024  ;;  %v6531_v7 = vsel %vm6527_vm15, %v6511_v46, %v6514_v3 }
 0x5fd   :  { %v13204_v33 = vmul.u32.u64.low %v13172_v56, %v6538_v10  ;;  %v13205_v18 = vmul.u32.u64.high %v13172_v56, %v6538_v10, %v13204_v33  ;;  %v6533_v17 = vsel %vm6529_vm2, %v6517_v28, %v6532_v53  ;;  %v6541_v54 = vsel %vm6529_vm2, %v6523_v21, %v6540_v22 }
 0x5fe   :  { %v7129_v37 = vmin.u32 %v6457_v1, %v13189_v61  ;;  %v6381_v32 = vand.u32 3, %v6380_v0  ;;  %v6542_v45 = vsel %vm6528_vm1, %v6539_v49, %v6541_v54  ;;  %v6602_v26 = vand.u32 2139095040, %v13184_v16 }
 0x5ff   :  { %v13218_v43 = vmul.f32 30.0, %v86_v4  ;;  %vm6379_vm3 = vweird.f32 %v12854_v15  ;;  %vm6393_vm4 = vcmp.lt.s32.totalorder %v13002_v24, 0  ;;  %v6534_v14 = vsel %vm6528_vm1, %v6531_v7, %v6533_v17 }
 0x600   :  { %v6459_v9 = vclz %v7129_v37  ;;  %v13225_v50 = vmul.u32.u64.low %v13172_v56, %v6542_v45  ;;  %v13226_v39 = vmul.u32.u64.high %v13172_v56, %v6542_v45, %v13225_v50  ;;  %v6603_v19 = vshrl.u32 %v6602_v26, 23 }
 0x601   :  { %vm13230_vm5 = vcmp.le.f32.partialorder %v6391_v2, 0.7853982  ;;  %v6478_v48 = vsel %vm6393_vm4, %v6477_v41, %v6453_v27  ;;  %v6599_v47 = vand.u32 2147483647, %v13184_v16  ;;  %vm6382_vm6 = vcmp.lt.s32.totalorder %v6381_v32, 2 }
 0x602   :  { %v7130_v59 = vadd.s32 4294967294, %v6459_v9  ;;  %vm6383_vm7 = vcmp.eq.s32.totalorder %v6381_v32, 0  ;;  %v6553_v5 = vadd.s32 1, %v13205_v18  ;;  %v7136_v3 = vadd.s32 4294967169, %v6603_v19 }
 0x603   :  { %vm6386_vm8 = vcmp.eq.s32.totalorder %v6381_v32, 2  ;;  %v6447_v25 = vadd.s32 %v13123_v57, %v13132_v60  ;;  %v6550_v2 = vmul.u32 %v13172_v56, %v6534_v14  ;;  %v6480_v21 = vsel %vm13230_vm5, 0, %v6478_v48 }
 0x604   :  { %vm7131_vm9 = vcmp.lt.s32.totalorder %v7130_v59, 0  ;;  %v7647_v55 = vpop.eup %7646  ;;  %vm6552_vm10 = vc.u32 %v13226_v39, %v13204_v33  ;;  %v6609_v27 = vadd.s32 1, %v7136_v3  ;;  %v6606_v60 = vand.u32 8388607, %v6599_v47 }
 0x605   :  { %v6462_v28 = vsel %vm7131_vm9, 0, %v7130_v59  ;;  %v7649_v63 = vpop.eup %7648  ;;  %v6387_v8 = vxor.u32 2147483648, %v7647_v55  ;;  %v6554_v57 = vsel %vm6552_vm10, %v6553_v5, %v13205_v18  ;;  %v6706_v23 = vand.u32 2139095040, %v13218_v43 }
 0x606   :  { %v6463_v29 = vsub.s32 32, %v6462_v28  ;;  %v6464_v12 = vshll.u32 %v13189_v61, %v6462_v28  ;;  %v6467_v30 = vsub.s32 4294967266, %v6462_v28  ;;  %v6384_v51 = vxor.u32 2147483648, %v7649_v63 }
 0x607   :  { %vm6610_vm11 = vcmp.gt.s32.totalorder %v6609_v27, 0  ;;  %v6388_v56 = vsel %vm6386_vm8, %v6387_v8, %v7649_v63  ;;  %v6555_v62 = vadd.s32 %v6554_v57, %v6550_v2  ;;  %v6484_v1 = vadd.s32 3, %v6480_v21 }
 0x608   :  { %v6465_v20 = vshrl.u32 %v6447_v25, %v6463_v29  ;;  %v6468_v11 = vadd.s32 127, %v6467_v30  ;;  %v6385_v58 = vsel %vm6383_vm7, %v7647_v55, %v6384_v51  ;;  %v6611_v13 = vsel %vm6610_vm11, %v6609_v27, 0 }
 0x609   :  { %v6389_v61 = vsel %vm6382_vm6, %v6385_v58, %v6388_v56  ;;  %v6556_v53 = vadd.s32 536870912, %v6555_v62  ;;  %v6613_v41 = vand.u32 31, %v6611_v13  ;;  %v6607_v22 = vor.u32 8388608, %v6606_v60 }
 0x60a   :  { %v6466_v46 = vor.u32 %v6465_v20, %v6464_v12  ;;  %v6469_v0 = vshll.u32 %v6468_v11, 23  ;;  %v6390_v6 = vsel %vm6379_vm3, nan, %v6389_v61  ;;  %v6612_v18 = vshrl.u32 %v6611_v13, 5 }
 0x60b   :  { %v13255_v49 = vshrl.u32 %v6556_v53, 30  ;;  %6866 = vst [vmem:[#allocation5 + $0x1d8] sm:$0xff] %v6390_v6  ;;  %v6614_v37 = vsub.s32 32, %v6613_v41  ;;  %v6703_v7 = vand.u32 2147483647, %v13218_v43  ;;  %v6707_v17 = vshrl.u32 %v6706_v23, 23 }
 0x60c   :  { %v6470_v10 = vor.u32 4788187, %v6469_v0  ;;  %v6473_v4 = vcvt.s32.f32 %v6466_v46  ;;  %v6616_v45 = vshll.u32 %v7717_v36, %v6613_v41  ;;  %v6619_v15 = vshll.u32 %v7718_v38, %v6613_v41 }
 0x60d   :  { %v6558_v32 = vshll.u32 %v13255_v49, 30  ;;  %v6617_v26 = vshrl.u32 %v7718_v38, %v6614_v37  ;;  %v6620_v9 = vshrl.u32 %v7719_v40, %v6614_v37  ;;  %v6622_v14 = vshll.u32 %v7719_v40, %v6613_v41 }
 0x60e   :  { %v6471_v54 = vand.u32 2147483647, %v6470_v10  ;;  %v6623_v50 = vshrl.u32 %v7720_v42, %v6614_v37  ;;  %v6625_v48 = vshll.u32 %v7720_v42, %v6613_v41  ;;  %v6626_v5 = vshrl.u32 %v7721_v44, %v6614_v37 }
 0x60f   :  { %v13265_v59 = vsub.s32 %v6555_v62, %v6558_v32  ;;  %v13269_v3 = vand.u32 3, %v6484_v1  ;;  %v13271_v25 = vshll.u32 %v6607_v22, 8  ;;  %v7140_v2 = vadd.s32 4294967169, %v6707_v17 }
 0x610   :  { %v6474_v19 = vmul.f32 %v6473_v4, %v6471_v54  ;;  %v13275_v55 = vand.u32 8388607, %v6703_v7  ;;  %v6615_v27 = vshrl.u32 %v7717_v36, %v6614_v37  ;;  %v6618_v63 = vor.u32 %v6617_v26, %v6616_v45 }
 0x611   :  { %v6561_v21 = vsub.s32 0, %v13265_v59  ;;  %v6621_v8 = vor.u32 %v6620_v9, %v6619_v15  ;;  %v6624_v29 = vor.u32 %v6623_v50, %v6622_v14  ;;  %v6628_v12 = vshll.u32 %v7721_v44, %v6613_v41 }
 0x612   :  { %v6475_v28 = vxor.u32 2147483648, %v6474_v19  ;;  %v6629_v30 = vshrl.u32 %v7722_v52, %v6614_v37  ;;  %v6627_v60 = vor.u32 %v6626_v5, %v6625_v48  ;;  %vm6631_vm12 = vcmp.lt.s32.totalorder %v6612_v18, 1 }
 0x613   :  { %v7133_v57 = vmin.u32 %v6561_v21, %v13265_v59  ;;  %vm6634_vm13 = vcmp.lt.s32.totalorder %v6612_v18, 4  ;;  %v6713_v11 = vadd.s32 1, %v7140_v2  ;;  %vm6632_vm14 = vcmp.lt.s32.totalorder %v6612_v18, 2 }
 0x614   :  { %v6476_v51 = vsel %vm6393_vm4, %v6475_v28, %v6474_v19  ;;  %v6630_v20 = vor.u32 %v6629_v30, %v6628_v12  ;;  %vm6633_vm15 = vcmp.lt.s32.totalorder %v6612_v18, 3  ;;  %v6635_v58 = vsel %vm6631_vm12, %v6615_v27, %v6618_v63 }
 0x615   :  { %v6479_v56 = vsel %vm13230_vm5, %v13002_v24, %v6476_v51  ;;  %v6563_v62 = vclz %v7133_v57  ;;  %v6636_v13 = vsel %vm6634_vm13, %v6624_v29, 2102212464  ;;  %v6639_v23 = vsel %vm6631_vm12, %v6618_v63, %v6621_v8 }
 0x616   :  { %7650 = vcosq.f32 %v6479_v56  ;;  %v6637_v46 = vsel %vm6633_vm15, %v6621_v8, %v6636_v13  ;;  %v6640_v35 = vsel %vm6634_vm13, %v6627_v60, 920167782  ;;  %v6643_v0 = vsel %vm6631_vm12, %v6621_v8, %v6624_v29 }
 0x617   :  { %7652 = vsinq.f32 %v6479_v56  ;;  %v7134_v61 = vadd.s32 4294967294, %v6563_v62  ;;  %vm6487_vm0 = vcmp.eq.s32.totalorder %v13269_v3, 0  ;;  %v6551_v53 = vadd.s32 %v13204_v33, %v13226_v39 }
 0x618   :  { %v6641_v6 = vsel %vm6633_vm15, %v6624_v29, %v6640_v35  ;;  %v6644_v1 = vsel %vm6634_vm13, %v6630_v20, 1326507024  ;;  %vm6714_vm1 = vcmp.gt.s32.totalorder %v6713_v11, 0  ;;  %vm6486_vm2 = vcmp.lt.s32.totalorder %v13269_v3, 2 }
 0x619   :  { %vm7135_vm3 = vcmp.lt.s32.totalorder %v7134_v61, 0  ;;  %v6638_v41 = vsel %vm6632_vm14, %v6635_v58, %v6637_v46  ;;  %v6642_v10 = vsel %vm6632_vm14, %v6639_v23, %v6641_v6  ;;  %v6645_v4 = vsel %vm6633_vm15, %v6627_v60, %v6644_v1 }
 0x61a   :  { %vm6483_vm4 = vweird.f32 %v13002_v24  ;;  %v6566_v22 = vsel %vm7135_vm3, 0, %v7134_v61  ;;  %v6646_v37 = vsel %vm6632_vm14, %v6643_v0, %v6645_v4  ;;  %vm6497_vm5 = vcmp.lt.s32.totalorder %v13036_v34, 0 }
 0x61b   :  { %v13305_v33 = vmul.u32.u64.low %v13271_v25, %v6642_v10  ;;  %v13306_v39 = vmul.u32.u64.high %v13271_v25, %v6642_v10, %v13305_v33  ;;  %v6567_v17 = vsub.s32 32, %v6566_v22  ;;  %v6568_v54 = vshll.u32 %v13265_v59, %v6566_v22 }
 0x61c   :  { %v6571_v32 = vsub.s32 4294967266, %v6566_v22  ;;  %v6715_v45 = vsel %vm6714_vm1, %v6713_v11, 0  ;;  %vm6490_vm6 = vcmp.eq.s32.totalorder %v13269_v3, 2  ;;  %v6581_v50 = vsub.s32 4, %v13255_v49 }
 0x61d   :  { %v13313_v15 = vmul.u32.u64.low %v13271_v25, %v6646_v37  ;;  %v13314_v26 = vmul.u32.u64.high %v13271_v25, %v6646_v37, %v13313_v15  ;;  %v6717_v18 = vand.u32 31, %v6715_v45  ;;  %v6569_v9 = vshrl.u32 %v6551_v53, %v6567_v17 }
 0x61e   :  { %v6572_v14 = vadd.s32 127, %v6571_v32  ;;  %v6711_v19 = vor.u32 8388608, %v13275_v55  ;;  %v6654_v48 = vmul.u32 %v13271_v25, %v6638_v41  ;;  %v6657_v5 = vadd.s32 1, %v13306_v39 }
 0x61f   :  { %v13320_v59 = vshrl.u32 %v6715_v45, 5  ;;  %v6718_v2 = vsub.s32 32, %v6717_v18  ;;  %vm13324_vm7 = vcmp.le.f32.partialorder %v6495_v31, 0.7853982  ;;  %v6570_v27 = vor.u32 %v6569_v9, %v6568_v54 }
 0x620   :  { %v7651_v28 = vpop.eup %7650  ;;  %v6573_v63 = vshll.u32 %v6572_v14, 23  ;;  %v6720_v8 = vshll.u32 %v7717_v36, %v6717_v18  ;;  %v6723_v55 = vshll.u32 %v7718_v38, %v6717_v18  ;;  %vm6656_vm8 = vc.u32 %v13314_v26, %v13305_v33 }
 0x621   :  { %v7653_v29 = vpop.eup %7652  ;;  %v6491_v25 = vxor.u32 2147483648, %v7651_v28  ;;  %v6726_v12 = vshll.u32 %v7719_v40, %v6717_v18  ;;  %v6729_v30 = vshll.u32 %v7720_v42, %v6717_v18  ;;  %v6577_v57 = vcvt.s32.f32 %v6570_v27 }
 0x622   :  { %v6488_v51 = vxor.u32 2147483648, %v7653_v29  ;;  %v6574_v31 = vor.u32 4788187, %v6573_v63  ;;  %v6658_v60 = vsel %vm6656_vm8, %v6657_v5, %v13306_v39  ;;  %v6721_v11 = vshrl.u32 %v7718_v38, %v6718_v2 }
 0x623   :  { %v6492_v56 = vsel %vm6490_vm6, %v6491_v25, %v7653_v29  ;;  %v6659_v20 = vadd.s32 %v6658_v60, %v6654_v48  ;;  %v6724_v62 = vshrl.u32 %v7719_v40, %v6718_v2  ;;  %v6727_v23 = vshrl.u32 %v7720_v42, %v6718_v2 }
 0x624   :  { %v6489_v58 = vsel %vm6487_vm0, %v7651_v28, %v6488_v51  ;;  %v6575_v13 = vand.u32 2147483647, %v6574_v31  ;;  %v6730_v61 = vshrl.u32 %v7721_v44, %v6718_v2  ;;  %v6582_v35 = vsel %vm6497_vm5, %v6581_v50, %v13255_v49 }
 0x625   :  { %v6493_v46 = vsel %vm6486_vm2, %v6489_v58, %v6492_v56  ;;  %v6660_v0 = vadd.s32 536870912, %v6659_v20  ;;  %v6722_v53 = vor.u32 %v6721_v11, %v6720_v8  ;;  %v6725_v6 = vor.u32 %v6724_v62, %v6723_v55 }
 0x626   :  { %v6494_v38 = vsel %vm6483_vm4, nan, %v6493_v46  ;;  %v6578_v40 = vmul.f32 %v6577_v57, %v6575_v13  ;;  %v6731_v1 = vor.u32 %v6730_v61, %v6729_v30  ;;  %v6732_v42 = vshll.u32 %v7721_v44, %v6717_v18 }
 0x627   :  { %v13350_v41 = vshrl.u32 %v6660_v0, 30  ;;  %v6733_v10 = vshrl.u32 %v7722_v52, %v6718_v2  ;;  %vm6735_vm9 = vcmp.lt.s32.totalorder %v13320_v59, 1  ;;  %6867 = vst [vmem:[#allocation5 + $0x1e0] sm:$0xff] %v6494_v38  ;;  %v6728_v4 = vor.u32 %v6727_v23, %v6726_v12 }
 0x628   :  { %v6579_v3 = vxor.u32 2147483648, %v6578_v40  ;;  %vm6738_vm10 = vcmp.lt.s32.totalorder %v13320_v59, 4  ;;  %v6751_v49 = vshll.u32 %v6711_v19, 8  ;;  %v6584_v24 = vsel %vm13324_vm7, 0, %v6582_v35 }
 0x629   :  { %v6662_v22 = vshll.u32 %v13350_v41, 30  ;;  %vm6736_vm11 = vcmp.lt.s32.totalorder %v13320_v59, 2  ;;  %vm6737_vm12 = vcmp.lt.s32.totalorder %v13320_v59, 3  ;;  %v6734_v52 = vor.u32 %v6733_v10, %v6732_v42 }
 0x62a   :  { %v6580_v44 = vsel %vm6497_vm5, %v6579_v3, %v6578_v40  ;;  %v6743_v37 = vsel %vm6735_vm9, %v6722_v53, %v6725_v6  ;;  %v6744_v39 = vsel %vm6738_vm10, %v6731_v1, 920167782  ;;  %v6719_v32 = vshrl.u32 %v7717_v36, %v6718_v2 }
 0x62b   :  { %v6583_v17 = vsel %vm13324_vm7, %v13036_v34, %v6580_v44  ;;  %v6663_v54 = vsub.s32 %v6659_v20, %v6662_v22  ;;  %v6740_v45 = vsel %vm6738_vm10, %v6728_v4, 2102212464  ;;  %v6745_v15 = vsel %vm6737_vm12, %v6728_v4, %v6744_v39 }
 0x62c   :  { %7654 = vcosq.f32 %v6583_v17  ;;  %v6588_v18 = vadd.s32 3, %v6584_v24  ;;  %v6746_v14 = vsel %vm6736_vm11, %v6743_v37, %v6745_v15  ;;  %v6747_v50 = vsel %vm6735_vm9, %v6725_v6, %v6728_v4 }
 0x62d   :  { %7656 = vsinq.f32 %v6583_v17  ;;  %v6665_v9 = vsub.s32 0, %v6663_v54  ;;  %v6748_v19 = vsel %vm6738_vm10, %v6734_v52, 1326507024  ;;  %v6739_v2 = vsel %vm6735_vm9, %v6719_v32, %v6722_v53 }
 0x62e   :  { %v13381_v36 = vmul.u32.u64.low %v6751_v49, %v6746_v14  ;;  %v13382_v48 = vmul.u32.u64.high %v6751_v49, %v6746_v14, %v13381_v36  ;;  %v6741_v28 = vsel %vm6737_vm12, %v6725_v6, %v6740_v45  ;;  %v6749_v21 = vsel %vm6737_vm12, %v6731_v1, %v6748_v19 }
 0x62f   :  { %v7137_v5 = vmin.u32 %v6665_v9, %v6663_v54  ;;  %v6750_v27 = vsel %vm6736_vm11, %v6747_v50, %v6749_v21  ;;  %v6589_v8 = vand.u32 3, %v6588_v18  ;;  %v6742_v55 = vsel %vm6736_vm11, %v6739_v2, %v6741_v28 }
 0x630   :  { %v13395_v29 = vmul.u32.u64.low %v6751_v49, %v6750_v27  ;;  %v13396_v25 = vmul.u32.u64.high %v6751_v49, %v6750_v27, %v13395_v29  ;;  %v6761_v30 = vadd.s32 1, %v13382_v48  ;;  %v6655_v51 = vadd.s32 %v13305_v33, %v13314_v26 }
 0x631   :  { %v6667_v63 = vclz %v7137_v5  ;;  %v6758_v31 = vmul.u32 %v6751_v49, %v6742_v55  ;;  %vm6591_vm14 = vcmp.eq.s32.totalorder %v6589_v8, 0  ;;  %vm6594_vm15 = vcmp.eq.s32.totalorder %v6589_v8, 2 }
 0x632   :  { %vm6760_vm0 = vc.u32 %v13396_v25, %v13381_v36  ;;  %vm6587_vm1 = vweird.f32 %v13036_v34  ;;  %vm6590_vm2 = vcmp.lt.s32.totalorder %v6589_v8, 2  ;;  %v6685_v10 = vsub.s32 4, %v13350_v41 }
 0x633   :  { %v7138_v12 = vadd.s32 4294967294, %v6667_v63  ;;  %v6762_v33 = vsel %vm6760_vm0, %v6761_v30, %v13382_v48  ;;  %vm6601_vm3 = vcmp.lt.s32.totalorder %v13184_v16, 0  ;;  %vm6600_vm4 = vcmp.le.f32.partialorder %v6599_v47, 0.7853982 }
 0x634   :  { %v6763_v61 = vadd.s32 %v6762_v33, %v6758_v31  ;;  %v6686_v22 = vsel %vm6601_vm3, %v6685_v10, %v13350_v41  ;;  %v6759_v15 = vadd.s32 %v13381_v36, %v13396_v25  ;;  %vm6691_vm9 = vweird.f32 %v13184_v16 }
 0x635   :  { %vm7139_vm13 = vcmp.lt.s32.totalorder %v7138_v12, 0  ;;  %v6688_v17 = vsel %vm6600_vm4, 0, %v6686_v22  ;;  %vm6705_vm10 = vcmp.lt.s32.totalorder %v13218_v43, 0  ;;  %vm6704_vm11 = vcmp.le.f32.partialorder %v6703_v7, 0.7853982 }
 0x636   :  { %v7655_v57 = vpop.eup %7654  ;;  %v6670_v60 = vsel %vm7139_vm13, 0, %v7138_v12  ;;  %v6764_v38 = vadd.s32 536870912, %v6763_v61  ;;  %v6692_v32 = vadd.s32 3, %v6688_v17 }
 0x637   :  { %v7657_v59 = vpop.eup %7656  ;;  %v6595_v56 = vxor.u32 2147483648, %v7655_v57  ;;  %v6671_v20 = vsub.s32 32, %v6670_v60  ;;  %v6672_v11 = vshll.u32 %v6663_v54, %v6670_v60  ;;  %v6675_v62 = vsub.s32 4294967266, %v6670_v60 }
 0x638   :  { %v6592_v58 = vxor.u32 2147483648, %v7657_v59  ;;  %v6765_v42 = vshrl.u32 %v6764_v38, 30  ;;  %v6693_v47 = vand.u32 3, %v6692_v32 }
 0x639   :  { %v6596_v26 = vsel %vm6594_vm15, %v6595_v56, %v7657_v59  ;;  %v6673_v13 = vshrl.u32 %v6655_v51, %v6671_v20  ;;  %v6676_v23 = vadd.s32 127, %v6675_v62  ;;  %vm6795_vm15 = vweird.f32 %v13218_v43 }
 0x63a   :  { %v6593_v46 = vsel %vm6591_vm14, %v7655_v57, %v6592_v58  ;;  %v6766_v3 = vshll.u32 %v6765_v42, 30  ;;  %vm6698_vm6 = vcmp.eq.s32.totalorder %v6693_v47, 2  ;;  %vm6695_vm7 = vcmp.eq.s32.totalorder %v6693_v47, 0 }
 0x63b   :  { %v6597_v35 = vsel %vm6590_vm2, %v6593_v46, %v6596_v26  ;;  %v6674_v0 = vor.u32 %v6673_v13, %v6672_v11  ;;  %v6677_v53 = vshll.u32 %v6676_v23, 23  ;;  %vm6694_vm8 = vcmp.lt.s32.totalorder %v6693_v47, 2 }
 0x63c   :  { %v6598_v40 = vsel %vm6587_vm1, nan, %v6597_v35  ;;  %v6767_v49 = vsub.s32 %v6763_v61, %v6766_v3  ;;  %v6789_v25 = vsub.s32 4, %v6765_v42 }
 0x63d   :  { %v6678_v6 = vor.u32 4788187, %v6677_v53  ;;  %v6681_v1 = vcvt.s32.f32 %v6674_v0  ;;  %6868 = vst [vmem:[#allocation5 + $0x1e8] sm:$0xff] %v6598_v40 }
 0x63e   :  { %v6769_v44 = vsub.s32 0, %v6767_v49  ;;  %v6790_v57 = vsel %vm6705_vm10, %v6789_v25, %v6765_v42 }
 0x63f   :  { %v6679_v34 = vand.u32 2147483647, %v6678_v6  ;;  %v6792_v56 = vsel %vm6704_vm11, 0, %v6790_v57 }
 0x640   :  { %v7141_v37 = vmin.u32 %v6769_v44, %v6767_v49 }
 0x641   :  { %v6682_v4 = vmul.f32 %v6681_v1, %v6679_v34 }
 0x642   :  { %v6771_v54 = vclz %v7141_v37 }
 0x643   :  { %v6683_v24 = vxor.u32 2147483648, %v6682_v4 }
 0x644   :  { %v7142_v45 = vadd.s32 4294967294, %v6771_v54 }
 0x645   :  { %v6684_v52 = vsel %vm6601_vm3, %v6683_v24, %v6682_v4 }
 0x646   :  { %v6687_v39 = vsel %vm6600_vm4, %v13184_v16, %v6684_v52  ;;  %vm7143_vm5 = vcmp.lt.s32.totalorder %v7142_v45, 0  ;;  %v6796_v16 = vadd.s32 3, %v6792_v56 }
 0x647   :  { %7658 = vcosq.f32 %v6687_v39  ;;  %v6774_v18 = vsel %vm7143_vm5, 0, %v7142_v45 }
 0x648   :  { %7660 = vsinq.f32 %v6687_v39  ;;  %v6775_v9 = vsub.s32 32, %v6774_v18  ;;  %v6776_v14 = vshll.u32 %v6767_v49, %v6774_v18  ;;  %v6779_v41 = vsub.s32 4294967266, %v6774_v18 }
 0x649   :  { %v6797_v20 = vand.u32 3, %v6796_v16 }
 0x64a   :  { %v6777_v50 = vshrl.u32 %v6759_v15, %v6775_v9  ;;  %v6780_v19 = vadd.s32 127, %v6779_v41 }
 0x64b   :  { %vm6802_vm12 = vcmp.eq.s32.totalorder %v6797_v20, 2  ;;  %vm6799_vm13 = vcmp.eq.s32.totalorder %v6797_v20, 0  ;;  %vm6798_vm14 = vcmp.lt.s32.totalorder %v6797_v20, 2 }
 0x64c   :  { %v6778_v5 = vor.u32 %v6777_v50, %v6776_v14  ;;  %v6781_v2 = vshll.u32 %v6780_v19, 23 }
 0x64e   :  { %v6782_v63 = vor.u32 4788187, %v6781_v2  ;;  %v6785_v8 = vcvt.s32.f32 %v6778_v5 }
 0x650   :  { %v6783_v29 = vand.u32 2147483647, %v6782_v63 }
 0x651   :  { %v7659_v48 = vpop.eup %7658 }
 0x652   :  { %v7661_v28 = vpop.eup %7660  ;;  %v6699_v21 = vxor.u32 2147483648, %v7659_v48  ;;  %v6786_v51 = vmul.f32 %v6785_v8, %v6783_v29 }
 0x653   :  { %v6696_v27 = vxor.u32 2147483648, %v7661_v28 }
 0x654   :  { %v6700_v36 = vsel %vm6698_vm6, %v6699_v21, %v7661_v28  ;;  %v6787_v31 = vxor.u32 2147483648, %v6786_v51 }
 0x655   :  { %v6697_v55 = vsel %vm6695_vm7, %v7659_v48, %v6696_v27 }
 0x656   :  { %v6701_v12 = vsel %vm6694_vm8, %v6697_v55, %v6700_v36  ;;  %v6788_v60 = vsel %vm6705_vm10, %v6787_v31, %v6786_v51 }
 0x657   :  { %v6702_v30 = vsel %vm6691_vm9, nan, %v6701_v12  ;;  %v6791_v59 = vsel %vm6704_vm11, %v13218_v43, %v6788_v60 }
 0x658   :  { %6869 = vst [vmem:[#allocation5 + $0x1f0] sm:$0xff] %v6702_v30  ;;  %7662 = vcosq.f32 %v6791_v59 }
 0x659   :  { %7664 = vsinq.f32 %v6791_v59 }
 0x662   :  { %v7663_v11 = vpop.eup %7662 }
 0x663   :  { %v7665_v62 = vpop.eup %7664  ;;  %v6803_v58 = vxor.u32 2147483648, %v7663_v11 }
 0x664   :  { %v6800_v33 = vxor.u32 2147483648, %v7665_v62 }
 0x665   :  { %v6804_v7 = vsel %vm6802_vm12, %v6803_v58, %v7665_v62 }
 0x666   :  { %v6801_v26 = vsel %vm6799_vm13, %v7663_v11, %v6800_v33 }
 0x667   :  { %v6805_v13 = vsel %vm6798_vm14, %v6801_v26, %v6804_v7 }
 0x668   :  { %v6806_v23 = vsel %vm6795_vm15, nan, %v6805_v13 }
 0x669   :  { %6870 = vst [vmem:[#allocation5 + $0x1f8] sm:$0xff] %v6806_v23 }
 0x66a   :  { %7699 = shalt.err (!%p7696_p12)
}
 0x66b   :  { %s7700_s24 = scalar_lea.hbm %s13436_s1, 8192 }
 0x66c   :  { %p7701_p13 = scmp.ne.s32.totalorder %s13436_s1, %s7700_s24  ;;  %p7704_p0 = scmp.lt.u32.totalorder %s7700_s24, %s13436_s1 }
 0x66e   :  { %p7706_p1 = pnand %p7704_p0, %p7701_p13 }
 0x670   :  { %7709 = shalt.err (!%p7706_p1)
}
 0x671   :  { %6882 = dma.vmem_to_hbm [thread:$0]  %s6877_s20, 8192, %s13436_s1, [#allocation4], %s7715_s16, %s7715_s16, %s7716_s17  }
 0x672   :  { %7712 = dma.done.wait [#allocation4], 8192  }
 0x673   :  { %7713 = vsyncadd [#allocation4], 4294959104 }
 0x674   :  { %6886 = vsyncpa [#allocation3], 1 }
 0x675   :  { %6887 = vsyncpa [#allocation4], 1 }

</bundles_post_ra>
